<compile_context>
chip_gen: v7x
topology: tpu7x:2x2x1
jax: 0.10.0
libtpu: 0.0.40
codegen_flags: <defaults>
</compile_context>

<pallas_src>
import functools

import jax
import jax.numpy as jnp
from jax.experimental import pallas as pl
from jax.experimental.pallas import tpu as pltpu

LN_EPS = 1e-12


# ----------------------------- in-kernel helpers -----------------------------

def _layernorm(x, g, b):
    mu = jnp.mean(x, axis=-1, keepdims=True)
    var = jnp.mean((x - mu) ** 2, axis=-1, keepdims=True)
    return (x - mu) * jax.lax.rsqrt(var + LN_EPS) * g + b


def _gelu(x):
    # TODO(synk): HF BERT default act is erf-based gelu; tanh approximation used here
    # for TPU-friendly lowering (numerically very close).
    c = jnp.float32(0.7978845608028654)  # sqrt(2/pi)
    return 0.5 * x * (1.0 + jnp.tanh(c * (x + 0.044715 * x * x * x)))


def _fused_mha(x, mask, wqkv, bqkv, num_heads):
    """BertSelfAttention context with a fused QKV projection.

    x:    (T, S, D)  f32 or bf16
    mask: (T, 1, S)  additive f32 mask or None
    wqkv: (D, 3D)    bf16, Q block pre-scaled by 1/sqrt(head_dim)
    bqkv: (1, 3D)    f32,  Q block pre-scaled by 1/sqrt(head_dim)
    Returns the context layer (T, S, D) in f32.
    """
    T, S, D = x.shape
    dh = D // num_heads
    cdt = wqkv.dtype  # matmul operand dtype (bf16)

    qkv = (jnp.einsum('tsd,de->tse', x.astype(cdt), wqkv,
                      preferred_element_type=jnp.float32) + bqkv).astype(cdt)
    q = qkv[:, :, :D]
    k = qkv[:, :, D:2 * D]
    v = qkv[:, :, 2 * D:]

    # Head-major batch layout (num_heads * T, S, dh) so QK^T and PV are each a single
    # batched dot_general (one big MXU op per stage instead of H tiny matmuls).
    def to_heads(a):
        return jnp.concatenate(
            [a[:, :, h * dh:(h + 1) * dh] for h in range(num_heads)], axis=0)

    qh, kh, vh = to_heads(q), to_heads(k), to_heads(v)

    s = jnp.einsum('bqd,bkd->bqk', qh, kh, preferred_element_type=jnp.float32)
    if mask is not None:
        s = s + jnp.concatenate([mask] * num_heads, axis=0)   # (H*T, 1, S) broadcasts over queries

    s = s - jnp.max(s, axis=-1, keepdims=True)
    e = jnp.exp(s)
    p = e * pl.reciprocal(jnp.sum(e, axis=-1, keepdims=True), approx=True)   # EUP, not a VPU divide

    ctx_b = jnp.einsum('bqk,bkd->bqd', p.astype(cdt), vh,
                       preferred_element_type=jnp.float32)                    # (H*T, S, dh)
    return jnp.concatenate(
        [ctx_b[h * T:(h + 1) * T] for h in range(num_heads)], axis=-1)        # (T, S, D)


# -------------------------------- Pallas kernels ------------------------------

def bert_layer_kernel(h_ref, m_ref, gt_ref,
                      wqkv_ref, bqkv_ref, wo_ref, bo_ref, g1_ref, be1_ref,
                      wi_ref, bi_ref, w2_ref, b2_ref, g2_ref, be2_ref,
                      o_ref, *, num_heads):
    """One full BertLayer with the inter-layer station-token update fused in:
         h[:, 0] += gt;  MHA -> dense + LN(residual) -> GELU FFN -> dense + LN(residual)."""
    h = h_ref[...].astype(jnp.float32)            # (T, S, D)
    T, S, D = h.shape

    # Fused station update: hidden[:, 0, :] += gt  (gt is zeros for layer 0).
    seq_pos = jax.lax.broadcasted_iota(jnp.int32, (1, S, 1), 1)
    h = h + jnp.where(seq_pos == 0, gt_ref[...].astype(jnp.float32), 0.0)

    mask = m_ref[...].astype(jnp.float32)         # (T, 1, S) additive
    ctx = _fused_mha(h, mask, wqkv_ref[...], bqkv_ref[...], num_heads)

    attn = jnp.einsum('tsd,de->tse', ctx.astype(wo_ref.dtype), wo_ref[...],
                      preferred_element_type=jnp.float32) + bo_ref[...]
    x1 = _layernorm(attn + h, g1_ref[...], be1_ref[...])

    inter = _gelu(jnp.einsum('tsd,de->tse', x1.astype(wi_ref.dtype), wi_ref[...],
                             preferred_element_type=jnp.float32) + bi_ref[...])
    ffn = jnp.einsum('tsd,de->tse', inter.astype(w2_ref.dtype), w2_ref[...],
                     preferred_element_type=jnp.float32) + b2_ref[...]
    o_ref[...] = _layernorm(ffn + x1, g2_ref[...], be2_ref[...]).astype(o_ref.dtype)


def graph_agg_kernel(x_ref, wqkv_ref, bqkv_ref, wg_ref,
                     feats_ref, gt_ref, *, num_heads):
    """GraphAggregation (BertSelfAttention context, mask=None) fused with
       gt = relu(graph_transform(mean(station, axis=1)));  writes feats (rows 1:) and gt
       directly so the wrapper never slices / scatter-adds full tensors."""
    x = x_ref[...]                                 # (T, 1+F, D)  bf16
    ctx = _fused_mha(x, None, wqkv_ref[...], bqkv_ref[...], num_heads)   # f32

    feats_ref[...] = ctx[:, 1:, :].astype(feats_ref.dtype)               # station_emb[:, 1:]

    mean_ctx = jnp.mean(ctx, axis=1)               # (T, D)  (mean over station + feat rows)
    gt = jnp.maximum(
        jnp.dot(mean_ctx.astype(wg_ref.dtype), wg_ref[...],
                preferred_element_type=jnp.float32), 0.0)
    gt_ref[...] = gt[:, None, :].astype(gt_ref.dtype)


# --------------------------------- wrappers -----------------------------------

def _rep_spec(shape):
    """Full-array block, replicated across the grid (weights; grid-invariant)."""
    return pl.BlockSpec(shape, lambda i, _n=len(shape): (0,) * _n)


def _vmem_limit_bytes(node_tile, S, D, Di, num_heads):
    """Size the scoped-VMEM limit from actual buffers (default is only 16/32 MiB), clamp to
    64 MiB so it never exceeds v7x's physical VMEM while comfortably covering v5e/v6e."""
    f32, mm = 4, 2
    io = 2 * 2 * node_tile * S * D * mm                                  # hidden in + out, double-buffered
    wts = 2 * ((4 * D * D + 2 * D * Di) * mm + (10 * D + Di) * f32)      # double-buffered weight set
    tmp = node_tile * (8 * S * D + 3 * num_heads * S * S + 2 * S * Di) * f32
    need = 2 * (io + wts + tmp)                                          # 2x headroom for compiler temps
    return int(min(max(need, 32 * 1024 * 1024), 64 * 1024 * 1024))


def bert_layer_call(hidden, mask, gt, lp, num_heads, node_tile, vmem_limit):
    N, S, D = hidden.shape
    weights = [lp['wqkv'], lp['bqkv'], lp['wo'], lp['bo'], lp['ln1_g'], lp['ln1_b'],
               lp['wi'], lp['bi'], lp['w2'], lp['b2'], lp['ln2_g'], lp['ln2_b']]
    h_spec = pl.BlockSpec((node_tile, S, D), lambda i: (i, 0, 0))
    m_spec = pl.BlockSpec((node_tile, 1, S), lambda i: (i, 0, 0))
    g_spec = pl.BlockSpec((node_tile, 1, D), lambda i: (i, 0, 0))
    return pl.pallas_call(
        functools.partial(bert_layer_kernel, num_heads=num_heads),
        out_shape=jax.ShapeDtypeStruct((N, S, D), hidden.dtype),
        grid=(pl.cdiv(N, node_tile),),
        in_specs=[h_spec, m_spec, g_spec] + [_rep_spec(w.shape) for w in weights],
        out_specs=h_spec,
        input_output_aliases={0: 0},   # residual folded in-kernel -> old hidden buffer is dead
        compiler_params=pltpu.CompilerParams(
            dimension_semantics=("parallel",),
            vmem_limit_bytes=vmem_limit),
    )(hidden, mask, gt, *weights)


def graph_agg_call(cls_emb, gp, wg, num_heads, node_tile, vmem_limit):
    N, Sg, D = cls_emb.shape
    F = Sg - 1
    weights = [gp['wqkv'], gp['bqkv'], wg]
    x_spec = pl.BlockSpec((node_tile, Sg, D), lambda i: (i, 0, 0))
    f_spec = pl.BlockSpec((node_tile, F, D), lambda i: (i, 0, 0))
    g_spec = pl.BlockSpec((node_tile, 1, D), lambda i: (i, 0, 0))
    feats_new, gt = pl.pallas_call(
        functools.partial(graph_agg_kernel, num_heads=num_heads),
        out_shape=(jax.ShapeDtypeStruct((N, F, D), cls_emb.dtype),
                   jax.ShapeDtypeStruct((N, 1, D), cls_emb.dtype)),
        grid=(pl.cdiv(N, node_tile),),
        in_specs=[x_spec] + [_rep_spec(w.shape) for w in weights],
        out_specs=(f_spec, g_spec),
        compiler_params=pltpu.CompilerParams(
            dimension_semantics=("parallel",),
            vmem_limit_bytes=vmem_limit),
    )(cls_emb, *weights)
    return feats_new, gt


def graph_bert_encoder_forward(hidden, attention_mask, feats, params, *,
                               num_heads, node_tile):
    """Functional equivalent of GraphBertEncoder.forward (output_hidden_states=False,
    output_attentions=False, dropout in eval mode)."""
    N, S, D = hidden.shape
    Di = params['layers'][0]['wi'].shape[1]
    vmem_limit = _vmem_limit_bytes(node_tile, S, D, Di, num_heads)

    zero_gt = jnp.zeros((N, 1, D), hidden.dtype)
    # Layer 0: temp_attention_mask[:, :, :, :1] = -10000.0 (mask the station token). One-time tiny op.
    mask0 = attention_mask.at[:, :, 0].set(-10000.0)

    for i, lp in enumerate(params['layers']):
        if i == 0:
            gt, mask_i = zero_gt, mask0
        else:
            # cls_emb = cat(hidden[:, :1], feats) — (N, 1+F, D) is tiny, so this concat stays in XLA;
            # the expensive per-layer ops (station scatter-add, station slicing) are fused in-kernel.
            cls_emb = jnp.concatenate([hidden[:, :1], feats], axis=1)
            feats, gt = graph_agg_call(cls_emb, params['graph_attention'],
                                       params['graph_transform_w'],
                                       num_heads, node_tile, vmem_limit)
            mask_i = attention_mask
        hidden = bert_layer_call(hidden, mask_i, gt, lp,
                                 num_heads, node_tile, vmem_limit)
    return hidden


# --------------------------------- param init ---------------------------------

def init_params(key, D, Di, num_layers):
    """PyTorch-layout parameters (separate q/k/v, f32) as they would come off the nn.Module."""
    kit = iter(jax.random.split(key, num_layers * 6 + 4))

    def w(din, dout):
        return jax.random.normal(next(kit), (din, dout), jnp.float32) * 0.02

    def b(dout):
        return jnp.zeros((1, dout), jnp.float32)

    layers = []
    for _ in range(num_layers):
        layers.append(dict(
            wq=w(D, D), bq=b(D), wk=w(D, D), bk=b(D), wv=w(D, D), bv=b(D),
            wo=w(D, D), bo=b(D),
            ln1_g=jnp.ones((1, D), jnp.float32), ln1_b=jnp.zeros((1, D), jnp.float32),
            wi=w(D, Di), bi=b(Di), w2=w(Di, D), b2=b(D),
            ln2_g=jnp.ones((1, D), jnp.float32), ln2_b=jnp.zeros((1, D), jnp.float32)))
    graph_attention = dict(wq=w(D, D), bq=b(D), wk=w(D, D), bk=b(D),
                           wv=w(D, D), bv=b(D))
    graph_transform_w = w(D, D)   # nn.Linear(hidden, hidden, bias=False)
    return dict(layers=layers, graph_attention=graph_attention,
                graph_transform_w=graph_transform_w)


def prepare_params(raw, D, num_heads, mm_dtype=jnp.bfloat16):
    """One-time conversion for the kernels: fuse Q/K/V into [D,3D] / [1,3D], fold the
    1/sqrt(head_dim) score scale into the Q block, and cast matmul weights to bf16
    (biases and LayerNorm affine parameters stay f32)."""
    scale = (D // num_heads) ** -0.5

    def fuse_qkv(p):
        wqkv = jnp.concatenate([p['wq'] * scale, p['wk'], p['wv']], axis=1).astype(mm_dtype)
        bqkv = jnp.concatenate([p['bq'] * scale, p['bk'], p['bv']], axis=1)    # f32 (1, 3D)
        return wqkv, bqkv

    layers = []
    for lp in raw['layers']:
        wqkv, bqkv = fuse_qkv(lp)
        layers.append(dict(
            wqkv=wqkv, bqkv=bqkv,
            wo=lp['wo'].astype(mm_dtype), bo=lp['bo'],
            ln1_g=lp['ln1_g'], ln1_b=lp['ln1_b'],
            wi=lp['wi'].astype(mm_dtype), bi=lp['bi'],
            w2=lp['w2'].astype(mm_dtype), b2=lp['b2'],
            ln2_g=lp['ln2_g'], ln2_b=lp['ln2_b']))
    g_wqkv, g_bqkv = fuse_qkv(raw['graph_attention'])
    return dict(layers=layers,
                graph_attention=dict(wqkv=g_wqkv, bqkv=g_bqkv),
                graph_transform_w=raw['graph_transform_w'].astype(mm_dtype))


# ------------------------------------ main -------------------------------------

if __name__ == "__main__":
    N, S, D = 8, 8, 128         # all_nodes_num, seq_length, hidden_size (lane-dense: D % 128 == 0)
    H, Di = 4, 512              # num_attention_heads, intermediate_size
    F, L = 3, 2                 # n_graph_feats, num_hidden_layers
    NODE_TILE = 4               # grid = (2,) so v7x's two TensorCores each take a tile

    key = jax.random.PRNGKey(0)
    k_h, k_f, k_p = jax.random.split(key, 3)
    hidden = jax.random.normal(k_h, (N, S, D), jnp.float32).astype(jnp.bfloat16)
    feats = jax.random.normal(k_f, (N, F, D), jnp.float32).astype(jnp.bfloat16)
    attention_mask = jnp.zeros((N, 1, S), jnp.float32)   # additive mask (0 = attend)

    params = prepare_params(init_params(k_p, D, Di, L), D, num_heads=H)

    fwd = jax.jit(functools.partial(graph_bert_encoder_forward,
                                    num_heads=H, node_tile=NODE_TILE))
    out = jax.block_until_ready(fwd(hidden, attention_mask, feats, params))

    assert out.shape == (N, S, D)
    assert bool(jnp.all(jnp.isfinite(out.astype(jnp.float32))))
    print("KERNEL_OK")
</pallas_src>

<mosaic_0001>
module attributes {stable_mosaic.version = 11 : i64} {
  func.func @bert_layer_kernel(%arg0: i32, %arg1: memref<4x8x128xbf16, #tpu.memory_space<vmem>>, %arg2: memref<4x1x8xf32, #tpu.memory_space<vmem>>, %arg3: memref<4x1x128xbf16, #tpu.memory_space<vmem>>, %arg4: memref<128x384xbf16, #tpu.memory_space<vmem>>, %arg5: memref<1x384xf32, #tpu.memory_space<vmem>>, %arg6: memref<128x128xbf16, #tpu.memory_space<vmem>>, %arg7: memref<1x128xf32, #tpu.memory_space<vmem>>, %arg8: memref<1x128xf32, #tpu.memory_space<vmem>>, %arg9: memref<1x128xf32, #tpu.memory_space<vmem>>, %arg10: memref<128x512xbf16, #tpu.memory_space<vmem>>, %arg11: memref<1x512xf32, #tpu.memory_space<vmem>>, %arg12: memref<512x128xbf16, #tpu.memory_space<vmem>>, %arg13: memref<1x128xf32, #tpu.memory_space<vmem>>, %arg14: memref<1x128xf32, #tpu.memory_space<vmem>>, %arg15: memref<1x128xf32, #tpu.memory_space<vmem>>, %arg16: memref<4x8x128xbf16, #tpu.memory_space<vmem>>) attributes {dimension_semantics = [#tpu.dimension_semantics<parallel>], iteration_bounds = array<i64: 2>, scalar_prefetch = 0 : i64, scratch_operands = 0 : i64, tpu.core_type = #tpu.core_type<tc>, window_params = [{transform_indices = @transform_0, window_bounds = array<i64: 4, 8, 128>}, {transform_indices = @transform_1, window_bounds = array<i64: 4, 1, 8>}, {transform_indices = @transform_2, window_bounds = array<i64: 4, 1, 128>}, {pipeline_mode = #tpu.pipeline_mode<synchronous>, transform_indices = @transform_3, window_bounds = array<i64: 128, 384>}, {pipeline_mode = #tpu.pipeline_mode<synchronous>, transform_indices = @transform_4, window_bounds = array<i64: 1, 384>}, {pipeline_mode = #tpu.pipeline_mode<synchronous>, transform_indices = @transform_5, window_bounds = array<i64: 128, 128>}, {pipeline_mode = #tpu.pipeline_mode<synchronous>, transform_indices = @transform_6, window_bounds = array<i64: 1, 128>}, {pipeline_mode = #tpu.pipeline_mode<synchronous>, transform_indices = @transform_7, window_bounds = array<i64: 1, 128>}, {pipeline_mode = #tpu.pipeline_mode<synchronous>, transform_indices = @transform_8, window_bounds = array<i64: 1, 128>}, {pipeline_mode = #tpu.pipeline_mode<synchronous>, transform_indices = @transform_9, window_bounds = array<i64: 128, 512>}, {pipeline_mode = #tpu.pipeline_mode<synchronous>, transform_indices = @transform_10, window_bounds = array<i64: 1, 512>}, {pipeline_mode = #tpu.pipeline_mode<synchronous>, transform_indices = @transform_11, window_bounds = array<i64: 512, 128>}, {pipeline_mode = #tpu.pipeline_mode<synchronous>, transform_indices = @transform_12, window_bounds = array<i64: 1, 128>}, {pipeline_mode = #tpu.pipeline_mode<synchronous>, transform_indices = @transform_13, window_bounds = array<i64: 1, 128>}, {pipeline_mode = #tpu.pipeline_mode<synchronous>, transform_indices = @transform_14, window_bounds = array<i64: 1, 128>}, {transform_indices = @transform_15, window_bounds = array<i64: 4, 8, 128>}]} {
    %c0 = arith.constant 0 : index
    %c0_0 = arith.constant 0 : index
    %c0_1 = arith.constant 0 : index
    %0 = vector.load %arg1[%c0, %c0_0, %c0_1] : memref<4x8x128xbf16, #tpu.memory_space<vmem>>, vector<4x8x128xbf16>
    %1 = arith.extf %0 : vector<4x8x128xbf16> to vector<4x8x128xf32>
    %2 = tpu.iota {dimensions = array<i32: 1>} : vector<1x8x1xi32>
    %c0_i32 = arith.constant 0 : i32
    %3 = vector.broadcast %c0_i32 : i32 to vector<1x8x1xi32>
    %4 = arith.cmpi eq, %2, %3 : vector<1x8x1xi32>
    %c0_2 = arith.constant 0 : index
    %c0_3 = arith.constant 0 : index
    %c0_4 = arith.constant 0 : index
    %5 = vector.load %arg3[%c0_2, %c0_3, %c0_4] : memref<4x1x128xbf16, #tpu.memory_space<vmem>>, vector<4x1x128xbf16>
    %6 = arith.extf %5 : vector<4x1x128xbf16> to vector<4x1x128xf32>
    %cst = arith.constant 0.000000e+00 : f32
    %7 = vector.shape_cast %4 : vector<1x8x1xi1> to vector<1x8x1xi1>
    %8 = vector.broadcast %7 : vector<1x8x1xi1> to vector<4x8x128xi1>
    %9 = vector.shape_cast %6 : vector<4x1x128xf32> to vector<4x1x128xf32>
    %10 = vector.broadcast %9 : vector<4x1x128xf32> to vector<4x8x128xf32>
    %11 = vector.broadcast %cst : f32 to vector<4x8x128xf32>
    %12 = arith.select %8, %10, %11 : vector<4x8x128xi1>, vector<4x8x128xf32>
    %13 = arith.addf %1, %12 : vector<4x8x128xf32>
    %c0_5 = arith.constant 0 : index
    %c0_6 = arith.constant 0 : index
    %c0_7 = arith.constant 0 : index
    %14 = vector.load %arg2[%c0_5, %c0_6, %c0_7] : memref<4x1x8xf32, #tpu.memory_space<vmem>>, vector<4x1x8xf32>
    %c0_8 = arith.constant 0 : index
    %c0_9 = arith.constant 0 : index
    %15 = vector.load %arg4[%c0_8, %c0_9] : memref<128x384xbf16, #tpu.memory_space<vmem>>, vector<128x384xbf16>
    %c0_10 = arith.constant 0 : index
    %c0_11 = arith.constant 0 : index
    %16 = vector.load %arg5[%c0_10, %c0_11] : memref<1x384xf32, #tpu.memory_space<vmem>>, vector<1x384xf32>
    %17 = arith.truncf %13 : vector<4x8x128xf32> to vector<4x8x128xbf16>
    "tpu.trace_start"() <{level = 10 : i32, message = "tsd,de->tse"}> : () -> ()
    %cst_12 = arith.constant dense<0.000000e+00> : vector<4x8x384xf32>
    %18 = tpu.matmul %17, %15, %cst_12 {dimension_numbers = #tpu.dot_dimension_numbers<[2], [0], [0, 1], [1], [0, 0, 0, 1, 1, 1], [], []>} : vector<4x8x128xbf16>, vector<128x384xbf16>, vector<4x8x384xf32> -> vector<4x8x384xf32>
    "tpu.trace_stop"() : () -> ()
    %19 = vector.shape_cast %16 : vector<1x384xf32> to vector<1x1x384xf32>
    %20 = vector.broadcast %19 : vector<1x1x384xf32> to vector<4x8x384xf32>
    %21 = arith.addf %18, %20 : vector<4x8x384xf32>
    %22 = arith.truncf %21 : vector<4x8x384xf32> to vector<4x8x384xbf16>
    %23 = vector.extract_strided_slice %22 {offsets = [0, 0, 0], sizes = [4, 8, 128], strides = [1, 1, 1]} : vector<4x8x384xbf16> to vector<4x8x128xbf16>
    %24 = vector.extract_strided_slice %22 {offsets = [0, 0, 128], sizes = [4, 8, 128], strides = [1, 1, 1]} : vector<4x8x384xbf16> to vector<4x8x128xbf16>
    %25 = vector.extract_strided_slice %22 {offsets = [0, 0, 256], sizes = [4, 8, 128], strides = [1, 1, 1]} : vector<4x8x384xbf16> to vector<4x8x128xbf16>
    %26 = vector.extract_strided_slice %23 {offsets = [0, 0, 0], sizes = [4, 8, 32], strides = [1, 1, 1]} : vector<4x8x128xbf16> to vector<4x8x32xbf16>
    %27 = vector.extract_strided_slice %23 {offsets = [0, 0, 32], sizes = [4, 8, 32], strides = [1, 1, 1]} : vector<4x8x128xbf16> to vector<4x8x32xbf16>
    %28 = vector.extract_strided_slice %23 {offsets = [0, 0, 64], sizes = [4, 8, 32], strides = [1, 1, 1]} : vector<4x8x128xbf16> to vector<4x8x32xbf16>
    %29 = vector.extract_strided_slice %23 {offsets = [0, 0, 96], sizes = [4, 8, 32], strides = [1, 1, 1]} : vector<4x8x128xbf16> to vector<4x8x32xbf16>
    %30 = tpu.concatenate %26, %27, %28, %29 in 0 : vector<4x8x32xbf16>, vector<4x8x32xbf16>, vector<4x8x32xbf16>, vector<4x8x32xbf16> -> vector<16x8x32xbf16>
    %31 = vector.extract_strided_slice %24 {offsets = [0, 0, 0], sizes = [4, 8, 32], strides = [1, 1, 1]} : vector<4x8x128xbf16> to vector<4x8x32xbf16>
    %32 = vector.extract_strided_slice %24 {offsets = [0, 0, 32], sizes = [4, 8, 32], strides = [1, 1, 1]} : vector<4x8x128xbf16> to vector<4x8x32xbf16>
    %33 = vector.extract_strided_slice %24 {offsets = [0, 0, 64], sizes = [4, 8, 32], strides = [1, 1, 1]} : vector<4x8x128xbf16> to vector<4x8x32xbf16>
    %34 = vector.extract_strided_slice %24 {offsets = [0, 0, 96], sizes = [4, 8, 32], strides = [1, 1, 1]} : vector<4x8x128xbf16> to vector<4x8x32xbf16>
    %35 = tpu.concatenate %31, %32, %33, %34 in 0 : vector<4x8x32xbf16>, vector<4x8x32xbf16>, vector<4x8x32xbf16>, vector<4x8x32xbf16> -> vector<16x8x32xbf16>
    %36 = vector.extract_strided_slice %25 {offsets = [0, 0, 0], sizes = [4, 8, 32], strides = [1, 1, 1]} : vector<4x8x128xbf16> to vector<4x8x32xbf16>
    %37 = vector.extract_strided_slice %25 {offsets = [0, 0, 32], sizes = [4, 8, 32], strides = [1, 1, 1]} : vector<4x8x128xbf16> to vector<4x8x32xbf16>
    %38 = vector.extract_strided_slice %25 {offsets = [0, 0, 64], sizes = [4, 8, 32], strides = [1, 1, 1]} : vector<4x8x128xbf16> to vector<4x8x32xbf16>
    %39 = vector.extract_strided_slice %25 {offsets = [0, 0, 96], sizes = [4, 8, 32], strides = [1, 1, 1]} : vector<4x8x128xbf16> to vector<4x8x32xbf16>
    %40 = tpu.concatenate %36, %37, %38, %39 in 0 : vector<4x8x32xbf16>, vector<4x8x32xbf16>, vector<4x8x32xbf16>, vector<4x8x32xbf16> -> vector<16x8x32xbf16>
    "tpu.trace_start"() <{level = 10 : i32, message = "bqd,bkd->bqk"}> : () -> ()
    %cst_13 = arith.constant dense<0.000000e+00> : vector<16x8x8xf32>
    %41 = tpu.matmul %30, %35, %cst_13 {dimension_numbers = #tpu.dot_dimension_numbers<[2], [2], [1], [1], [0, 0, 0, 1, 1, 1], [0], [0]>} : vector<16x8x32xbf16>, vector<16x8x32xbf16>, vector<16x8x8xf32> -> vector<16x8x8xf32>
    "tpu.trace_stop"() : () -> ()
    %42 = tpu.concatenate %14, %14, %14, %14 in 0 : vector<4x1x8xf32>, vector<4x1x8xf32>, vector<4x1x8xf32>, vector<4x1x8xf32> -> vector<16x1x8xf32>
    %43 = vector.broadcast %42 : vector<16x1x8xf32> to vector<16x8x8xf32>
    %44 = arith.addf %41, %43 : vector<16x8x8xf32>
    %cst_14 = arith.constant dense<0xFF800000> : vector<16x8xf32>
    %45 = vector.multi_reduction <maximumf>, %44, %cst_14 [2] : vector<16x8x8xf32> to vector<16x8xf32>
    %46 = vector.shape_cast %45 : vector<16x8xf32> to vector<16x8x1xf32>
    %47 = vector.broadcast %46 : vector<16x8x1xf32> to vector<16x8x8xf32>
    %48 = arith.subf %44, %47 : vector<16x8x8xf32>
    %49 = math.exp %48 : vector<16x8x8xf32>
    %cst_15 = arith.constant dense<0.000000e+00> : vector<16x8xf32>
    %50 = vector.multi_reduction <add>, %49, %cst_15 [2] : vector<16x8x8xf32> to vector<16x8xf32>
    %51 = vector.shape_cast %50 : vector<16x8xf32> to vector<16x8x1xf32>
    %52 = tpu.reciprocal %51 {approx = true} : vector<16x8x1xf32> -> vector<16x8x1xf32>
    %53 = vector.broadcast %52 : vector<16x8x1xf32> to vector<16x8x8xf32>
    %54 = arith.mulf %49, %53 : vector<16x8x8xf32>
    %55 = arith.truncf %54 : vector<16x8x8xf32> to vector<16x8x8xbf16>
    "tpu.trace_start"() <{level = 10 : i32, message = "bqk,bkd->bqd"}> : () -> ()
    %cst_16 = arith.constant dense<0.000000e+00> : vector<16x8x32xf32>
    %56 = tpu.matmul %55, %40, %cst_16 {dimension_numbers = #tpu.dot_dimension_numbers<[2], [1], [1], [2], [0, 0, 0, 1, 1, 2], [0], [0]>} : vector<16x8x8xbf16>, vector<16x8x32xbf16>, vector<16x8x32xf32> -> vector<16x8x32xf32>
    "tpu.trace_stop"() : () -> ()
    %57 = vector.extract_strided_slice %56 {offsets = [0, 0, 0], sizes = [4, 8, 32], strides = [1, 1, 1]} : vector<16x8x32xf32> to vector<4x8x32xf32>
    %58 = vector.extract_strided_slice %56 {offsets = [4, 0, 0], sizes = [4, 8, 32], strides = [1, 1, 1]} : vector<16x8x32xf32> to vector<4x8x32xf32>
    %59 = vector.extract_strided_slice %56 {offsets = [8, 0, 0], sizes = [4, 8, 32], strides = [1, 1, 1]} : vector<16x8x32xf32> to vector<4x8x32xf32>
    %60 = vector.extract_strided_slice %56 {offsets = [12, 0, 0], sizes = [4, 8, 32], strides = [1, 1, 1]} : vector<16x8x32xf32> to vector<4x8x32xf32>
    %61 = tpu.concatenate %57, %58, %59, %60 in 2 : vector<4x8x32xf32>, vector<4x8x32xf32>, vector<4x8x32xf32>, vector<4x8x32xf32> -> vector<4x8x128xf32>
    %62 = arith.truncf %61 : vector<4x8x128xf32> to vector<4x8x128xbf16>
    %c0_17 = arith.constant 0 : index
    %c0_18 = arith.constant 0 : index
    %63 = vector.load %arg6[%c0_17, %c0_18] : memref<128x128xbf16, #tpu.memory_space<vmem>>, vector<128x128xbf16>
    "tpu.trace_start"() <{level = 10 : i32, message = "tsd,de->tse"}> : () -> ()
    %cst_19 = arith.constant dense<0.000000e+00> : vector<4x8x128xf32>
    %64 = tpu.matmul %62, %63, %cst_19 {dimension_numbers = #tpu.dot_dimension_numbers<[2], [0], [0, 1], [1], [0, 0, 0, 1, 1, 1], [], []>} : vector<4x8x128xbf16>, vector<128x128xbf16>, vector<4x8x128xf32> -> vector<4x8x128xf32>
    "tpu.trace_stop"() : () -> ()
    %c0_20 = arith.constant 0 : index
    %c0_21 = arith.constant 0 : index
    %65 = vector.load %arg7[%c0_20, %c0_21] : memref<1x128xf32, #tpu.memory_space<vmem>>, vector<1x128xf32>
    %66 = vector.shape_cast %65 : vector<1x128xf32> to vector<1x1x128xf32>
    %67 = vector.broadcast %66 : vector<1x1x128xf32> to vector<4x8x128xf32>
    %68 = arith.addf %64, %67 : vector<4x8x128xf32>
    %69 = arith.addf %68, %13 : vector<4x8x128xf32>
    %c0_22 = arith.constant 0 : index
    %c0_23 = arith.constant 0 : index
    %70 = vector.load %arg8[%c0_22, %c0_23] : memref<1x128xf32, #tpu.memory_space<vmem>>, vector<1x128xf32>
    %c0_24 = arith.constant 0 : index
    %c0_25 = arith.constant 0 : index
    %71 = vector.load %arg9[%c0_24, %c0_25] : memref<1x128xf32, #tpu.memory_space<vmem>>, vector<1x128xf32>
    %cst_26 = arith.constant dense<0.000000e+00> : vector<4x8xf32>
    %72 = vector.multi_reduction <add>, %69, %cst_26 [2] : vector<4x8x128xf32> to vector<4x8xf32>
    %73 = vector.shape_cast %72 : vector<4x8xf32> to vector<4x8x1xf32>
    %cst_27 = arith.constant 1.280000e+02 : f32
    %74 = vector.broadcast %cst_27 : f32 to vector<4x8x1xf32>
    %75 = arith.divf %73, %74 : vector<4x8x1xf32>
    %76 = vector.broadcast %75 : vector<4x8x1xf32> to vector<4x8x128xf32>
    %77 = arith.subf %69, %76 : vector<4x8x128xf32>
    %78 = arith.mulf %77, %77 : vector<4x8x128xf32>
    %cst_28 = arith.constant dense<0.000000e+00> : vector<4x8xf32>
    %79 = vector.multi_reduction <add>, %78, %cst_28 [2] : vector<4x8x128xf32> to vector<4x8xf32>
    %80 = vector.shape_cast %79 : vector<4x8xf32> to vector<4x8x1xf32>
    %cst_29 = arith.constant 1.280000e+02 : f32
    %81 = vector.broadcast %cst_29 : f32 to vector<4x8x1xf32>
    %82 = arith.divf %80, %81 : vector<4x8x1xf32>
    %83 = vector.broadcast %75 : vector<4x8x1xf32> to vector<4x8x128xf32>
    %84 = arith.subf %69, %83 : vector<4x8x128xf32>
    %cst_30 = arith.constant 9.99999996E-13 : f32
    %85 = vector.broadcast %cst_30 : f32 to vector<4x8x1xf32>
    %86 = arith.addf %82, %85 : vector<4x8x1xf32>
    %87 = math.rsqrt %86 : vector<4x8x1xf32>
    %88 = vector.broadcast %87 : vector<4x8x1xf32> to vector<4x8x128xf32>
    %89 = arith.mulf %84, %88 : vector<4x8x128xf32>
    %90 = vector.shape_cast %70 : vector<1x128xf32> to vector<1x1x128xf32>
    %91 = vector.broadcast %90 : vector<1x1x128xf32> to vector<4x8x128xf32>
    %92 = arith.mulf %89, %91 : vector<4x8x128xf32>
    %93 = vector.shape_cast %71 : vector<1x128xf32> to vector<1x1x128xf32>
    %94 = vector.broadcast %93 : vector<1x1x128xf32> to vector<4x8x128xf32>
    %95 = arith.addf %92, %94 : vector<4x8x128xf32>
    %96 = arith.truncf %95 : vector<4x8x128xf32> to vector<4x8x128xbf16>
    %c0_31 = arith.constant 0 : index
    %c0_32 = arith.constant 0 : index
    %97 = vector.load %arg10[%c0_31, %c0_32] : memref<128x512xbf16, #tpu.memory_space<vmem>>, vector<128x512xbf16>
    "tpu.trace_start"() <{level = 10 : i32, message = "tsd,de->tse"}> : () -> ()
    %cst_33 = arith.constant dense<0.000000e+00> : vector<4x8x512xf32>
    %98 = tpu.matmul %96, %97, %cst_33 {dimension_numbers = #tpu.dot_dimension_numbers<[2], [0], [0, 1], [1], [0, 0, 0, 1, 1, 1], [], []>} : vector<4x8x128xbf16>, vector<128x512xbf16>, vector<4x8x512xf32> -> vector<4x8x512xf32>
    "tpu.trace_stop"() : () -> ()
    %c0_34 = arith.constant 0 : index
    %c0_35 = arith.constant 0 : index
    %99 = vector.load %arg11[%c0_34, %c0_35] : memref<1x512xf32, #tpu.memory_space<vmem>>, vector<1x512xf32>
    %100 = vector.shape_cast %99 : vector<1x512xf32> to vector<1x1x512xf32>
    %101 = vector.broadcast %100 : vector<1x1x512xf32> to vector<4x8x512xf32>
    %102 = arith.addf %98, %101 : vector<4x8x512xf32>
    %cst_36 = arith.constant 5.000000e-01 : f32
    %103 = vector.broadcast %cst_36 : f32 to vector<4x8x512xf32>
    %104 = arith.mulf %103, %102 : vector<4x8x512xf32>
    %cst_37 = arith.constant 4.471500e-02 : f32
    %105 = vector.broadcast %cst_37 : f32 to vector<4x8x512xf32>
    %106 = arith.mulf %105, %102 : vector<4x8x512xf32>
    %107 = arith.mulf %106, %102 : vector<4x8x512xf32>
    %108 = arith.mulf %107, %102 : vector<4x8x512xf32>
    %109 = arith.addf %102, %108 : vector<4x8x512xf32>
    %cst_38 = arith.constant 0.797884583 : f32
    %110 = vector.broadcast %cst_38 : f32 to vector<4x8x512xf32>
    %111 = arith.mulf %110, %109 : vector<4x8x512xf32>
    %112 = math.tanh %111 : vector<4x8x512xf32>
    %cst_39 = arith.constant 1.000000e+00 : f32
    %113 = vector.broadcast %cst_39 : f32 to vector<4x8x512xf32>
    %114 = arith.addf %113, %112 : vector<4x8x512xf32>
    %115 = arith.mulf %104, %114 : vector<4x8x512xf32>
    %116 = arith.truncf %115 : vector<4x8x512xf32> to vector<4x8x512xbf16>
    %c0_40 = arith.constant 0 : index
    %c0_41 = arith.constant 0 : index
    %117 = vector.load %arg12[%c0_40, %c0_41] : memref<512x128xbf16, #tpu.memory_space<vmem>>, vector<512x128xbf16>
    "tpu.trace_start"() <{level = 10 : i32, message = "tsd,de->tse"}> : () -> ()
    %cst_42 = arith.constant dense<0.000000e+00> : vector<4x8x128xf32>
    %118 = tpu.matmul %116, %117, %cst_42 {dimension_numbers = #tpu.dot_dimension_numbers<[2], [0], [0, 1], [1], [0, 0, 0, 1, 1, 1], [], []>} : vector<4x8x512xbf16>, vector<512x128xbf16>, vector<4x8x128xf32> -> vector<4x8x128xf32>
    "tpu.trace_stop"() : () -> ()
    %c0_43 = arith.constant 0 : index
    %c0_44 = arith.constant 0 : index
    %119 = vector.load %arg13[%c0_43, %c0_44] : memref<1x128xf32, #tpu.memory_space<vmem>>, vector<1x128xf32>
    %120 = vector.shape_cast %119 : vector<1x128xf32> to vector<1x1x128xf32>
    %121 = vector.broadcast %120 : vector<1x1x128xf32> to vector<4x8x128xf32>
    %122 = arith.addf %118, %121 : vector<4x8x128xf32>
    %123 = arith.addf %122, %95 : vector<4x8x128xf32>
    %c0_45 = arith.constant 0 : index
    %c0_46 = arith.constant 0 : index
    %124 = vector.load %arg14[%c0_45, %c0_46] : memref<1x128xf32, #tpu.memory_space<vmem>>, vector<1x128xf32>
    %c0_47 = arith.constant 0 : index
    %c0_48 = arith.constant 0 : index
    %125 = vector.load %arg15[%c0_47, %c0_48] : memref<1x128xf32, #tpu.memory_space<vmem>>, vector<1x128xf32>
    %cst_49 = arith.constant dense<0.000000e+00> : vector<4x8xf32>
    %126 = vector.multi_reduction <add>, %123, %cst_49 [2] : vector<4x8x128xf32> to vector<4x8xf32>
    %127 = vector.shape_cast %126 : vector<4x8xf32> to vector<4x8x1xf32>
    %cst_50 = arith.constant 1.280000e+02 : f32
    %128 = vector.broadcast %cst_50 : f32 to vector<4x8x1xf32>
    %129 = arith.divf %127, %128 : vector<4x8x1xf32>
    %130 = vector.broadcast %129 : vector<4x8x1xf32> to vector<4x8x128xf32>
    %131 = arith.subf %123, %130 : vector<4x8x128xf32>
    %132 = arith.mulf %131, %131 : vector<4x8x128xf32>
    %cst_51 = arith.constant dense<0.000000e+00> : vector<4x8xf32>
    %133 = vector.multi_reduction <add>, %132, %cst_51 [2] : vector<4x8x128xf32> to vector<4x8xf32>
    %134 = vector.shape_cast %133 : vector<4x8xf32> to vector<4x8x1xf32>
    %cst_52 = arith.constant 1.280000e+02 : f32
    %135 = vector.broadcast %cst_52 : f32 to vector<4x8x1xf32>
    %136 = arith.divf %134, %135 : vector<4x8x1xf32>
    %137 = vector.broadcast %129 : vector<4x8x1xf32> to vector<4x8x128xf32>
    %138 = arith.subf %123, %137 : vector<4x8x128xf32>
    %cst_53 = arith.constant 9.99999996E-13 : f32
    %139 = vector.broadcast %cst_53 : f32 to vector<4x8x1xf32>
    %140 = arith.addf %136, %139 : vector<4x8x1xf32>
    %141 = math.rsqrt %140 : vector<4x8x1xf32>
    %142 = vector.broadcast %141 : vector<4x8x1xf32> to vector<4x8x128xf32>
    %143 = arith.mulf %138, %142 : vector<4x8x128xf32>
    %144 = vector.shape_cast %124 : vector<1x128xf32> to vector<1x1x128xf32>
    %145 = vector.broadcast %144 : vector<1x1x128xf32> to vector<4x8x128xf32>
    %146 = arith.mulf %143, %145 : vector<4x8x128xf32>
    %147 = vector.shape_cast %125 : vector<1x128xf32> to vector<1x1x128xf32>
    %148 = vector.broadcast %147 : vector<1x1x128xf32> to vector<4x8x128xf32>
    %149 = arith.addf %146, %148 : vector<4x8x128xf32>
    %150 = arith.truncf %149 : vector<4x8x128xf32> to vector<4x8x128xbf16>
    %c0_54 = arith.constant 0 : index
    %c0_55 = arith.constant 0 : index
    %c0_56 = arith.constant 0 : index
    %151 = vector.load %arg16[%c0_54, %c0_55, %c0_56] : memref<4x8x128xbf16, #tpu.memory_space<vmem>>, vector<4x8x128xbf16>
    tpu.vector_store %arg16[%c0_54, %c0_55, %c0_56], %150 {strides = array<i32>} : memref<4x8x128xbf16, #tpu.memory_space<vmem>>, vector<4x8x128xbf16>,
    return
  }
  func.func @transform_0(%arg0: i32) -> (i32, i32, i32) {
    %c0_i32 = arith.constant 0 : i32
    %c0_i32_0 = arith.constant 0 : i32
    %c0_i32_1 = arith.constant 0 : i32
    return %arg0, %c0_i32, %c0_i32_0 : i32, i32, i32
  }
  func.func @transform_1(%arg0: i32) -> (i32, i32, i32) {
    %c0_i32 = arith.constant 0 : i32
    %c0_i32_0 = arith.constant 0 : i32
    %c0_i32_1 = arith.constant 0 : i32
    return %arg0, %c0_i32, %c0_i32_0 : i32, i32, i32
  }
  func.func @transform_2(%arg0: i32) -> (i32, i32, i32) {
    %c0_i32 = arith.constant 0 : i32
    %c0_i32_0 = arith.constant 0 : i32
    %c0_i32_1 = arith.constant 0 : i32
    return %arg0, %c0_i32, %c0_i32_0 : i32, i32, i32
  }
  func.func @transform_3(%arg0: i32) -> (i32, i32) {
    %c0_i32 = arith.constant 0 : i32
    %c0_i32_0 = arith.constant 0 : i32
    %c0_i32_1 = arith.constant 0 : i32
    return %c0_i32, %c0_i32_0 : i32, i32
  }
  func.func @transform_4(%arg0: i32) -> (i32, i32) {
    %c0_i32 = arith.constant 0 : i32
    %c0_i32_0 = arith.constant 0 : i32
    %c0_i32_1 = arith.constant 0 : i32
    return %c0_i32, %c0_i32_0 : i32, i32
  }
  func.func @transform_5(%arg0: i32) -> (i32, i32) {
    %c0_i32 = arith.constant 0 : i32
    %c0_i32_0 = arith.constant 0 : i32
    %c0_i32_1 = arith.constant 0 : i32
    return %c0_i32, %c0_i32_0 : i32, i32
  }
  func.func @transform_6(%arg0: i32) -> (i32, i32) {
    %c0_i32 = arith.constant 0 : i32
    %c0_i32_0 = arith.constant 0 : i32
    %c0_i32_1 = arith.constant 0 : i32
    return %c0_i32, %c0_i32_0 : i32, i32
  }
  func.func @transform_7(%arg0: i32) -> (i32, i32) {
    %c0_i32 = arith.constant 0 : i32
    %c0_i32_0 = arith.constant 0 : i32
    %c0_i32_1 = arith.constant 0 : i32
    return %c0_i32, %c0_i32_0 : i32, i32
  }
  func.func @transform_8(%arg0: i32) -> (i32, i32) {
    %c0_i32 = arith.constant 0 : i32
    %c0_i32_0 = arith.constant 0 : i32
    %c0_i32_1 = arith.constant 0 : i32
    return %c0_i32, %c0_i32_0 : i32, i32
  }
  func.func @transform_9(%arg0: i32) -> (i32, i32) {
    %c0_i32 = arith.constant 0 : i32
    %c0_i32_0 = arith.constant 0 : i32
    %c0_i32_1 = arith.constant 0 : i32
    return %c0_i32, %c0_i32_0 : i32, i32
  }
  func.func @transform_10(%arg0: i32) -> (i32, i32) {
    %c0_i32 = arith.constant 0 : i32
    %c0_i32_0 = arith.constant 0 : i32
    %c0_i32_1 = arith.constant 0 : i32
    return %c0_i32, %c0_i32_0 : i32, i32
  }
  func.func @transform_11(%arg0: i32) -> (i32, i32) {
    %c0_i32 = arith.constant 0 : i32
    %c0_i32_0 = arith.constant 0 : i32
    %c0_i32_1 = arith.constant 0 : i32
    return %c0_i32, %c0_i32_0 : i32, i32
  }
  func.func @transform_12(%arg0: i32) -> (i32, i32) {
    %c0_i32 = arith.constant 0 : i32
    %c0_i32_0 = arith.constant 0 : i32
    %c0_i32_1 = arith.constant 0 : i32
    return %c0_i32, %c0_i32_0 : i32, i32
  }
  func.func @transform_13(%arg0: i32) -> (i32, i32) {
    %c0_i32 = arith.constant 0 : i32
    %c0_i32_0 = arith.constant 0 : i32
    %c0_i32_1 = arith.constant 0 : i32
    return %c0_i32, %c0_i32_0 : i32, i32
  }
  func.func @transform_14(%arg0: i32) -> (i32, i32) {
    %c0_i32 = arith.constant 0 : i32
    %c0_i32_0 = arith.constant 0 : i32
    %c0_i32_1 = arith.constant 0 : i32
    return %c0_i32, %c0_i32_0 : i32, i32
  }
  func.func @transform_15(%arg0: i32) -> (i32, i32, i32) {
    %c0_i32 = arith.constant 0 : i32
    %c0_i32_0 = arith.constant 0 : i32
    %c0_i32_1 = arith.constant 0 : i32
    return %arg0, %c0_i32, %c0_i32_0 : i32, i32, i32
  }
}

module attributes {stable_mosaic.version = 11 : i64} {
  func.func @graph_agg_kernel(%arg0: i32, %arg1: memref<4x4x128xbf16, #tpu.memory_space<vmem>>, %arg2: memref<128x384xbf16, #tpu.memory_space<vmem>>, %arg3: memref<1x384xf32, #tpu.memory_space<vmem>>, %arg4: memref<128x128xbf16, #tpu.memory_space<vmem>>, %arg5: memref<4x3x128xbf16, #tpu.memory_space<vmem>>, %arg6: memref<4x1x128xbf16, #tpu.memory_space<vmem>>) attributes {dimension_semantics = [#tpu.dimension_semantics<parallel>], iteration_bounds = array<i64: 2>, scalar_prefetch = 0 : i64, scratch_operands = 0 : i64, tpu.core_type = #tpu.core_type<tc>, window_params = [{transform_indices = @transform_0, window_bounds = array<i64: 4, 4, 128>}, {pipeline_mode = #tpu.pipeline_mode<synchronous>, transform_indices = @transform_1, window_bounds = array<i64: 128, 384>}, {pipeline_mode = #tpu.pipeline_mode<synchronous>, transform_indices = @transform_2, window_bounds = array<i64: 1, 384>}, {pipeline_mode = #tpu.pipeline_mode<synchronous>, transform_indices = @transform_3, window_bounds = array<i64: 128, 128>}, {transform_indices = @transform_4, window_bounds = array<i64: 4, 3, 128>}, {transform_indices = @transform_5, window_bounds = array<i64: 4, 1, 128>}]} {
    %c0 = arith.constant 0 : index
    %c0_0 = arith.constant 0 : index
    %c0_1 = arith.constant 0 : index
    %0 = vector.load %arg1[%c0, %c0_0, %c0_1] : memref<4x4x128xbf16, #tpu.memory_space<vmem>>, vector<4x4x128xbf16>
    %c0_2 = arith.constant 0 : index
    %c0_3 = arith.constant 0 : index
    %1 = vector.load %arg2[%c0_2, %c0_3] : memref<128x384xbf16, #tpu.memory_space<vmem>>, vector<128x384xbf16>
    %c0_4 = arith.constant 0 : index
    %c0_5 = arith.constant 0 : index
    %2 = vector.load %arg3[%c0_4, %c0_5] : memref<1x384xf32, #tpu.memory_space<vmem>>, vector<1x384xf32>
    "tpu.trace_start"() <{level = 10 : i32, message = "tsd,de->tse"}> : () -> ()
    %cst = arith.constant dense<0.000000e+00> : vector<4x4x384xf32>
    %3 = tpu.matmul %0, %1, %cst {dimension_numbers = #tpu.dot_dimension_numbers<[2], [0], [0, 1], [1], [0, 0, 0, 1, 1, 1], [], []>} : vector<4x4x128xbf16>, vector<128x384xbf16>, vector<4x4x384xf32> -> vector<4x4x384xf32>
    "tpu.trace_stop"() : () -> ()
    %4 = vector.shape_cast %2 : vector<1x384xf32> to vector<1x1x384xf32>
    %5 = vector.broadcast %4 : vector<1x1x384xf32> to vector<4x4x384xf32>
    %6 = arith.addf %3, %5 : vector<4x4x384xf32>
    %7 = arith.truncf %6 : vector<4x4x384xf32> to vector<4x4x384xbf16>
    %8 = vector.extract_strided_slice %7 {offsets = [0, 0, 0], sizes = [4, 4, 128], strides = [1, 1, 1]} : vector<4x4x384xbf16> to vector<4x4x128xbf16>
    %9 = vector.extract_strided_slice %7 {offsets = [0, 0, 128], sizes = [4, 4, 128], strides = [1, 1, 1]} : vector<4x4x384xbf16> to vector<4x4x128xbf16>
    %10 = vector.extract_strided_slice %7 {offsets = [0, 0, 256], sizes = [4, 4, 128], strides = [1, 1, 1]} : vector<4x4x384xbf16> to vector<4x4x128xbf16>
    %11 = vector.extract_strided_slice %8 {offsets = [0, 0, 0], sizes = [4, 4, 32], strides = [1, 1, 1]} : vector<4x4x128xbf16> to vector<4x4x32xbf16>
    %12 = vector.extract_strided_slice %8 {offsets = [0, 0, 32], sizes = [4, 4, 32], strides = [1, 1, 1]} : vector<4x4x128xbf16> to vector<4x4x32xbf16>
    %13 = vector.extract_strided_slice %8 {offsets = [0, 0, 64], sizes = [4, 4, 32], strides = [1, 1, 1]} : vector<4x4x128xbf16> to vector<4x4x32xbf16>
    %14 = vector.extract_strided_slice %8 {offsets = [0, 0, 96], sizes = [4, 4, 32], strides = [1, 1, 1]} : vector<4x4x128xbf16> to vector<4x4x32xbf16>
    %15 = tpu.concatenate %11, %12, %13, %14 in 0 : vector<4x4x32xbf16>, vector<4x4x32xbf16>, vector<4x4x32xbf16>, vector<4x4x32xbf16> -> vector<16x4x32xbf16>
    %16 = vector.extract_strided_slice %9 {offsets = [0, 0, 0], sizes = [4, 4, 32], strides = [1, 1, 1]} : vector<4x4x128xbf16> to vector<4x4x32xbf16>
    %17 = vector.extract_strided_slice %9 {offsets = [0, 0, 32], sizes = [4, 4, 32], strides = [1, 1, 1]} : vector<4x4x128xbf16> to vector<4x4x32xbf16>
    %18 = vector.extract_strided_slice %9 {offsets = [0, 0, 64], sizes = [4, 4, 32], strides = [1, 1, 1]} : vector<4x4x128xbf16> to vector<4x4x32xbf16>
    %19 = vector.extract_strided_slice %9 {offsets = [0, 0, 96], sizes = [4, 4, 32], strides = [1, 1, 1]} : vector<4x4x128xbf16> to vector<4x4x32xbf16>
    %20 = tpu.concatenate %16, %17, %18, %19 in 0 : vector<4x4x32xbf16>, vector<4x4x32xbf16>, vector<4x4x32xbf16>, vector<4x4x32xbf16> -> vector<16x4x32xbf16>
    %21 = vector.extract_strided_slice %10 {offsets = [0, 0, 0], sizes = [4, 4, 32], strides = [1, 1, 1]} : vector<4x4x128xbf16> to vector<4x4x32xbf16>
    %22 = vector.extract_strided_slice %10 {offsets = [0, 0, 32], sizes = [4, 4, 32], strides = [1, 1, 1]} : vector<4x4x128xbf16> to vector<4x4x32xbf16>
    %23 = vector.extract_strided_slice %10 {offsets = [0, 0, 64], sizes = [4, 4, 32], strides = [1, 1, 1]} : vector<4x4x128xbf16> to vector<4x4x32xbf16>
    %24 = vector.extract_strided_slice %10 {offsets = [0, 0, 96], sizes = [4, 4, 32], strides = [1, 1, 1]} : vector<4x4x128xbf16> to vector<4x4x32xbf16>
    %25 = tpu.concatenate %21, %22, %23, %24 in 0 : vector<4x4x32xbf16>, vector<4x4x32xbf16>, vector<4x4x32xbf16>, vector<4x4x32xbf16> -> vector<16x4x32xbf16>
    "tpu.trace_start"() <{level = 10 : i32, message = "bqd,bkd->bqk"}> : () -> ()
    %cst_6 = arith.constant dense<0.000000e+00> : vector<16x4x4xf32>
    %26 = tpu.matmul %15, %20, %cst_6 {dimension_numbers = #tpu.dot_dimension_numbers<[2], [2], [1], [1], [0, 0, 0, 1, 1, 1], [0], [0]>} : vector<16x4x32xbf16>, vector<16x4x32xbf16>, vector<16x4x4xf32> -> vector<16x4x4xf32>
    "tpu.trace_stop"() : () -> ()
    %cst_7 = arith.constant dense<0xFF800000> : vector<16x4xf32>
    %27 = vector.multi_reduction <maximumf>, %26, %cst_7 [2] : vector<16x4x4xf32> to vector<16x4xf32>
    %28 = vector.shape_cast %27 : vector<16x4xf32> to vector<16x4x1xf32>
    %29 = vector.broadcast %28 : vector<16x4x1xf32> to vector<16x4x4xf32>
    %30 = arith.subf %26, %29 : vector<16x4x4xf32>
    %31 = math.exp %30 : vector<16x4x4xf32>
    %cst_8 = arith.constant dense<0.000000e+00> : vector<16x4xf32>
    %32 = vector.multi_reduction <add>, %31, %cst_8 [2] : vector<16x4x4xf32> to vector<16x4xf32>
    %33 = vector.shape_cast %32 : vector<16x4xf32> to vector<16x4x1xf32>
    %34 = tpu.reciprocal %33 {approx = true} : vector<16x4x1xf32> -> vector<16x4x1xf32>
    %35 = vector.broadcast %34 : vector<16x4x1xf32> to vector<16x4x4xf32>
    %36 = arith.mulf %31, %35 : vector<16x4x4xf32>
    %37 = arith.truncf %36 : vector<16x4x4xf32> to vector<16x4x4xbf16>
    "tpu.trace_start"() <{level = 10 : i32, message = "bqk,bkd->bqd"}> : () -> ()
    %cst_9 = arith.constant dense<0.000000e+00> : vector<16x4x32xf32>
    %38 = tpu.matmul %37, %25, %cst_9 {dimension_numbers = #tpu.dot_dimension_numbers<[2], [1], [1], [2], [0, 0, 0, 1, 1, 2], [0], [0]>} : vector<16x4x4xbf16>, vector<16x4x32xbf16>, vector<16x4x32xf32> -> vector<16x4x32xf32>
    "tpu.trace_stop"() : () -> ()
    %39 = vector.extract_strided_slice %38 {offsets = [0, 0, 0], sizes = [4, 4, 32], strides = [1, 1, 1]} : vector<16x4x32xf32> to vector<4x4x32xf32>
    %40 = vector.extract_strided_slice %38 {offsets = [4, 0, 0], sizes = [4, 4, 32], strides = [1, 1, 1]} : vector<16x4x32xf32> to vector<4x4x32xf32>
    %41 = vector.extract_strided_slice %38 {offsets = [8, 0, 0], sizes = [4, 4, 32], strides = [1, 1, 1]} : vector<16x4x32xf32> to vector<4x4x32xf32>
    %42 = vector.extract_strided_slice %38 {offsets = [12, 0, 0], sizes = [4, 4, 32], strides = [1, 1, 1]} : vector<16x4x32xf32> to vector<4x4x32xf32>
    %43 = tpu.concatenate %39, %40, %41, %42 in 2 : vector<4x4x32xf32>, vector<4x4x32xf32>, vector<4x4x32xf32>, vector<4x4x32xf32> -> vector<4x4x128xf32>
    %44 = vector.extract_strided_slice %43 {offsets = [0, 1, 0], sizes = [4, 3, 128], strides = [1, 1, 1]} : vector<4x4x128xf32> to vector<4x3x128xf32>
    %45 = arith.truncf %44 : vector<4x3x128xf32> to vector<4x3x128xbf16>
    %c0_10 = arith.constant 0 : index
    %c0_11 = arith.constant 0 : index
    %c0_12 = arith.constant 0 : index
    %46 = vector.load %arg5[%c0_10, %c0_11, %c0_12] : memref<4x3x128xbf16, #tpu.memory_space<vmem>>, vector<4x3x128xbf16>
    tpu.vector_store %arg5[%c0_10, %c0_11, %c0_12], %45 {strides = array<i32>} : memref<4x3x128xbf16, #tpu.memory_space<vmem>>, vector<4x3x128xbf16>,
    %cst_13 = arith.constant dense<0.000000e+00> : vector<4x128xf32>
    %47 = vector.multi_reduction <add>, %43, %cst_13 [1] : vector<4x4x128xf32> to vector<4x128xf32>
    %cst_14 = arith.constant 4.000000e+00 : f32
    %48 = vector.broadcast %cst_14 : f32 to vector<4x128xf32>
    %49 = arith.divf %47, %48 : vector<4x128xf32>
    %50 = arith.truncf %49 : vector<4x128xf32> to vector<4x128xbf16>
    %c0_15 = arith.constant 0 : index
    %c0_16 = arith.constant 0 : index
    %51 = vector.load %arg4[%c0_15, %c0_16] : memref<128x128xbf16, #tpu.memory_space<vmem>>, vector<128x128xbf16>
    %cst_17 = arith.constant dense<0.000000e+00> : vector<4x128xf32>
    %52 = tpu.matmul %50, %51, %cst_17 {dimension_numbers = #tpu.dot_dimension_numbers<[1], [0], [0], [1], [0, 0, 1, 1], [], []>} : vector<4x128xbf16>, vector<128x128xbf16>, vector<4x128xf32> -> vector<4x128xf32>
    %cst_18 = arith.constant 0.000000e+00 : f32
    %53 = vector.broadcast %cst_18 : f32 to vector<4x128xf32>
    %54 = arith.maximumf %52, %53 : vector<4x128xf32>
    %55 = vector.shape_cast %54 : vector<4x128xf32> to vector<4x1x128xf32>
    %56 = arith.truncf %55 : vector<4x1x128xf32> to vector<4x1x128xbf16>
    %c0_19 = arith.constant 0 : index
    %c0_20 = arith.constant 0 : index
    %c0_21 = arith.constant 0 : index
    %57 = vector.load %arg6[%c0_19, %c0_20, %c0_21] : memref<4x1x128xbf16, #tpu.memory_space<vmem>>, vector<4x1x128xbf16>
    tpu.vector_store %arg6[%c0_19, %c0_20, %c0_21], %56 {strides = array<i32>} : memref<4x1x128xbf16, #tpu.memory_space<vmem>>, vector<4x1x128xbf16>,
    return
  }
  func.func @transform_0(%arg0: i32) -> (i32, i32, i32) {
    %c0_i32 = arith.constant 0 : i32
    %c0_i32_0 = arith.constant 0 : i32
    %c0_i32_1 = arith.constant 0 : i32
    return %arg0, %c0_i32, %c0_i32_0 : i32, i32, i32
  }
  func.func @transform_1(%arg0: i32) -> (i32, i32) {
    %c0_i32 = arith.constant 0 : i32
    %c0_i32_0 = arith.constant 0 : i32
    %c0_i32_1 = arith.constant 0 : i32
    return %c0_i32, %c0_i32_0 : i32, i32
  }
  func.func @transform_2(%arg0: i32) -> (i32, i32) {
    %c0_i32 = arith.constant 0 : i32
    %c0_i32_0 = arith.constant 0 : i32
    %c0_i32_1 = arith.constant 0 : i32
    return %c0_i32, %c0_i32_0 : i32, i32
  }
  func.func @transform_3(%arg0: i32) -> (i32, i32) {
    %c0_i32 = arith.constant 0 : i32
    %c0_i32_0 = arith.constant 0 : i32
    %c0_i32_1 = arith.constant 0 : i32
    return %c0_i32, %c0_i32_0 : i32, i32
  }
  func.func @transform_4(%arg0: i32) -> (i32, i32, i32) {
    %c0_i32 = arith.constant 0 : i32
    %c0_i32_0 = arith.constant 0 : i32
    %c0_i32_1 = arith.constant 0 : i32
    return %arg0, %c0_i32, %c0_i32_0 : i32, i32, i32
  }
  func.func @transform_5(%arg0: i32) -> (i32, i32, i32) {
    %c0_i32 = arith.constant 0 : i32
    %c0_i32_0 = arith.constant 0 : i32
    %c0_i32_1 = arith.constant 0 : i32
    return %arg0, %c0_i32, %c0_i32_0 : i32, i32, i32
  }
}

module attributes {stable_mosaic.version = 11 : i64} {
  func.func @bert_layer_kernel(%arg0: i32, %arg1: memref<4x8x128xbf16, #tpu.memory_space<vmem>>, %arg2: memref<4x1x8xf32, #tpu.memory_space<vmem>>, %arg3: memref<4x1x128xbf16, #tpu.memory_space<vmem>>, %arg4: memref<128x384xbf16, #tpu.memory_space<vmem>>, %arg5: memref<1x384xf32, #tpu.memory_space<vmem>>, %arg6: memref<128x128xbf16, #tpu.memory_space<vmem>>, %arg7: memref<1x128xf32, #tpu.memory_space<vmem>>, %arg8: memref<1x128xf32, #tpu.memory_space<vmem>>, %arg9: memref<1x128xf32, #tpu.memory_space<vmem>>, %arg10: memref<128x512xbf16, #tpu.memory_space<vmem>>, %arg11: memref<1x512xf32, #tpu.memory_space<vmem>>, %arg12: memref<512x128xbf16, #tpu.memory_space<vmem>>, %arg13: memref<1x128xf32, #tpu.memory_space<vmem>>, %arg14: memref<1x128xf32, #tpu.memory_space<vmem>>, %arg15: memref<1x128xf32, #tpu.memory_space<vmem>>, %arg16: memref<4x8x128xbf16, #tpu.memory_space<vmem>>) attributes {dimension_semantics = [#tpu.dimension_semantics<parallel>], iteration_bounds = array<i64: 2>, scalar_prefetch = 0 : i64, scratch_operands = 0 : i64, tpu.core_type = #tpu.core_type<tc>, window_params = [{transform_indices = @transform_0, window_bounds = array<i64: 4, 8, 128>}, {transform_indices = @transform_1, window_bounds = array<i64: 4, 1, 8>}, {transform_indices = @transform_2, window_bounds = array<i64: 4, 1, 128>}, {pipeline_mode = #tpu.pipeline_mode<synchronous>, transform_indices = @transform_3, window_bounds = array<i64: 128, 384>}, {pipeline_mode = #tpu.pipeline_mode<synchronous>, transform_indices = @transform_4, window_bounds = array<i64: 1, 384>}, {pipeline_mode = #tpu.pipeline_mode<synchronous>, transform_indices = @transform_5, window_bounds = array<i64: 128, 128>}, {pipeline_mode = #tpu.pipeline_mode<synchronous>, transform_indices = @transform_6, window_bounds = array<i64: 1, 128>}, {pipeline_mode = #tpu.pipeline_mode<synchronous>, transform_indices = @transform_7, window_bounds = array<i64: 1, 128>}, {pipeline_mode = #tpu.pipeline_mode<synchronous>, transform_indices = @transform_8, window_bounds = array<i64: 1, 128>}, {pipeline_mode = #tpu.pipeline_mode<synchronous>, transform_indices = @transform_9, window_bounds = array<i64: 128, 512>}, {pipeline_mode = #tpu.pipeline_mode<synchronous>, transform_indices = @transform_10, window_bounds = array<i64: 1, 512>}, {pipeline_mode = #tpu.pipeline_mode<synchronous>, transform_indices = @transform_11, window_bounds = array<i64: 512, 128>}, {pipeline_mode = #tpu.pipeline_mode<synchronous>, transform_indices = @transform_12, window_bounds = array<i64: 1, 128>}, {pipeline_mode = #tpu.pipeline_mode<synchronous>, transform_indices = @transform_13, window_bounds = array<i64: 1, 128>}, {pipeline_mode = #tpu.pipeline_mode<synchronous>, transform_indices = @transform_14, window_bounds = array<i64: 1, 128>}, {transform_indices = @transform_15, window_bounds = array<i64: 4, 8, 128>}]} {
    %c0 = arith.constant 0 : index
    %c0_0 = arith.constant 0 : index
    %c0_1 = arith.constant 0 : index
    %0 = vector.load %arg1[%c0, %c0_0, %c0_1] : memref<4x8x128xbf16, #tpu.memory_space<vmem>>, vector<4x8x128xbf16>
    %1 = arith.extf %0 : vector<4x8x128xbf16> to vector<4x8x128xf32>
    %2 = tpu.iota {dimensions = array<i32: 1>} : vector<1x8x1xi32>
    %c0_i32 = arith.constant 0 : i32
    %3 = vector.broadcast %c0_i32 : i32 to vector<1x8x1xi32>
    %4 = arith.cmpi eq, %2, %3 : vector<1x8x1xi32>
    %c0_2 = arith.constant 0 : index
    %c0_3 = arith.constant 0 : index
    %c0_4 = arith.constant 0 : index
    %5 = vector.load %arg3[%c0_2, %c0_3, %c0_4] : memref<4x1x128xbf16, #tpu.memory_space<vmem>>, vector<4x1x128xbf16>
    %6 = arith.extf %5 : vector<4x1x128xbf16> to vector<4x1x128xf32>
    %cst = arith.constant 0.000000e+00 : f32
    %7 = vector.shape_cast %4 : vector<1x8x1xi1> to vector<1x8x1xi1>
    %8 = vector.broadcast %7 : vector<1x8x1xi1> to vector<4x8x128xi1>
    %9 = vector.shape_cast %6 : vector<4x1x128xf32> to vector<4x1x128xf32>
    %10 = vector.broadcast %9 : vector<4x1x128xf32> to vector<4x8x128xf32>
    %11 = vector.broadcast %cst : f32 to vector<4x8x128xf32>
    %12 = arith.select %8, %10, %11 : vector<4x8x128xi1>, vector<4x8x128xf32>
    %13 = arith.addf %1, %12 : vector<4x8x128xf32>
    %c0_5 = arith.constant 0 : index
    %c0_6 = arith.constant 0 : index
    %c0_7 = arith.constant 0 : index
    %14 = vector.load %arg2[%c0_5, %c0_6, %c0_7] : memref<4x1x8xf32, #tpu.memory_space<vmem>>, vector<4x1x8xf32>
    %c0_8 = arith.constant 0 : index
    %c0_9 = arith.constant 0 : index
    %15 = vector.load %arg4[%c0_8, %c0_9] : memref<128x384xbf16, #tpu.memory_space<vmem>>, vector<128x384xbf16>
    %c0_10 = arith.constant 0 : index
    %c0_11 = arith.constant 0 : index
    %16 = vector.load %arg5[%c0_10, %c0_11] : memref<1x384xf32, #tpu.memory_space<vmem>>, vector<1x384xf32>
    %17 = arith.truncf %13 : vector<4x8x128xf32> to vector<4x8x128xbf16>
    "tpu.trace_start"() <{level = 10 : i32, message = "tsd,de->tse"}> : () -> ()
    %cst_12 = arith.constant dense<0.000000e+00> : vector<4x8x384xf32>
    %18 = tpu.matmul %17, %15, %cst_12 {dimension_numbers = #tpu.dot_dimension_numbers<[2], [0], [0, 1], [1], [0, 0, 0, 1, 1, 1], [], []>} : vector<4x8x128xbf16>, vector<128x384xbf16>, vector<4x8x384xf32> -> vector<4x8x384xf32>
    "tpu.trace_stop"() : () -> ()
    %19 = vector.shape_cast %16 : vector<1x384xf32> to vector<1x1x384xf32>
    %20 = vector.broadcast %19 : vector<1x1x384xf32> to vector<4x8x384xf32>
    %21 = arith.addf %18, %20 : vector<4x8x384xf32>
    %22 = arith.truncf %21 : vector<4x8x384xf32> to vector<4x8x384xbf16>
    %23 = vector.extract_strided_slice %22 {offsets = [0, 0, 0], sizes = [4, 8, 128], strides = [1, 1, 1]} : vector<4x8x384xbf16> to vector<4x8x128xbf16>
    %24 = vector.extract_strided_slice %22 {offsets = [0, 0, 128], sizes = [4, 8, 128], strides = [1, 1, 1]} : vector<4x8x384xbf16> to vector<4x8x128xbf16>
    %25 = vector.extract_strided_slice %22 {offsets = [0, 0, 256], sizes = [4, 8, 128], strides = [1, 1, 1]} : vector<4x8x384xbf16> to vector<4x8x128xbf16>
    %26 = vector.extract_strided_slice %23 {offsets = [0, 0, 0], sizes = [4, 8, 32], strides = [1, 1, 1]} : vector<4x8x128xbf16> to vector<4x8x32xbf16>
    %27 = vector.extract_strided_slice %23 {offsets = [0, 0, 32], sizes = [4, 8, 32], strides = [1, 1, 1]} : vector<4x8x128xbf16> to vector<4x8x32xbf16>
    %28 = vector.extract_strided_slice %23 {offsets = [0, 0, 64], sizes = [4, 8, 32], strides = [1, 1, 1]} : vector<4x8x128xbf16> to vector<4x8x32xbf16>
    %29 = vector.extract_strided_slice %23 {offsets = [0, 0, 96], sizes = [4, 8, 32], strides = [1, 1, 1]} : vector<4x8x128xbf16> to vector<4x8x32xbf16>
    %30 = tpu.concatenate %26, %27, %28, %29 in 0 : vector<4x8x32xbf16>, vector<4x8x32xbf16>, vector<4x8x32xbf16>, vector<4x8x32xbf16> -> vector<16x8x32xbf16>
    %31 = vector.extract_strided_slice %24 {offsets = [0, 0, 0], sizes = [4, 8, 32], strides = [1, 1, 1]} : vector<4x8x128xbf16> to vector<4x8x32xbf16>
    %32 = vector.extract_strided_slice %24 {offsets = [0, 0, 32], sizes = [4, 8, 32], strides = [1, 1, 1]} : vector<4x8x128xbf16> to vector<4x8x32xbf16>
    %33 = vector.extract_strided_slice %24 {offsets = [0, 0, 64], sizes = [4, 8, 32], strides = [1, 1, 1]} : vector<4x8x128xbf16> to vector<4x8x32xbf16>
    %34 = vector.extract_strided_slice %24 {offsets = [0, 0, 96], sizes = [4, 8, 32], strides = [1, 1, 1]} : vector<4x8x128xbf16> to vector<4x8x32xbf16>
    %35 = tpu.concatenate %31, %32, %33, %34 in 0 : vector<4x8x32xbf16>, vector<4x8x32xbf16>, vector<4x8x32xbf16>, vector<4x8x32xbf16> -> vector<16x8x32xbf16>
    %36 = vector.extract_strided_slice %25 {offsets = [0, 0, 0], sizes = [4, 8, 32], strides = [1, 1, 1]} : vector<4x8x128xbf16> to vector<4x8x32xbf16>
    %37 = vector.extract_strided_slice %25 {offsets = [0, 0, 32], sizes = [4, 8, 32], strides = [1, 1, 1]} : vector<4x8x128xbf16> to vector<4x8x32xbf16>
    %38 = vector.extract_strided_slice %25 {offsets = [0, 0, 64], sizes = [4, 8, 32], strides = [1, 1, 1]} : vector<4x8x128xbf16> to vector<4x8x32xbf16>
    %39 = vector.extract_strided_slice %25 {offsets = [0, 0, 96], sizes = [4, 8, 32], strides = [1, 1, 1]} : vector<4x8x128xbf16> to vector<4x8x32xbf16>
    %40 = tpu.concatenate %36, %37, %38, %39 in 0 : vector<4x8x32xbf16>, vector<4x8x32xbf16>, vector<4x8x32xbf16>, vector<4x8x32xbf16> -> vector<16x8x32xbf16>
    "tpu.trace_start"() <{level = 10 : i32, message = "bqd,bkd->bqk"}> : () -> ()
    %cst_13 = arith.constant dense<0.000000e+00> : vector<16x8x8xf32>
    %41 = tpu.matmul %30, %35, %cst_13 {dimension_numbers = #tpu.dot_dimension_numbers<[2], [2], [1], [1], [0, 0, 0, 1, 1, 1], [0], [0]>} : vector<16x8x32xbf16>, vector<16x8x32xbf16>, vector<16x8x8xf32> -> vector<16x8x8xf32>
    "tpu.trace_stop"() : () -> ()
    %42 = tpu.concatenate %14, %14, %14, %14 in 0 : vector<4x1x8xf32>, vector<4x1x8xf32>, vector<4x1x8xf32>, vector<4x1x8xf32> -> vector<16x1x8xf32>
    %43 = vector.broadcast %42 : vector<16x1x8xf32> to vector<16x8x8xf32>
    %44 = arith.addf %41, %43 : vector<16x8x8xf32>
    %cst_14 = arith.constant dense<0xFF800000> : vector<16x8xf32>
    %45 = vector.multi_reduction <maximumf>, %44, %cst_14 [2] : vector<16x8x8xf32> to vector<16x8xf32>
    %46 = vector.shape_cast %45 : vector<16x8xf32> to vector<16x8x1xf32>
    %47 = vector.broadcast %46 : vector<16x8x1xf32> to vector<16x8x8xf32>
    %48 = arith.subf %44, %47 : vector<16x8x8xf32>
    %49 = math.exp %48 : vector<16x8x8xf32>
    %cst_15 = arith.constant dense<0.000000e+00> : vector<16x8xf32>
    %50 = vector.multi_reduction <add>, %49, %cst_15 [2] : vector<16x8x8xf32> to vector<16x8xf32>
    %51 = vector.shape_cast %50 : vector<16x8xf32> to vector<16x8x1xf32>
    %52 = tpu.reciprocal %51 {approx = true} : vector<16x8x1xf32> -> vector<16x8x1xf32>
    %53 = vector.broadcast %52 : vector<16x8x1xf32> to vector<16x8x8xf32>
    %54 = arith.mulf %49, %53 : vector<16x8x8xf32>
    %55 = arith.truncf %54 : vector<16x8x8xf32> to vector<16x8x8xbf16>
    "tpu.trace_start"() <{level = 10 : i32, message = "bqk,bkd->bqd"}> : () -> ()
    %cst_16 = arith.constant dense<0.000000e+00> : vector<16x8x32xf32>
    %56 = tpu.matmul %55, %40, %cst_16 {dimension_numbers = #tpu.dot_dimension_numbers<[2], [1], [1], [2], [0, 0, 0, 1, 1, 2], [0], [0]>} : vector<16x8x8xbf16>, vector<16x8x32xbf16>, vector<16x8x32xf32> -> vector<16x8x32xf32>
    "tpu.trace_stop"() : () -> ()
    %57 = vector.extract_strided_slice %56 {offsets = [0, 0, 0], sizes = [4, 8, 32], strides = [1, 1, 1]} : vector<16x8x32xf32> to vector<4x8x32xf32>
    %58 = vector.extract_strided_slice %56 {offsets = [4, 0, 0], sizes = [4, 8, 32], strides = [1, 1, 1]} : vector<16x8x32xf32> to vector<4x8x32xf32>
    %59 = vector.extract_strided_slice %56 {offsets = [8, 0, 0], sizes = [4, 8, 32], strides = [1, 1, 1]} : vector<16x8x32xf32> to vector<4x8x32xf32>
    %60 = vector.extract_strided_slice %56 {offsets = [12, 0, 0], sizes = [4, 8, 32], strides = [1, 1, 1]} : vector<16x8x32xf32> to vector<4x8x32xf32>
    %61 = tpu.concatenate %57, %58, %59, %60 in 2 : vector<4x8x32xf32>, vector<4x8x32xf32>, vector<4x8x32xf32>, vector<4x8x32xf32> -> vector<4x8x128xf32>
    %62 = arith.truncf %61 : vector<4x8x128xf32> to vector<4x8x128xbf16>
    %c0_17 = arith.constant 0 : index
    %c0_18 = arith.constant 0 : index
    %63 = vector.load %arg6[%c0_17, %c0_18] : memref<128x128xbf16, #tpu.memory_space<vmem>>, vector<128x128xbf16>
    "tpu.trace_start"() <{level = 10 : i32, message = "tsd,de->tse"}> : () -> ()
    %cst_19 = arith.constant dense<0.000000e+00> : vector<4x8x128xf32>
    %64 = tpu.matmul %62, %63, %cst_19 {dimension_numbers = #tpu.dot_dimension_numbers<[2], [0], [0, 1], [1], [0, 0, 0, 1, 1, 1], [], []>} : vector<4x8x128xbf16>, vector<128x128xbf16>, vector<4x8x128xf32> -> vector<4x8x128xf32>
    "tpu.trace_stop"() : () -> ()
    %c0_20 = arith.constant 0 : index
    %c0_21 = arith.constant 0 : index
    %65 = vector.load %arg7[%c0_20, %c0_21] : memref<1x128xf32, #tpu.memory_space<vmem>>, vector<1x128xf32>
    %66 = vector.shape_cast %65 : vector<1x128xf32> to vector<1x1x128xf32>
    %67 = vector.broadcast %66 : vector<1x1x128xf32> to vector<4x8x128xf32>
    %68 = arith.addf %64, %67 : vector<4x8x128xf32>
    %69 = arith.addf %68, %13 : vector<4x8x128xf32>
    %c0_22 = arith.constant 0 : index
    %c0_23 = arith.constant 0 : index
    %70 = vector.load %arg8[%c0_22, %c0_23] : memref<1x128xf32, #tpu.memory_space<vmem>>, vector<1x128xf32>
    %c0_24 = arith.constant 0 : index
    %c0_25 = arith.constant 0 : index
    %71 = vector.load %arg9[%c0_24, %c0_25] : memref<1x128xf32, #tpu.memory_space<vmem>>, vector<1x128xf32>
    %cst_26 = arith.constant dense<0.000000e+00> : vector<4x8xf32>
    %72 = vector.multi_reduction <add>, %69, %cst_26 [2] : vector<4x8x128xf32> to vector<4x8xf32>
    %73 = vector.shape_cast %72 : vector<4x8xf32> to vector<4x8x1xf32>
    %cst_27 = arith.constant 1.280000e+02 : f32
    %74 = vector.broadcast %cst_27 : f32 to vector<4x8x1xf32>
    %75 = arith.divf %73, %74 : vector<4x8x1xf32>
    %76 = vector.broadcast %75 : vector<4x8x1xf32> to vector<4x8x128xf32>
    %77 = arith.subf %69, %76 : vector<4x8x128xf32>
    %78 = arith.mulf %77, %77 : vector<4x8x128xf32>
    %cst_28 = arith.constant dense<0.000000e+00> : vector<4x8xf32>
    %79 = vector.multi_reduction <add>, %78, %cst_28 [2] : vector<4x8x128xf32> to vector<4x8xf32>
    %80 = vector.shape_cast %79 : vector<4x8xf32> to vector<4x8x1xf32>
    %cst_29 = arith.constant 1.280000e+02 : f32
    %81 = vector.broadcast %cst_29 : f32 to vector<4x8x1xf32>
    %82 = arith.divf %80, %81 : vector<4x8x1xf32>
    %83 = vector.broadcast %75 : vector<4x8x1xf32> to vector<4x8x128xf32>
    %84 = arith.subf %69, %83 : vector<4x8x128xf32>
    %cst_30 = arith.constant 9.99999996E-13 : f32
    %85 = vector.broadcast %cst_30 : f32 to vector<4x8x1xf32>
    %86 = arith.addf %82, %85 : vector<4x8x1xf32>
    %87 = math.rsqrt %86 : vector<4x8x1xf32>
    %88 = vector.broadcast %87 : vector<4x8x1xf32> to vector<4x8x128xf32>
    %89 = arith.mulf %84, %88 : vector<4x8x128xf32>
    %90 = vector.shape_cast %70 : vector<1x128xf32> to vector<1x1x128xf32>
    %91 = vector.broadcast %90 : vector<1x1x128xf32> to vector<4x8x128xf32>
    %92 = arith.mulf %89, %91 : vector<4x8x128xf32>
    %93 = vector.shape_cast %71 : vector<1x128xf32> to vector<1x1x128xf32>
    %94 = vector.broadcast %93 : vector<1x1x128xf32> to vector<4x8x128xf32>
    %95 = arith.addf %92, %94 : vector<4x8x128xf32>
    %96 = arith.truncf %95 : vector<4x8x128xf32> to vector<4x8x128xbf16>
    %c0_31 = arith.constant 0 : index
    %c0_32 = arith.constant 0 : index
    %97 = vector.load %arg10[%c0_31, %c0_32] : memref<128x512xbf16, #tpu.memory_space<vmem>>, vector<128x512xbf16>
    "tpu.trace_start"() <{level = 10 : i32, message = "tsd,de->tse"}> : () -> ()
    %cst_33 = arith.constant dense<0.000000e+00> : vector<4x8x512xf32>
    %98 = tpu.matmul %96, %97, %cst_33 {dimension_numbers = #tpu.dot_dimension_numbers<[2], [0], [0, 1], [1], [0, 0, 0, 1, 1, 1], [], []>} : vector<4x8x128xbf16>, vector<128x512xbf16>, vector<4x8x512xf32> -> vector<4x8x512xf32>
    "tpu.trace_stop"() : () -> ()
    %c0_34 = arith.constant 0 : index
    %c0_35 = arith.constant 0 : index
    %99 = vector.load %arg11[%c0_34, %c0_35] : memref<1x512xf32, #tpu.memory_space<vmem>>, vector<1x512xf32>
    %100 = vector.shape_cast %99 : vector<1x512xf32> to vector<1x1x512xf32>
    %101 = vector.broadcast %100 : vector<1x1x512xf32> to vector<4x8x512xf32>
    %102 = arith.addf %98, %101 : vector<4x8x512xf32>
    %cst_36 = arith.constant 5.000000e-01 : f32
    %103 = vector.broadcast %cst_36 : f32 to vector<4x8x512xf32>
    %104 = arith.mulf %103, %102 : vector<4x8x512xf32>
    %cst_37 = arith.constant 4.471500e-02 : f32
    %105 = vector.broadcast %cst_37 : f32 to vector<4x8x512xf32>
    %106 = arith.mulf %105, %102 : vector<4x8x512xf32>
    %107 = arith.mulf %106, %102 : vector<4x8x512xf32>
    %108 = arith.mulf %107, %102 : vector<4x8x512xf32>
    %109 = arith.addf %102, %108 : vector<4x8x512xf32>
    %cst_38 = arith.constant 0.797884583 : f32
    %110 = vector.broadcast %cst_38 : f32 to vector<4x8x512xf32>
    %111 = arith.mulf %110, %109 : vector<4x8x512xf32>
    %112 = math.tanh %111 : vector<4x8x512xf32>
    %cst_39 = arith.constant 1.000000e+00 : f32
    %113 = vector.broadcast %cst_39 : f32 to vector<4x8x512xf32>
    %114 = arith.addf %113, %112 : vector<4x8x512xf32>
    %115 = arith.mulf %104, %114 : vector<4x8x512xf32>
    %116 = arith.truncf %115 : vector<4x8x512xf32> to vector<4x8x512xbf16>
    %c0_40 = arith.constant 0 : index
    %c0_41 = arith.constant 0 : index
    %117 = vector.load %arg12[%c0_40, %c0_41] : memref<512x128xbf16, #tpu.memory_space<vmem>>, vector<512x128xbf16>
    "tpu.trace_start"() <{level = 10 : i32, message = "tsd,de->tse"}> : () -> ()
    %cst_42 = arith.constant dense<0.000000e+00> : vector<4x8x128xf32>
    %118 = tpu.matmul %116, %117, %cst_42 {dimension_numbers = #tpu.dot_dimension_numbers<[2], [0], [0, 1], [1], [0, 0, 0, 1, 1, 1], [], []>} : vector<4x8x512xbf16>, vector<512x128xbf16>, vector<4x8x128xf32> -> vector<4x8x128xf32>
    "tpu.trace_stop"() : () -> ()
    %c0_43 = arith.constant 0 : index
    %c0_44 = arith.constant 0 : index
    %119 = vector.load %arg13[%c0_43, %c0_44] : memref<1x128xf32, #tpu.memory_space<vmem>>, vector<1x128xf32>
    %120 = vector.shape_cast %119 : vector<1x128xf32> to vector<1x1x128xf32>
    %121 = vector.broadcast %120 : vector<1x1x128xf32> to vector<4x8x128xf32>
    %122 = arith.addf %118, %121 : vector<4x8x128xf32>
    %123 = arith.addf %122, %95 : vector<4x8x128xf32>
    %c0_45 = arith.constant 0 : index
    %c0_46 = arith.constant 0 : index
    %124 = vector.load %arg14[%c0_45, %c0_46] : memref<1x128xf32, #tpu.memory_space<vmem>>, vector<1x128xf32>
    %c0_47 = arith.constant 0 : index
    %c0_48 = arith.constant 0 : index
    %125 = vector.load %arg15[%c0_47, %c0_48] : memref<1x128xf32, #tpu.memory_space<vmem>>, vector<1x128xf32>
    %cst_49 = arith.constant dense<0.000000e+00> : vector<4x8xf32>
    %126 = vector.multi_reduction <add>, %123, %cst_49 [2] : vector<4x8x128xf32> to vector<4x8xf32>
    %127 = vector.shape_cast %126 : vector<4x8xf32> to vector<4x8x1xf32>
    %cst_50 = arith.constant 1.280000e+02 : f32
    %128 = vector.broadcast %cst_50 : f32 to vector<4x8x1xf32>
    %129 = arith.divf %127, %128 : vector<4x8x1xf32>
    %130 = vector.broadcast %129 : vector<4x8x1xf32> to vector<4x8x128xf32>
    %131 = arith.subf %123, %130 : vector<4x8x128xf32>
    %132 = arith.mulf %131, %131 : vector<4x8x128xf32>
    %cst_51 = arith.constant dense<0.000000e+00> : vector<4x8xf32>
    %133 = vector.multi_reduction <add>, %132, %cst_51 [2] : vector<4x8x128xf32> to vector<4x8xf32>
    %134 = vector.shape_cast %133 : vector<4x8xf32> to vector<4x8x1xf32>
    %cst_52 = arith.constant 1.280000e+02 : f32
    %135 = vector.broadcast %cst_52 : f32 to vector<4x8x1xf32>
    %136 = arith.divf %134, %135 : vector<4x8x1xf32>
    %137 = vector.broadcast %129 : vector<4x8x1xf32> to vector<4x8x128xf32>
    %138 = arith.subf %123, %137 : vector<4x8x128xf32>
    %cst_53 = arith.constant 9.99999996E-13 : f32
    %139 = vector.broadcast %cst_53 : f32 to vector<4x8x1xf32>
    %140 = arith.addf %136, %139 : vector<4x8x1xf32>
    %141 = math.rsqrt %140 : vector<4x8x1xf32>
    %142 = vector.broadcast %141 : vector<4x8x1xf32> to vector<4x8x128xf32>
    %143 = arith.mulf %138, %142 : vector<4x8x128xf32>
    %144 = vector.shape_cast %124 : vector<1x128xf32> to vector<1x1x128xf32>
    %145 = vector.broadcast %144 : vector<1x1x128xf32> to vector<4x8x128xf32>
    %146 = arith.mulf %143, %145 : vector<4x8x128xf32>
    %147 = vector.shape_cast %125 : vector<1x128xf32> to vector<1x1x128xf32>
    %148 = vector.broadcast %147 : vector<1x1x128xf32> to vector<4x8x128xf32>
    %149 = arith.addf %146, %148 : vector<4x8x128xf32>
    %150 = arith.truncf %149 : vector<4x8x128xf32> to vector<4x8x128xbf16>
    %c0_54 = arith.constant 0 : index
    %c0_55 = arith.constant 0 : index
    %c0_56 = arith.constant 0 : index
    %151 = vector.load %arg16[%c0_54, %c0_55, %c0_56] : memref<4x8x128xbf16, #tpu.memory_space<vmem>>, vector<4x8x128xbf16>
    tpu.vector_store %arg16[%c0_54, %c0_55, %c0_56], %150 {strides = array<i32>} : memref<4x8x128xbf16, #tpu.memory_space<vmem>>, vector<4x8x128xbf16>,
    return
  }
  func.func @transform_0(%arg0: i32) -> (i32, i32, i32) {
    %c0_i32 = arith.constant 0 : i32
    %c0_i32_0 = arith.constant 0 : i32
    %c0_i32_1 = arith.constant 0 : i32
    return %arg0, %c0_i32, %c0_i32_0 : i32, i32, i32
  }
  func.func @transform_1(%arg0: i32) -> (i32, i32, i32) {
    %c0_i32 = arith.constant 0 : i32
    %c0_i32_0 = arith.constant 0 : i32
    %c0_i32_1 = arith.constant 0 : i32
    return %arg0, %c0_i32, %c0_i32_0 : i32, i32, i32
  }
  func.func @transform_2(%arg0: i32) -> (i32, i32, i32) {
    %c0_i32 = arith.constant 0 : i32
    %c0_i32_0 = arith.constant 0 : i32
    %c0_i32_1 = arith.constant 0 : i32
    return %arg0, %c0_i32, %c0_i32_0 : i32, i32, i32
  }
  func.func @transform_3(%arg0: i32) -> (i32, i32) {
    %c0_i32 = arith.constant 0 : i32
    %c0_i32_0 = arith.constant 0 : i32
    %c0_i32_1 = arith.constant 0 : i32
    return %c0_i32, %c0_i32_0 : i32, i32
  }
  func.func @transform_4(%arg0: i32) -> (i32, i32) {
    %c0_i32 = arith.constant 0 : i32
    %c0_i32_0 = arith.constant 0 : i32
    %c0_i32_1 = arith.constant 0 : i32
    return %c0_i32, %c0_i32_0 : i32, i32
  }
  func.func @transform_5(%arg0: i32) -> (i32, i32) {
    %c0_i32 = arith.constant 0 : i32
    %c0_i32_0 = arith.constant 0 : i32
    %c0_i32_1 = arith.constant 0 : i32
    return %c0_i32, %c0_i32_0 : i32, i32
  }
  func.func @transform_6(%arg0: i32) -> (i32, i32) {
    %c0_i32 = arith.constant 0 : i32
    %c0_i32_0 = arith.constant 0 : i32
    %c0_i32_1 = arith.constant 0 : i32
    return %c0_i32, %c0_i32_0 : i32, i32
  }
  func.func @transform_7(%arg0: i32) -> (i32, i32) {
    %c0_i32 = arith.constant 0 : i32
    %c0_i32_0 = arith.constant 0 : i32
    %c0_i32_1 = arith.constant 0 : i32
    return %c0_i32, %c0_i32_0 : i32, i32
  }
  func.func @transform_8(%arg0: i32) -> (i32, i32) {
    %c0_i32 = arith.constant 0 : i32
    %c0_i32_0 = arith.constant 0 : i32
    %c0_i32_1 = arith.constant 0 : i32
    return %c0_i32, %c0_i32_0 : i32, i32
  }
  func.func @transform_9(%arg0: i32) -> (i32, i32) {
    %c0_i32 = arith.constant 0 : i32
    %c0_i32_0 = arith.constant 0 : i32
    %c0_i32_1 = arith.constant 0 : i32
    return %c0_i32, %c0_i32_0 : i32, i32
  }
  func.func @transform_10(%arg0: i32) -> (i32, i32) {
    %c0_i32 = arith.constant 0 : i32
    %c0_i32_0 = arith.constant 0 : i32
    %c0_i32_1 = arith.constant 0 : i32
    return %c0_i32, %c0_i32_0 : i32, i32
  }
  func.func @transform_11(%arg0: i32) -> (i32, i32) {
    %c0_i32 = arith.constant 0 : i32
    %c0_i32_0 = arith.constant 0 : i32
    %c0_i32_1 = arith.constant 0 : i32
    return %c0_i32, %c0_i32_0 : i32, i32
  }
  func.func @transform_12(%arg0: i32) -> (i32, i32) {
    %c0_i32 = arith.constant 0 : i32
    %c0_i32_0 = arith.constant 0 : i32
    %c0_i32_1 = arith.constant 0 : i32
    return %c0_i32, %c0_i32_0 : i32, i32
  }
  func.func @transform_13(%arg0: i32) -> (i32, i32) {
    %c0_i32 = arith.constant 0 : i32
    %c0_i32_0 = arith.constant 0 : i32
    %c0_i32_1 = arith.constant 0 : i32
    return %c0_i32, %c0_i32_0 : i32, i32
  }
  func.func @transform_14(%arg0: i32) -> (i32, i32) {
    %c0_i32 = arith.constant 0 : i32
    %c0_i32_0 = arith.constant 0 : i32
    %c0_i32_1 = arith.constant 0 : i32
    return %c0_i32, %c0_i32_0 : i32, i32
  }
  func.func @transform_15(%arg0: i32) -> (i32, i32, i32) {
    %c0_i32 = arith.constant 0 : i32
    %c0_i32_0 = arith.constant 0 : i32
    %c0_i32_1 = arith.constant 0 : i32
    return %arg0, %c0_i32, %c0_i32_0 : i32, i32, i32
  }
}

</mosaic_0001>

<bundles_post_ra>
// kernel: graph_bert_encoder_forward.4
= control target key start
LH: loop header
LB: loop body
LE: loop exit
PB: predicated region body
PF: predicated region fallthrough
CT: control target
= control target key end

     0   :  { %11 = vsyncpa [#allocation3], 0  ;;  %s4168_s0 = inlined_call_operand.vmem [shape: bf16[8,4,128], index: 0, kind: input, shape index: {}]   ;;  %s4169_s1 = inlined_call_operand.vmem [shape: bf16[128,384], index: 1, kind: input, shape index: {}]   ;;  %s4170_s2 = inlined_call_operand.vmem [shape: f32[1,384], index: 2, kind: input, shape index: {}]   ;;  %s4171_s3 = inlined_call_operand.vmem [shape: bf16[128,128], index: 3, kind: input, shape index: {}]   ;;  %s4172_s4 = inlined_call_operand.hbm [shape: bf16[8,3,128], index: 4, kind: output, shape index: {0}]   ;;  %s4173_s5 = inlined_call_operand.vmem [shape: bf16[8,1,128], index: 5, kind: output, shape index: {1}]  }
   0x1   :  { %13 = vsyncpa [#allocation3 + $0x1], 0  ;;  %s3438_s18 = smov 0   ;;  %s3440_s19 = smov 0  }
   0x2   :  { %s3442_s20 = smov 0   ;;  %s3444_s21 = smov 0  }
   0x3 LB: > { %s3459_s22 = sadd.s32 4294967295, %s3396_s21   ;;  %s2784_s23 = sadd.s32 4294967294, %s3396_s21   ;;  %s3396_s21 = sphi %s3444_s21, %s4183_s21   ;;  %s3392_s20 = sphi %s3442_s20, %s4182_s20   ;;  %s3388_s19 = sphi %s3440_s19, %s4181_s19   ;;  %s3384_s18 = sphi %s3438_s18, %s4180_s18  }
   0x4   : > { %s3463_s24 = sadd.s32 1, %s3396_s21   ;;  %s115_s25 = sadd.s32 1, %s3392_s20 }
   0x5   : > { %s112_s26 = ssub.s32 %s3396_s21, %s3463_s24  ;;  %p125_p0 = scmp.ne.s32.totalorder %s3392_s20, %s3388_s19 }
   0x6   : > { %p113_p1 = scmp.eq.s32.totalorder %s112_s26, 0  ;;  %p126_p2 = scmp.eq.s32.totalorder %s3459_s22, 1 }
   0x7   : > { %p131_p3 = scmp.ne.s32.totalorder %s3388_s19, %s3384_s18  ;;  %p132_p4 = scmp.eq.s32.totalorder %s2784_s23, 1 }
   0x8   : > { %s3474_s27 = scalar_select %p113_p1, %s3392_s20, %s115_s25  }
   0x9   : > { %p3476_p5 = por %p126_p2, %p125_p0  ;;  %p3480_p6 = por %p132_p4, %p131_p3 }
   0xa   : > { %p2787_p7 = scmp.ge.s32.totalorder %s3396_s21, 1  ;;  %p194_p8 = scmp.lt.s32.totalorder %s3396_s21, 3 }
   0xc   : > { %p195_p9 = pnand %p2787_p7, %p194_p8 }
   0xd   : > { %v3230_v0 = vld [vmem:[%s4169_s1 + $0x4] ss:$12 sps:$4 sm:$0xff] (!%p195_p9)   ;;  %s2789_s7 = sshll.u32 (!%p195_p9), %s3459_s22, 2  ;;  %v3232_v1 = vld [vmem:[%s4169_s1] ss:$12 sps:$4 sm:$0xff] (!%p195_p9)   ;;  %v3398_v2 = vmov (!%p195_p9), 0   ;;  %v277_v9 = vlaneseq (!%p195_p9) }
   0xe   : > { %198 = sbr.rel (%p195_p9) target bundleno = 1604 (0x644), region = 36  ;;  %478 = vmatprep.mubr.bf16.mxu0 (!%p195_p9), %v3398_v2  ;;  %446 = vmatprep.subr.bf16.mxu0 (!%p195_p9), %v3230_v0  ;;  %v3233_v3 = vld [vmem:[%s4169_s1 + $0x1c] ss:$12 sps:$4 sm:$0xff] (!%p195_p9)   ;;  %v3399_v4 = vmov (!%p195_p9), 0.0   ;;  %v3235_v5 = vld [vmem:[%s4169_s1 + $0x18] ss:$12 sps:$4 sm:$0xff] (!%p195_p9)  }
   0xf   : > { %2950 = vmatprep.subr.bf16.mxu1 (!%p195_p9), %v3399_v4  ;;  %447 = vmatpush1.bf16.msra.mxu0 (!%p195_p9), %v3232_v1  ;;  %p227_p10 = scmp.lt.s32.totalorder (!%p195_p9), %s2789_s7, 7  ;;  %v3236_v6 = vld [vmem:[%s4169_s1 + $0x34] ss:$12 sps:$4 sm:$0xff] (!%p195_p9)   ;;  %v3238_v7 = vld [vmem:[%s4169_s1 + $0x30] ss:$12 sps:$4 sm:$0xff] (!%p195_p9)   ;;  %v3521_v13 = vshrl.u32 (!%p195_p9), %v277_v9, 7 }
  0x10   : > { %448 = vmatprep.subr.bf16.mxu0 (!%p195_p9), %v3233_v3  ;;  %v3239_v8 = vld [vmem:[%s4169_s1 + $0x4c] ss:$12 sps:$4 sm:$0xff] (!%p195_p9)   ;;  %v3241_v10 = vld [vmem:[%s4169_s1 + $0x48] ss:$12 sps:$4 sm:$0xff] (!%p195_p9)   ;;  %v3242_v11 = vld [vmem:[%s4169_s1 + $0x64] ss:$12 sps:$4 sm:$0xff] (!%p195_p9)  }
  0x11   : > { %v3254_v12 = vld [vmem:[%s4169_s1 + $0x8] ss:$12 sps:$4 sm:$0xff] (!%p195_p9)   ;;  %v3400_v14 = vmov (!%p195_p9), 1983009808   ;;  %v3255_v16 = vld [vmem:[%s4169_s1 + $0x20] ss:$12 sps:$4 sm:$0xff] (!%p195_p9)  }
  0x12   : > { %v297_v15 = vunpack.c.l.s4 (!%p195_p9), %v3400_v14  ;;  %2951 = vmatpush3.bf16.msra.mxu1 (!%p195_p9), %v3254_v12  ;;  %v3244_v17 = vld [vmem:[%s4169_s1 + $0x60] ss:$12 sps:$4 sm:$0xff] (!%p195_p9)   ;;  %v3245_v18 = vld [vmem:[%s4169_s1 + $0x7c] ss:$12 sps:$4 sm:$0xff] (!%p195_p9)   ;;  %v3247_v19 = vld [vmem:[%s4169_s1 + $0x78] ss:$12 sps:$4 sm:$0xff] (!%p195_p9)  }
  0x13   : > { %449 = vmatpush1.bf16.msra.mxu0 (!%p195_p9), %v3235_v5  ;;  %2952 = vmatprep.subr.bf16.mxu1 (!%p195_p9), %v3399_v4  ;;  %v3248_v23 = vld [vmem:[%s4169_s1 + $0x94] ss:$12 sps:$4 sm:$0xff] (!%p195_p9)   ;;  %v3256_v25 = vld [vmem:[%s4169_s1 + $0x38] ss:$12 sps:$4 sm:$0xff] (!%p195_p9)   ;;  %v3257_v27 = vld [vmem:[%s4169_s1 + $0x50] ss:$12 sps:$4 sm:$0xff] (!%p195_p9)  }
  0x14   : > { %450 = vmatprep.subr.bf16.mxu0 (!%p195_p9), %v3236_v6  ;;  %v298_v24 = vunpack.c.0.s8 (!%p195_p9), %v297_v15  ;;  %v3250_v28 = vld [vmem:[%s4169_s1 + $0x90] ss:$12 sps:$4 sm:$0xff] (!%p195_p9)   ;;  %v3251_v29 = vld [vmem:[%s4169_s1 + $0xac] ss:$12 sps:$4 sm:$0xff] (!%p195_p9)   ;;  %v3258_v35 = vld [vmem:[%s4169_s1 + $0x68] ss:$12 sps:$4 sm:$0xff] (!%p195_p9)  }
  0x15   : > { %s4185_s7 = smov (!%p227_p10, %s2789_s7), 7  ;;  %v3253_v36 = vld [vmem:[%s4169_s1 + $0xa8] ss:$12 sps:$4 sm:$0xff]   ;;  %v3259_v38 = vld [vmem:[%s4169_s1 + $0x80] ss:$12 sps:$4 sm:$0xff]   ;;  %vm3401_vm0 = vmmov 0  }
  0x16   : > { %s2790_s9 = sshll.u32 %s4185_s7, 1  ;;  %2953 = vmatpush3.bf16.msra.mxu1 %v3255_v16  ;;  %v3556_v32 = vsub.s32 %v298_v24, %v3521_v13  ;;  %v3260_v39 = vld [vmem:[%s4169_s1 + $0x98] ss:$12 sps:$4 sm:$0xff]   ;;  %v3261_v40 = vld [vmem:[%s4169_s1 + $0xb0] ss:$12 sps:$4 sm:$0xff]   ;;  %2966 = vmatprep.mubr.msk.bf16.mxu1 %vm3401_vm0, %v3399_v4  ;;  %v279_v41 = vsub.s32 0, %v3521_v13 }
  0x17   : > { %451 = vmatpush1.bf16.msra.mxu0 %v3238_v7  ;;  %s230_s14 = scalar_lea.vmem %s4168_s0, %s2790_s9  ;;  %2954 = vmatprep.subr.bf16.mxu1 %v3399_v4  ;;  %v3592_v42 = vld [vmem:[%s4170_s2] sm:$0x7]  ;;  %v283_v43 = vsub.s32 1, %v3521_v13  ;;  %vm652_vm1 = vcmask 261120   ;;  %s3402_s16 = smov 96   ;;  %v287_v14 = vsub.s32 2, %v3521_v13 }
  0x18   : > { %452 = vmatprep.subr.bf16.mxu0 %v3239_v8  ;;  %v239_v20 = vld [vmem:[%s230_s14] sm:$0x3]  ;;  %v240_v21 = vld [vmem:[%s230_s14 + $0x2] sm:$0x3]  ;;  %v241_v22 = vld [vmem:[%s230_s14 + $0x4] sm:$0x3]  ;;  %v280_v44 = vrot.slane %v3592_v42, %v279_v41 }
  0x19   : > { %v242_v26 = vld [vmem:[%s230_s14 + $0x6] sm:$0x3]  ;;  %v294_v30 = vcombine.low %v239_v20, %v240_v21  ;;  %v284_v45 = vrot.slane %v3592_v42, %v283_v43  ;;  %s3403_s17 = smov 64   ;;  %s3404_s23 = smov 32   ;;  %v288_v15 = vrot.slane %v3592_v42, %v287_v14  ;;  %vm1586_vm2 = vcmask 1041408  }
  0x1a   : > { %v295_v31 = vcombine.low %v241_v22, %v242_v26  ;;  %2955 = vmatpush3.bf16.msra.mxu1 %v3256_v25  ;;  %v2816_v46 = vcombine.low %v280_v44, %v280_v44  ;;  %vm1389_vm3 = vcmask 27648   ;;  %vm1582_vm4 = vcmask 31744   ;;  %s2867_s8 = sshll.u32 %s3459_s22, 7  ;;  %s3405_s22 = smov [#allocation2]  }
  0x1b   : > { %453 = vmatpush1.bf16.msra.mxu0 %v3241_v10  ;;  %2956 = vmatprep.subr.bf16.mxu1 %v3399_v4  ;;  %v302_v33 = vrot.slane %v294_v30, %v3556_v32  ;;  %v2817_v47 = vcombine.low %v284_v45, %v284_v45  ;;  %v3643_v16 = vcombine.low %v288_v15, %v288_v15  ;;  %vm2372_vm5 = vcmask 523264   ;;  %s4102_s12 = scalar_lea.hbm %s4172_s4, %s2867_s8 }
  0x1c   : > { %454 = vmatprep.subr.bf16.mxu0 %v3242_v11  ;;  %v309_v34 = vrot.slane %v295_v31, %v3556_v32  ;;  %vm2377_vm6 = vcmask 785408   ;;  %vm2473_vm7 = vcmask 1043456   ;;  %vm2459_vm8 = vsmask.f32 1280 }
  0x1d   : > { %vm4070_vm9 = vmand %vm1586_vm2, %vm2459_vm8  ;;  %vm2535_vm10 = vcmask 1041409   ;;  %vm2537_vm11 = vcmask 1042434   ;;  %vm2539_vm12 = vcmask 1043459  }
  0x1e   : > { %2957 = vmatpush3.bf16.msra.mxu1 %v3257_v27  ;;  %v310_v37 = vcombine.low %v302_v33, %v309_v34 }
  0x1f   : > { %455 = vmatpush1.bf16.msra.mxu0 %v3244_v17  ;;  %2958 = vmatprep.subr.bf16.mxu1 %v3399_v4 }
  0x20   : > { %456 = vmatprep.subr.bf16.mxu0 %v3245_v18 }
  0x22   : > { %2959 = vmatpush3.bf16.msra.mxu1 %v3258_v35 }
  0x23   : > { %457 = vmatpush1.bf16.msra.mxu0 %v3247_v19  ;;  %2960 = vmatprep.subr.bf16.mxu1 %v3399_v4 }
  0x24   : > { %458 = vmatprep.subr.bf16.mxu0 %v3248_v23 }
  0x26   : > { %2961 = vmatpush3.bf16.msra.mxu1 %v3259_v38 }
  0x27   : > { %459 = vmatpush1.bf16.msra.mxu0 %v3250_v28  ;;  %2962 = vmatprep.subr.bf16.mxu1 %v3399_v4 }
  0x28   : > { %460 = vmatprep.subr.bf16.mxu0 %v3251_v29 }
  0x2a   : > { %2963 = vmatpush3.bf16.msra.mxu1 %v3260_v39 }
  0x2b   : > { %461 = vmatpush1.bf16.msra.mxu0 %v3253_v36  ;;  %2964 = vmatprep.subr.bf16.mxu1 %v3399_v4 }
  0x2c   : > { %2994 = vmatprep.subr.bf16.mxu0 %v3399_v4 }
  0x2e   : > { %479 = vmatmul.mubr.bf16.vlgmr.msra.gmra.mrb[0].mxu0 %v310_v37  ;;  %2965 = vmatpush3.bf16.msra.mxu1 %v3261_v40 }
  0x2f   : > { %2970 = vmatprep.subr.bf16.mxu1 %v3399_v4  ;;  %2996 = vmatprep.mubr.msk.bf16.mxu0 %vm3401_vm0, %v3399_v4 }
  0x31   : > { %2967 = vmatmul.mubr.bf16.vlgmr.msra.gmra.mrb[0].mxu1 %v310_v37 }
  0x32   : > { %2972 = vmatprep.mubr.msk.bf16.mxu1 %vm3401_vm0, %v3399_v4 }
 0x101   : > { %v480_v48 = vpop.f32.mrb[0].mxu0 }
 0x102   : > { %v481_v49 = vadd.f32 %v2816_v46, %v480_v48  ;;  %v482_v50 = vpop.f32.mrb[1].mxu0 }
 0x103   : > { %v483_v51 = vadd.f32 %v2817_v47, %v482_v50  ;;  %v484_v52 = vpop.f32.mrb[2].mxu0 }
 0x104   : > { %v485_v53 = vadd.f32 %v2816_v46, %v484_v52  ;;  %v486_v54 = vpop.f32.mrb[3].mxu0  ;;  %v3645_v17 = vpop.f32.mrb[0].mxu1 }
 0x105   : > { %v487_v55 = vadd.f32 %v2817_v47, %v486_v54  ;;  %v2818_v56 = vcombine.low %v483_v51, %v483_v51  ;;  %v536_v57 = vcombine.low %v481_v49, %v483_v51  ;;  %v537_v58 = vcombine.high %v481_v49, %v483_v51  ;;  %v2968_v18 = vpop.f32.mrb[1].mxu1 }
 0x106   : > { %v2819_v61 = vcombine.high %v483_v51, %v483_v51  ;;  %v526_v19 = vpop.f32.mrb[2].mxu1 }
 0x107   : > { %v557_v59 = vpack.c.bf16 %v2818_v56, %v2818_v56  ;;  %v556_v60 = vpack.c.bf16 %v536_v57, %v536_v57  ;;  %v2820_v62 = vcombine.low %v487_v55, %v487_v55  ;;  %v539_v63 = vcombine.low %v485_v53, %v487_v55  ;;  %v2969_v21 = vpop.f32.mrb[3].mxu1 }
 0x108   : > { %v540_v0 = vcombine.high %v485_v53, %v487_v55  ;;  %v560_v2 = vpack.c.bf16 %v2819_v61, %v2819_v61  ;;  %v2821_v5 = vcombine.high %v487_v55, %v487_v55  ;;  %v559_v6 = vpack.c.bf16 %v537_v58, %v537_v58 }
 0x109   : > { %600 = vrot.lane.b32.xlu0 %v557_v59, %s3402_s16  ;;  %572 = vrot.lane.b32.xlu1 %v556_v60, %s3402_s16  ;;  %v657_v1 = vsel %vm652_vm1, %v557_v59, 0  ;;  %v563_v3 = vpack.c.bf16 %v2820_v62, %v2820_v62  ;;  %v562_v9 = vpack.c.bf16 %v539_v63, %v539_v63  ;;  %v3648_v20 = vadd.f32 %v526_v19, %v3643_v16 }
 0x10a   : > { %2971 = vmatpush3.bf16.xpose.msra.mxu1 %v657_v1  ;;  %v566_v7 = vpack.c.bf16 %v2821_v5, %v2821_v5  ;;  %v703_v8 = vsel %vm652_vm1, %v560_v2, 0  ;;  %v565_v10 = vpack.c.bf16 %v540_v0, %v540_v0  ;;  %v524_v53 = vadd.f32 %v3645_v17, %v3643_v16 }
 0x10b   : > { %2976 = vmatprep.subr.bf16.mxu1 %v3399_v4  ;;  %v749_v11 = vsel %vm652_vm1, %v563_v3, 0 }
 0x10c   : > { %v795_v12 = vsel %vm652_vm1, %v566_v7, 0  ;;  %v538_v57 = vcombine.high %v524_v53, %v524_v53  ;;  %v3700_v58 = vpack.c.bf16 %v524_v53, %v524_v53 }
 0x10d   : > { %602 = vrot.lane.b32.xlu0 %v560_v2, %s3402_s16  ;;  %604 = vrot.lane.b32.xlu1 %v563_v3, %s3402_s16 }
 0x10e   : > { %v1588_v61 = vsel %vm1586_vm2, %v3700_v58, 0 }
 0x111   : > { %574 = vrot.lane.b32.xlu0 %v559_v6, %s3402_s16  ;;  %606 = vrot.lane.b32.xlu1 %v566_v7, %s3402_s16 }
 0x112   : > { %2973 = vmatmul.mubr.msk.bf16.vlgmr.msra.gmra.mrb[4].mxu1 %vm652_vm1, %v556_v60 }
 0x113   : > { %2977 = vmatpush3.bf16.xpose.msra.mxu1 %v703_v8  ;;  %2978 = vmatprep.mubr.msk.bf16.mxu1 %vm3401_vm0, %v3399_v4 }
 0x114   : > { %2982 = vmatprep.subr.bf16.mxu1 %v3399_v4 }
 0x115   : > { %576 = vrot.lane.b32.xlu0 %v562_v9, %s3402_s16  ;;  %608 = vrot.lane.b32.xlu1 %v557_v59, %s3403_s17 }
 0x119   : > { %578 = vrot.lane.b32.xlu0 %v565_v10, %s3402_s16  ;;  %610 = vrot.lane.b32.xlu1 %v560_v2, %s3403_s17 }
 0x11a   : > { %2979 = vmatmul.mubr.msk.bf16.vlgmr.msra.gmra.mrb[8].mxu1 %vm652_vm1, %v559_v6 }
 0x11b   : > { %2983 = vmatpush3.bf16.xpose.msra.mxu1 %v749_v11  ;;  %2984 = vmatprep.mubr.msk.bf16.mxu1 %vm3401_vm0, %v3399_v4 }
 0x11c   : > { %2988 = vmatprep.subr.bf16.mxu1 %v3399_v4 }
 0x11d   : > { %580 = vrot.lane.b32.xlu0 %v556_v60, %s3403_s17  ;;  %612 = vrot.lane.b32.xlu1 %v563_v3, %s3403_s17 }
 0x121   : > { %582 = vrot.lane.b32.xlu0 %v559_v6, %s3403_s17  ;;  %614 = vrot.lane.b32.xlu1 %v566_v7, %s3403_s17 }
 0x122   : > { %2985 = vmatmul.mubr.msk.bf16.vlgmr.msra.gmra.mrb[12].mxu1 %vm652_vm1, %v562_v9 }
 0x123   : > { %2989 = vmatpush3.bf16.xpose.msra.mxu1 %v795_v12  ;;  %2990 = vmatprep.mubr.msk.bf16.mxu1 %vm3401_vm0, %v3399_v4 }
 0x124   : > { %3000 = vmatprep.subr.bf16.mxu1 %v3399_v4 }
 0x125   : > { %584 = vrot.lane.b32.xlu0 %v562_v9, %s3403_s17  ;;  %616 = vrot.lane.b32.xlu1 %v557_v59, %s3404_s23 }
 0x129   : > { %586 = vrot.lane.b32.xlu0 %v565_v10, %s3403_s17  ;;  %618 = vrot.lane.b32.xlu1 %v560_v2, %s3404_s23 }
 0x12a   : > { %2991 = vmatmul.mubr.msk.bf16.vlgmr.msra.gmra.mrb[16].mxu1 %vm652_vm1, %v565_v10 }
 0x12b   : > { %3002 = vmatprep.mubr.msk.bf16.mxu1 %vm3401_vm0, %v3399_v4 }
 0x12d   : > { %588 = vrot.lane.b32.xlu0 %v556_v60, %s3404_s23  ;;  %620 = vrot.lane.b32.xlu1 %v563_v3, %s3404_s23  ;;  %v3707_v60 = vpack.c.bf16 %v538_v57, %v538_v57 }
 0x12f   : > { %v1634_v63 = vsel %vm1586_vm2, %v3707_v60, 0 }
 0x131   : > { %590 = vrot.lane.b32.xlu0 %v559_v6, %s3404_s23  ;;  %622 = vrot.lane.b32.xlu1 %v566_v7, %s3404_s23 }
 0x135   : > { %592 = vrot.lane.b32.xlu0 %v562_v9, %s3404_s23  ;;  %594 = vrot.lane.b32.xlu1 %v565_v10, %s3404_s23 }
 0x17b   : > { %v601_v22 = vpop.permute.xlu0 %600  ;;  %v573_v23 = vpop.permute.xlu1 %572 }
 0x17c   : > { %v841_v24 = vsel %vm652_vm1, %v601_v22, 0 }
 0x17d   : > { %2995 = vmatpush3.bf16.xpose.msra.mxu0 %v841_v24 }
 0x17e   : > { %3006 = vmatprep.subr.bf16.mxu0 %v3399_v4 }
 0x17f   : > { %v603_v25 = vpop.permute.xlu0 %602  ;;  %v605_v26 = vpop.permute.xlu1 %604 }
 0x180   : > { %v887_v27 = vsel %vm652_vm1, %v603_v25, 0  ;;  %v933_v30 = vsel %vm652_vm1, %v605_v26, 0 }
 0x181   : > { %3001 = vmatpush3.bf16.xpose.msra.mxu1 %v887_v27 }
 0x182   : > { %3012 = vmatprep.subr.bf16.mxu1 %v3399_v4 }
 0x183   : > { %v575_v28 = vpop.permute.xlu0 %574  ;;  %v607_v29 = vpop.permute.xlu1 %606 }
 0x184   : > { %2997 = vmatmul.mubr.msk.bf16.vlgmr.msra.gmra.mrb[4].mxu0 %vm652_vm1, %v573_v23  ;;  %v979_v34 = vsel %vm652_vm1, %v607_v29, 0 }
 0x185   : > { %3007 = vmatpush3.bf16.xpose.msra.mxu0 %v933_v30  ;;  %3008 = vmatprep.mubr.msk.bf16.mxu0 %vm3401_vm0, %v3399_v4 }
 0x186   : > { %3018 = vmatprep.subr.bf16.mxu0 %v3399_v4 }
 0x187   : > { %v577_v31 = vpop.permute.xlu0 %576  ;;  %v609_v33 = vpop.permute.xlu1 %608 }
 0x188   : > { %3003 = vmatmul.mubr.msk.bf16.vlgmr.msra.gmra.mrb[20].mxu1 %vm652_vm1, %v575_v28  ;;  %v1025_v37 = vsel %vm652_vm1, %v609_v33, 0 }
 0x189   : > { %3013 = vmatpush3.bf16.xpose.msra.mxu1 %v979_v34  ;;  %3014 = vmatprep.mubr.msk.bf16.mxu1 %vm3401_vm0, %v3399_v4 }
 0x18a   : > { %3024 = vmatprep.subr.bf16.mxu1 %v3399_v4 }
 0x18b   : > { %v579_v35 = vpop.permute.xlu0 %578  ;;  %v611_v36 = vpop.permute.xlu1 %610 }
 0x18c   : > { %3009 = vmatmul.mubr.msk.bf16.vlgmr.msra.gmra.mrb[8].mxu0 %vm652_vm1, %v577_v31  ;;  %v1071_v40 = vsel %vm652_vm1, %v611_v36, 0 }
 0x18d   : > { %3019 = vmatpush3.bf16.xpose.msra.mxu0 %v1025_v37  ;;  %3020 = vmatprep.mubr.msk.bf16.mxu0 %vm3401_vm0, %v3399_v4 }
 0x18e   : > { %3030 = vmatprep.subr.bf16.mxu0 %v3399_v4 }
 0x18f   : > { %v581_v38 = vpop.permute.xlu0 %580  ;;  %v613_v39 = vpop.permute.xlu1 %612 }
 0x190   : > { %3015 = vmatmul.mubr.msk.bf16.vlgmr.msra.gmra.mrb[24].mxu1 %vm652_vm1, %v579_v35  ;;  %v1117_v43 = vsel %vm652_vm1, %v613_v39, 0 }
 0x191   : > { %3025 = vmatpush3.bf16.xpose.msra.mxu1 %v1071_v40  ;;  %3026 = vmatprep.mubr.msk.bf16.mxu1 %vm3401_vm0, %v3399_v4 }
 0x192   : > { %3036 = vmatprep.subr.bf16.mxu1 %v3399_v4 }
 0x193   : > { %v583_v41 = vpop.permute.xlu0 %582  ;;  %v615_v42 = vpop.permute.xlu1 %614 }
 0x194   : > { %3021 = vmatmul.mubr.msk.bf16.vlgmr.msra.gmra.mrb[12].mxu0 %vm652_vm1, %v581_v38  ;;  %v1163_v46 = vsel %vm652_vm1, %v615_v42, 0 }
 0x195   : > { %3031 = vmatpush3.bf16.xpose.msra.mxu0 %v1117_v43  ;;  %3032 = vmatprep.mubr.msk.bf16.mxu0 %vm3401_vm0, %v3399_v4 }
 0x196   : > { %3042 = vmatprep.subr.bf16.mxu0 %v3399_v4 }
 0x197   : > { %v585_v44 = vpop.permute.xlu0 %584  ;;  %v617_v45 = vpop.permute.xlu1 %616 }
 0x198   : > { %3027 = vmatmul.mubr.msk.bf16.vlgmr.msra.gmra.mrb[28].mxu1 %vm652_vm1, %v583_v41  ;;  %v1209_v49 = vsel %vm652_vm1, %v617_v45, 0 }
 0x199   : > { %3037 = vmatpush3.bf16.xpose.msra.mxu1 %v1163_v46  ;;  %3038 = vmatprep.mubr.msk.bf16.mxu1 %vm3401_vm0, %v3399_v4 }
 0x19a   : > { %3048 = vmatprep.subr.bf16.mxu1 %v3399_v4 }
 0x19b   : > { %v587_v47 = vpop.permute.xlu0 %586  ;;  %v619_v48 = vpop.permute.xlu1 %618 }
 0x19c   : > { %3033 = vmatmul.mubr.msk.bf16.vlgmr.msra.gmra.mrb[16].mxu0 %vm652_vm1, %v585_v44  ;;  %v1255_v52 = vsel %vm652_vm1, %v619_v48, 0 }
 0x19d   : > { %3043 = vmatpush3.bf16.xpose.msra.mxu0 %v1209_v49  ;;  %3044 = vmatprep.mubr.msk.bf16.mxu0 %vm3401_vm0, %v3399_v4 }
 0x19e   : > { %3054 = vmatprep.subr.bf16.mxu0 %v3399_v4 }
 0x19f   : > { %v589_v50 = vpop.permute.xlu0 %588  ;;  %v621_v51 = vpop.permute.xlu1 %620 }
 0x1a0   : > { %3039 = vmatmul.mubr.msk.bf16.vlgmr.msra.gmra.mrb[32].mxu1 %vm652_vm1, %v587_v47  ;;  %v1301_v54 = vsel %vm652_vm1, %v621_v51, 0 }
 0x1a1   : > { %3049 = vmatpush3.bf16.xpose.msra.mxu1 %v1255_v52  ;;  %3050 = vmatprep.mubr.msk.bf16.mxu1 %vm3401_vm0, %v3399_v4 }
 0x1a2   : > { %3060 = vmatprep.subr.bf16.mxu1 %v3399_v4 }
 0x1a3   : > { %v591_v55 = vpop.permute.xlu0 %590  ;;  %v623_v56 = vpop.permute.xlu1 %622 }
 0x1a4   : > { %3045 = vmatmul.mubr.msk.bf16.vlgmr.msra.gmra.mrb[20].mxu0 %vm652_vm1, %v589_v50  ;;  %v1347_v59 = vsel %vm652_vm1, %v623_v56, 0 }
 0x1a5   : > { %3055 = vmatpush3.bf16.xpose.msra.mxu0 %v1301_v54  ;;  %3056 = vmatprep.mubr.msk.bf16.mxu0 %vm3401_vm0, %v3399_v4 }
 0x1a6   : > { %3066 = vmatprep.subr.bf16.mxu0 %v3399_v4 }
 0x1a7   : > { %v593_v62 = vpop.permute.xlu0 %592  ;;  %v595_v0 = vpop.permute.xlu1 %594 }
 0x1a8   : > { %3051 = vmatmul.mubr.msk.bf16.vlgmr.msra.gmra.mrb[36].mxu1 %vm652_vm1, %v591_v55 }
 0x1a9   : > { %3061 = vmatpush3.bf16.xpose.msra.mxu1 %v1347_v59  ;;  %3062 = vmatprep.mubr.msk.bf16.mxu1 %vm3401_vm0, %v3399_v4 }
 0x1aa   : > { %3072 = vmatprep.subr.bf16.mxu1 %v3399_v4 }
 0x1ac   : > { %3057 = vmatmul.mubr.msk.bf16.vlgmr.msra.gmra.mrb[24].mxu0 %vm652_vm1, %v593_v62 }
 0x1ad   : > { %3067 = vmatpush3.bf16.msra.mxu0 %v1588_v61  ;;  %3068 = vmatprep.mubr.msk.bf16.mxu0 %vm3401_vm0, %v3399_v4 }
 0x1ae   : > { %3078 = vmatprep.subr.bf16.mxu0 %v3399_v4 }
 0x1b0   : > { %3063 = vmatmul.mubr.msk.bf16.vlgmr.msra.gmra.mrb[40].mxu1 %vm652_vm1, %v595_v0 }
 0x1b1   : > { %3073 = vmatpush3.bf16.msra.mxu1 %v1634_v63  ;;  %3074 = vmatprep.mubr.msk.bf16.mxu1 %vm3401_vm0, %v3399_v4 }
 0x1b2   : > { %3084 = vmatprep.subr.bf16.mxu1 %v3399_v4 }
 0x1e5   : > { %v3722_v1 = vpop.f32.mrb[4].mxu1 }
 0x1e6   : > { %v2974_v2 = vpop.f32.mrb[5].mxu1  ;;  %v1390_v3 = vsel %vm1389_vm3, %v3722_v1, -inf }
 0x1e7   : > { %1391 = vmax.xlane.f32.xlu0 %v1390_v3  ;;  %v696_v5 = vpop.f32.mrb[6].mxu1 }
 0x1e8   : > { %v2975_v6 = vpop.f32.mrb[7].mxu1 }
 0x1ed   : > { %v3726_v7 = vpop.f32.mrb[8].mxu1 }
 0x1ee   : > { %v2980_v8 = vpop.f32.mrb[9].mxu1  ;;  %v1393_v9 = vsel %vm1389_vm3, %v3726_v7, -inf }
 0x1ef   : > { %1394 = vmax.xlane.f32.xlu1 %v1393_v9  ;;  %v742_v10 = vpop.f32.mrb[10].mxu1 }
 0x1f0   : > { %v2981_v11 = vpop.f32.mrb[11].mxu1 }
 0x1f5   : > { %v3730_v12 = vpop.f32.mrb[12].mxu1 }
 0x1f6   : > { %v2986_v14 = vpop.f32.mrb[13].mxu1  ;;  %v1396_v15 = vsel %vm1389_vm3, %v3730_v12, -inf }
 0x1f7   : > { %1397 = vmax.xlane.f32.xlu0 %v1396_v15  ;;  %v788_v16 = vpop.f32.mrb[14].mxu1 }
 0x1f8   : > { %v2987_v17 = vpop.f32.mrb[15].mxu1 }
 0x1fd   : > { %v3734_v18 = vpop.f32.mrb[16].mxu1 }
 0x1fe   : > { %v2992_v19 = vpop.f32.mrb[17].mxu1  ;;  %v1399_v21 = vsel %vm1389_vm3, %v3734_v18, -inf }
 0x1ff   : > { %1400 = vmax.xlane.f32.xlu0 %v1399_v21  ;;  %v834_v22 = vpop.f32.mrb[18].mxu1 }
 0x200   : > { %v2993_v23 = vpop.f32.mrb[19].mxu1 }
 0x257   : > { %v3738_v24 = vpop.f32.mrb[4].mxu0 }
 0x258   : > { %v2998_v25 = vpop.f32.mrb[5].mxu0  ;;  %v1402_v26 = vsel %vm1389_vm3, %v3738_v24, -inf }
 0x259   : > { %v880_v27 = vpop.f32.mrb[6].mxu0  ;;  %1403 = vmax.xlane.f32.xlu1 %v1402_v26 }
 0x25a   : > { %v2999_v28 = vpop.f32.mrb[7].mxu0 }
 0x25b   : > { %v3742_v29 = vpop.f32.mrb[20].mxu1 }
 0x25c   : > { %v3004_v30 = vpop.f32.mrb[21].mxu1  ;;  %v1405_v31 = vsel %vm1389_vm3, %v3742_v29, -inf }
 0x25d   : > { %1406 = vmax.xlane.f32.xlu0 %v1405_v31  ;;  %v926_v33 = vpop.f32.mrb[22].mxu1 }
 0x25e   : > { %v3005_v34 = vpop.f32.mrb[23].mxu1  ;;  %v3790_v33 = vpack.c.bf16 %v3648_v20, %v3648_v20 }
 0x25f   : > { %v3746_v35 = vpop.f32.mrb[8].mxu0 }
 0x260   : > { %v3010_v36 = vpop.f32.mrb[9].mxu0  ;;  %v1408_v37 = vsel %vm1389_vm3, %v3746_v35, -inf }
 0x261   : > { %v972_v38 = vpop.f32.mrb[10].mxu0  ;;  %1409 = vmax.xlane.f32.xlu1 %v1408_v37 }
 0x262   : > { %v3011_v39 = vpop.f32.mrb[11].mxu0 }
 0x263   : > { %v3750_v40 = vpop.f32.mrb[24].mxu1 }
 0x264   : > { %v3016_v41 = vpop.f32.mrb[25].mxu1  ;;  %v1411_v42 = vsel %vm1389_vm3, %v3750_v40, -inf }
 0x265   : > { %1412 = vmax.xlane.f32.xlu0 %v1411_v42  ;;  %v1018_v43 = vpop.f32.mrb[26].mxu1 }
 0x266   : > { %v3017_v44 = vpop.f32.mrb[27].mxu1 }
 0x267   : > { %v3754_v45 = vpop.f32.mrb[12].mxu0 }
 0x268   : > { %v3022_v46 = vpop.f32.mrb[13].mxu0  ;;  %v1414_v47 = vsel %vm1389_vm3, %v3754_v45, -inf }
 0x269   : > { %v1064_v48 = vpop.f32.mrb[14].mxu0  ;;  %1415 = vmax.xlane.f32.xlu1 %v1414_v47 }
 0x26a   : > { %v3023_v49 = vpop.f32.mrb[15].mxu0 }
 0x26b   : > { %v3758_v50 = vpop.f32.mrb[28].mxu1 }
 0x26c   : > { %v3028_v51 = vpop.f32.mrb[29].mxu1  ;;  %v1417_v52 = vsel %vm1389_vm3, %v3758_v50, -inf }
 0x26d   : > { %1418 = vmax.xlane.f32.xlu0 %v1417_v52  ;;  %v1110_v53 = vpop.f32.mrb[30].mxu1 }
 0x26e   : > { %v3029_v54 = vpop.f32.mrb[31].mxu1 }
 0x26f   : > { %v3762_v55 = vpop.f32.mrb[16].mxu0 }
 0x270   : > { %v3034_v56 = vpop.f32.mrb[17].mxu0  ;;  %v1420_v57 = vsel %vm1389_vm3, %v3762_v55, -inf }
 0x271   : > { %v1156_v59 = vpop.f32.mrb[18].mxu0  ;;  %1421 = vmax.xlane.f32.xlu1 %v1420_v57 }
 0x272   : > { %v3035_v61 = vpop.f32.mrb[19].mxu0 }
 0x273   : > { %v3766_v62 = vpop.f32.mrb[32].mxu1 }
 0x274   : > { %v3040_v63 = vpop.f32.mrb[33].mxu1  ;;  %v1423_v0 = vsel %vm1389_vm3, %v3766_v62, -inf  ;;  %v1392_v34 = vpop.xlane.xlu0 %1391 }
 0x275   : > { %1424 = vmax.xlane.f32.xlu0 %v1423_v0  ;;  %v1202_v2 = vpop.f32.mrb[34].mxu1  ;;  %v1438_v38 = vsub.f32 %v3722_v1, %v1392_v34 }
 0x276   : > { %v3041_v3 = vpop.f32.mrb[35].mxu1 }
 0x277   : > { %v3770_v5 = vpop.f32.mrb[20].mxu0  ;;  %v1454_v42 = vmul.f32 1.442695, %v1438_v38 }
 0x278   : > { %v3046_v6 = vpop.f32.mrb[21].mxu0  ;;  %v1426_v8 = vsel %vm1389_vm3, %v3770_v5, -inf }
 0x279   : > { %v1248_v9 = vpop.f32.mrb[22].mxu0  ;;  %1427 = vmax.xlane.f32.xlu1 %v1426_v8  ;;  %3270 = vpow2.f32 %v1454_v42 }
 0x27a   : > { %v3047_v10 = vpop.f32.mrb[23].mxu0 }
 0x27b   : > { %v3774_v11 = vpop.f32.mrb[36].mxu1 }
 0x27c   : > { %v3052_v14 = vpop.f32.mrb[37].mxu1  ;;  %v1429_v15 = vsel %vm1389_vm3, %v3774_v11, -inf  ;;  %v1395_v36 = vpop.xlane.xlu1 %1394 }
 0x27d   : > { %1430 = vmax.xlane.f32.xlu0 %v1429_v15  ;;  %v1294_v16 = vpop.f32.mrb[38].mxu1  ;;  %v1439_v39 = vsub.f32 %v3726_v7, %v1395_v36 }
 0x27e   : > { %v3053_v17 = vpop.f32.mrb[39].mxu1 }
 0x27f   : > { %v3778_v19 = vpop.f32.mrb[24].mxu0  ;;  %v1456_v44 = vmul.f32 1.442695, %v1439_v39 }
 0x280   : > { %v3058_v21 = vpop.f32.mrb[25].mxu0  ;;  %v1432_v22 = vsel %vm1389_vm3, %v3778_v19, -inf }
 0x281   : > { %v1340_v23 = vpop.f32.mrb[26].mxu0  ;;  %1433 = vmax.xlane.f32.xlu1 %v1432_v22  ;;  %3272 = vpow2.f32 %v1456_v44 }
 0x282   : > { %v3059_v25 = vpop.f32.mrb[27].mxu0 }
 0x283   : > { %v3782_v26 = vpop.f32.mrb[40].mxu1  ;;  %v3800_v49 = vpop.eup %3270 }
 0x284   : > { %v3064_v27 = vpop.f32.mrb[41].mxu1  ;;  %v1435_v28 = vsel %vm1389_vm3, %v3782_v26, -inf  ;;  %v1398_v37 = vpop.xlane.xlu0 %1397  ;;  %v1486_v7 = vsel %vm1389_vm3, %v3800_v49, 0.0 }
 0x285   : > { %1436 = vmax.xlane.f32.xlu0 %v1435_v28  ;;  %v1386_v30 = vpop.f32.mrb[42].mxu1  ;;  %v1440_v43 = vsub.f32 %v3730_v12, %v1398_v37 }
 0x286   : > { %v3065_v31 = vpop.f32.mrb[43].mxu1 }
 0x287   : > { %v1458_v47 = vmul.f32 1.442695, %v1440_v43  ;;  %v541_v31 = vcombine.high %v3648_v20, %v3648_v20 }
 0x289   : > { %3274 = vpow2.f32 %v1458_v47  ;;  %v3852_v34 = vpack.c.bf16 %v541_v31, %v541_v31 }
 0x28b   : > { %v3802_v51 = vpop.eup %3272 }
 0x28c   : > { %v1401_v41 = vpop.xlane.xlu0 %1400  ;;  %v1489_v12 = vsel %vm1389_vm3, %v3802_v51, 0.0 }
 0x28d   : > { %v1441_v46 = vsub.f32 %v3734_v18, %v1401_v41 }
 0x28f   : > { %v1460_v48 = vmul.f32 1.442695, %v1441_v46 }
 0x291   : > { %3276 = vpow2.f32 %v1460_v48 }
 0x292   : > { %630 = vrot.lane.b32.xlu1 %v3707_v60, %s3402_s16 }
 0x293   : > { %v3804_v1 = vpop.eup %3274 }
 0x294   : > { %v1492_v18 = vsel %vm1389_vm3, %v3804_v1, 0.0 }
 0x296   : > { %632 = vrot.lane.b32.xlu1 %v3790_v33, %s3402_s16 }
 0x29b   : > { %628 = vrot.lane.b32.xlu0 %v3700_v58, %s3402_s16  ;;  %v3810_v52 = vpop.eup %3276 }
 0x29c   : > { %v1495_v53 = vsel %vm1389_vm3, %v3810_v52, 0.0 }
 0x2ba   : > { %1487 = vadd.xlane.f32.xlu1 %v1486_v7  ;;  %1490 = vadd.xlane.f32.xlu0 %v1489_v12 }
 0x2be   : > { %1493 = vadd.xlane.f32.xlu1 %v1492_v18  ;;  %1496 = vadd.xlane.f32.xlu0 %v1495_v53 }
 0x2e6   : > { %v1404_v54 = vpop.xlane.xlu1 %1403 }
 0x2e7   : > { %v1442_v56 = vsub.f32 %v3738_v24, %v1404_v54 }
 0x2e9   : > { %v1462_v57 = vmul.f32 1.442695, %v1442_v56 }
 0x2ea   : > { %v1407_v59 = vpop.xlane.xlu0 %1406 }
 0x2eb   : > { %3278 = vpow2.f32 %v1462_v57  ;;  %v1443_v61 = vsub.f32 %v3742_v29, %v1407_v59 }
 0x2ed   : > { %v1464_v63 = vmul.f32 1.442695, %v1443_v61 }
 0x2ee   : > { %v1410_v0 = vpop.xlane.xlu1 %1409 }
 0x2ef   : > { %3280 = vpow2.f32 %v1464_v63  ;;  %v1444_v2 = vsub.f32 %v3746_v35, %v1410_v0 }
 0x2f1   : > { %v1466_v3 = vmul.f32 1.442695, %v1444_v2 }
 0x2f2   : > { %v1413_v6 = vpop.xlane.xlu0 %1412 }
 0x2f3   : > { %3282 = vpow2.f32 %v1466_v3  ;;  %v1445_v8 = vsub.f32 %v3750_v40, %v1413_v6 }
 0x2f5   : > { %v3820_v9 = vpop.eup %3278  ;;  %v1468_v10 = vmul.f32 1.442695, %v1445_v8 }
 0x2f6   : > { %v1416_v14 = vpop.xlane.xlu1 %1415  ;;  %v1498_v24 = vsel %vm1389_vm3, %v3820_v9, 0.0 }
 0x2f7   : > { %3284 = vpow2.f32 %v1468_v10  ;;  %v1446_v29 = vsub.f32 %v3754_v45, %v1416_v14  ;;  %1499 = vadd.xlane.f32.xlu1 %v1498_v24 }
 0x2f9   : > { %v3825_v15 = vpop.eup %3280  ;;  %v1470_v16 = vmul.f32 1.442695, %v1446_v29 }
 0x2fa   : > { %v1419_v35 = vpop.xlane.xlu0 %1418  ;;  %v1501_v17 = vsel %vm1389_vm3, %v3825_v15, 0.0 }
 0x2fb   : > { %3286 = vpow2.f32 %v1470_v16  ;;  %v1447_v40 = vsub.f32 %v3758_v50, %v1419_v35  ;;  %1502 = vadd.xlane.f32.xlu0 %v1501_v17 }
 0x2fd   : > { %v3830_v21 = vpop.eup %3282  ;;  %v1472_v22 = vmul.f32 1.442695, %v1447_v40  ;;  %v1680_v40 = vsel %vm1586_vm2, %v3790_v33, 0 }
 0x2fe   : > { %v1504_v23 = vsel %vm1389_vm3, %v3830_v21, 0.0  ;;  %v1422_v36 = vpop.xlane.xlu1 %1421 }
 0x2ff   : > { %3288 = vpow2.f32 %v1472_v22  ;;  %1505 = vadd.xlane.f32.xlu1 %v1504_v23  ;;  %v1448_v47 = vsub.f32 %v3762_v55, %v1422_v36 }
 0x301   : > { %v3834_v45 = vpop.eup %3284 }
 0x302   : > { %v1507_v25 = vsel %vm1389_vm3, %v3834_v45, 0.0  ;;  %v1425_v37 = vpop.xlane.xlu0 %1424 }
 0x303   : > { %1508 = vadd.xlane.f32.xlu0 %v1507_v25 }
 0x305   : > { %v3838_v27 = vpop.eup %3286 }
 0x306   : > { %v1510_v50 = vsel %vm1389_vm3, %v3838_v27, 0.0  ;;  %v1428_v38 = vpop.xlane.xlu1 %1427 }
 0x307   : > { %1511 = vadd.xlane.f32.xlu1 %v1510_v50  ;;  %v1450_v20 = vsub.f32 %v3770_v5, %v1428_v38  ;;  %v1449_v5 = vsub.f32 %v3766_v62, %v1425_v37 }
 0x309   : > { %v3842_v28 = vpop.eup %3288  ;;  %v1478_v42 = vmul.f32 1.442695, %v1450_v20 }
 0x30a   : > { %v1513_v30 = vsel %vm1389_vm3, %v3842_v28, 0.0  ;;  %v1431_v39 = vpop.xlane.xlu0 %1430 }
 0x30b   : > { %1514 = vadd.xlane.f32.xlu0 %v1513_v30  ;;  %3290 = vpow2.f32 %v1478_v42  ;;  %v1451_v18 = vsub.f32 %v3774_v11, %v1431_v39 }
 0x30d   : > { %v1480_v56 = vmul.f32 1.442695, %v1451_v18 }
 0x30e   : > { %v1434_v46 = vpop.xlane.xlu1 %1433 }
 0x30f   : > { %v1452_v62 = vsub.f32 %v3778_v19, %v1434_v46 }
 0x311   : > { %v1482_v61 = vmul.f32 1.442695, %v1452_v62 }
 0x312   : > { %v1437_v41 = vpop.xlane.xlu0 %1436  ;;  %v3869_v7 = vpop.permute.xlu1 %630 }
 0x313   : > { %v1453_v43 = vsub.f32 %v3782_v26, %v1437_v41  ;;  %v1476_v26 = vmul.f32 1.442695, %v1449_v5  ;;  %v1818_v31 = vsel %vm1586_vm2, %v3869_v7, 0 }
 0x315   : > { %v1484_v44 = vmul.f32 1.442695, %v1453_v43  ;;  %v3867_v48 = vpop.eup %3290 }
 0x316   : > { %v1522_v12 = vsel %vm1389_vm3, %v3867_v48, 0.0  ;;  %v3877_v53 = vpop.permute.xlu1 %632  ;;  %v629_v55 = vpop.permute.xlu0 %628 }
 0x317   : > { %3292 = vpow2.f32 %v1484_v44  ;;  %v1864_v43 = vsel %vm1586_vm2, %v3877_v53, 0 }
 0x318   : > { %636 = vrot.lane.b32.xlu1 %v3700_v58, %s3403_s17 }
 0x31c   : > { %638 = vrot.lane.b32.xlu1 %v3707_v60, %s3403_s17 }
 0x320   : > { %640 = vrot.lane.b32.xlu1 %v3790_v33, %s3403_s17 }
 0x321   : > { %634 = vrot.lane.b32.xlu0 %v3852_v34, %s3402_s16 }
 0x324   : > { %642 = vrot.lane.b32.xlu1 %v3852_v34, %s3403_s17 }
 0x328   : > { %644 = vrot.lane.b32.xlu1 %v3700_v58, %s3404_s23  ;;  %v1474_v58 = vmul.f32 1.442695, %v1448_v47 }
 0x32a   : > { %3294 = vpow2.f32 %v1474_v58 }
 0x32b   : > { %3296 = vpow2.f32 %v1476_v26 }
 0x32c   : > { %646 = vrot.lane.b32.xlu1 %v3707_v60, %s3404_s23  ;;  %v3874_v60 = vpop.eup %3292 }
 0x32d   : > { %v1531_v54 = vsel %vm1389_vm3, %v3874_v60, 0.0 }
 0x334   : > { %v3882_v11 = vpop.eup %3294 }
 0x335   : > { %v1516_v2 = vsel %vm1389_vm3, %v3882_v11, 0.0  ;;  %v3886_v3 = vpop.eup %3296 }
 0x336   : > { %v1519_v10 = vsel %vm1389_vm3, %v3886_v3, 0.0 }
 0x340   : > { %1523 = vadd.xlane.f32.xlu0 %v1522_v12 }
 0x344   : > { %1532 = vadd.xlane.f32.xlu0 %v1531_v54 }
 0x347   : > { %v1488_v57 = vpop.xlane.xlu1 %1487  ;;  %v1491_v59 = vpop.xlane.xlu0 %1490 }
 0x348   : > { %3298 = vrcp.f32 %v1488_v57 }
 0x349   : > { %3300 = vrcp.f32 %v1491_v59 }
 0x34a   : > { %3302 = vpow2.f32 %v1480_v56 }
 0x34b   : > { %v1494_v63 = vpop.xlane.xlu1 %1493  ;;  %v1497_v0 = vpop.xlane.xlu0 %1496 }
 0x34c   : > { %3304 = vrcp.f32 %v1494_v63 }
 0x34d   : > { %3306 = vrcp.f32 %v1497_v0 }
 0x34e   : > { %3308 = vpow2.f32 %v1482_v61 }
 0x350   : > { %1517 = vadd.xlane.f32.xlu1 %v1516_v2 }
 0x352   : > { %v3299_v19 = vpop.eup %3298 }
 0x353   : > { %v3301_v6 = vpop.eup %3300  ;;  %v1550_v8 = vmul.f32 %v3299_v19, %v3800_v49  ;;  %v1726_v49 = vsel %vm1586_vm2, %v3852_v34, 0 }
 0x354   : > { %v1551_v14 = vmul.f32 %v3301_v6, %v3802_v51  ;;  %1520 = vadd.xlane.f32.xlu1 %v1519_v10  ;;  %v3892_v24 = vpop.eup %3302 }
 0x355   : > { %v1566_v29 = vpack.c.bf16 %v1550_v8, %v1550_v8  ;;  %v1525_v51 = vsel %vm1389_vm3, %v3892_v24, 0.0 }
 0x356   : > { %v3305_v16 = vpop.eup %3304  ;;  %v1567_v35 = vpack.c.bf16 %v1551_v14, %v1551_v14 }
 0x357   : > { %v3307_v17 = vpop.eup %3306  ;;  %3069 = vmatmul.mubr.msk.bf16.vlgmr.msra.gmra.mrb[28].mxu0 %vm1582_vm4, %v1566_v29  ;;  %v1552_v23 = vmul.f32 %v3305_v16, %v3804_v1 }
 0x358   : > { %3075 = vmatmul.mubr.msk.bf16.vlgmr.msra.gmra.mrb[44].mxu1 %vm1582_vm4, %v1567_v35  ;;  %3079 = vmatpush3.bf16.msra.mxu0 %v1680_v40  ;;  %v3902_v22 = vpop.eup %3308  ;;  %v1553_v25 = vmul.f32 %v3307_v17, %v3810_v52  ;;  %v1772_v52 = vsel %vm1586_vm2, %v629_v55, 0 }
 0x359   : > { %3085 = vmatpush3.bf16.msra.mxu1 %v1726_v49  ;;  %1526 = vadd.xlane.f32.xlu1 %v1525_v51  ;;  %v1528_v50 = vsel %vm1389_vm3, %v3902_v22, 0.0  ;;  %v1568_v1 = vpack.c.bf16 %v1552_v23, %v1552_v23 }
 0x35a   : > { %650 = vrot.lane.b32.xlu0 %v3852_v34, %s3404_s23  ;;  %3080 = vmatprep.mubr.msk.bf16.mxu0 %vm3401_vm0, %v3399_v4  ;;  %v1569_v30 = vpack.c.bf16 %v1553_v25, %v1553_v25 }
 0x35b   : > { %3086 = vmatprep.mubr.msk.bf16.mxu1 %vm3401_vm0, %v3399_v4  ;;  %3090 = vmatprep.subr.bf16.mxu0 %v3399_v4 }
 0x35c   : > { %3096 = vmatprep.subr.bf16.mxu1 %v3399_v4 }
 0x35d   : > { %1529 = vadd.xlane.f32.xlu1 %v1528_v50 }
 0x35f   : > { %3081 = vmatmul.mubr.msk.bf16.vlgmr.msra.gmra.mrb[32].mxu0 %vm1582_vm4, %v1568_v1 }
 0x360   : > { %3087 = vmatmul.mubr.msk.bf16.vlgmr.msra.gmra.mrb[48].mxu1 %vm1582_vm4, %v1569_v30  ;;  %3091 = vmatpush3.bf16.msra.mxu0 %v1772_v52 }
 0x361   : > { %3097 = vmatpush3.bf16.msra.mxu1 %v1818_v31  ;;  %3092 = vmatprep.mubr.msk.bf16.mxu0 %vm3401_vm0, %v3399_v4 }
 0x362   : > { %3102 = vmatprep.subr.bf16.mxu0 %v3399_v4  ;;  %3098 = vmatprep.mubr.msk.bf16.mxu1 %vm3401_vm0, %v3399_v4 }
 0x363   : > { %3108 = vmatprep.subr.bf16.mxu1 %v3399_v4 }
 0x36e   : > { %648 = vrot.lane.b32.xlu1 %v3790_v33, %s3404_s23 }
 0x384   : > { %v1500_v34 = vpop.xlane.xlu1 %1499 }
 0x385   : > { %3310 = vrcp.f32 %v1500_v34 }
 0x388   : > { %v1503_v36 = vpop.xlane.xlu0 %1502 }
 0x389   : > { %3312 = vrcp.f32 %v1503_v36 }
 0x38c   : > { %v1506_v37 = vpop.xlane.xlu1 %1505 }
 0x38d   : > { %3314 = vrcp.f32 %v1506_v37 }
 0x38f   : > { %v3311_v38 = vpop.eup %3310 }
 0x390   : > { %v1554_v39 = vmul.f32 %v3311_v38, %v3820_v9  ;;  %v1509_v20 = vpop.xlane.xlu0 %1508 }
 0x391   : > { %3316 = vrcp.f32 %v1509_v20 }
 0x392   : > { %v1570_v41 = vpack.c.bf16 %v1554_v39, %v1554_v39 }
 0x393   : > { %v3313_v42 = vpop.eup %3312 }
 0x394   : > { %v1555_v44 = vmul.f32 %v3313_v42, %v3825_v15  ;;  %v1512_v46 = vpop.xlane.xlu1 %1511  ;;  %3093 = vmatmul.mubr.msk.bf16.vlgmr.msra.gmra.mrb[36].mxu0 %vm1582_vm4, %v1570_v41 }
 0x395   : > { %3318 = vrcp.f32 %v1512_v46  ;;  %3103 = vmatpush3.bf16.msra.mxu0 %v1864_v43  ;;  %3104 = vmatprep.mubr.msk.bf16.mxu0 %vm3401_vm0, %v3399_v4 }
 0x396   : > { %v1571_v33 = vpack.c.bf16 %v1555_v44, %v1555_v44  ;;  %3114 = vmatprep.subr.bf16.mxu0 %v3399_v4 }
 0x397   : > { %v3315_v9 = vpop.eup %3314 }
 0x398   : > { %v1556_v47 = vmul.f32 %v3315_v9, %v3830_v21  ;;  %v637_v7 = vpop.permute.xlu1 %636  ;;  %3099 = vmatmul.mubr.msk.bf16.vlgmr.msra.gmra.mrb[52].mxu1 %vm1582_vm4, %v1571_v33  ;;  %v1515_v58 = vpop.xlane.xlu0 %1514 }
 0x399   : > { %3320 = vrcp.f32 %v1515_v58  ;;  %3110 = vmatprep.mubr.msk.bf16.mxu1 %vm3401_vm0, %v3399_v4  ;;  %v1956_v26 = vsel %vm1586_vm2, %v637_v7, 0 }
 0x39a   : > { %v1572_v15 = vpack.c.bf16 %v1556_v47, %v1556_v47 }
 0x39b   : > { %v3317_v5 = vpop.eup %3316 }
 0x39c   : > { %v1557_v12 = vmul.f32 %v3317_v5, %v3834_v45  ;;  %v639_v18 = vpop.permute.xlu1 %638  ;;  %3105 = vmatmul.mubr.msk.bf16.vlgmr.msra.gmra.mrb[40].mxu0 %vm1582_vm4, %v1572_v15  ;;  %v635_v53 = vpop.permute.xlu0 %634 }
 0x39d   : > { %3115 = vmatpush3.bf16.msra.mxu0 %v1956_v26  ;;  %v1910_v21 = vsel %vm1586_vm2, %v635_v53, 0  ;;  %3116 = vmatprep.mubr.msk.bf16.mxu0 %vm3401_vm0, %v3399_v4  ;;  %v2002_v62 = vsel %vm1586_vm2, %v639_v18, 0 }
 0x39e   : > { %3109 = vmatpush3.bf16.msra.mxu1 %v1910_v21  ;;  %v1573_v55 = vpack.c.bf16 %v1557_v12, %v1557_v12  ;;  %3126 = vmatprep.subr.bf16.mxu0 %v3399_v4 }
 0x39f   : > { %v3319_v54 = vpop.eup %3318  ;;  %3120 = vmatprep.subr.bf16.mxu1 %v3399_v4 }
 0x3a0   : > { %v1558_v45 = vmul.f32 %v3319_v54, %v3838_v27  ;;  %v641_v56 = vpop.permute.xlu1 %640 }
 0x3a1   : > { %3111 = vmatmul.mubr.msk.bf16.vlgmr.msra.gmra.mrb[56].mxu1 %vm1582_vm4, %v1573_v55  ;;  %v2048_v63 = vsel %vm1586_vm2, %v641_v56, 0 }
 0x3a2   : > { %3121 = vmatpush3.bf16.msra.mxu1 %v2002_v62  ;;  %v1574_v57 = vpack.c.bf16 %v1558_v45, %v1558_v45  ;;  %3122 = vmatprep.mubr.msk.bf16.mxu1 %vm3401_vm0, %v3399_v4 }
 0x3a3   : > { %v3321_v59 = vpop.eup %3320  ;;  %3132 = vmatprep.subr.bf16.mxu1 %v3399_v4 }
 0x3a4   : > { %v1559_v61 = vmul.f32 %v3321_v59, %v3842_v28  ;;  %3117 = vmatmul.mubr.msk.bf16.vlgmr.msra.gmra.mrb[44].mxu0 %vm1582_vm4, %v1574_v57  ;;  %v643_v27 = vpop.permute.xlu1 %642 }
 0x3a5   : > { %3127 = vmatpush3.bf16.msra.mxu0 %v2048_v63  ;;  %3128 = vmatprep.mubr.msk.bf16.mxu0 %vm3401_vm0, %v3399_v4  ;;  %v2094_v2 = vsel %vm1586_vm2, %v643_v27, 0 }
 0x3a6   : > { %v1575_v0 = vpack.c.bf16 %v1559_v61, %v1559_v61  ;;  %3138 = vmatprep.subr.bf16.mxu0 %v3399_v4 }
 0x3a8   : > { %v645_v28 = vpop.permute.xlu1 %644 }
 0x3a9   : > { %3123 = vmatmul.mubr.msk.bf16.vlgmr.msra.gmra.mrb[60].mxu1 %vm1582_vm4, %v1575_v0  ;;  %v2140_v23 = vsel %vm1586_vm2, %v645_v28, 0 }
 0x3aa   : > { %3133 = vmatpush3.bf16.msra.mxu1 %v2094_v2  ;;  %3134 = vmatprep.mubr.msk.bf16.mxu1 %vm3401_vm0, %v3399_v4 }
 0x3ab   : > { %3144 = vmatprep.subr.bf16.mxu1 %v3399_v4 }
 0x3ac   : > { %v647_v19 = vpop.permute.xlu1 %646 }
 0x3ad   : > { %v2186_v30 = vsel %vm1586_vm2, %v647_v19, 0 }
 0x3cd   : > { %v1524_v8 = vpop.xlane.xlu0 %1523 }
 0x3d1   : > { %v1533_v40 = vpop.xlane.xlu0 %1532 }
 0x3d5   : > { %v651_v36 = vpop.permute.xlu0 %650 }
 0x3dd   : > { %v1518_v6 = vpop.xlane.xlu1 %1517 }
 0x3de   : > { %3322 = vrcp.f32 %v1518_v6 }
 0x3df   : > { %3324 = vrcp.f32 %v1524_v8 }
 0x3e1   : > { %v1521_v10 = vpop.xlane.xlu1 %1520 }
 0x3e2   : > { %3326 = vrcp.f32 %v1521_v10 }
 0x3e6   : > { %v1527_v14 = vpop.xlane.xlu1 %1526 }
 0x3e7   : > { %3328 = vrcp.f32 %v1527_v14 }
 0x3e8   : > { %v3323_v29 = vpop.eup %3322 }
 0x3e9   : > { %v1560_v16 = vmul.f32 %v3323_v29, %v3882_v11  ;;  %v3325_v17 = vpop.eup %3324 }
 0x3ea   : > { %v1530_v35 = vpop.xlane.xlu1 %1529  ;;  %v1562_v50 = vmul.f32 %v3325_v17, %v3867_v48 }
 0x3eb   : > { %3330 = vrcp.f32 %v1530_v35  ;;  %v1576_v49 = vpack.c.bf16 %v1560_v16, %v1560_v16 }
 0x3ec   : > { %v3327_v51 = vpop.eup %3326  ;;  %3332 = vrcp.f32 %v1533_v40  ;;  %v1578_v31 = vpack.c.bf16 %v1562_v50, %v1562_v50 }
 0x3ed   : > { %v1561_v25 = vmul.f32 %v3327_v51, %v3886_v3  ;;  %3129 = vmatmul.mubr.msk.bf16.vlgmr.msra.gmra.mrb[48].mxu0 %vm1582_vm4, %v1576_v49  ;;  %v3262_v51 = vld [vmem:[%s4171_s3] sm:$0xff]  }
 0x3ee   : > { %3139 = vmatpush3.bf16.msra.mxu0 %v2140_v23  ;;  %3140 = vmatprep.mubr.msk.bf16.mxu0 %vm3401_vm0, %v3399_v4  ;;  %v649_v52 = vpop.permute.xlu1 %648 }
 0x3ef   : > { %v1577_v11 = vpack.c.bf16 %v1561_v25, %v1561_v25  ;;  %3150 = vmatprep.subr.bf16.mxu0 %v3399_v4  ;;  %v2232_v48 = vsel %vm1586_vm2, %v649_v52, 0 }
 0x3f1   : > { %v3329_v1 = vpop.eup %3328  ;;  %3135 = vmatmul.mubr.msk.bf16.vlgmr.msra.gmra.mrb[64].mxu1 %vm1582_vm4, %v1577_v11 }
 0x3f2   : > { %3145 = vmatpush3.bf16.msra.mxu1 %v2186_v30  ;;  %3146 = vmatprep.mubr.msk.bf16.mxu1 %vm3401_vm0, %v3399_v4  ;;  %v1563_v3 = vmul.f32 %v3329_v1, %v3892_v24  ;;  %v2278_v24 = vsel %vm1586_vm2, %v651_v36, 0  ;;  %v3263_v1 = vld [vmem:[%s4171_s3 + $0x8] sm:$0xff]  }
 0x3f3   : > { %3156 = vmatprep.subr.bf16.mxu1 %v3399_v4 }
 0x3f4   : > { %v1579_v38 = vpack.c.bf16 %v1563_v3, %v1563_v3 }
 0x3f5   : > { %v3331_v34 = vpop.eup %3330  ;;  %3141 = vmatmul.mubr.msk.bf16.vlgmr.msra.gmra.mrb[52].mxu0 %vm1582_vm4, %v1578_v31 }
 0x3f6   : > { %3151 = vmatpush3.bf16.msra.mxu0 %v2232_v48  ;;  %3152 = vmatprep.mubr.msk.bf16.mxu0 %vm3401_vm0, %v3399_v4  ;;  %v1564_v37 = vmul.f32 %v3331_v34, %v3902_v22  ;;  %v3333_v39 = vpop.eup %3332  ;;  %v3264_v48 = vld [vmem:[%s4171_s3 + $0x10] sm:$0xff]  }
 0x3f7   : > { %3162 = vmatprep.subr.bf16.mxu0 %v3399_v4  ;;  %v1565_v20 = vmul.f32 %v3333_v39, %v3874_v60 }
 0x3f8   : > { %v1580_v41 = vpack.c.bf16 %v1564_v37, %v1564_v37 }
 0x3f9   : > { %3147 = vmatmul.mubr.msk.bf16.vlgmr.msra.gmra.mrb[68].mxu1 %vm1582_vm4, %v1579_v38  ;;  %v1581_v22 = vpack.c.bf16 %v1565_v20, %v1565_v20 }
 0x3fa   : > { %3157 = vmatpush3.bf16.msra.mxu1 %v2278_v24  ;;  %3158 = vmatprep.mubr.msk.bf16.mxu1 %vm3401_vm0, %v3399_v4  ;;  %v3265_v24 = vld [vmem:[%s4171_s3 + $0x18] sm:$0xff]  }
 0x3fd   : > { %3153 = vmatmul.mubr.msk.bf16.vlgmr.msra.gmra.mrb[56].mxu0 %vm1582_vm4, %v1580_v41 }
 0x3fe   : > { %3178 = vmatprep.mubr.msk.bf16.mxu0 %vm3401_vm0, %v3399_v4  ;;  %3163 = vmatpush3.bf16.msra.mxu0 %v3262_v51 }
 0x3ff   : > { %3164 = vmatprep.subr.bf16.mxu0 %v3399_v4 }
 0x401   : > { %3159 = vmatmul.mubr.msk.bf16.vlgmr.msra.gmra.mrb[72].mxu1 %vm1582_vm4, %v1581_v22 }
 0x402   : > { %3165 = vmatpush3.bf16.msra.mxu0 %v3263_v1 }
 0x403   : > { %3166 = vmatprep.subr.bf16.mxu0 %v3399_v4 }
 0x406   : > { %3167 = vmatpush3.bf16.msra.mxu0 %v3264_v48 }
 0x407   : > { %3168 = vmatprep.subr.bf16.mxu0 %v3399_v4 }
 0x40a   : > { %3169 = vmatpush3.bf16.msra.mxu0 %v3265_v24 }
 0x40b   : > { %3170 = vmatprep.subr.bf16.mxu0 %v3399_v4 }
 0x42a   : > { %v3995_v42 = vpop.f32.mrb[28].mxu0 }
 0x42b   : > { %v3997_v43 = vpop.f32.mrb[44].mxu1  ;;  %v3070_v44 = vpop.f32.mrb[29].mxu0 }
 0x42c   : > { %v3076_v46 = vpop.f32.mrb[45].mxu1  ;;  %v1627_v33 = vpop.f32.mrb[30].mxu0 }
 0x42d   : > { %v1673_v9 = vpop.f32.mrb[46].mxu1  ;;  %v3071_v47 = vpop.f32.mrb[31].mxu0  ;;  %v3266_v46 = vld [vmem:[%s4171_s3 + $0x20] sm:$0xff]  }
 0x42e   : > { %v3077_v7 = vpop.f32.mrb[47].mxu1  ;;  %3171 = vmatpush3.bf16.msra.mxu0 %v3266_v46 }
 0x42f   : > { %3172 = vmatprep.subr.bf16.mxu0 %v3399_v4 }
 0x432   : > { %v3999_v60 = vpop.f32.mrb[32].mxu0 }
 0x433   : > { %v4001_v58 = vpop.f32.mrb[48].mxu1  ;;  %v3082_v15 = vpop.f32.mrb[33].mxu0 }
 0x434   : > { %v3088_v5 = vpop.f32.mrb[49].mxu1  ;;  %v1719_v12 = vpop.f32.mrb[34].mxu0  ;;  %v3267_v15 = vld [vmem:[%s4171_s3 + $0x28] sm:$0xff]  }
 0x435   : > { %v1765_v26 = vpop.f32.mrb[50].mxu1  ;;  %v3083_v18 = vpop.f32.mrb[35].mxu0  ;;  %3173 = vmatpush3.bf16.msra.mxu0 %v3267_v15 }
 0x436   : > { %v3089_v53 = vpop.f32.mrb[51].mxu1  ;;  %3174 = vmatprep.subr.bf16.mxu0 %v3399_v4  ;;  %v3268_v26 = vld [vmem:[%s4171_s3 + $0x30] sm:$0xff]   ;;  %v3269_v18 = vld [vmem:[%s4171_s3 + $0x38] sm:$0xff]  }
 0x439   : > { %3175 = vmatpush3.bf16.msra.mxu0 %v3268_v26 }
 0x43a   : > { %3176 = vmatprep.subr.bf16.mxu0 %v3399_v4 }
 0x43d   : > { %3177 = vmatpush3.bf16.msra.mxu0 %v3269_v18 }
 0x467   : > { %v1808_v21 = vpop.f32.mrb[36].mxu0 }
 0x468   : > { %2324 = vrot.lane.b32.xlu1 %v1808_v21, %s3404_s23  ;;  %v3094_v55 = vpop.f32.mrb[37].mxu0 }
 0x469   : > { %v1811_v54 = vpop.f32.mrb[38].mxu0 }
 0x46a   : > { %v3095_v45 = vpop.f32.mrb[39].mxu0 }
 0x46b   : > { %v1854_v56 = vpop.f32.mrb[52].mxu1 }
 0x46c   : > { %2326 = vrot.lane.b32.xlu1 %v1854_v56, %s3404_s23  ;;  %v3100_v62 = vpop.f32.mrb[53].mxu1 }
 0x46d   : > { %v1857_v57 = vpop.f32.mrb[54].mxu1 }
 0x46e   : > { %v3101_v59 = vpop.f32.mrb[55].mxu1 }
 0x46f   : > { %v1900_v61 = vpop.f32.mrb[40].mxu0 }
 0x470   : > { %v3106_v63 = vpop.f32.mrb[41].mxu0  ;;  %2328 = vrot.lane.b32.xlu1 %v1900_v61, %s3404_s23 }
 0x471   : > { %v1903_v27 = vpop.f32.mrb[42].mxu0 }
 0x472   : > { %v3107_v0 = vpop.f32.mrb[43].mxu0 }
 0x474   : > { %v1946_v2 = vpop.f32.mrb[56].mxu1 }
 0x475   : > { %2330 = vrot.lane.b32.xlu1 %v1946_v2, %s3404_s23  ;;  %v3112_v28 = vpop.f32.mrb[57].mxu1 }
 0x476   : > { %v1949_v19 = vpop.f32.mrb[58].mxu1 }
 0x477   : > { %v3113_v6 = vpop.f32.mrb[59].mxu1  ;;  %v1992_v8 = vpop.f32.mrb[44].mxu0 }
 0x478   : > { %v3118_v10 = vpop.f32.mrb[45].mxu0 }
 0x479   : > { %v1995_v14 = vpop.f32.mrb[46].mxu0  ;;  %2340 = vrot.lane.b32.xlu1 %v1992_v8, %s3403_s17 }
 0x47a   : > { %v3119_v29 = vpop.f32.mrb[47].mxu0 }
 0x47c   : > { %v2038_v16 = vpop.f32.mrb[60].mxu1 }
 0x47d   : > { %2342 = vrot.lane.b32.xlu1 %v2038_v16, %s3403_s17  ;;  %v3124_v35 = vpop.f32.mrb[61].mxu1 }
 0x47e   : > { %v2041_v17 = vpop.f32.mrb[62].mxu1 }
 0x47f   : > { %v3125_v40 = vpop.f32.mrb[63].mxu1 }
 0x4c0   : > { %v2084_v49 = vpop.f32.mrb[48].mxu0 }
 0x4c1   : > { %2344 = vrot.lane.b32.xlu0 %v2084_v49, %s3403_s17  ;;  %v3130_v23 = vpop.f32.mrb[49].mxu0 }
 0x4c2   : > { %v2087_v25 = vpop.f32.mrb[50].mxu0 }
 0x4c3   : > { %v3131_v50 = vpop.f32.mrb[51].mxu0 }
 0x4c4   : > { %v2130_v11 = vpop.f32.mrb[64].mxu1 }
 0x4c5   : > { %2346 = vrot.lane.b32.xlu1 %v2130_v11, %s3403_s17  ;;  %v3136_v30 = vpop.f32.mrb[65].mxu1  ;;  %s3338_s17 = sshll.u32 %s3405_s22, 4  ;;  %s3339_s17 = int_to_ptr.vmem [resolvable:$false] %s3338_s17 }
 0x4c6   : > { %v2133_v52 = vpop.f32.mrb[66].mxu1  ;;  %s3340_s14 = scalar_lea.vmem %s3339_s17, 256 }
 0x4c7   : > { %v3137_v3 = vpop.f32.mrb[67].mxu1 }
 0x4c8   : > { %v2176_v31 = vpop.f32.mrb[52].mxu0 }
 0x4c9   : > { %v3142_v34 = vpop.f32.mrb[53].mxu0  ;;  %2356 = vrot.lane.b32.xlu1 %v2176_v31, %s3402_s16 }
 0x4ca   : > { %v2179_v36 = vpop.f32.mrb[54].mxu0 }
 0x4cb   : > { %v3143_v37 = vpop.f32.mrb[55].mxu0 }
 0x4cc   : > { %v2222_v38 = vpop.f32.mrb[68].mxu1 }
 0x4cd   : > { %2358 = vrot.lane.b32.xlu0 %v2222_v38, %s3402_s16  ;;  %v3148_v39 = vpop.f32.mrb[69].mxu1 }
 0x4ce   : > { %v2225_v20 = vpop.f32.mrb[70].mxu1 }
 0x4cf   : > { %v3149_v41 = vpop.f32.mrb[71].mxu1 }
 0x4d0   : > { %v2268_v22 = vpop.f32.mrb[56].mxu0 }
 0x4d1   : > { %v3154_v44 = vpop.f32.mrb[57].mxu0  ;;  %2360 = vrot.lane.b32.xlu0 %v2268_v22, %s3402_s16 }
 0x4d2   : > { %v2271_v33 = vpop.f32.mrb[58].mxu0 }
 0x4d3   : > { %v3155_v9 = vpop.f32.mrb[59].mxu0 }
 0x4d4   : > { %v2314_v47 = vpop.f32.mrb[72].mxu1 }
 0x4d5   : > { %2362 = vrot.lane.b32.xlu1 %v2314_v47, %s3402_s16  ;;  %v3160_v7 = vpop.f32.mrb[73].mxu1  ;;  %s217_s16 = sand.u32 1, %s3388_s19  }
 0x4d6   : > { %v2317_v5 = vpop.f32.mrb[74].mxu1  ;;  %s2788_s30 = sshll.u32 %s217_s16, 3  ;;  %s4108_s13 = scalar_lea.sflag [#allocation3], %s217_s16 }
 0x4d7   : > { %v3161_v12 = vpop.f32.mrb[75].mxu1  ;;  %s4074_s6 = scalar_lea.vmem [#allocation2], %s2788_s30 }
 0x4d8   : > { %v2464_v18 = vld [vmem:[%s4074_s6 + $0x2] sm:$0x3]  ;;  %s2698_s9 = sshll.u32 %s4074_s6, 4  ;;  %s4104_s9 = int_to_ptr.vmem [resolvable:$true] %s2698_s9 }
 0x4d9   : > { %s3334_s15 = scalar_lea.vmem %s4104_s9, 128  ;;  %p3341_p0 = scmp.lt.s32.totalorder %s4104_s9, %s3339_s17 }
 0x4da   : > { %v2325_v53 = vpop.permute.xlu1 %2324  ;;  %p3335_p11 = scmp.ne.s32.totalorder %s4104_s9, %s3334_s15  ;;  %p3342_p1 = scmp.lt.s32.totalorder %s3340_s14, %s3334_s15 }
 0x4db   : > { %v2368_v57 = vsel %vm652_vm1, %v3995_v42, %v2325_v53 }
 0x4dc   : > { %p3336_p12 = pnand %p3335_p11, %p3476_p5  ;;  %p3343_p2 = por %p3342_p1, %p3341_p0 }
 0x4de   : > { %v2327_v21 = vpop.permute.xlu1 %2326  ;;  %p3337_p13 = pneg %p3336_p12 }
 0x4df   : > { %v2369_v2 = vsel %vm652_vm1, %v3997_v43, %v2327_v21 }
 0x4e0   : > { %p3344_p3 = pnand %p3343_p2, %p3337_p13 }
 0x4e2   : > { %v2329_v55 = vpop.permute.xlu1 %2328 }
 0x4e3   : > { %v2370_v17 = vsel %vm652_vm1, %v3999_v60, %v2329_v55 }
 0x4e7   : > { %v2331_v54 = vpop.permute.xlu1 %2330 }
 0x4e8   : > { %v2371_v11 = vsel %vm652_vm1, %v4001_v58, %v2331_v54  ;;  %v2461_v58 = vld [vmem:[%s4074_s6] sm:$0x3] }
 0x4eb   : > { %v2341_v45 = vpop.permute.xlu1 %2340 }
 0x4ec   : > { %v2373_v4 = vsel %vm2372_vm5, %v2368_v57, %v2341_v45 }
 0x4ef   : > { %v2343_v56 = vpop.permute.xlu1 %2342 }
 0x4f0   : > { %v2374_v19 = vsel %vm2372_vm5, %v2369_v2, %v2343_v56 }
 0x533   : > { %v2345_v59 = vpop.permute.xlu0 %2344 }
 0x534   : > { %v2375_v49 = vsel %vm2372_vm5, %v2370_v17, %v2345_v59 }
 0x537   : > { %v2347_v62 = vpop.permute.xlu1 %2346 }
 0x538   : > { %v2376_v48 = vsel %vm2372_vm5, %v2371_v11, %v2347_v62 }
 0x53b   : > { %v2357_v61 = vpop.permute.xlu1 %2356 }
 0x53c   : > { %v2378_v63 = vsel %vm2377_vm6, %v2373_v4, %v2357_v61 }
 0x53d   : > { %v2382_v27 = vpack.c.bf16 %v2378_v63, %v2378_v63  ;;  %v2474_v0 = vsel %vm2473_vm7, %v2378_v63, 0.0 }
 0x53e   : > { %v2475_v28 = vrot.slane %v2474_v0, 4 }
 0x53f   : > { %v2396_v6 = vrot.slane %v2382_v27, %v3556_v32  ;;  %v2359_v42 = vpop.permute.xlu0 %2358 }
 0x540   : > { %v2476_v8 = vadd.f32 %v2475_v28, %v2474_v0  ;;  %v2379_v10 = vsel %vm2377_vm6, %v2374_v19, %v2359_v42  ;;  %v2467_v28 = vld [vmem:[%s4074_s6 + $0x4] sm:$0x3] }
 0x541   : > { %v2419_v14 = vshrl.u32 %v2396_v6, 16  ;;  %v2422_v29 = vshll.u32 %v2396_v6, 16  ;;  %v2383_v16 = vpack.c.bf16 %v2379_v10, %v2379_v10  ;;  %v2481_v35 = vsel %vm2473_vm7, %v2379_v10, 0.0 }
 0x542   : > { %v2477_v43 = vrot.slane %v2476_v8, 2  ;;  %v2482_v40 = vrot.slane %v2481_v35, 4 }
 0x543   : > { %v2421_v51 = vrot.slane %v2419_v14, 6  ;;  %v2424_v23 = vrot.slane %v2422_v29, 7  ;;  %v2403_v25 = vrot.slane %v2383_v16, %v3556_v32  ;;  %v2361_v50 = vpop.permute.xlu0 %2360 }
 0x544   : > { %v2478_v1 = vadd.f32 %v2477_v43, %v2476_v8  ;;  %v2483_v30 = vadd.f32 %v2482_v40, %v2481_v35  ;;  %v2380_v52 = vsel %vm2377_vm6, %v2375_v49, %v2361_v50  ;;  %v2470_v50 = vld [vmem:[%s4074_s6 + $0x6] sm:$0x3] }
 0x545   : > { %v2425_v3 = vor.u32 %v2424_v23, %v2421_v51  ;;  %v2428_v31 = vshrl.u32 %v2403_v25, 16  ;;  %v2431_v60 = vshll.u32 %v2403_v25, 16  ;;  %v2384_v34 = vpack.c.bf16 %v2380_v52, %v2380_v52 }
 0x546   : > { %v2479_v37 = vrot.slane %v2478_v1, 1  ;;  %v2484_v38 = vrot.slane %v2483_v30, 2  ;;  %v2488_v39 = vsel %vm2473_vm7, %v2380_v52, 0.0 }
 0x547   : > { %v2426_v24 = vrot.slane %v2425_v3, 2  ;;  %v2430_v20 = vrot.slane %v2428_v31, 6  ;;  %v2433_v41 = vrot.slane %v2431_v60, 7  ;;  %v2410_v22 = vrot.slane %v2384_v34, %v3556_v32  ;;  %v2363_v44 = vpop.permute.xlu1 %2362 }
 0x548   : > { %v2480_v46 = vadd.f32 %v2479_v37, %v2478_v1  ;;  %v2485_v33 = vadd.f32 %v2484_v38, %v2483_v30  ;;  %v2489_v9 = vrot.slane %v2488_v39, 4  ;;  %v2381_v47 = vsel %vm2377_vm6, %v2376_v48, %v2363_v44 }
 0x549   : > { %v2462_v7 = vsel %vm4070_vm9, %v2426_v24, %v2461_v58  ;;  %v2434_v15 = vor.u32 %v2433_v41, %v2430_v20  ;;  %v2437_v5 = vshrl.u32 %v2410_v22, 16  ;;  %v2440_v12 = vshll.u32 %v2410_v22, 16 }
 0x54a   : > { %2463 = vst [vmem:[%s4074_s6] sm:$0x3] %v2462_v7  ;;  %v2503_v26 = vmul.f32 0.25, %v2480_v46  ;;  %v2486_v53 = vrot.slane %v2485_v33, 1  ;;  %v2490_v21 = vadd.f32 %v2489_v9, %v2488_v39  ;;  %v2385_v55 = vpack.c.bf16 %v2381_v47, %v2381_v47 }
 0x54b   : > { %v2435_v54 = vrot.slane %v2434_v15, 2  ;;  %v2439_v45 = vrot.slane %v2437_v5, 6  ;;  %v2442_v56 = vrot.slane %v2440_v12, 7  ;;  %v2495_v62 = vsel %vm2473_vm7, %v2381_v47, 0.0 }
 0x54c   : > { %v2487_v57 = vadd.f32 %v2486_v53, %v2485_v33  ;;  %v2491_v4 = vrot.slane %v2490_v21, 2  ;;  %v2417_v59 = vrot.slane %v2385_v55, %v3556_v32  ;;  %v2496_v27 = vrot.slane %v2495_v62, 4 }
 0x54d   : > { %v2465_v61 = vsel %vm4070_vm9, %v2435_v54, %v2464_v18  ;;  %v2443_v63 = vor.u32 %v2442_v56, %v2439_v45  ;;  %v2507_v0 = vpack.c.bf16 %v2503_v26, %v2503_v26 }
 0x54e   : > { %2466 = vst [vmem:[%s4074_s6 + $0x2] sm:$0x3] %v2465_v61  ;;  %v2504_v2 = vmul.f32 0.25, %v2487_v57  ;;  %v2492_v19 = vadd.f32 %v2491_v4, %v2490_v21  ;;  %v2446_v6 = vshrl.u32 %v2417_v59, 16  ;;  %v2449_v8 = vshll.u32 %v2417_v59, 16 }
 0x54f   : > { %v2444_v42 = vrot.slane %v2443_v63, 2  ;;  %v2497_v10 = vadd.f32 %v2496_v27, %v2495_v62  ;;  %v2531_v43 = vunpack.c.l.b16 %v2507_v0 }
 0x550   : > { %v2508_v14 = vpack.c.bf16 %v2504_v2, %v2504_v2  ;;  %v2493_v29 = vrot.slane %v2492_v19, 1  ;;  %v2448_v16 = vrot.slane %v2446_v6, 6  ;;  %v2451_v35 = vrot.slane %v2449_v8, 7 }
 0x551   : > { %v2468_v32 = vsel %vm4070_vm9, %v2444_v42, %v2467_v28  ;;  %v2498_v17 = vrot.slane %v2497_v10, 2 }
 0x552   : > { %v2532_v40 = vunpack.c.l.b16 %v2508_v14  ;;  %2469 = vst [vmem:[%s4074_s6 + $0x4] sm:$0x3] %v2468_v32  ;;  %v2494_v49 = vadd.f32 %v2493_v29, %v2492_v19  ;;  %v2452_v51 = vor.u32 %v2451_v35, %v2448_v16 }
 0x553   : > { %v2499_v23 = vadd.f32 %v2498_v17, %v2497_v10 }
 0x554   : > { %v2505_v25 = vmul.f32 0.25, %v2494_v49  ;;  %v2536_v11 = vsel %vm2535_vm10, %v2532_v40, %v2531_v43  ;;  %v2453_v1 = vrot.slane %v2452_v51, 2 }
 0x555   : > { %v2500_v30 = vrot.slane %v2499_v23, 1 }
 0x556   : > { %v2509_v52 = vpack.c.bf16 %v2505_v25, %v2505_v25  ;;  %v2471_v3 = vsel %vm4070_vm9, %v2453_v1, %v2470_v50 }
 0x557   : > { %v2501_v31 = vadd.f32 %v2500_v30, %v2499_v23  ;;  %2472 = vst [vmem:[%s4074_s6 + $0x6] sm:$0x3] %v2471_v3 }
 0x558   : > { %v2533_v60 = vunpack.c.l.b16 %v2509_v52 }
 0x559   : > { %v2506_v34 = vmul.f32 0.25, %v2501_v31 }
 0x55a   : > { %v2538_v48 = vsel %vm2537_vm11, %v2533_v60, %v2536_v11 }
 0x55b   : > { %v2510_v58 = vpack.c.bf16 %v2506_v34, %v2506_v34 }
 0x55d   : > { %v2534_v37 = vunpack.c.l.b16 %v2510_v58 }
 0x55f   : > { %v2540_v38 = vsel %vm2539_vm12, %v2534_v37, %v2538_v48 }
 0x560   : > { %v2541_v39 = vpack.c.b16 %v2540_v38, %v2540_v38 }
 0x562   : > { %3179 = vmatmul.mubr.bf16.vlgmr.msra.gmra.mrb[60].mxu0 %v2541_v39 }
 0x563   : > { %3347 = shalt.err (!%p3344_p3)
}
 0x564   : > { %s3348_s25 = scalar_lea.hbm %s4102_s12, 128  ;;  %s3352_s30 = scalar_lea.hbm %s4172_s4, 256 }
 0x565   : > { %p3349_p4 = scmp.ne.s32.totalorder %s4102_s12, %s3348_s25  ;;  %p3353_p9 = scmp.lt.u32.totalorder %s4102_s12, %s4172_s4 }
 0x566   : > { %p3354_p10 = scmp.lt.u32.totalorder %s3352_s30, %s3348_s25  ;;  %p3356_p12 = scmp.lt.u32.totalorder %s3348_s25, %s4102_s12 }
 0x567   : > { %p3350_p7 = pnand %p3349_p4, %p3476_p5 }
 0x568   : > { %p3355_p11 = por %p3354_p10, %p3353_p9 }
 0x569   : > { %p3351_p8 = pneg %p3350_p7 }
 0x56a   : > { %p3357_p13 = por %p3356_p12, %p3355_p11 }
 0x56c   : > { %p3358_p0 = pnand %p3357_p13, %p3351_p8 }
 0x56e   : > { %3361 = shalt.err (!%p3358_p0)
}
 0x56f   : > { %s3406_s10 = smov 2   ;;  %v3407_v36 = vmov 1966171168   ;;  %s236_s28 = scalar_lea.vmem %s4173_s5, %s4185_s7  ;;  %vm2665_vm13 = vcmask 1040384   ;;  %vm2666_vm14 = vsmask.f32 256 }
 0x570   : > { %3182 = dma.vmem_to_hbm [thread:$0]  (%p3476_p5), %s4104_s9, 128, %s4102_s12, %s4108_s13, %s3404_s23, %s3404_s23, %s3406_s10   ;;  %v2634_v24 = vunpack.c.l.s4 %v3407_v36  ;;  %vm4139_vm15 = vmand %vm2665_vm13, %vm2666_vm14 }
 0x571   : > { %v2668_v5 = vld [vmem:[%s236_s28] sm:$0x1]  ;;  %v2671_v21 = vld [vmem:[%s236_s28 + $0x1] sm:$0x1]  ;;  %v2674_v56 = vld [vmem:[%s236_s28 + $0x2] sm:$0x1] }
 0x572   : > { %v2635_v20 = vunpack.c.0.s8 %v2634_v24  ;;  %v2677_v59 = vld [vmem:[%s236_s28 + $0x3] sm:$0x1] }
 0x574   : > { %v2638_v41 = vsub.s32 %v2635_v20, %v3521_v13 }
 0x635   : > { %v2625_v22 = vpop.f32.mrb[60].mxu0 }
 0x636   : > { %v2631_v44 = vmax.f32 %v2625_v22, 0.0  ;;  %v3180_v46 = vpop.f32.mrb[61].mxu0 }
 0x637   : > { %v2628_v33 = vpop.f32.mrb[62].mxu0 }
 0x638   : > { %v2639_v9 = vrot.slane %v2631_v44, %v2638_v41  ;;  %v3181_v47 = vpop.f32.mrb[63].mxu0 }
 0x63a   : > { %v2647_v7 = vrot.slane %v2639_v9, %v2638_v41  ;;  %v2640_v13 = vcombine.high %v2639_v9, %v2639_v9 }
 0x63c   : > { %v2661_v12 = vpack.c.bf16 %v2647_v7, %v2647_v7  ;;  %v2654_v18 = vrot.slane %v2640_v13, %v2638_v41  ;;  %v2655_v54 = vcombine.high %v2647_v7, %v2647_v7 }
 0x63e   : > { %v2669_v26 = vsel %vm4139_vm15, %v2661_v12, %v2668_v5  ;;  %v2662_v53 = vpack.c.bf16 %v2654_v18, %v2654_v18  ;;  %v2663_v45 = vpack.c.bf16 %v2655_v54, %v2655_v54  ;;  %v2656_v57 = vcombine.high %v2654_v18, %v2654_v18 }
 0x63f   : > { %2670 = vst [vmem:[%s236_s28] sm:$0x1] %v2669_v26 }
 0x640   : > { %v2672_v55 = vsel %vm4139_vm15, %v2662_v53, %v2671_v21  ;;  %v2675_v62 = vsel %vm4139_vm15, %v2663_v45, %v2674_v56  ;;  %v2664_v4 = vpack.c.bf16 %v2656_v57, %v2656_v57 }
 0x641   : > { %2673 = vst [vmem:[%s236_s28 + $0x1] sm:$0x1] %v2672_v55  ;;  %2676 = vst [vmem:[%s236_s28 + $0x2] sm:$0x1] %v2675_v62 }
 0x642   : > { %v2678_v61 = vsel %vm4139_vm15, %v2664_v4, %v2677_v59 }
 0x643   : > { %2679 = vst [vmem:[%s236_s28 + $0x3] sm:$0x1] %v2678_v61 }
 0x644 PF: > { %p3188_p5 = scmp.ge.s32.totalorder %s3396_s21, 2  ;;  %s2717_s7 = sand.u32 1, %s3384_s18  }
 0x645   : > { %s2718_s23 = scalar_lea.sflag [#allocation3], %s2717_s7 }
 0x646   : > { %p3185_p1 = pnand %p3188_p5, %p3480_p6 }
 0x648   : > { %3379 = dma.done.wait (!%p3185_p1), %s2718_s23, 128  }
 0x649   : > { %3381 = vsyncadd (!%p3185_p1), %s2718_s23, 4294967168  ;;  %p16_p2 = scmp.ge.s32.totalorder %s3463_s24, 4   ;;  %s4180_s18 = smov %s3388_s19 }
 0x64a   : > { %s4181_s19 = smov %s3392_s20  ;;  %s4182_s20 = smov %s3474_s27 }
 0x64b   : > { %s4183_s21 = smov %s3463_s24  ;;  %18 = sbr.rel (!%p16_p2) target bundleno = 3 (0x3), region = 83 }
 0x652   :  { %2730 = vsyncpa [#allocation3], 1 }
 0x653   :  { %2732 = vsyncpa [#allocation3 + $0x1], 1 }

// kernel: graph_bert_encoder_forward.3
= control target key start
LH: loop header
LB: loop body
LE: loop exit
PB: predicated region body
PF: predicated region fallthrough
CT: control target
= control target key end

     0   :  { %s6024_s0 = inlined_call_operand.vmem [shape: bf16[8,8,128], index: 0, kind: input, shape index: {}, may-alias: {0,15}]   ;;  %s6025_s1 = inlined_call_operand.vmem [shape: f32[8,1,8], index: 1, kind: input, shape index: {}]   ;;  %s6026_s2 = inlined_call_operand.vmem [shape: bf16[8,1,128], index: 2, kind: input, shape index: {}]   ;;  %s6027_s3 = inlined_call_operand.hbm [shape: bf16[128,384], index: 3, kind: input, shape index: {}]   ;;  %s6028_s4 = inlined_call_operand.vmem [shape: f32[1,384], index: 4, kind: input, shape index: {}]   ;;  %s6029_s5 = inlined_call_operand.vmem [shape: bf16[128,128], index: 5, kind: input, shape index: {}]   ;;  %s6030_s6 = inlined_call_operand.vmem [shape: f32[1,128], index: 6, kind: input, shape index: {}]   ;;  %s6031_s7 = inlined_call_operand.vmem [shape: f32[1,128], index: 7, kind: input, shape index: {}]   ;;  %s6032_s8 = inlined_call_operand.vmem [shape: f32[1,128], index: 8, kind: input, shape index: {}]   ;;  %s6033_s9 = inlined_call_operand.hbm [shape: bf16[128,512], index: 9, kind: input, shape index: {}]   ;;  %s6034_s10 = inlined_call_operand.vmem [shape: f32[1,512], index: 10, kind: input, shape index: {}]   ;;  %s6035_s11 = inlined_call_operand.hbm [shape: bf16[512,128], index: 11, kind: input, shape index: {}]   ;;  %s6036_s12 = inlined_call_operand.vmem [shape: f32[1,128], index: 12, kind: input, shape index: {}]   ;;  %s6037_s13 = inlined_call_operand.vmem [shape: f32[1,128], index: 13, kind: input, shape index: {}]   ;;  %s6038_s14 = inlined_call_operand.vmem [shape: f32[1,128], index: 14, kind: input, shape index: {}]   ;;  %s6039_s15 = inlined_call_operand.vmem [shape: bf16[8,8,128], index: 15, kind: output, shape index: {}, may-alias: {0,15}]  }
   0x1   :  { %6044 = sst [smem:[#allocation9_spill]] %s6036_s12 }
   0x2   :  { %6045 = sst [smem:[#allocation10_spill]] %s6037_s13 }
   0x3   :  { %6046 = sst [smem:[#allocation11_spill]] %s6038_s14 }
   0x4   :  { %6047 = sst [smem:[#allocation12_spill]] %s6039_s15 }
   0x5   :  { %20 = vsyncpa [#allocation3], 0 }
   0x6   :  { %21 = vsyncpa [#allocation5], 0  ;;  %s5154_s18 = smov 0  }
   0x7 LB: > { %s5059_s19 = smov [#allocation4]   ;;  %s6040_s21 = sadd.s32 4294967295, %s5057_s18   ;;  %s5057_s18 = sphi %s5154_s18, %s27_s18  }
   0x8   : > { %s428_s20 = sshll.u32 %s5059_s19, 4  ;;  %p4071_p0 = scmp.ge.s32.totalorder %s5057_s18, 1  ;;  %s5168_s20 = int_to_ptr.vmem [resolvable:$true] %s428_s20 }
   0x9   : > { %p388_p1 = scmp.lt.s32.totalorder %s5057_s18, 3  ;;  %p5164_p2 = scmp.eq.s32.totalorder %s6040_s21, 0 }
   0xa   : > { %s5060_s24 = smov [#allocation2]   ;;  %s5061_s27 = smov [#allocation6]  }
   0xb   : > { %s6048_s22 = scalar_select %p5164_p2, 1, 0 }
   0xc   : > { %p5170_p3 = pnand %p4071_p0, %p388_p1  ;;  %s400_s25 = sshll.u32 %s5060_s24, 4  ;;  %s5176_s25 = int_to_ptr.vmem [resolvable:$true] %s400_s25 }
   0xd   : > { %s5184_s28 = sshll.u32 %s5061_s27, 4  ;;  %s4959_s16 = scalar_lea.hbm %s6033_s9, 4096  ;;  %s445_s28 = int_to_ptr.vmem [resolvable:$true] %s5184_s28 }
   0xe   : > { %s6049_s23 = scalar_select %p5170_p3, 1, 0 }
   0xf   : > { %p4658_p4 = pneg %p5170_p3  ;;  %p4960_p6 = scmp.ne.s32.totalorder %s6033_s9, %s4959_s16 }
  0x10   : > { %p4966_p10 = scmp.lt.u32.totalorder %s4959_s16, %s6033_s9 }
  0x11   : > { %p5180_p5 = pnand %p5164_p2, %p4658_p4 }
  0x13   : > { %p5194_p7 = pneg %p5180_p5 }
  0x15   : > { %p4962_p8 = pnand %p5194_p7, %p4960_p6 }
  0x17   : > { %p4963_p9 = pneg %p4962_p8 }
  0x19   : > { %p4968_p11 = pnand %p4966_p10, %p4963_p9 }
  0x1b   : > { %4971 = shalt.err (!%p4968_p11)
}
  0x1c   : > { %s4972_s29 = scalar_lea.vmem %s5168_s20, 4096  ;;  %p4980_p1 = scmp.lt.s32.totalorder %s5168_s20, %s5168_s20 }
  0x1d   : > { %p4973_p12 = scmp.ne.s32.totalorder %s5168_s20, %s4972_s29  ;;  %p4981_p4 = scmp.lt.s32.totalorder %s4972_s29, %s4972_s29 }
  0x1f   : > { %p4975_p13 = pnand %p4973_p12, %p5194_p7  ;;  %p4982_p6 = por %p4981_p4, %p4980_p1 }
  0x21   : > { %p4976_p0 = pneg %p4975_p13 }
  0x23   : > { %p4983_p8 = pnand %p4982_p6, %p4976_p0 }
  0x25   : > { %4986 = shalt.err (!%p4983_p8)
}
  0x26   : > { %s5062_s30 = smov 256   ;;  %s5063_s21 = smov 16  }
  0x27   : > { %4664 = dma.hbm_to_vmem [thread:$0]  (!%p5180_p5), %s6033_s9, 4096, %s5168_s20, [#allocation5], %s5062_s30, %s5062_s30, %s5063_s21  }
  0x28   : > { %s4987_s15 = scalar_lea.hbm %s6027_s3, 3072 }
  0x29   : > { %p4988_p9 = scmp.ne.s32.totalorder %s6027_s3, %s4987_s15  ;;  %p4994_p12 = scmp.lt.u32.totalorder %s4987_s15, %s6027_s3 }
  0x2b   : > { %p4990_p10 = pnand %p4988_p9, %p5194_p7 }
  0x2d   : > { %p4991_p11 = pneg %p4990_p10 }
  0x2f   : > { %p4996_p13 = pnand %p4994_p12, %p4991_p11 }
  0x31   : > { %4999 = shalt.err (!%p4996_p13)
}
  0x32   : > { %s5000_s20 = scalar_lea.vmem %s5176_s25, 3072  ;;  %p5008_p6 = scmp.lt.s32.totalorder %s5176_s25, %s5176_s25 }
  0x33   : > { %p5001_p0 = scmp.ne.s32.totalorder %s5176_s25, %s5000_s20  ;;  %p5009_p8 = scmp.lt.s32.totalorder %s5000_s20, %s5000_s20 }
  0x35   : > { %p5003_p1 = pnand %p5001_p0, %p5194_p7  ;;  %p5010_p9 = por %p5009_p8, %p5008_p6 }
  0x37   : > { %p5004_p4 = pneg %p5003_p1 }
  0x39   : > { %p5011_p10 = pnand %p5010_p9, %p5004_p4 }
  0x3b   : > { %5014 = shalt.err (!%p5011_p10)
}
  0x3c   : > { %s5064_s13 = smov 192   ;;  %s5065_s12 = smov 12  }
  0x3d   : > { %4661 = dma.hbm_to_vmem [thread:$0]  (!%p5180_p5), %s6027_s3, 3072, %s5176_s25, [#allocation3], %s5064_s13, %s5064_s13, %s5065_s12  }
  0x3e   : > { %s5015_s16 = scalar_lea.hbm %s6035_s11, 4096 }
  0x3f   : > { %p5016_p11 = scmp.ne.s32.totalorder %s6035_s11, %s5015_s16  ;;  %p5022_p0 = scmp.lt.u32.totalorder %s5015_s16, %s6035_s11 }
  0x41   : > { %p5018_p12 = pnand %p5016_p11, %p5194_p7 }
  0x43   : > { %p5019_p13 = pneg %p5018_p12 }
  0x45   : > { %p5024_p1 = pnand %p5022_p0, %p5019_p13 }
  0x47   : > { %5027 = shalt.err (!%p5024_p1)
}
  0x48   : > { %s5028_s20 = scalar_lea.vmem %s445_s28, 4096  ;;  %p5036_p9 = scmp.lt.s32.totalorder %s445_s28, %s445_s28 }
  0x49   : > { %p5029_p4 = scmp.ne.s32.totalorder %s445_s28, %s5028_s20  ;;  %p5037_p10 = scmp.lt.s32.totalorder %s5028_s20, %s5028_s20 }
  0x4b   : > { %p5031_p6 = pnand %p5029_p4, %p5194_p7  ;;  %p5038_p2 = por %p5037_p10, %p5036_p9 }
  0x4d   : > { %p5032_p8 = pneg %p5031_p6 }
  0x4f   : > { %p5039_p3 = pnand %p5038_p2, %p5032_p8 }
  0x51   : > { %5042 = shalt.err (!%p5039_p3)
}
  0x52   : > { %s5066_s25 = smov 64   ;;  %s5067_s13 = smov 4  }
  0x53   : > { %4667 = dma.hbm_to_vmem [thread:$0]  (!%p5180_p5), %s6035_s11, 4096, %s445_s28, [#allocation5], %s5066_s25, %s5066_s25, %s5067_s13  }
  0x54   : > { %p6052_p11 = scmp.ne.s32.totalorder %s6049_s23, 0 }
  0x55   : > { %p6053_p12 = scmp.ne.s32.totalorder (!%p6052_p11), %s6048_s22, 0 }
  0x56   : > { %494 = sbr.rel (%p6052_p11) target bundleno = 2753 (0xac1), region = 80 }
  0x5d   : > { %5048 = dma.done.wait (%p6053_p12), [#allocation3], 3072  }
  0x5e   : > { %5050 = vsyncadd (%p6053_p12), [#allocation3], 4294964224 }
  0x5f   : > { %5052 = dma.done.wait (%p6053_p12), [#allocation5], 8192  }
  0x60   : > { %5054 = vsyncadd (%p6053_p12), [#allocation5], 4294959104  ;;  %v5068_v0 = vmov 0   ;;  %s6054_s26 = sadd.s32 4294967295, %s5057_s18   ;;  %v4727_v1 = vld [vmem:[#allocation2 + $0x4] ss:$12 sps:$4 sm:$0xff]   ;;  %v589_v4 = vlaneseq }
  0x61   : > { %855 = vmatprep.mubr.bf16.mxu0 %v5068_v0  ;;  %s4080_s28 = sshll.u32 %s6054_s26, 2  ;;  %v4729_v2 = vld [vmem:[#allocation2] ss:$12 sps:$4 sm:$0xff]   ;;  %823 = vmatprep.subr.bf16.mxu0 %v4727_v1  ;;  %v4730_v3 = vld [vmem:[#allocation2 + $0x1c] ss:$12 sps:$4 sm:$0xff]   ;;  %v5069_v56 = vmov 0.0  }
  0x62   : > { %p559_p2 = scmp.lt.s32.totalorder %s4080_s28, 7  ;;  %824 = vmatpush1.bf16.msra.mxu0 %v4729_v2  ;;  %v4732_v5 = vld [vmem:[#allocation2 + $0x18] ss:$12 sps:$4 sm:$0xff]   ;;  %v4733_v6 = vld [vmem:[#allocation2 + $0x34] ss:$12 sps:$4 sm:$0xff]   ;;  %v5273_v7 = vshrl.u32 %v589_v4, 7 }
  0x63   : > { %825 = vmatprep.subr.bf16.mxu0 %v4730_v3  ;;  %v4735_v8 = vld [vmem:[#allocation2 + $0x30] ss:$12 sps:$4 sm:$0xff]   ;;  %v4736_v9 = vld [vmem:[#allocation2 + $0x4c] ss:$12 sps:$4 sm:$0xff]   ;;  %v4738_v12 = vld [vmem:[#allocation2 + $0x48] ss:$12 sps:$4 sm:$0xff]  }
  0x64   : > { %s6060_s28 = smov (!%p559_p2, %s4080_s28), 7  ;;  %v5290_v11 = vsub.s32 0, %v5273_v7  ;;  %v4739_v15 = vld [vmem:[#allocation2 + $0x64] ss:$12 sps:$4 sm:$0xff]   ;;  %vm591_vm0 = vcmp.eq.s32.totalorder %v5273_v7, 0  ;;  %vm5070_vm1 = vmmov 0  }
  0x65   : > { %s4081_s22 = sshll.u32 %s6060_s28, 2  ;;  %s5286_s16 = scalar_lea.vmem %s6026_s2, %s6060_s28  ;;  %v4751_v20 = vld [vmem:[#allocation2 + $0x8] ss:$12 sps:$4 sm:$0xff]   ;;  %v4752_v23 = vld [vmem:[#allocation2 + $0x20] ss:$12 sps:$4 sm:$0xff]   ;;  %v674_v58 = vsub.s32 1, %v5273_v7 }
  0x66   : > { %826 = vmatpush1.bf16.msra.mxu0 %v4732_v5  ;;  %s5280_s15 = scalar_lea.vmem %s6024_s0, %s4081_s22  ;;  %v592_v13 = vld [vmem:[%s5286_s16] sm:$0x1]  ;;  %v593_v14 = vld [vmem:[%s5286_s16 + $0x1] sm:$0x1]  ;;  %4414 = vmatprep.subr.bf16.mxu1 %v4751_v20  ;;  %v4742_v25 = vld [vmem:[#allocation2 + $0x7c] ss:$12 sps:$4 sm:$0xff]   ;;  %s567_s12 = scalar_lea.vmem %s6025_s1, %s6060_s28 }
  0x67   : > { %827 = vmatprep.subr.bf16.mxu0 %v4733_v6  ;;  %v4255_v10 = vld [vmem:[%s5280_s15] sm:$0xff]   ;;  %v596_v16 = vunpack.c.l.bf16 %v592_v13  ;;  %v597_v17 = vunpack.c.l.bf16 %v593_v14  ;;  %4415 = vmatpush3.bf16.msra.mxu1 %v4751_v20  ;;  %v4747_v36 = vld [vmem:[#allocation2 + $0x90] ss:$12 sps:$4 sm:$0xff]   ;;  %v4748_v38 = vld [vmem:[#allocation2 + $0xac] ss:$12 sps:$4 sm:$0xff]   ;;  %vm1045_vm2 = vcmask 261120  }
  0x68   : > { %v4256_v18 = vunpack.c.l.bf16 %v4255_v10  ;;  %v4257_v19 = vunpack.c.h.bf16 %v4255_v10  ;;  %v4741_v24 = vld [vmem:[#allocation2 + $0x60] ss:$12 sps:$4 sm:$0xff]   ;;  %v4744_v28 = vld [vmem:[#allocation2 + $0x78] ss:$12 sps:$4 sm:$0xff]   ;;  %4416 = vmatprep.subr.bf16.mxu1 %v4752_v23  ;;  %v4754_v37 = vld [vmem:[#allocation2 + $0x50] ss:$12 sps:$4 sm:$0xff]  }
  0x69   : > { %v605_v21 = vrot.slane %v596_v16, %v5290_v11  ;;  %v609_v22 = vrot.slane %v597_v17, %v5290_v11  ;;  %v4753_v31 = vld [vmem:[#allocation2 + $0x38] ss:$12 sps:$4 sm:$0xff]   ;;  %v4745_v32 = vld [vmem:[#allocation2 + $0x94] ss:$12 sps:$4 sm:$0xff]   ;;  %v4272_v43 = vld [vmem:[%s5280_s15 + $0x8] sm:$0xff]   ;;  %s5071_s27 = smov 96  }
  0x6a   : > { %828 = vmatpush1.bf16.msra.mxu0 %v4735_v8  ;;  %v594_v34 = vld [vmem:[%s5286_s16 + $0x2] sm:$0x1]  ;;  %v595_v35 = vld [vmem:[%s5286_s16 + $0x3] sm:$0x1]  ;;  %v4755_v41 = vld [vmem:[#allocation2 + $0x68] ss:$12 sps:$4 sm:$0xff]   ;;  %v4260_v47 = vunpack.c.l.bf16 %v4272_v43  ;;  %v4261_v48 = vunpack.c.h.bf16 %v4272_v43 }
  0x6b   : > { %829 = vmatprep.subr.bf16.mxu0 %v4736_v9  ;;  %v618_v26 = vsel %vm591_vm0, %v605_v21, 0.0  ;;  %v619_v27 = vsel %vm591_vm0, %v609_v22, 0.0  ;;  %4417 = vmatpush3.bf16.msra.mxu1 %v4752_v23  ;;  %v598_v39 = vunpack.c.l.bf16 %v594_v34  ;;  %v599_v40 = vunpack.c.l.bf16 %v595_v35  ;;  %v4750_v42 = vld [vmem:[#allocation2 + $0xa8] ss:$12 sps:$4 sm:$0xff]   ;;  %v4756_v46 = vld [vmem:[#allocation2 + $0x80] ss:$12 sps:$4 sm:$0xff]  }
  0x6c   : > { %v5301_v29 = vadd.f32 %v4256_v18, %v618_v26  ;;  %v5303_v30 = vadd.f32 %v4257_v19, %v619_v27  ;;  %4418 = vmatprep.subr.bf16.mxu1 %v4753_v31  ;;  %v4757_v51 = vld [vmem:[#allocation2 + $0x98] ss:$12 sps:$4 sm:$0xff]   ;;  %v4758_v54 = vld [vmem:[#allocation2 + $0xb0] ss:$12 sps:$4 sm:$0xff]   ;;  %v5332_v57 = vld [vmem:[%s6028_s4] sm:$0x7] }
  0x6d   : > { %v613_v44 = vrot.slane %v598_v39, %v5290_v11  ;;  %v617_v45 = vrot.slane %v599_v40, %v5290_v11  ;;  %v671_v59 = vrot.slane %v5332_v57, %v5290_v11  ;;  %v675_v60 = vrot.slane %v5332_v57, %v674_v58  ;;  %s5072_s29 = smov 64   ;;  %s5073_s20 = smov 32  }
  0x6e   : > { %830 = vmatpush1.bf16.msra.mxu0 %v4738_v12  ;;  %v4240_v33 = vpack.c.bf16 %v5303_v30, %v5301_v29  ;;  %vm1978_vm3 = vcmask 1043456   ;;  %vm1782_vm4 = vcmask 64512   ;;  %vm2764_vm5 = vcmask 523264   ;;  %s6058_s24 = sld [smem:[#allocation12_spill]] }
  0x6f   : > { %831 = vmatprep.subr.bf16.mxu0 %v4739_v15  ;;  %4419 = vmatpush3.bf16.msra.mxu1 %v4753_v31  ;;  %v620_v49 = vsel %vm591_vm0, %v613_v44, 0.0  ;;  %v621_v50 = vsel %vm591_vm0, %v617_v45, 0.0  ;;  %vm2769_vm6 = vcmask 785408  }
  0x70   : > { %4430 = vmatprep.mubr.bf16.mxu1 %v4240_v33  ;;  %4420 = vmatprep.subr.bf16.mxu1 %v4754_v37  ;;  %v5316_v52 = vadd.f32 %v4260_v47, %v620_v49  ;;  %v5318_v53 = vadd.f32 %v4261_v48, %v621_v50 }
  0x72   : > { %832 = vmatpush1.bf16.msra.mxu0 %v4741_v24  ;;  %v4241_v55 = vpack.c.bf16 %v5318_v53, %v5316_v52 }
  0x73   : > { %833 = vmatprep.subr.bf16.mxu0 %v4742_v25  ;;  %4421 = vmatpush3.bf16.msra.mxu1 %v4754_v37 }
  0x74   : > { %4422 = vmatprep.subr.bf16.mxu1 %v4755_v41  ;;  %s578_s15 = scalar_lea.vmem %s6058_s24, %s4081_s22 }
  0x76   : > { %834 = vmatpush1.bf16.msra.mxu0 %v4744_v28  ;;  %v678_v28 = vsub.s32 2, %v5273_v7 }
  0x77   : > { %835 = vmatprep.subr.bf16.mxu0 %v4745_v32  ;;  %4423 = vmatpush3.bf16.msra.mxu1 %v4755_v41 }
  0x78   : > { %4424 = vmatprep.subr.bf16.mxu1 %v4756_v46 }
  0x7a   : > { %836 = vmatpush1.bf16.msra.mxu0 %v4747_v36 }
  0x7b   : > { %837 = vmatprep.subr.bf16.mxu0 %v4748_v38  ;;  %4425 = vmatpush3.bf16.msra.mxu1 %v4756_v46 }
  0x7c   : > { %4426 = vmatprep.subr.bf16.mxu1 %v4757_v51 }
  0x7e   : > { %838 = vmatpush1.bf16.msra.mxu0 %v4750_v42 }
  0x7f   : > { %4427 = vmatpush3.bf16.msra.mxu1 %v4757_v51  ;;  %4434 = vmatprep.subr.bf16.mxu0 %v5069_v56 }
  0x80   : > { %4428 = vmatprep.subr.bf16.mxu1 %v4758_v54 }
  0x81   : > { %856 = vmatmul.mubr.bf16.vlgmr.msra.gmra.mrb[0].mxu0 %v4240_v33  ;;  %v679_v33 = vrot.slane %v5332_v57, %v678_v28 }
  0x82   : > { %865 = vmatprep.mubr.bf16.mxu0 %v5068_v0 }
  0x83   : > { %4429 = vmatpush3.bf16.msra.mxu1 %v4758_v54 }
  0x84   : > { %4446 = vmatprep.subr.bf16.mxu1 %v5069_v56 }
  0x86   : > { %4431 = vmatmul.mubr.bf16.vlgmr.msra.gmra.mrb[0].mxu1 %v4241_v55 }
  0x87   : > { %4448 = vmatprep.mubr.msk.bf16.mxu1 %vm5070_vm1, %v5069_v56 }
  0x89   : > { %866 = vmatmul.mubr.bf16.gmra.mrb[4].mxu0 %v4241_v55 }
  0x8a   : > { %4436 = vmatprep.mubr.msk.bf16.mxu0 %vm5070_vm1, %v5069_v56 }
 0x154   : > { %v857_v61 = vpop.f32.mrb[0].mxu0 }
 0x155   : > { %v858_v62 = vadd.f32 %v857_v61, %v671_v59  ;;  %v859_v63 = vpop.f32.mrb[1].mxu0 }
 0x156   : > { %v860_v1 = vadd.f32 %v859_v63, %v675_v60  ;;  %v861_v2 = vpop.f32.mrb[2].mxu0 }
 0x157   : > { %v925_v3 = vpack.c.bf16 %v858_v62, %v858_v62  ;;  %v862_v4 = vadd.f32 %v861_v2, %v671_v59  ;;  %v863_v5 = vpop.f32.mrb[3].mxu0 }
 0x158   : > { %v926_v6 = vpack.c.bf16 %v860_v1, %v860_v1  ;;  %v864_v8 = vadd.f32 %v863_v5, %v675_v60 }
 0x159   : > { %941 = vrot.lane.b32.xlu1 %v925_v3, %s5071_s27  ;;  %v928_v10 = vpack.c.bf16 %v862_v4, %v862_v4  ;;  %v4432_v31 = vpop.f32.mrb[0].mxu1 }
 0x15a   : > { %969 = vrot.lane.b32.xlu0 %v926_v6, %s5071_s27  ;;  %v1050_v9 = vsel %vm1045_vm2, %v926_v6, 0  ;;  %v929_v12 = vpack.c.bf16 %v864_v8, %v864_v8  ;;  %v910_v32 = vpop.f32.mrb[1].mxu1  ;;  %v919_v40 = vadd.f32 %v4432_v31, %v679_v33 }
 0x15b   : > { %4435 = vmatpush3.bf16.xpose.msra.mxu0 %v1050_v9  ;;  %v4433_v34 = vpop.f32.mrb[2].mxu1  ;;  %v911_v36 = vadd.f32 %v910_v32, %v679_v33 }
 0x15c   : > { %v867_v13 = vpop.f32.mrb[4].mxu0  ;;  %4440 = vmatprep.subr.bf16.mxu0 %v5069_v56  ;;  %v1096_v23 = vsel %vm1045_vm2, %v929_v12, 0  ;;  %v913_v35 = vpop.f32.mrb[3].mxu1  ;;  %v922_v38 = vadd.f32 %v4433_v34, %v679_v33  ;;  %v5396_v43 = vpack.c.bf16 %v919_v40, %v919_v40 }
 0x15d   : > { %v869_v14 = vpop.f32.mrb[5].mxu0  ;;  %943 = vrot.lane.b32.xlu1 %v928_v10, %s5071_s27  ;;  %v868_v18 = vadd.f32 %v867_v13, %v671_v59  ;;  %v914_v37 = vadd.f32 %v913_v35, %v679_v33  ;;  %v5390_v41 = vpack.c.bf16 %v911_v36, %v911_v36  ;;  %v5483_v35 = vld [vmem:[%s567_s12 + $0x2] ss:$0 sm:$0xff]  ;;  %v5485_v36 = vld [vmem:[%s567_s12 + $0x1] ss:$0 sm:$0xff] }
 0x15e   : > { %v870_v15 = vadd.f32 %v869_v14, %v675_v60  ;;  %v871_v16 = vpop.f32.mrb[6].mxu0  ;;  %971 = vrot.lane.b32.xlu0 %v929_v12, %s5071_s27  ;;  %v5392_v42 = vpack.c.bf16 %v922_v38, %v922_v38 }
 0x15f   : > { %v873_v17 = vpop.f32.mrb[7].mxu0  ;;  %v872_v21 = vadd.f32 %v871_v16, %v671_v59  ;;  %v931_v25 = vpack.c.bf16 %v868_v18, %v868_v18  ;;  %v5387_v39 = vpack.c.bf16 %v914_v37, %v914_v37 }
 0x160   : > { %v932_v19 = vpack.c.bf16 %v870_v15, %v870_v15  ;;  %v874_v20 = vadd.f32 %v873_v17, %v675_v60 }
 0x161   : > { %v934_v26 = vpack.c.bf16 %v872_v21, %v872_v21  ;;  %v1980_v21 = vsel %vm1978_vm3, %v5390_v41, 0 }
 0x162   : > { %v935_v22 = vpack.c.bf16 %v874_v20, %v874_v20  ;;  %973 = vrot.lane.b32.xlu0 %v932_v19, %s5071_s27  ;;  %4437 = vmatmul.mubr.msk.bf16.vlgmr.msra.gmra.mrb[8].mxu0 %vm1045_vm2, %v925_v3  ;;  %v1142_v24 = vsel %vm1045_vm2, %v932_v19, 0 }
 0x163   : > { %4441 = vmatpush3.bf16.xpose.msra.mxu0 %v1096_v23  ;;  %4447 = vmatpush3.bf16.xpose.msra.mxu1 %v1142_v24  ;;  %v2026_v23 = vsel %vm1978_vm3, %v5387_v39, 0 }
 0x164   : > { %975 = vrot.lane.b32.xlu1 %v935_v22, %s5071_s27  ;;  %4442 = vmatprep.mubr.msk.bf16.mxu0 %vm5070_vm1, %v5069_v56  ;;  %v1188_v27 = vsel %vm1045_vm2, %v935_v22, 0 }
 0x165   : > { %4452 = vmatprep.subr.bf16.mxu0 %v5069_v56  ;;  %4458 = vmatprep.subr.bf16.mxu1 %v5069_v56 }
 0x166   : > { %945 = vrot.lane.b32.xlu0 %v931_v25, %s5071_s27 }
 0x168   : > { %947 = vrot.lane.b32.xlu1 %v934_v26, %s5071_s27 }
 0x16a   : > { %4449 = vmatmul.mubr.msk.bf16.vlgmr.msra.gmra.mrb[4].mxu1 %vm1045_vm2, %v931_v25  ;;  %977 = vrot.lane.b32.xlu0 %v926_v6, %s5072_s29 }
 0x16b   : > { %4443 = vmatmul.mubr.msk.bf16.vlgmr.msra.gmra.mrb[12].mxu0 %vm1045_vm2, %v928_v10  ;;  %4460 = vmatprep.mubr.msk.bf16.mxu1 %vm5070_vm1, %v5069_v56 }
 0x16c   : > { %4453 = vmatpush3.bf16.xpose.msra.mxu0 %v1188_v27  ;;  %979 = vrot.lane.b32.xlu1 %v929_v12, %s5072_s29 }
 0x16d   : > { %4454 = vmatprep.mubr.msk.bf16.mxu0 %vm5070_vm1, %v5069_v56  ;;  %4464 = vmatprep.subr.bf16.mxu0 %v5069_v56 }
 0x16e   : > { %949 = vrot.lane.b32.xlu0 %v925_v3, %s5072_s29 }
 0x170   : > { %951 = vrot.lane.b32.xlu1 %v928_v10, %s5072_s29 }
 0x172   : > { %981 = vrot.lane.b32.xlu0 %v932_v19, %s5072_s29 }
 0x173   : > { %4455 = vmatmul.mubr.msk.bf16.vlgmr.msra.gmra.mrb[16].mxu0 %vm1045_vm2, %v934_v26 }
 0x174   : > { %983 = vrot.lane.b32.xlu1 %v935_v22, %s5072_s29  ;;  %4466 = vmatprep.mubr.msk.bf16.mxu0 %vm5070_vm1, %v5069_v56 }
 0x176   : > { %953 = vrot.lane.b32.xlu0 %v931_v25, %s5072_s29 }
 0x178   : > { %955 = vrot.lane.b32.xlu1 %v934_v26, %s5072_s29 }
 0x17a   : > { %985 = vrot.lane.b32.xlu0 %v926_v6, %s5073_s20 }
 0x17c   : > { %987 = vrot.lane.b32.xlu1 %v929_v12, %s5073_s20 }
 0x17e   : > { %957 = vrot.lane.b32.xlu0 %v925_v3, %s5073_s20 }
 0x180   : > { %959 = vrot.lane.b32.xlu1 %v928_v10, %s5073_s20 }
 0x182   : > { %989 = vrot.lane.b32.xlu0 %v932_v19, %s5073_s20 }
 0x184   : > { %991 = vrot.lane.b32.xlu1 %v935_v22, %s5073_s20 }
 0x186   : > { %961 = vrot.lane.b32.xlu0 %v931_v25, %s5073_s20  ;;  %v5476_v25 = vld [vmem:[%s567_s12] ss:$0 sm:$0xff] }
 0x188   : > { %963 = vrot.lane.b32.xlu1 %v934_v26, %s5073_s20 }
 0x18a   : > { %999 = vrot.lane.b32.xlu0 %v5387_v39, %s5071_s27 }
 0x18c   : > { %997 = vrot.lane.b32.xlu1 %v5390_v41, %s5071_s27 }
 0x18e   : > { %1003 = vrot.lane.b32.xlu0 %v5392_v42, %s5071_s27 }
 0x190   : > { %1001 = vrot.lane.b32.xlu1 %v5396_v43, %s5071_s27 }
 0x194   : > { %1005 = vrot.lane.b32.xlu1 %v5390_v41, %s5072_s29 }
 0x1cb   : > { %v942_v44 = vpop.permute.xlu1 %941 }
 0x1cc   : > { %v970_v45 = vpop.permute.xlu0 %969 }
 0x1cd   : > { %v1234_v46 = vsel %vm1045_vm2, %v970_v45, 0 }
 0x1ce   : > { %4459 = vmatpush3.bf16.xpose.msra.mxu1 %v1234_v46 }
 0x1cf   : > { %4470 = vmatprep.subr.bf16.mxu1 %v5069_v56  ;;  %v944_v49 = vpop.permute.xlu1 %943 }
 0x1d0   : > { %v972_v47 = vpop.permute.xlu0 %971 }
 0x1d1   : > { %v1280_v48 = vsel %vm1045_vm2, %v972_v47, 0 }
 0x1d2   : > { %4465 = vmatpush3.bf16.xpose.msra.mxu0 %v1280_v48 }
 0x1d3   : > { %4476 = vmatprep.subr.bf16.mxu0 %v5069_v56 }
 0x1d4   : > { %v974_v50 = vpop.permute.xlu0 %973 }
 0x1d5   : > { %v1326_v51 = vsel %vm1045_vm2, %v974_v50, 0  ;;  %4461 = vmatmul.mubr.msk.bf16.vlgmr.msra.gmra.mrb[8].mxu1 %vm1045_vm2, %v942_v44 }
 0x1d6   : > { %4471 = vmatpush3.bf16.xpose.msra.mxu1 %v1326_v51  ;;  %v976_v54 = vpop.permute.xlu1 %975  ;;  %4472 = vmatprep.mubr.msk.bf16.mxu1 %vm5070_vm1, %v5069_v56 }
 0x1d7   : > { %4482 = vmatprep.subr.bf16.mxu1 %v5069_v56  ;;  %v1372_v57 = vsel %vm1045_vm2, %v976_v54, 0 }
 0x1d8   : > { %v946_v55 = vpop.permute.xlu0 %945 }
 0x1d9   : > { %4467 = vmatmul.mubr.msk.bf16.vlgmr.msra.gmra.mrb[20].mxu0 %vm1045_vm2, %v944_v49 }
 0x1da   : > { %v948_v59 = vpop.permute.xlu1 %947  ;;  %4477 = vmatpush3.bf16.xpose.msra.mxu0 %v1372_v57  ;;  %4478 = vmatprep.mubr.msk.bf16.mxu0 %vm5070_vm1, %v5069_v56 }
 0x1db   : > { %4488 = vmatprep.subr.bf16.mxu0 %v5069_v56 }
 0x1dc   : > { %v978_v60 = vpop.permute.xlu0 %977 }
 0x1dd   : > { %v1418_v61 = vsel %vm1045_vm2, %v978_v60, 0  ;;  %4473 = vmatmul.mubr.msk.bf16.vlgmr.msra.gmra.mrb[12].mxu1 %vm1045_vm2, %v946_v55  ;;  %v5497_v55 = vld [vmem:[%s567_s12 + $0x3] ss:$0 sm:$0xff]  ;;  %s6056_s12 = sld [smem:[#allocation10_spill]] }
 0x1de   : > { %4483 = vmatpush3.bf16.xpose.msra.mxu1 %v1418_v61  ;;  %v980_v62 = vpop.permute.xlu1 %979  ;;  %4484 = vmatprep.mubr.msk.bf16.mxu1 %vm5070_vm1, %v5069_v56 }
 0x1df   : > { %4494 = vmatprep.subr.bf16.mxu1 %v5069_v56  ;;  %v1464_v1 = vsel %vm1045_vm2, %v980_v62, 0 }
 0x1e0   : > { %v950_v63 = vpop.permute.xlu0 %949 }
 0x1e1   : > { %4479 = vmatmul.mubr.msk.bf16.vlgmr.msra.gmra.mrb[24].mxu0 %vm1045_vm2, %v948_v59 }
 0x1e2   : > { %v952_v2 = vpop.permute.xlu1 %951  ;;  %4489 = vmatpush3.bf16.xpose.msra.mxu0 %v1464_v1  ;;  %4490 = vmatprep.mubr.msk.bf16.mxu0 %vm5070_vm1, %v5069_v56 }
 0x1e3   : > { %4500 = vmatprep.subr.bf16.mxu0 %v5069_v56 }
 0x1e4   : > { %v982_v3 = vpop.permute.xlu0 %981 }
 0x1e5   : > { %v1510_v4 = vsel %vm1045_vm2, %v982_v3, 0  ;;  %4485 = vmatmul.mubr.msk.bf16.vlgmr.msra.gmra.mrb[16].mxu1 %vm1045_vm2, %v950_v63 }
 0x1e6   : > { %4495 = vmatpush3.bf16.xpose.msra.mxu1 %v1510_v4  ;;  %v984_v5 = vpop.permute.xlu1 %983  ;;  %4496 = vmatprep.mubr.msk.bf16.mxu1 %vm5070_vm1, %v5069_v56 }
 0x1e7   : > { %4506 = vmatprep.subr.bf16.mxu1 %v5069_v56  ;;  %v1556_v8 = vsel %vm1045_vm2, %v984_v5, 0 }
 0x1e8   : > { %v954_v6 = vpop.permute.xlu0 %953 }
 0x1e9   : > { %4491 = vmatmul.mubr.msk.bf16.vlgmr.msra.gmra.mrb[28].mxu0 %vm1045_vm2, %v952_v2 }
 0x1ea   : > { %v956_v9 = vpop.permute.xlu1 %955  ;;  %4501 = vmatpush3.bf16.xpose.msra.mxu0 %v1556_v8  ;;  %4502 = vmatprep.mubr.msk.bf16.mxu0 %vm5070_vm1, %v5069_v56 }
 0x1eb   : > { %4512 = vmatprep.subr.bf16.mxu0 %v5069_v56 }
 0x1ec   : > { %v986_v10 = vpop.permute.xlu0 %985 }
 0x1ed   : > { %v1602_v12 = vsel %vm1045_vm2, %v986_v10, 0  ;;  %4497 = vmatmul.mubr.msk.bf16.vlgmr.msra.gmra.mrb[20].mxu1 %vm1045_vm2, %v954_v6 }
 0x1ee   : > { %4507 = vmatpush3.bf16.xpose.msra.mxu1 %v1602_v12  ;;  %v988_v13 = vpop.permute.xlu1 %987  ;;  %4508 = vmatprep.mubr.msk.bf16.mxu1 %vm5070_vm1, %v5069_v56 }
 0x1ef   : > { %4518 = vmatprep.subr.bf16.mxu1 %v5069_v56  ;;  %v1648_v15 = vsel %vm1045_vm2, %v988_v13, 0 }
 0x1f0   : > { %v958_v14 = vpop.permute.xlu0 %957 }
 0x1f1   : > { %4503 = vmatmul.mubr.msk.bf16.vlgmr.msra.gmra.mrb[32].mxu0 %vm1045_vm2, %v956_v9 }
 0x1f2   : > { %v960_v16 = vpop.permute.xlu1 %959  ;;  %4513 = vmatpush3.bf16.xpose.msra.mxu0 %v1648_v15  ;;  %4514 = vmatprep.mubr.msk.bf16.mxu0 %vm5070_vm1, %v5069_v56 }
 0x1f3   : > { %4524 = vmatprep.subr.bf16.mxu0 %v5069_v56 }
 0x1f4   : > { %v990_v17 = vpop.permute.xlu0 %989 }
 0x1f5   : > { %v1694_v18 = vsel %vm1045_vm2, %v990_v17, 0  ;;  %4509 = vmatmul.mubr.msk.bf16.vlgmr.msra.gmra.mrb[24].mxu1 %vm1045_vm2, %v958_v14 }
 0x1f6   : > { %4519 = vmatpush3.bf16.xpose.msra.mxu1 %v1694_v18  ;;  %v992_v19 = vpop.permute.xlu1 %991  ;;  %4520 = vmatprep.mubr.msk.bf16.mxu1 %vm5070_vm1, %v5069_v56 }
 0x1f7   : > { %4530 = vmatprep.subr.bf16.mxu1 %v5069_v56  ;;  %v1740_v20 = vsel %vm1045_vm2, %v992_v19, 0 }
 0x1f8   : > { %v962_v22 = vpop.permute.xlu0 %961 }
 0x1f9   : > { %4515 = vmatmul.mubr.msk.bf16.vlgmr.msra.gmra.mrb[36].mxu0 %vm1045_vm2, %v960_v16 }
 0x1fa   : > { %4525 = vmatpush3.bf16.xpose.msra.mxu0 %v1740_v20  ;;  %4526 = vmatprep.mubr.msk.bf16.mxu0 %vm5070_vm1, %v5069_v56  ;;  %v964_v24 = vpop.permute.xlu1 %963 }
 0x1fb   : > { %4536 = vmatprep.subr.bf16.mxu0 %v5069_v56 }
 0x1fd   : > { %4521 = vmatmul.mubr.msk.bf16.vlgmr.msra.gmra.mrb[28].mxu1 %vm1045_vm2, %v962_v22 }
 0x1fe   : > { %4531 = vmatpush3.bf16.msra.mxu1 %v1980_v21  ;;  %4532 = vmatprep.mubr.msk.bf16.mxu1 %vm5070_vm1, %v5069_v56 }
 0x1ff   : > { %4542 = vmatprep.subr.bf16.mxu1 %v5069_v56 }
 0x201   : > { %4527 = vmatmul.mubr.msk.bf16.vlgmr.msra.gmra.mrb[40].mxu0 %vm1045_vm2, %v964_v24 }
 0x202   : > { %4537 = vmatpush3.bf16.msra.mxu0 %v2026_v23  ;;  %4538 = vmatprep.mubr.msk.bf16.mxu0 %vm5070_vm1, %v5069_v56 }
 0x203   : > { %4548 = vmatprep.subr.bf16.mxu0 %v5069_v56 }
 0x235   : > { %v1086_v26 = vpop.f32.mrb[8].mxu0 }
 0x236   : > { %v5479_v27 = vadd.f32 %v5476_v25, %v1086_v26  ;;  %v4438_v31 = vpop.f32.mrb[9].mxu0 }
 0x237   : > { %v1089_v32 = vpop.f32.mrb[10].mxu0 }
 0x238   : > { %v4439_v33 = vpop.f32.mrb[11].mxu0  ;;  %v1783_v34 = vsel %vm1782_vm4, %v5479_v27, -inf }
 0x239   : > { %1784 = vmax.xlane.f32.xlu0 %v1783_v34 }
 0x23d   : > { %v1178_v37 = vpop.f32.mrb[4].mxu1 }
 0x23e   : > { %v1132_v38 = vpop.f32.mrb[12].mxu0  ;;  %v5488_v40 = vadd.f32 %v5483_v35, %v1178_v37  ;;  %v4450_v44 = vpop.f32.mrb[5].mxu1 }
 0x23f   : > { %v5491_v45 = vadd.f32 %v5485_v36, %v1132_v38  ;;  %v4444_v46 = vpop.f32.mrb[13].mxu0  ;;  %v1181_v47 = vpop.f32.mrb[6].mxu1 }
 0x240   : > { %v1135_v48 = vpop.f32.mrb[14].mxu0  ;;  %v4451_v49 = vpop.f32.mrb[7].mxu1  ;;  %v1789_v50 = vsel %vm1782_vm4, %v5488_v40, -inf }
 0x241   : > { %v4445_v51 = vpop.f32.mrb[15].mxu0  ;;  %1790 = vmax.xlane.f32.xlu0 %v1789_v50  ;;  %v1786_v54 = vsel %vm1782_vm4, %v5491_v45, -inf }
 0x242   : > { %1787 = vmax.xlane.f32.xlu1 %v1786_v54 }
 0x246   : > { %v1224_v57 = vpop.f32.mrb[16].mxu0 }
 0x247   : > { %v5500_v59 = vadd.f32 %v5497_v55, %v1224_v57  ;;  %v4456_v60 = vpop.f32.mrb[17].mxu0 }
 0x248   : > { %v1227_v61 = vpop.f32.mrb[18].mxu0 }
 0x249   : > { %v4457_v62 = vpop.f32.mrb[19].mxu0  ;;  %v1792_v63 = vsel %vm1782_vm4, %v5500_v59, -inf }
 0x24a   : > { %1793 = vmax.xlane.f32.xlu0 %v1792_v63 }
 0x2a8   : > { %v1270_v1 = vpop.f32.mrb[8].mxu1 }
 0x2a9   : > { %v5505_v2 = vadd.f32 %v5476_v25, %v1270_v1  ;;  %v4462_v3 = vpop.f32.mrb[9].mxu1 }
 0x2aa   : > { %v1273_v4 = vpop.f32.mrb[10].mxu1 }
 0x2ab   : > { %v4463_v5 = vpop.f32.mrb[11].mxu1  ;;  %v1795_v6 = vsel %vm1782_vm4, %v5505_v2, -inf }
 0x2ac   : > { %1796 = vmax.xlane.f32.xlu1 %v1795_v6  ;;  %v1316_v8 = vpop.f32.mrb[20].mxu0 }
 0x2ad   : > { %v5510_v9 = vadd.f32 %v5485_v36, %v1316_v8  ;;  %v4468_v10 = vpop.f32.mrb[21].mxu0 }
 0x2ae   : > { %v1319_v12 = vpop.f32.mrb[22].mxu0 }
 0x2af   : > { %v4469_v13 = vpop.f32.mrb[23].mxu0  ;;  %v1798_v14 = vsel %vm1782_vm4, %v5510_v9, -inf }
 0x2b0   : > { %v1362_v15 = vpop.f32.mrb[12].mxu1  ;;  %1799 = vmax.xlane.f32.xlu0 %v1798_v14 }
 0x2b1   : > { %v5515_v16 = vadd.f32 %v5483_v35, %v1362_v15  ;;  %v4474_v17 = vpop.f32.mrb[13].mxu1 }
 0x2b2   : > { %v1365_v18 = vpop.f32.mrb[14].mxu1 }
 0x2b3   : > { %v4475_v19 = vpop.f32.mrb[15].mxu1  ;;  %v1801_v20 = vsel %vm1782_vm4, %v5515_v16, -inf }
 0x2b4   : > { %1802 = vmax.xlane.f32.xlu1 %v1801_v20  ;;  %v1408_v21 = vpop.f32.mrb[24].mxu0 }
 0x2b5   : > { %v5520_v22 = vadd.f32 %v5497_v55, %v1408_v21  ;;  %v4480_v23 = vpop.f32.mrb[25].mxu0 }
 0x2b6   : > { %v1411_v24 = vpop.f32.mrb[26].mxu0 }
 0x2b7   : > { %v4481_v26 = vpop.f32.mrb[27].mxu0  ;;  %v1804_v31 = vsel %vm1782_vm4, %v5520_v22, -inf }
 0x2b8   : > { %v1454_v32 = vpop.f32.mrb[16].mxu1  ;;  %1805 = vmax.xlane.f32.xlu0 %v1804_v31 }
 0x2b9   : > { %v5525_v33 = vadd.f32 %v5476_v25, %v1454_v32  ;;  %v4486_v34 = vpop.f32.mrb[17].mxu1 }
 0x2ba   : > { %v1457_v37 = vpop.f32.mrb[18].mxu1 }
 0x2bb   : > { %v4487_v38 = vpop.f32.mrb[19].mxu1  ;;  %v1807_v44 = vsel %vm1782_vm4, %v5525_v33, -inf }
 0x2bc   : > { %1808 = vmax.xlane.f32.xlu1 %v1807_v44  ;;  %v1500_v46 = vpop.f32.mrb[28].mxu0 }
 0x2bd   : > { %v5530_v47 = vadd.f32 %v5485_v36, %v1500_v46  ;;  %v4492_v48 = vpop.f32.mrb[29].mxu0 }
 0x2be   : > { %v1503_v49 = vpop.f32.mrb[30].mxu0 }
 0x2bf   : > { %v4493_v50 = vpop.f32.mrb[31].mxu0  ;;  %v1810_v51 = vsel %vm1782_vm4, %v5530_v47, -inf }
 0x2c0   : > { %v1546_v54 = vpop.f32.mrb[20].mxu1  ;;  %1811 = vmax.xlane.f32.xlu0 %v1810_v51  ;;  %v5566_v50 = vpop.permute.xlu0 %999 }
 0x2c1   : > { %v5535_v57 = vadd.f32 %v5483_v35, %v1546_v54  ;;  %v4498_v60 = vpop.f32.mrb[21].mxu1 }
 0x2c2   : > { %v1549_v61 = vpop.f32.mrb[22].mxu1 }
 0x2c3   : > { %v4499_v62 = vpop.f32.mrb[23].mxu1  ;;  %v1813_v63 = vsel %vm1782_vm4, %v5535_v57, -inf }
 0x2c4   : > { %1814 = vmax.xlane.f32.xlu1 %v1813_v63  ;;  %v1592_v1 = vpop.f32.mrb[32].mxu0 }
 0x2c5   : > { %v5540_v3 = vadd.f32 %v5497_v55, %v1592_v1  ;;  %v4504_v4 = vpop.f32.mrb[33].mxu0 }
 0x2c6   : > { %v1595_v5 = vpop.f32.mrb[34].mxu0 }
 0x2c7   : > { %v4505_v6 = vpop.f32.mrb[35].mxu0  ;;  %v1816_v8 = vsel %vm1782_vm4, %v5540_v3, -inf }
 0x2c8   : > { %v1638_v10 = vpop.f32.mrb[24].mxu1  ;;  %1817 = vmax.xlane.f32.xlu0 %v1816_v8 }
 0x2c9   : > { %v5545_v12 = vadd.f32 %v5476_v25, %v1638_v10  ;;  %v4510_v13 = vpop.f32.mrb[25].mxu1 }
 0x2ca   : > { %v1641_v14 = vpop.f32.mrb[26].mxu1 }
 0x2cb   : > { %v4511_v15 = vpop.f32.mrb[27].mxu1  ;;  %v1819_v17 = vsel %vm1782_vm4, %v5545_v12, -inf }
 0x2cc   : > { %1820 = vmax.xlane.f32.xlu1 %v1819_v17  ;;  %v1684_v18 = vpop.f32.mrb[36].mxu0 }
 0x2cd   : > { %v5550_v19 = vadd.f32 %v5485_v36, %v1684_v18  ;;  %v4516_v20 = vpop.f32.mrb[37].mxu0 }
 0x2ce   : > { %v1687_v21 = vpop.f32.mrb[38].mxu0 }
 0x2cf   : > { %v4517_v23 = vpop.f32.mrb[39].mxu0  ;;  %v1822_v24 = vsel %vm1782_vm4, %v5550_v19, -inf }
 0x2d0   : > { %v1730_v26 = vpop.f32.mrb[28].mxu1  ;;  %1823 = vmax.xlane.f32.xlu0 %v1822_v24 }
 0x2d1   : > { %v5555_v25 = vadd.f32 %v5483_v35, %v1730_v26  ;;  %v4522_v31 = vpop.f32.mrb[29].mxu1  ;;  %v5564_v35 = vpop.permute.xlu1 %997 }
 0x2d2   : > { %v1733_v32 = vpop.f32.mrb[30].mxu1 }
 0x2d3   : > { %v4523_v34 = vpop.f32.mrb[31].mxu1  ;;  %v1825_v37 = vsel %vm1782_vm4, %v5555_v25, -inf }
 0x2d4   : > { %1826 = vmax.xlane.f32.xlu1 %v1825_v37  ;;  %v1776_v36 = vpop.f32.mrb[40].mxu0 }
 0x2d5   : > { %v5560_v38 = vadd.f32 %v5497_v55, %v1776_v36  ;;  %v4528_v44 = vpop.f32.mrb[41].mxu0  ;;  %v5570_v51 = vpop.permute.xlu1 %1001 }
 0x2d6   : > { %v1779_v46 = vpop.f32.mrb[42].mxu0  ;;  %v5574_v55 = vpop.permute.xlu0 %1003 }
 0x2d7   : > { %v4529_v48 = vpop.f32.mrb[43].mxu0  ;;  %v1828_v49 = vsel %vm1782_vm4, %v5560_v38, -inf }
 0x2d8   : > { %1829 = vmax.xlane.f32.xlu0 %v1828_v49 }
 0x2d9   : > { %v5576_v54 = vpop.permute.xlu1 %1005 }
 0x2da   : > { %v1785_v60 = vpop.xlane.xlu0 %1784 }
 0x2db   : > { %v1831_v63 = vsub.f32 %v5479_v27, %v1785_v60 }
 0x2dd   : > { %v1788_v62 = vpop.xlane.xlu1 %1787  ;;  %v1847_v5 = vmul.f32 1.442695, %v1831_v63 }
 0x2de   : > { %v1791_v61 = vpop.xlane.xlu0 %1790  ;;  %v1832_v1 = vsub.f32 %v5491_v45, %v1788_v62 }
 0x2df   : > { %v1833_v6 = vsub.f32 %v5488_v40, %v1791_v61  ;;  %4847 = vpow2.f32 %v1847_v5 }
 0x2e0   : > { %v1849_v8 = vmul.f32 1.442695, %v1832_v1 }
 0x2e1   : > { %v1851_v13 = vmul.f32 1.442695, %v1833_v6 }
 0x2e2   : > { %v1794_v4 = vpop.xlane.xlu0 %1793  ;;  %4849 = vpow2.f32 %v1849_v8 }
 0x2e3   : > { %v1834_v10 = vsub.f32 %v5500_v59, %v1794_v4  ;;  %4851 = vpow2.f32 %v1851_v13 }
 0x2e5   : > { %1009 = vrot.lane.b32.xlu1 %v5396_v43, %s5072_s29  ;;  %v1853_v14 = vmul.f32 1.442695, %v1834_v10 }
 0x2e7   : > { %4853 = vpow2.f32 %v1853_v14 }
 0x2e9   : > { %1011 = vrot.lane.b32.xlu1 %v5392_v42, %s5072_s29  ;;  %v5584_v15 = vpop.eup %4847 }
 0x2ea   : > { %v1879_v45 = vsel %vm1782_vm4, %v5584_v15, 0.0 }
 0x2ec   : > { %v5586_v17 = vpop.eup %4849 }
 0x2ed   : > { %v5588_v27 = vpop.eup %4851  ;;  %v1882_v40 = vsel %vm1782_vm4, %v5586_v17, 0.0 }
 0x2ee   : > { %1007 = vrot.lane.b32.xlu0 %v5387_v39, %s5072_s29  ;;  %v1885_v59 = vsel %vm1782_vm4, %v5588_v27, 0.0 }
 0x2f1   : > { %v5594_v18 = vpop.eup %4853 }
 0x2f2   : > { %v1888_v20 = vsel %vm1782_vm4, %v5594_v18, 0.0 }
 0x30d   : > { %1880 = vadd.xlane.f32.xlu1 %v1879_v45  ;;  %1883 = vadd.xlane.f32.xlu0 %v1882_v40 }
 0x311   : > { %1886 = vadd.xlane.f32.xlu1 %v1885_v59  ;;  %1889 = vadd.xlane.f32.xlu0 %v1888_v20 }
 0x339   : > { %v1797_v21 = vpop.xlane.xlu1 %1796 }
 0x33a   : > { %v1835_v23 = vsub.f32 %v5505_v2, %v1797_v21 }
 0x33c   : > { %v1855_v24 = vmul.f32 1.442695, %v1835_v23 }
 0x33d   : > { %v1800_v26 = vpop.xlane.xlu0 %1799 }
 0x33e   : > { %4855 = vpow2.f32 %v1855_v24  ;;  %v1836_v31 = vsub.f32 %v5510_v9, %v1800_v26 }
 0x340   : > { %v1857_v32 = vmul.f32 1.442695, %v1836_v31 }
 0x341   : > { %v1803_v34 = vpop.xlane.xlu1 %1802 }
 0x342   : > { %4857 = vpow2.f32 %v1857_v32  ;;  %v1837_v37 = vsub.f32 %v5515_v16, %v1803_v34 }
 0x344   : > { %v1859_v36 = vmul.f32 1.442695, %v1837_v37 }
 0x345   : > { %v1806_v44 = vpop.xlane.xlu0 %1805 }
 0x346   : > { %4859 = vpow2.f32 %v1859_v36  ;;  %v1838_v46 = vsub.f32 %v5520_v22, %v1806_v44 }
 0x348   : > { %v5604_v48 = vpop.eup %4855  ;;  %v1861_v49 = vmul.f32 1.442695, %v1838_v46 }
 0x349   : > { %v1809_v60 = vpop.xlane.xlu1 %1808  ;;  %v1891_v2 = vsel %vm1782_vm4, %v5604_v48, 0.0 }
 0x34a   : > { %4861 = vpow2.f32 %v1861_v49  ;;  %v1839_v9 = vsub.f32 %v5525_v33, %v1809_v60  ;;  %1892 = vadd.xlane.f32.xlu1 %v1891_v2 }
 0x34c   : > { %v5609_v61 = vpop.eup %4857  ;;  %v1863_v62 = vmul.f32 1.442695, %v1839_v9 }
 0x34d   : > { %v1812_v16 = vpop.xlane.xlu0 %1811  ;;  %v1894_v63 = vsel %vm1782_vm4, %v5609_v61, 0.0 }
 0x34e   : > { %4863 = vpow2.f32 %v1863_v62  ;;  %v1840_v22 = vsub.f32 %v5530_v47, %v1812_v16  ;;  %1895 = vadd.xlane.f32.xlu0 %v1894_v63 }
 0x350   : > { %v5614_v1 = vpop.eup %4859  ;;  %v1865_v4 = vmul.f32 1.442695, %v1840_v22 }
 0x351   : > { %v1815_v5 = vpop.xlane.xlu1 %1814  ;;  %v1897_v6 = vsel %vm1782_vm4, %v5614_v1, 0.0 }
 0x352   : > { %4865 = vpow2.f32 %v1865_v4  ;;  %v1841_v33 = vsub.f32 %v5535_v57, %v1815_v5  ;;  %1898 = vadd.xlane.f32.xlu1 %v1897_v6 }
 0x354   : > { %v5619_v8 = vpop.eup %4861  ;;  %v1867_v10 = vmul.f32 1.442695, %v1841_v33 }
 0x355   : > { %v1818_v13 = vpop.xlane.xlu0 %1817  ;;  %v1900_v14 = vsel %vm1782_vm4, %v5619_v8, 0.0 }
 0x356   : > { %4867 = vpow2.f32 %v1867_v10  ;;  %v1842_v47 = vsub.f32 %v5540_v3, %v1818_v13  ;;  %1901 = vadd.xlane.f32.xlu0 %v1900_v14 }
 0x358   : > { %v5624_v45 = vpop.eup %4863  ;;  %v1869_v40 = vmul.f32 1.442695, %v1842_v47 }
 0x359   : > { %v1903_v59 = vsel %vm1782_vm4, %v5624_v45, 0.0  ;;  %v1821_v26 = vpop.xlane.xlu1 %1820 }
 0x35a   : > { %4869 = vpow2.f32 %v1869_v40  ;;  %1904 = vadd.xlane.f32.xlu1 %v1903_v59  ;;  %v1843_v31 = vsub.f32 %v5545_v12, %v1821_v26  ;;  %v2072_v26 = vsel %vm1978_vm3, %v5396_v43, 0 }
 0x35c   : > { %v5628_v57 = vpop.eup %4865  ;;  %v1871_v36 = vmul.f32 1.442695, %v1843_v31  ;;  %v2118_v31 = vsel %vm1978_vm3, %v5392_v42, 0 }
 0x35d   : > { %v1906_v20 = vsel %vm1782_vm4, %v5628_v57, 0.0  ;;  %v1824_v32 = vpop.xlane.xlu0 %1823 }
 0x35e   : > { %1907 = vadd.xlane.f32.xlu0 %v1906_v20  ;;  %v1844_v37 = vsub.f32 %v5550_v19, %v1824_v32  ;;  %4871 = vpow2.f32 %v1871_v36 }
 0x360   : > { %v5632_v21 = vpop.eup %4867  ;;  %v1873_v49 = vmul.f32 1.442695, %v1844_v37 }
 0x361   : > { %v1909_v3 = vsel %vm1782_vm4, %v5632_v21, 0.0  ;;  %v1827_v34 = vpop.xlane.xlu1 %1826 }
 0x362   : > { %1910 = vadd.xlane.f32.xlu1 %v1909_v3  ;;  %v1845_v44 = vsub.f32 %v5555_v25, %v1827_v34  ;;  %4873 = vpow2.f32 %v1873_v49  ;;  %v2256_v49 = vsel %vm1978_vm3, %v5570_v51, 0 }
 0x364   : > { %v5636_v23 = vpop.eup %4869  ;;  %v1875_v60 = vmul.f32 1.442695, %v1845_v44 }
 0x365   : > { %v1912_v24 = vsel %vm1782_vm4, %v5636_v23, 0.0  ;;  %v1830_v46 = vpop.xlane.xlu0 %1829 }
 0x366   : > { %1913 = vadd.xlane.f32.xlu0 %v1912_v24  ;;  %v1846_v2 = vsub.f32 %v5560_v38, %v1830_v46  ;;  %4875 = vpow2.f32 %v1875_v60 }
 0x368   : > { %v5650_v12 = vpop.eup %4871 }
 0x369   : > { %v5656_v62 = vpop.permute.xlu0 %1007  ;;  %v1915_v25 = vsel %vm1782_vm4, %v5650_v12, 0.0 }
 0x36c   : > { %v5652_v9 = vpop.eup %4873 }
 0x36d   : > { %v1918_v4 = vsel %vm1782_vm4, %v5652_v9, 0.0 }
 0x370   : > { %v5660_v16 = vpop.eup %4875 }
 0x371   : > { %v1921_v22 = vsel %vm1782_vm4, %v5660_v16, 0.0 }
 0x373   : > { %1015 = vrot.lane.b32.xlu1 %v5387_v39, %s5073_s20  ;;  %v1877_v39 = vmul.f32 1.442695, %v1846_v2 }
 0x375   : > { %4877 = vpow2.f32 %v1877_v39 }
 0x37c   : > { %1013 = vrot.lane.b32.xlu0 %v5390_v41, %s5073_s20  ;;  %v5648_v41 = vpop.permute.xlu1 %1009 }
 0x37f   : > { %v5666_v5 = vpop.eup %4877 }
 0x380   : > { %v5654_v19 = vpop.permute.xlu1 %1011  ;;  %v1924_v10 = vsel %vm1782_vm4, %v5666_v5, 0.0 }
 0x397   : > { %1916 = vadd.xlane.f32.xlu1 %v1915_v25  ;;  %v2302_v25 = vsel %vm1978_vm3, %v5574_v55, 0 }
 0x39a   : > { %v1881_v38 = vpop.xlane.xlu1 %1880  ;;  %v1884_v63 = vpop.xlane.xlu0 %1883 }
 0x39b   : > { %4879 = vrcp.f32 %v1881_v38  ;;  %1922 = vadd.xlane.f32.xlu1 %v1921_v22  ;;  %1919 = vadd.xlane.f32.xlu0 %v1918_v4  ;;  %v2348_v22 = vsel %vm1978_vm3, %v5576_v54, 0 }
 0x39c   : > { %4881 = vrcp.f32 %v1884_v63 }
 0x39e   : > { %v1887_v6 = vpop.xlane.xlu1 %1886  ;;  %v1890_v33 = vpop.xlane.xlu0 %1889 }
 0x39f   : > { %4883 = vrcp.f32 %v1887_v6  ;;  %1925 = vadd.xlane.f32.xlu0 %v1924_v10 }
 0x3a0   : > { %4885 = vrcp.f32 %v1890_v33  ;;  %v2394_v33 = vsel %vm1978_vm3, %v5656_v62, 0 }
 0x3a5   : > { %v4880_v13 = vpop.eup %4879 }
 0x3a6   : > { %v4882_v14 = vpop.eup %4881  ;;  %v1943_v47 = vmul.f32 %v4880_v13, %v5584_v15 }
 0x3a7   : > { %v1944_v40 = vmul.f32 %v4882_v14, %v5586_v17  ;;  %v2440_v14 = vsel %vm1978_vm3, %v5648_v41, 0 }
 0x3a8   : > { %v1959_v59 = vpack.c.bf16 %v1943_v47, %v1943_v47 }
 0x3a9   : > { %v4884_v20 = vpop.eup %4883  ;;  %v1960_v3 = vpack.c.bf16 %v1944_v40, %v1944_v40  ;;  %v2486_v40 = vsel %vm1978_vm3, %v5654_v19, 0 }
 0x3aa   : > { %v4886_v24 = vpop.eup %4885  ;;  %4533 = vmatmul.mubr.msk.bf16.vlgmr.msra.gmra.mrb[32].mxu1 %vm1782_vm4, %v1959_v59  ;;  %v1945_v32 = vmul.f32 %v4884_v20, %v5588_v27  ;;  %v2164_v27 = vsel %vm1978_vm3, %v5564_v35, 0 }
 0x3ab   : > { %4539 = vmatmul.mubr.msk.bf16.vlgmr.msra.gmra.mrb[44].mxu0 %vm1782_vm4, %v1960_v3  ;;  %4543 = vmatpush3.bf16.msra.mxu1 %v2072_v26  ;;  %v1946_v15 = vmul.f32 %v4886_v24, %v5594_v18 }
 0x3ac   : > { %4549 = vmatpush3.bf16.msra.mxu0 %v2118_v31  ;;  %1019 = vrot.lane.b32.xlu1 %v5392_v42, %s5073_s20  ;;  %v1961_v17 = vpack.c.bf16 %v1945_v32, %v1945_v32  ;;  %v2210_v42 = vsel %vm1978_vm3, %v5566_v50, 0 }
 0x3ad   : > { %4544 = vmatprep.mubr.msk.bf16.mxu1 %vm5070_vm1, %v5069_v56  ;;  %4550 = vmatprep.mubr.msk.bf16.mxu0 %vm5070_vm1, %v5069_v56  ;;  %v1962_v34 = vpack.c.bf16 %v1946_v15, %v1946_v15 }
 0x3ae   : > { %4554 = vmatprep.subr.bf16.mxu1 %v5069_v56  ;;  %4560 = vmatprep.subr.bf16.mxu0 %v5069_v56 }
 0x3b2   : > { %4545 = vmatmul.mubr.msk.bf16.vlgmr.msra.gmra.mrb[36].mxu1 %vm1782_vm4, %v1961_v17 }
 0x3b3   : > { %4551 = vmatmul.mubr.msk.bf16.vlgmr.msra.gmra.mrb[48].mxu0 %vm1782_vm4, %v1962_v34  ;;  %4555 = vmatpush3.bf16.msra.mxu1 %v2164_v27 }
 0x3b4   : > { %4561 = vmatpush3.bf16.msra.mxu0 %v2210_v42  ;;  %4556 = vmatprep.mubr.msk.bf16.mxu1 %vm5070_vm1, %v5069_v56 }
 0x3b5   : > { %1017 = vrot.lane.b32.xlu0 %v5396_v43, %s5073_s20  ;;  %4566 = vmatprep.subr.bf16.mxu1 %v5069_v56 }
 0x3b6   : > { %4562 = vmatprep.mubr.msk.bf16.mxu0 %vm5070_vm1, %v5069_v56  ;;  %4572 = vmatprep.subr.bf16.mxu0 %v5069_v56 }
 0x3d7   : > { %v1893_v35 = vpop.xlane.xlu1 %1892 }
 0x3d8   : > { %4887 = vrcp.f32 %v1893_v35 }
 0x3db   : > { %v1896_v50 = vpop.xlane.xlu0 %1895 }
 0x3dc   : > { %4889 = vrcp.f32 %v1896_v50 }
 0x3df   : > { %v1899_v18 = vpop.xlane.xlu1 %1898 }
 0x3e0   : > { %4891 = vrcp.f32 %v1899_v18 }
 0x3e2   : > { %v4888_v37 = vpop.eup %4887 }
 0x3e3   : > { %v1947_v36 = vmul.f32 %v4888_v37, %v5604_v48  ;;  %v1902_v44 = vpop.xlane.xlu0 %1901 }
 0x3e4   : > { %4893 = vrcp.f32 %v1902_v44 }
 0x3e5   : > { %v1963_v46 = vpack.c.bf16 %v1947_v36, %v1947_v36 }
 0x3e6   : > { %v4890_v43 = vpop.eup %4889 }
 0x3e7   : > { %v1948_v60 = vmul.f32 %v4890_v43, %v5609_v61  ;;  %4557 = vmatmul.mubr.msk.bf16.vlgmr.msra.gmra.mrb[40].mxu1 %vm1782_vm4, %v1963_v46  ;;  %v1905_v2 = vpop.xlane.xlu1 %1904 }
 0x3e8   : > { %4567 = vmatpush3.bf16.msra.mxu1 %v2256_v49  ;;  %4895 = vrcp.f32 %v1905_v2  ;;  %4568 = vmatprep.mubr.msk.bf16.mxu1 %vm5070_vm1, %v5069_v56 }
 0x3e9   : > { %v1964_v39 = vpack.c.bf16 %v1948_v60, %v1948_v60  ;;  %4578 = vmatprep.subr.bf16.mxu1 %v5069_v56 }
 0x3ea   : > { %v4892_v48 = vpop.eup %4891 }
 0x3eb   : > { %v1949_v38 = vmul.f32 %v4892_v48, %v5614_v1  ;;  %4563 = vmatmul.mubr.msk.bf16.vlgmr.msra.gmra.mrb[52].mxu0 %vm1782_vm4, %v1964_v39  ;;  %v1908_v51 = vpop.xlane.xlu0 %1907 }
 0x3ec   : > { %4573 = vmatpush3.bf16.msra.mxu0 %v2302_v25  ;;  %4897 = vrcp.f32 %v1908_v51  ;;  %4574 = vmatprep.mubr.msk.bf16.mxu0 %vm5070_vm1, %v5069_v56 }
 0x3ed   : > { %v1965_v61 = vpack.c.bf16 %v1949_v38, %v1949_v38  ;;  %4584 = vmatprep.subr.bf16.mxu0 %v5069_v56 }
 0x3ee   : > { %v4894_v63 = vpop.eup %4893 }
 0x3ef   : > { %v1950_v4 = vmul.f32 %v4894_v63, %v5619_v8  ;;  %4569 = vmatmul.mubr.msk.bf16.vlgmr.msra.gmra.mrb[44].mxu1 %vm1782_vm4, %v1965_v61  ;;  %v1911_v55 = vpop.xlane.xlu1 %1910 }
 0x3f0   : > { %4579 = vmatpush3.bf16.msra.mxu1 %v2348_v22  ;;  %4899 = vrcp.f32 %v1911_v55  ;;  %4580 = vmatprep.mubr.msk.bf16.mxu1 %vm5070_vm1, %v5069_v56 }
 0x3f1   : > { %v1966_v1 = vpack.c.bf16 %v1950_v4, %v1950_v4  ;;  %4590 = vmatprep.subr.bf16.mxu1 %v5069_v56 }
 0x3f2   : > { %v4896_v6 = vpop.eup %4895 }
 0x3f3   : > { %v1951_v10 = vmul.f32 %v4896_v6, %v5624_v45  ;;  %4575 = vmatmul.mubr.msk.bf16.vlgmr.msra.gmra.mrb[56].mxu0 %vm1782_vm4, %v1966_v1  ;;  %v1914_v54 = vpop.xlane.xlu0 %1913  ;;  %v1016_v19 = vpop.permute.xlu1 %1015 }
 0x3f4   : > { %4585 = vmatpush3.bf16.msra.mxu0 %v2394_v33  ;;  %4901 = vrcp.f32 %v1914_v54  ;;  %4586 = vmatprep.mubr.msk.bf16.mxu0 %vm5070_vm1, %v5069_v56  ;;  %v2578_v26 = vsel %vm1978_vm3, %v1016_v19, 0 }
 0x3f5   : > { %v1967_v8 = vpack.c.bf16 %v1951_v10, %v1951_v10  ;;  %4596 = vmatprep.subr.bf16.mxu0 %v5069_v56 }
 0x3f6   : > { %v4898_v13 = vpop.eup %4897 }
 0x3f7   : > { %v1952_v47 = vmul.f32 %v4898_v13, %v5628_v57  ;;  %4581 = vmatmul.mubr.msk.bf16.vlgmr.msra.gmra.mrb[48].mxu1 %vm1782_vm4, %v1967_v8  ;;  %v1014_v41 = vpop.permute.xlu0 %1013 }
 0x3f8   : > { %4591 = vmatpush3.bf16.msra.mxu1 %v2440_v14  ;;  %4592 = vmatprep.mubr.msk.bf16.mxu1 %vm5070_vm1, %v5069_v56  ;;  %v2532_v24 = vsel %vm1978_vm3, %v1014_v41, 0 }
 0x3f9   : > { %v1968_v45 = vpack.c.bf16 %v1952_v47, %v1952_v47  ;;  %4602 = vmatprep.subr.bf16.mxu1 %v5069_v56 }
 0x3fa   : > { %v4900_v62 = vpop.eup %4899 }
 0x3fb   : > { %v1953_v59 = vmul.f32 %v4900_v62, %v5632_v21  ;;  %4587 = vmatmul.mubr.msk.bf16.vlgmr.msra.gmra.mrb[60].mxu0 %vm1782_vm4, %v1968_v45 }
 0x3fc   : > { %4597 = vmatpush3.bf16.msra.mxu0 %v2486_v40  ;;  %4598 = vmatprep.mubr.msk.bf16.mxu0 %vm5070_vm1, %v5069_v56 }
 0x3fd   : > { %v1969_v57 = vpack.c.bf16 %v1953_v59, %v1953_v59  ;;  %4608 = vmatprep.subr.bf16.mxu0 %v5069_v56 }
 0x3fe   : > { %v4902_v20 = vpop.eup %4901 }
 0x3ff   : > { %v1954_v3 = vmul.f32 %v4902_v20, %v5636_v23  ;;  %4593 = vmatmul.mubr.msk.bf16.vlgmr.msra.gmra.mrb[52].mxu1 %vm1782_vm4, %v1969_v57 }
 0x400   : > { %4603 = vmatpush3.bf16.msra.mxu1 %v2532_v24  ;;  %4604 = vmatprep.mubr.msk.bf16.mxu1 %vm5070_vm1, %v5069_v56 }
 0x401   : > { %v1970_v21 = vpack.c.bf16 %v1954_v3, %v1954_v3  ;;  %4614 = vmatprep.subr.bf16.mxu1 %v5069_v56 }
 0x403   : > { %4599 = vmatmul.mubr.msk.bf16.vlgmr.msra.gmra.mrb[64].mxu0 %vm1782_vm4, %v1970_v21 }
 0x404   : > { %4609 = vmatpush3.bf16.msra.mxu0 %v2578_v26  ;;  %4610 = vmatprep.mubr.msk.bf16.mxu0 %vm5070_vm1, %v5069_v56 }
 0x405   : > { %4620 = vmatprep.subr.bf16.mxu0 %v5069_v56 }
 0x424   : > { %v1917_v23 = vpop.xlane.xlu1 %1916 }
 0x425   : > { %4903 = vrcp.f32 %v1917_v23 }
 0x428   : > { %v1923_v31 = vpop.xlane.xlu1 %1922  ;;  %v1920_v32 = vpop.xlane.xlu0 %1919 }
 0x429   : > { %4905 = vrcp.f32 %v1923_v31 }
 0x42a   : > { %4907 = vrcp.f32 %v1920_v32 }
 0x42c   : > { %v1926_v15 = vpop.xlane.xlu0 %1925  ;;  %v1020_v44 = vpop.permute.xlu1 %1019 }
 0x42d   : > { %4909 = vrcp.f32 %v1926_v15 }
 0x42f   : > { %v4904_v17 = vpop.eup %4903 }
 0x430   : > { %v1955_v34 = vmul.f32 %v4904_v17, %v5650_v12  ;;  %v1018_v27 = vpop.permute.xlu0 %1017  ;;  %v2670_v12 = vsel %vm1978_vm3, %v1020_v44, 0  ;;  %v4759_v17 = vld [vmem:[%s6029_s5] sm:$0xff]  }
 0x431   : > { %v2624_v18 = vsel %vm1978_vm3, %v1018_v27, 0 }
 0x432   : > { %v1971_v42 = vpack.c.bf16 %v1955_v34, %v1955_v34  ;;  %v4760_v34 = vld [vmem:[%s6029_s5 + $0x8] sm:$0xff]  }
 0x433   : > { %v4906_v35 = vpop.eup %4905 }
 0x434   : > { %v4908_v50 = vpop.eup %4907  ;;  %4605 = vmatmul.mubr.msk.bf16.vlgmr.msra.gmra.mrb[56].mxu1 %vm1782_vm4, %v1971_v42  ;;  %v1957_v36 = vmul.f32 %v4906_v35, %v5660_v16 }
 0x435   : > { %v1956_v37 = vmul.f32 %v4908_v50, %v5652_v9  ;;  %4615 = vmatpush3.bf16.msra.mxu1 %v2624_v18  ;;  %4616 = vmatprep.mubr.msk.bf16.mxu1 %vm5070_vm1, %v5069_v56 }
 0x436   : > { %v1973_v49 = vpack.c.bf16 %v1957_v36, %v1957_v36  ;;  %4626 = vmatprep.subr.bf16.mxu1 %v4759_v17 }
 0x437   : > { %v1972_v46 = vpack.c.bf16 %v1956_v37, %v1956_v37  ;;  %v4910_v43 = vpop.eup %4909  ;;  %v4761_v37 = vld [vmem:[%s6029_s5 + $0x10] sm:$0xff]  }
 0x438   : > { %v1958_v9 = vmul.f32 %v4910_v43, %v5666_v5 }
 0x439   : > { %4611 = vmatmul.mubr.msk.bf16.vlgmr.msra.gmra.mrb[68].mxu0 %vm1782_vm4, %v1972_v46 }
 0x43a   : > { %4621 = vmatpush3.bf16.msra.mxu0 %v2670_v12  ;;  %4622 = vmatprep.mubr.msk.bf16.mxu0 %vm5070_vm1, %v5069_v56  ;;  %v1974_v60 = vpack.c.bf16 %v1958_v9, %v1958_v9  ;;  %v4762_v12 = vld [vmem:[%s6029_s5 + $0x18] sm:$0xff]  }
 0x43c   : > { %4617 = vmatmul.mubr.msk.bf16.vlgmr.msra.gmra.mrb[60].mxu1 %vm1782_vm4, %v1973_v49 }
 0x43d   : > { %4627 = vmatpush3.bf16.msra.mxu1 %v4759_v17 }
 0x43e   : > { %4628 = vmatprep.subr.bf16.mxu1 %v4760_v34 }
 0x441   : > { %4623 = vmatmul.mubr.msk.bf16.vlgmr.msra.gmra.mrb[72].mxu0 %vm1782_vm4, %v1974_v60  ;;  %4629 = vmatpush3.bf16.msra.mxu1 %v4760_v34 }
 0x442   : > { %3243 = vmatprep.mubr.bf16.mxu0 %v5068_v0  ;;  %4630 = vmatprep.subr.bf16.mxu1 %v4761_v37 }
 0x445   : > { %4631 = vmatpush3.bf16.msra.mxu1 %v4761_v37 }
 0x446   : > { %4632 = vmatprep.subr.bf16.mxu1 %v4762_v12 }
 0x449   : > { %4633 = vmatpush3.bf16.msra.mxu1 %v4762_v12 }
 0x47d   : > { %v5771_v16 = vpop.f32.mrb[32].mxu1 }
 0x47e   : > { %v5773_v2 = vpop.f32.mrb[44].mxu0  ;;  %v4534_v39 = vpop.f32.mrb[33].mxu1 }
 0x47f   : > { %v4540_v48 = vpop.f32.mrb[45].mxu0  ;;  %v2019_v25 = vpop.f32.mrb[34].mxu1 }
 0x480   : > { %v2065_v38 = vpop.f32.mrb[46].mxu0  ;;  %v4535_v51 = vpop.f32.mrb[35].mxu1  ;;  %v4763_v48 = vld [vmem:[%s6029_s5 + $0x20] sm:$0xff]   ;;  %v4764_v25 = vld [vmem:[%s6029_s5 + $0x28] sm:$0xff]  }
 0x481   : > { %v4541_v61 = vpop.f32.mrb[47].mxu0  ;;  %4634 = vmatprep.subr.bf16.mxu1 %v4763_v48  ;;  %v4765_v38 = vld [vmem:[%s6029_s5 + $0x30] sm:$0xff]  }
 0x482   : > { %4635 = vmatpush3.bf16.msra.mxu1 %v4763_v48 }
 0x483   : > { %4636 = vmatprep.subr.bf16.mxu1 %v4764_v25 }
 0x485   : > { %v5775_v56 = vpop.f32.mrb[36].mxu1 }
 0x486   : > { %v5777_v5 = vpop.f32.mrb[48].mxu0  ;;  %v4546_v63 = vpop.f32.mrb[37].mxu1  ;;  %4637 = vmatpush3.bf16.msra.mxu1 %v4764_v25 }
 0x487   : > { %v4552_v22 = vpop.f32.mrb[49].mxu0  ;;  %v2111_v4 = vpop.f32.mrb[38].mxu1  ;;  %4638 = vmatprep.subr.bf16.mxu1 %v4765_v38 }
 0x488   : > { %v2157_v55 = vpop.f32.mrb[50].mxu0  ;;  %v4547_v1 = vpop.f32.mrb[39].mxu1  ;;  %v4766_v4 = vld [vmem:[%s6029_s5 + $0x38] sm:$0xff]  }
 0x489   : > { %v4553_v6 = vpop.f32.mrb[51].mxu0 }
 0x48a   : > { %4639 = vmatpush3.bf16.msra.mxu1 %v4765_v38 }
 0x48b   : > { %4640 = vmatprep.subr.bf16.mxu1 %v4766_v4 }
 0x48e   : > { %4641 = vmatpush3.bf16.msra.mxu1 %v4766_v4 }
 0x4ba   : > { %v2200_v33 = vpop.f32.mrb[40].mxu1 }
 0x4bb   : > { %v4558_v10 = vpop.f32.mrb[41].mxu1 }
 0x4bc   : > { %v2203_v54 = vpop.f32.mrb[42].mxu1 }
 0x4bd   : > { %v4559_v8 = vpop.f32.mrb[43].mxu1 }
 0x4be   : > { %v2246_v13 = vpop.f32.mrb[52].mxu0 }
 0x4bf   : > { %v4697_v14 = vpack.i.bf16 %v2246_v13, %v2200_v33  ;;  %v4564_v47 = vpop.f32.mrb[53].mxu0 }
 0x4c0   : > { %v2249_v45 = vpop.f32.mrb[54].mxu0 }
 0x4c1   : > { %4698 = vrot.lane.b32.xlu0 %v4697_v14, %s5073_s20  ;;  %v4565_v62 = vpop.f32.mrb[55].mxu0 }
 0x4c2   : > { %v2292_v40 = vpop.f32.mrb[44].mxu1 }
 0x4c3   : > { %v4570_v59 = vpop.f32.mrb[45].mxu1 }
 0x4c4   : > { %v2295_v41 = vpop.f32.mrb[46].mxu1 }
 0x4c5   : > { %v4571_v57 = vpop.f32.mrb[47].mxu1 }
 0x4c6   : > { %v2338_v20 = vpop.f32.mrb[56].mxu0 }
 0x4c7   : > { %v4702_v3 = vpack.i.bf16 %v2338_v20, %v2292_v40  ;;  %v4576_v24 = vpop.f32.mrb[57].mxu0 }
 0x4c8   : > { %v2341_v19 = vpop.f32.mrb[58].mxu0 }
 0x4c9   : > { %4703 = vrot.lane.b32.xlu1 %v4702_v3, %s5073_s20  ;;  %v4577_v21 = vpop.f32.mrb[59].mxu0  ;;  %s6055_s20 = sld [smem:[#allocation9_spill]] }
 0x4ca   : > { %v2384_v26 = vpop.f32.mrb[48].mxu1 }
 0x4cb   : > { %v4582_v23 = vpop.f32.mrb[49].mxu1 }
 0x4cc   : > { %v2387_v31 = vpop.f32.mrb[50].mxu1 }
 0x4cd   : > { %v4583_v32 = vpop.f32.mrb[51].mxu1 }
 0x4ce   : > { %v2430_v15 = vpop.f32.mrb[60].mxu0 }
 0x4cf   : > { %v4707_v27 = vpack.i.bf16 %v2430_v15, %v2384_v26  ;;  %v4588_v42 = vpop.f32.mrb[61].mxu0 }
 0x4d0   : > { %v2433_v35 = vpop.f32.mrb[62].mxu0 }
 0x4d1   : > { %4708 = vrot.lane.b32.xlu0 %v4707_v27, %s5072_s29  ;;  %v4589_v50 = vpop.f32.mrb[63].mxu0 }
 0x4d2   : > { %v2476_v18 = vpop.f32.mrb[52].mxu1 }
 0x4d3   : > { %v4594_v36 = vpop.f32.mrb[53].mxu1 }
 0x4d4   : > { %v2479_v44 = vpop.f32.mrb[54].mxu1 }
 0x4d5   : > { %v4595_v46 = vpop.f32.mrb[55].mxu1 }
 0x4d6   : > { %v2522_v43 = vpop.f32.mrb[64].mxu0 }
 0x4d7   : > { %v4712_v49 = vpack.i.bf16 %v2522_v43, %v2476_v18  ;;  %v4600_v9 = vpop.f32.mrb[65].mxu0 }
 0x4d8   : > { %v2525_v60 = vpop.f32.mrb[66].mxu0 }
 0x4d9   : > { %4713 = vrot.lane.b32.xlu1 %v4712_v49, %s5072_s29  ;;  %v4601_v39 = vpop.f32.mrb[67].mxu0 }
 0x507   : > { %v2568_v51 = vpop.f32.mrb[56].mxu1 }
 0x508   : > { %v4606_v61 = vpop.f32.mrb[57].mxu1 }
 0x509   : > { %v2571_v63 = vpop.f32.mrb[58].mxu1 }
 0x50a   : > { %v4607_v22 = vpop.f32.mrb[59].mxu1 }
 0x50c   : > { %v2614_v55 = vpop.f32.mrb[68].mxu0 }
 0x50d   : > { %v4717_v1 = vpack.i.bf16 %v2614_v55, %v2568_v51  ;;  %v4612_v6 = vpop.f32.mrb[69].mxu0 }
 0x50e   : > { %v2617_v33 = vpop.f32.mrb[70].mxu0 }
 0x50f   : > { %4718 = vrot.lane.b32.xlu0 %v4717_v1, %s5071_s27  ;;  %v4613_v10 = vpop.f32.mrb[71].mxu0  ;;  %v2660_v54 = vpop.f32.mrb[60].mxu1 }
 0x510   : > { %v4618_v8 = vpop.f32.mrb[61].mxu1  ;;  %v4767_v10 = vld [vmem:[#allocation4] ss:$16 sps:$4 sm:$0xff]  }
 0x511   : > { %v2663_v13 = vpop.f32.mrb[62].mxu1  ;;  %v4770_v8 = vld [vmem:[#allocation4 + $0x8] ss:$16 sps:$4 sm:$0xff]  }
 0x512   : > { %v4619_v14 = vpop.f32.mrb[63].mxu1  ;;  %v4772_v13 = vld [vmem:[#allocation4 + $0xc] ss:$16 sps:$4 sm:$0xff]  }
 0x513   : > { %v4775_v14 = vld [vmem:[#allocation4 + $0x24] ss:$16 sps:$4 sm:$0xff]   ;;  %3264 = vmatprep.subr.bf16.mxu1 %v4772_v13 }
 0x514   : > { %v2706_v47 = vpop.f32.mrb[72].mxu0 }
 0x515   : > { %v4722_v45 = vpack.i.bf16 %v2706_v47, %v2660_v54  ;;  %v4624_v62 = vpop.f32.mrb[73].mxu0  ;;  %v4769_v54 = vld [vmem:[#allocation4 + $0x4] ss:$16 sps:$4 sm:$0xff]   ;;  %v4778_v47 = vld [vmem:[#allocation4 + $0x2c] ss:$16 sps:$4 sm:$0xff]  }
 0x516   : > { %v2709_v40 = vpop.f32.mrb[74].mxu0  ;;  %3211 = vmatprep.subr.bf16.mxu0 %v4769_v54 }
 0x517   : > { %4723 = vrot.lane.b32.xlu1 %v4722_v45, %s5071_s27  ;;  %v4625_v59 = vpop.f32.mrb[75].mxu0  ;;  %3212 = vmatpush1.bf16.msra.mxu0 %v4767_v10  ;;  %s6057_s27 = sld [smem:[#allocation11_spill]] }
 0x518   : > { %3213 = vmatprep.subr.bf16.mxu0 %v4775_v14 }
 0x533   : > { %v4699_v41 = vpop.permute.xlu0 %4698 }
 0x534   : > { %v4701_v20 = vunpack.i.h.bf16 %v4699_v41  ;;  %v4700_v3 = vunpack.i.l.bf16 %v4699_v41 }
 0x536   : > { %v2761_v23 = vsel %vm1045_vm2, %v5773_v2, %v4701_v20  ;;  %v2760_v31 = vsel %vm1045_vm2, %v5771_v16, %v4700_v3 }
 0x53b   : > { %v4704_v21 = vpop.permute.xlu1 %4703 }
 0x53c   : > { %v4706_v18 = vunpack.i.h.bf16 %v4704_v21  ;;  %v4705_v37 = vunpack.i.l.bf16 %v4704_v21 }
 0x53e   : > { %v2763_v16 = vsel %vm1045_vm2, %v5777_v5, %v4706_v18  ;;  %v2762_v46 = vsel %vm1045_vm2, %v5775_v56, %v4705_v37  ;;  %v4148_v5 = vld [vmem:[%s6030_s6] ss:$0 sm:$0xff]  ;;  %v4793_v18 = vld [vmem:[#allocation4 + $0x84] ss:$16 sps:$4 sm:$0xff]   ;;  %v4796_v37 = vld [vmem:[#allocation4 + $0x8c] ss:$16 sps:$4 sm:$0xff]  }
 0x543   : > { %v4709_v57 = vpop.permute.xlu0 %4708 }
 0x544   : > { %v4711_v24 = vunpack.i.h.bf16 %v4709_v57  ;;  %v4710_v19 = vunpack.i.l.bf16 %v4709_v57 }
 0x546   : > { %v2766_v17 = vsel %vm2764_vm5, %v2761_v23, %v4711_v24  ;;  %v2765_v34 = vsel %vm2764_vm5, %v2760_v31, %v4710_v19 }
 0x54b   : > { %v4714_v27 = vpop.permute.xlu1 %4713 }
 0x54c   : > { %v4716_v36 = vunpack.i.h.bf16 %v4714_v27  ;;  %v4715_v44 = vunpack.i.l.bf16 %v4714_v27  ;;  %v4787_v27 = vld [vmem:[#allocation4 + $0x64] ss:$16 sps:$4 sm:$0xff]  }
 0x54e   : > { %v2768_v49 = vsel %vm2764_vm5, %v2763_v16, %v4716_v36  ;;  %v2767_v9 = vsel %vm2764_vm5, %v2762_v46, %v4715_v44  ;;  %v4791_v36 = vld [vmem:[#allocation4 + $0x80] ss:$16 sps:$4 sm:$0xff]   ;;  %v4794_v44 = vld [vmem:[#allocation4 + $0x88] ss:$16 sps:$4 sm:$0xff]   ;;  %v4802_v16 = vld [vmem:[#allocation4 + $0xac] ss:$16 sps:$4 sm:$0xff]  }
 0x54f   : > { %v4797_v46 = vld [vmem:[#allocation4 + $0xa0] ss:$16 sps:$4 sm:$0xff]  }
 0x581   : > { %v4719_v26 = vpop.permute.xlu0 %4718 }
 0x582   : > { %v4721_v32 = vunpack.i.h.bf16 %v4719_v26  ;;  %v4720_v15 = vunpack.i.l.bf16 %v4719_v26 }
 0x584   : > { %v2770_v42 = vsel %vm2769_vm6, %v2765_v34, %v4720_v15  ;;  %v2771_v35 = vsel %vm2769_vm6, %v2766_v17, %v4721_v32  ;;  %v4781_v32 = vld [vmem:[#allocation4 + $0x44] ss:$16 sps:$4 sm:$0xff]   ;;  %v4784_v15 = vld [vmem:[#allocation4 + $0x4c] ss:$16 sps:$4 sm:$0xff]   ;;  %v4779_v17 = vld [vmem:[#allocation4 + $0x40] ss:$16 sps:$4 sm:$0xff]  }
 0x585   : > { %v4242_v50 = vpack.c.bf16 %v2771_v35, %v2770_v42  ;;  %v4782_v34 = vld [vmem:[#allocation4 + $0x48] ss:$16 sps:$4 sm:$0xff]   ;;  %v4790_v42 = vld [vmem:[#allocation4 + $0x6c] ss:$16 sps:$4 sm:$0xff]   ;;  %v4785_v35 = vld [vmem:[#allocation4 + $0x60] ss:$16 sps:$4 sm:$0xff]  }
 0x587   : > { %4642 = vmatprep.mubr.bf16.mxu1 %v4242_v50  ;;  %v4788_v50 = vld [vmem:[#allocation4 + $0x68] ss:$16 sps:$4 sm:$0xff]  }
 0x589   : > { %v4724_v2 = vpop.permute.xlu1 %4723 }
 0x58a   : > { %v4726_v43 = vunpack.i.h.bf16 %v4724_v2  ;;  %v4725_v12 = vunpack.i.l.bf16 %v4724_v2  ;;  %v4799_v2 = vld [vmem:[#allocation4 + $0xa4] ss:$16 sps:$4 sm:$0xff]  }
 0x58c   : > { %v2773_v60 = vsel %vm2769_vm6, %v2768_v49, %v4726_v43  ;;  %v2772_v39 = vsel %vm2769_vm6, %v2767_v9, %v4725_v12  ;;  %v4800_v43 = vld [vmem:[#allocation4 + $0xa8] ss:$16 sps:$4 sm:$0xff]   ;;  %v4805_v12 = vld [vmem:[#allocation4 + $0xc4] ss:$16 sps:$4 sm:$0xff]   ;;  %v4808_v49 = vld [vmem:[#allocation4 + $0xcc] ss:$16 sps:$4 sm:$0xff]  }
 0x58d   : > { %v4243_v48 = vpack.c.bf16 %v2773_v60, %v2772_v39  ;;  %v4803_v9 = vld [vmem:[#allocation4 + $0xc0] ss:$16 sps:$4 sm:$0xff]   ;;  %v4806_v60 = vld [vmem:[#allocation4 + $0xc8] ss:$16 sps:$4 sm:$0xff]   ;;  %v4811_v39 = vld [vmem:[#allocation4 + $0xe4] ss:$16 sps:$4 sm:$0xff]  }
 0x58f   : > { %4643 = vmatmul.mubr.bf16.vlgmr.msra.gmra.mrb[64].mxu1 %v4243_v48  ;;  %v4814_v48 = vld [vmem:[#allocation4 + $0xec] ss:$16 sps:$4 sm:$0xff]  }
 0x590   : > { %3296 = vmatprep.mubr.bf16.mxu1 %v5068_v0  ;;  %3265 = vmatpush1.bf16.msra.mxu1 %v4770_v8  ;;  %v4159_v8 = vld [vmem:[%s6031_s7] ss:$0 sm:$0xff] }
 0x591   : > { %3266 = vmatprep.subr.bf16.mxu1 %v4778_v47 }
 0x662   : > { %v4644_v25 = vpop.f32.mrb[64].mxu1 }
 0x663   : > { %v2895_v56 = vpop.f32.mrb[65].mxu1  ;;  %v2904_v63 = vadd.f32 %v4644_v25, %v4148_v5  ;;  %v4812_v25 = vld [vmem:[#allocation4 + $0xe8] ss:$16 sps:$4 sm:$0xff]  }
 0x664   : > { %v2896_v38 = vadd.f32 %v4148_v5, %v2895_v56  ;;  %v4645_v51 = vpop.f32.mrb[66].mxu1 }
 0x665   : > { %v2898_v61 = vpop.f32.mrb[67].mxu1  ;;  %v2907_v1 = vadd.f32 %v4645_v51, %v4148_v5  ;;  %v2912_v6 = vadd.f32 %v2904_v63, %v5316_v52 }
 0x666   : > { %v2899_v22 = vadd.f32 %v4148_v5, %v2898_v61  ;;  %v2910_v4 = vadd.f32 %v2896_v38, %v5301_v29  ;;  %v4773_v29 = vld [vmem:[#allocation4 + $0x20] ss:$16 sps:$4 sm:$0xff]  }
 0x667   : > { %v2913_v33 = vadd.f32 %v2907_v1, %v5318_v53  ;;  %3214 = vmatpush1.bf16.msra.mxu0 %v4773_v29  ;;  %v4809_v5 = vld [vmem:[#allocation4 + $0xe0] ss:$16 sps:$4 sm:$0xff]  }
 0x668   : > { %2916 = vadd.xlane.f32.xlu0 %v2910_v4  ;;  %v2911_v55 = vadd.f32 %v2899_v22, %v5303_v30  ;;  %v4776_v30 = vld [vmem:[#allocation4 + $0x28] ss:$16 sps:$4 sm:$0xff]   ;;  %3215 = vmatprep.subr.bf16.mxu0 %v4781_v32  ;;  %v4818_v32 = vld [vmem:[#allocation6 + $0x80] sm:$0xff]  }
 0x669   : > { %3267 = vmatpush1.bf16.msra.mxu1 %v4776_v30 }
 0x66a   : > { %2918 = vadd.xlane.f32.xlu1 %v2911_v55  ;;  %3268 = vmatprep.subr.bf16.mxu1 %v4784_v15  ;;  %v4819_v15 = vld [vmem:[#allocation6 + $0x48] sm:$0xff]  }
 0x66b   : > { %3216 = vmatpush1.bf16.msra.mxu0 %v4779_v17  ;;  %v4820_v17 = vld [vmem:[#allocation6 + $0xc8] sm:$0xff]  }
 0x66c   : > { %2920 = vadd.xlane.f32.xlu0 %v2912_v6  ;;  %3217 = vmatprep.subr.bf16.mxu0 %v4787_v27  ;;  %v4823_v27 = vld [vmem:[#allocation6 + $0x50] sm:$0xff]  }
 0x66d   : > { %3269 = vmatpush1.bf16.msra.mxu1 %v4782_v34  ;;  %v4822_v34 = vld [vmem:[#allocation6 + $0x88] sm:$0xff]  }
 0x66e   : > { %3270 = vmatprep.subr.bf16.mxu1 %v4790_v42  ;;  %v4824_v42 = vld [vmem:[#allocation6 + $0xd0] sm:$0xff]  }
 0x66f   : > { %3218 = vmatpush1.bf16.msra.mxu0 %v4785_v35  ;;  %v4825_v35 = vld [vmem:[#allocation6 + $0x10] sm:$0xff]  }
 0x670   : > { %2922 = vadd.xlane.f32.xlu0 %v2913_v33  ;;  %3219 = vmatprep.subr.bf16.mxu0 %v4793_v18  ;;  %v4827_v18 = vld [vmem:[#allocation6 + $0x58] sm:$0xff]  }
 0x671   : > { %3271 = vmatpush1.bf16.msra.mxu1 %v4788_v50  ;;  %v4826_v50 = vld [vmem:[#allocation6 + $0x90] sm:$0xff]  }
 0x672   : > { %3272 = vmatprep.subr.bf16.mxu1 %v4796_v37  ;;  %v4828_v37 = vld [vmem:[#allocation6 + $0xd8] sm:$0xff]  }
 0x673   : > { %3220 = vmatpush1.bf16.msra.mxu0 %v4791_v36  ;;  %v4829_v36 = vld [vmem:[#allocation6 + $0x18] sm:$0xff]  }
 0x674   : > { %3221 = vmatprep.subr.bf16.mxu0 %v4799_v2  ;;  %v4831_v2 = vld [vmem:[#allocation6 + $0x60] sm:$0xff]  }
 0x675   : > { %3273 = vmatpush1.bf16.msra.mxu1 %v4794_v44  ;;  %v4830_v44 = vld [vmem:[#allocation6 + $0x98] sm:$0xff]  }
 0x676   : > { %3274 = vmatprep.subr.bf16.mxu1 %v4802_v16  ;;  %v4832_v16 = vld [vmem:[#allocation6 + $0xe0] sm:$0xff]  }
 0x677   : > { %3222 = vmatpush1.bf16.msra.mxu0 %v4797_v46  ;;  %v4833_v46 = vld [vmem:[#allocation6 + $0x20] sm:$0xff]  }
 0x678   : > { %3223 = vmatprep.subr.bf16.mxu0 %v4805_v12  ;;  %v4835_v12 = vld [vmem:[#allocation6 + $0x68] sm:$0xff]  }
 0x679   : > { %3275 = vmatpush1.bf16.msra.mxu1 %v4800_v43  ;;  %v4834_v43 = vld [vmem:[#allocation6 + $0xa0] sm:$0xff]  }
 0x67a   : > { %3276 = vmatprep.subr.bf16.mxu1 %v4808_v49  ;;  %v4836_v49 = vld [vmem:[#allocation6 + $0xe8] sm:$0xff]  }
 0x67b   : > { %3224 = vmatpush1.bf16.msra.mxu0 %v4803_v9  ;;  %v4837_v9 = vld [vmem:[#allocation6 + $0x28] sm:$0xff]  }
 0x67c   : > { %3225 = vmatprep.subr.bf16.mxu0 %v4811_v39  ;;  %v4839_v39 = vld [vmem:[#allocation6 + $0x70] sm:$0xff]  }
 0x67d   : > { %3277 = vmatpush1.bf16.msra.mxu1 %v4806_v60  ;;  %v4838_v60 = vld [vmem:[#allocation6 + $0xa8] sm:$0xff]  }
 0x67e   : > { %3278 = vmatprep.subr.bf16.mxu1 %v4814_v48  ;;  %v4840_v48 = vld [vmem:[#allocation6 + $0xf0] sm:$0xff]  }
 0x67f   : > { %3226 = vmatpush1.bf16.msra.mxu0 %v4809_v5  ;;  %v4841_v5 = vld [vmem:[#allocation6 + $0x30] sm:$0xff]  }
 0x681   : > { %3279 = vmatpush1.bf16.msra.mxu1 %v4812_v25  ;;  %v4842_v25 = vld [vmem:[#allocation6 + $0xb0] sm:$0xff]  }
 0x6f5   : > { %v2917_v52 = vpop.xlane.xlu0 %2916 }
 0x6f6   : > { %v2925_v45 = vmul.f32 0.0078125, %v2917_v52  ;;  %v4160_v52 = vld [vmem:[%s6032_s8] ss:$0 sm:$0xff] }
 0x6f7   : > { %v2919_v53 = vpop.xlane.xlu1 %2918 }
 0x6f8   : > { %v5833_v62 = vsub.f32 %v2910_v4, %v2925_v45  ;;  %v2926_v40 = vmul.f32 0.0078125, %v2919_v53 }
 0x6f9   : > { %v2921_v59 = vpop.xlane.xlu0 %2920 }
 0x6fa   : > { %v5835_v41 = vsub.f32 %v2911_v55, %v2926_v40  ;;  %v2927_v57 = vmul.f32 0.0078125, %v2921_v59  ;;  %v2933_v20 = vmul.f32 %v5833_v62, %v5833_v62 }
 0x6fc   : > { %v5839_v3 = vsub.f32 %v2912_v6, %v2927_v57  ;;  %2937 = vadd.xlane.f32.xlu1 %v2933_v20  ;;  %v2934_v24 = vmul.f32 %v5835_v41, %v5835_v41 }
 0x6fd   : > { %v2923_v19 = vpop.xlane.xlu0 %2922 }
 0x6fe   : > { %v2928_v21 = vmul.f32 0.0078125, %v2923_v19  ;;  %2939 = vadd.xlane.f32.xlu0 %v2934_v24  ;;  %v2935_v26 = vmul.f32 %v5839_v3, %v5839_v3 }
 0x700   : > { %v5845_v23 = vsub.f32 %v2913_v33, %v2928_v21  ;;  %2941 = vadd.xlane.f32.xlu1 %v2935_v26  ;;  %v4815_v26 = vld [vmem:[#allocation6 + $0x40] sm:$0xff]  }
 0x701   : > { %4358 = vmatprep.subr.bf16.mxu0 %v4815_v26 }
 0x702   : > { %v2936_v31 = vmul.f32 %v5845_v23, %v5845_v23 }
 0x704   : > { %2943 = vadd.xlane.f32.xlu0 %v2936_v31  ;;  %v4816_v31 = vld [vmem:[#allocation6 + $0xc0] sm:$0xff]  }
 0x705   : > { %4386 = vmatprep.subr.bf16.mxu1 %v4816_v31 }
 0x789   : > { %v2938_v56 = vpop.xlane.xlu1 %2937 }
 0x78a   : > { %v2945_v38 = vmul.f32 0.0078125, %v2938_v56  ;;  %v4843_v56 = vld [vmem:[#allocation6 + $0x78] sm:$0xff]  }
 0x78b   : > { %v2940_v51 = vpop.xlane.xlu0 %2939 }
 0x78c   : > { %v2949_v61 = vadd.f32 1e-12, %v2945_v38  ;;  %v2946_v63 = vmul.f32 0.0078125, %v2940_v51  ;;  %v4844_v38 = vld [vmem:[#allocation6 + $0xf8] sm:$0xff]  }
 0x78d   : > { %v2942_v22 = vpop.xlane.xlu1 %2941  ;;  %v4845_v51 = vld [vmem:[#allocation6 + $0x38] sm:$0xff]  }
 0x78e   : > { %4911 = vrsqrt.f32 %v2949_v61  ;;  %v2950_v4 = vadd.f32 1e-12, %v2946_v63  ;;  %v2947_v55 = vmul.f32 0.0078125, %v2942_v22  ;;  %v4846_v61 = vld [vmem:[#allocation6 + $0xb8] sm:$0xff]   ;;  %v3017_v63 = vld [vmem:[%s6034_s10] sm:$0xf] }
 0x78f   : > { %v5877_v22 = vrot.slane %v3017_v63, %v5290_v11 }
 0x790   : > { %4913 = vrsqrt.f32 %v2950_v4  ;;  %v2951_v1 = vadd.f32 1e-12, %v2947_v55  ;;  %v5881_v4 = vrot.slane %v3017_v63, %v678_v28  ;;  %v3033_v55 = vsub.s32 3, %v5273_v7 }
 0x791   : > { %v2944_v6 = vpop.xlane.xlu0 %2943 }
 0x792   : > { %4915 = vrsqrt.f32 %v2951_v1  ;;  %v2948_v33 = vmul.f32 0.0078125, %v2944_v6  ;;  %v5890_v11 = vrot.slane %v3017_v63, %v3033_v55 }
 0x794   : > { %v2952_v10 = vadd.f32 1e-12, %v2948_v33  ;;  %v5886_v33 = vrot.slane %v3017_v63, %v674_v58 }
 0x796   : > { %4917 = vrsqrt.f32 %v2952_v10 }
 0x798   : > { %v4912_v54 = vpop.eup %4911 }
 0x799   : > { %v2957_v13 = vmul.f32 %v4912_v54, %v5833_v62 }
 0x79a   : > { %v4914_v14 = vpop.eup %4913 }
 0x79b   : > { %v2958_v47 = vmul.f32 %v4914_v14, %v5835_v41  ;;  %v2967_v29 = vmul.f32 %v4159_v8, %v2957_v13 }
 0x79c   : > { %v4916_v30 = vpop.eup %4915 }
 0x79d   : > { %v2968_v45 = vmul.f32 %v4159_v8, %v2958_v47  ;;  %v5857_v53 = vadd.f32 %v4160_v52, %v2967_v29  ;;  %v2959_v59 = vmul.f32 %v4916_v30, %v5839_v3 }
 0x79f   : > { %v5859_v40 = vadd.f32 %v4160_v52, %v2968_v45  ;;  %v2969_v41 = vmul.f32 %v4159_v8, %v2959_v59 }
 0x7a0   : > { %v4918_v57 = vpop.eup %4917 }
 0x7a1   : > { %v4244_v62 = vpack.c.bf16 %v5859_v40, %v5857_v53  ;;  %v2960_v20 = vmul.f32 %v4918_v57, %v5845_v23  ;;  %v5869_v21 = vadd.f32 %v4160_v52, %v2969_v41  ;;  %v4817_v23 = vld [vmem:[#allocation6] sm:$0xff]  }
 0x7a3   : > { %3244 = vmatmul.mubr.bf16.vlgmr.msra.gmra.mrb[76].mxu0 %v4244_v62  ;;  %3297 = vmatmul.mubr.bf16.vlgmr.msra.gmra.mrb[68].mxu1 %v4244_v62  ;;  %v2970_v24 = vmul.f32 %v4159_v8, %v2960_v20 }
 0x7a4   : > { %3253 = vmatprep.mubr.bf16.mxu0 %v5068_v0  ;;  %3306 = vmatprep.mubr.bf16.mxu1 %v5068_v0  ;;  %v4821_v0 = vld [vmem:[#allocation6 + $0x8] sm:$0xff]  }
 0x7a5   : > { %v5867_v19 = vadd.f32 %v4160_v52, %v2970_v24  ;;  %4359 = vmatpush3.bf16.msra.mxu0 %v4817_v23  ;;  %4387 = vmatpush3.bf16.msra.mxu1 %v4818_v32 }
 0x7a6   : > { %4360 = vmatprep.subr.bf16.mxu0 %v4819_v15  ;;  %4388 = vmatprep.subr.bf16.mxu1 %v4820_v17 }
 0x7a7   : > { %v4245_v3 = vpack.c.bf16 %v5867_v19, %v5869_v21 }
 0x7a9   : > { %4361 = vmatpush3.bf16.msra.mxu0 %v4821_v0  ;;  %4389 = vmatpush3.bf16.msra.mxu1 %v4822_v34 }
 0x7aa   : > { %4362 = vmatprep.subr.bf16.mxu0 %v4823_v27  ;;  %4390 = vmatprep.subr.bf16.mxu1 %v4824_v42 }
 0x7ab   : > { %3254 = vmatmul.mubr.bf16.gmra.mrb[80].mxu0 %v4245_v3  ;;  %3307 = vmatmul.mubr.bf16.gmra.mrb[72].mxu1 %v4245_v3 }
 0x7ad   : > { %4363 = vmatpush3.bf16.msra.mxu0 %v4825_v35  ;;  %4391 = vmatpush3.bf16.msra.mxu1 %v4826_v50 }
 0x7ae   : > { %4364 = vmatprep.subr.bf16.mxu0 %v4827_v18  ;;  %4392 = vmatprep.subr.bf16.mxu1 %v4828_v37 }
 0x7b1   : > { %4365 = vmatpush3.bf16.msra.mxu0 %v4829_v36  ;;  %4393 = vmatpush3.bf16.msra.mxu1 %v4830_v44 }
 0x7b2   : > { %4366 = vmatprep.subr.bf16.mxu0 %v4831_v2  ;;  %4394 = vmatprep.subr.bf16.mxu1 %v4832_v16 }
 0x7b5   : > { %4367 = vmatpush3.bf16.msra.mxu0 %v4833_v46  ;;  %4395 = vmatpush3.bf16.msra.mxu1 %v4834_v43 }
 0x7b6   : > { %4368 = vmatprep.subr.bf16.mxu0 %v4835_v12  ;;  %4396 = vmatprep.subr.bf16.mxu1 %v4836_v49 }
 0x7b9   : > { %4369 = vmatpush3.bf16.msra.mxu0 %v4837_v9  ;;  %4397 = vmatpush3.bf16.msra.mxu1 %v4838_v60 }
 0x7ba   : > { %4370 = vmatprep.subr.bf16.mxu0 %v4839_v39  ;;  %4398 = vmatprep.subr.bf16.mxu1 %v4840_v48 }
 0x7bd   : > { %4371 = vmatpush3.bf16.msra.mxu0 %v4841_v5  ;;  %4399 = vmatpush3.bf16.msra.mxu1 %v4842_v25 }
 0x7be   : > { %4372 = vmatprep.subr.bf16.mxu0 %v4843_v56  ;;  %4400 = vmatprep.subr.bf16.mxu1 %v4844_v38 }
 0x7c1   : > { %4373 = vmatpush3.bf16.msra.mxu0 %v4845_v51  ;;  %4401 = vmatpush3.bf16.msra.mxu1 %v4846_v61 }
 0x876   : > { %v3245_v1 = vpop.f32.mrb[76].mxu0  ;;  %v3298_v6 = vpop.f32.mrb[68].mxu1 }
 0x877   : > { %v3246_v10 = vadd.f32 %v3245_v1, %v5877_v22  ;;  %v3299_v54 = vadd.f32 %v3298_v6, %v5881_v4  ;;  %v3247_v8 = vpop.f32.mrb[77].mxu0  ;;  %v3300_v13 = vpop.f32.mrb[69].mxu1 }
 0x878   : > { %v3249_v14 = vpop.f32.mrb[78].mxu0  ;;  %v3302_v47 = vpop.f32.mrb[70].mxu1  ;;  %v5893_v30 = vadd.f32 %v3247_v8, %v5886_v33  ;;  %v5903_v20 = vadd.f32 %v3300_v13, %v5890_v11 }
 0x879   : > { %v3333_v28 = vmul.f32 0.044715, %v3246_v10  ;;  %v3335_v29 = vmul.f32 0.044715, %v3299_v54  ;;  %v3250_v52 = vadd.f32 %v3249_v14, %v5877_v22  ;;  %v5897_v7 = vadd.f32 %v3302_v47, %v5881_v4  ;;  %v3251_v58 = vpop.f32.mrb[79].mxu0  ;;  %v3304_v45 = vpop.f32.mrb[71].mxu1 }
 0x87a   : > { %v5900_v62 = vadd.f32 %v3251_v58, %v5886_v33  ;;  %v5906_v24 = vadd.f32 %v3304_v45, %v5890_v11  ;;  %v5908_v3 = vmul.f32 0.5, %v3246_v10  ;;  %v3334_v32 = vmul.f32 0.044715, %v5893_v30 }
 0x87b   : > { %v3349_v59 = vmul.f32 %v3333_v28, %v3246_v10  ;;  %v3351_v57 = vmul.f32 %v3335_v29, %v3299_v54  ;;  %v3337_v41 = vmul.f32 0.044715, %v3250_v52  ;;  %v3339_v23 = vmul.f32 0.044715, %v5897_v7 }
 0x87c   : > { %v3338_v17 = vmul.f32 0.044715, %v5900_v62  ;;  %v5913_v42 = vmul.f32 0.5, %v3299_v54  ;;  %v3336_v36 = vmul.f32 0.044715, %v5903_v20  ;;  %v3350_v48 = vmul.f32 %v3334_v32, %v5893_v30 }
 0x87d   : > { %v3365_v26 = vmul.f32 %v3349_v59, %v3246_v10  ;;  %v3367_v31 = vmul.f32 %v3351_v57, %v3299_v54  ;;  %v3353_v15 = vmul.f32 %v3337_v41, %v3250_v52  ;;  %v3355_v50 = vmul.f32 %v3339_v23, %v5897_v7 }
 0x87e   : > { %v3255_v0 = vpop.f32.mrb[80].mxu0  ;;  %v3308_v34 = vpop.f32.mrb[72].mxu1  ;;  %v3340_v2 = vmul.f32 0.044715, %v5906_v24  ;;  %v3354_v25 = vmul.f32 %v3338_v17, %v5900_v62  ;;  %v3352_v63 = vmul.f32 %v3336_v36, %v5903_v20  ;;  %v3366_v13 = vmul.f32 %v3350_v48, %v5893_v30 }
 0x87f   : > { %v3381_v27 = vadd.f32 %v3365_v26, %v3246_v10  ;;  %v3383_v35 = vadd.f32 %v3367_v31, %v3299_v54  ;;  %v3257_v18 = vpop.f32.mrb[81].mxu0  ;;  %v3310_v37 = vpop.f32.mrb[73].mxu1  ;;  %v3369_v44 = vmul.f32 %v3353_v15, %v3250_v52  ;;  %v5919_v16 = vadd.f32 %v3255_v0, %v5877_v22 }
 0x880   : > { %v3259_v46 = vpop.f32.mrb[82].mxu0  ;;  %v3312_v43 = vpop.f32.mrb[74].mxu1  ;;  %v3371_v9 = vmul.f32 %v3355_v50, %v5897_v7  ;;  %v5925_v56 = vadd.f32 %v3308_v34, %v5881_v4  ;;  %v5930_v61 = vadd.f32 %v3257_v18, %v5886_v33  ;;  %v3356_v1 = vmul.f32 %v3340_v2, %v5906_v24 }
 0x881   : > { %v3397_v12 = vmul.f32 0.7978846, %v3381_v27  ;;  %v3399_v49 = vmul.f32 0.7978846, %v3383_v35  ;;  %v3261_v60 = vpop.f32.mrb[83].mxu0  ;;  %v3314_v39 = vpop.f32.mrb[75].mxu1  ;;  %v3385_v5 = vadd.f32 %v3369_v44, %v3250_v52  ;;  %v5936_v54 = vadd.f32 %v3310_v37, %v5890_v11 }
 0x882   : > { %v3387_v38 = vadd.f32 %v3371_v9, %v5897_v7  ;;  %v3341_v51 = vmul.f32 0.044715, %v5919_v16  ;;  %v3342_v10 = vmul.f32 0.044715, %v5930_v61  ;;  %v5939_v8 = vadd.f32 %v3259_v46, %v5877_v22 }
 0x883   : > { %4919 = vtanh.f32 %v3397_v12  ;;  %v3401_v55 = vmul.f32 0.7978846, %v3385_v5  ;;  %v3370_v14 = vmul.f32 %v3354_v25, %v5900_v62  ;;  %v5944_v47 = vadd.f32 %v3312_v43, %v5881_v4 }
 0x884   : > { %4921 = vtanh.f32 %v3399_v49  ;;  %v3403_v6 = vmul.f32 0.7978846, %v3387_v38  ;;  %v3357_v28 = vmul.f32 %v3341_v51, %v5919_v16  ;;  %v3343_v29 = vmul.f32 0.044715, %v5925_v56 }
 0x885   : > { %4923 = vtanh.f32 %v3401_v55  ;;  %v3344_v58 = vmul.f32 0.044715, %v5936_v54  ;;  %v3321_v45 = vmul.f32 0.5, %v3250_v52  ;;  %v3358_v59 = vmul.f32 %v3342_v10, %v5930_v61 }
 0x886   : > { %4925 = vtanh.f32 %v3403_v6  ;;  %v5951_v22 = vadd.f32 %v3261_v60, %v5886_v33  ;;  %v5954_v57 = vadd.f32 %v3314_v39, %v5890_v11  ;;  %v3368_v41 = vmul.f32 %v3352_v63, %v5903_v20 }
 0x887   : > { %v3372_v4 = vmul.f32 %v3356_v1, %v5906_v24  ;;  %v3345_v26 = vmul.f32 0.044715, %v5939_v8  ;;  %v3347_v31 = vmul.f32 0.044715, %v5944_v47  ;;  %v3360_v23 = vmul.f32 %v3344_v58, %v5936_v54 }
 0x888   : > { %v3346_v52 = vmul.f32 0.044715, %v5951_v22  ;;  %v3348_v32 = vmul.f32 0.044715, %v5954_v57  ;;  %v3382_v33 = vadd.f32 %v3366_v13, %v5893_v30  ;;  %v3323_v15 = vmul.f32 0.5, %v5897_v7 }
 0x889   : > { %v3373_v11 = vmul.f32 %v3357_v28, %v5919_v16  ;;  %v3359_v17 = vmul.f32 %v3343_v29, %v5925_v56  ;;  %v3386_v0 = vadd.f32 %v3370_v14, %v5900_v62  ;;  %v3374_v34 = vmul.f32 %v3358_v59, %v5930_v61 }
 0x88a   : > { %v3362_v27 = vmul.f32 %v3346_v52, %v5951_v22  ;;  %v3364_v35 = vmul.f32 %v3348_v32, %v5954_v57  ;;  %v3398_v50 = vmul.f32 0.7978846, %v3382_v33  ;;  %v3361_v37 = vmul.f32 %v3345_v26, %v5939_v8 }
 0x88b   : > { %v3402_v36 = vmul.f32 0.7978846, %v3386_v0  ;;  %v3384_v44 = vadd.f32 %v3368_v41, %v5903_v20  ;;  %v3388_v7 = vadd.f32 %v3372_v4, %v5906_v24  ;;  %v3376_v46 = vmul.f32 %v3360_v23, %v5936_v54 }
 0x88c   : > { %v3363_v43 = vmul.f32 %v3347_v31, %v5944_v47  ;;  %v3378_v12 = vmul.f32 %v3362_v27, %v5951_v22  ;;  %4927 = vtanh.f32 %v3398_v50  ;;  %v3375_v48 = vmul.f32 %v3359_v17, %v5925_v56 }
 0x88d   : > { %v4920_v18 = vpop.eup %4919  ;;  %4929 = vtanh.f32 %v3402_v36  ;;  %v3400_v49 = vmul.f32 0.7978846, %v3384_v44  ;;  %v3404_v9 = vmul.f32 0.7978846, %v3388_v7  ;;  %v3380_v5 = vmul.f32 %v3364_v35, %v5954_v57 }
 0x88e   : > { %v4922_v2 = vpop.eup %4921  ;;  %v3429_v60 = vadd.f32 1.0, %v4920_v18  ;;  %v3390_v38 = vadd.f32 %v3374_v34, %v5930_v61  ;;  %v3377_v63 = vmul.f32 %v3361_v37, %v5939_v8  ;;  %v3394_v1 = vadd.f32 %v3378_v12, %v5951_v22 }
 0x88f   : > { %v4924_v39 = vpop.eup %4923  ;;  %v3431_v25 = vadd.f32 1.0, %v4922_v2  ;;  %4931 = vtanh.f32 %v3400_v49  ;;  %v3379_v6 = vmul.f32 %v3363_v43, %v5944_v47  ;;  %v3392_v58 = vadd.f32 %v3376_v46, %v5936_v54 }
 0x890   : > { %v4926_v51 = vpop.eup %4925  ;;  %v3433_v55 = vadd.f32 1.0, %v4924_v39  ;;  %4933 = vtanh.f32 %v3404_v9  ;;  %v3406_v13 = vmul.f32 0.7978846, %v3390_v38  ;;  %v3445_v14 = vmul.f32 %v3429_v60, %v5908_v3 }
 0x891   : > { %v3435_v10 = vadd.f32 1.0, %v4926_v51  ;;  %v3410_v29 = vmul.f32 0.7978846, %v3394_v1  ;;  %v3447_v59 = vmul.f32 %v3431_v25, %v5913_v42  ;;  %v3396_v4 = vadd.f32 %v3380_v5, %v5954_v57 }
 0x892   : > { %v3449_v28 = vmul.f32 %v3433_v55, %v3321_v45  ;;  %4935 = vtanh.f32 %v3406_v13  ;;  %v3408_v31 = vmul.f32 0.7978846, %v3392_v58  ;;  %v3389_v32 = vadd.f32 %v3373_v11, %v5919_v16 }
 0x893   : > { %v3451_v41 = vmul.f32 %v3435_v10, %v3323_v15  ;;  %4937 = vtanh.f32 %v3410_v29  ;;  %v3412_v52 = vmul.f32 0.7978846, %v3396_v4  ;;  %v3393_v33 = vadd.f32 %v3377_v63, %v5939_v8 }
 0x894   : > { %v4246_v26 = vpack.c.bf16 %v3449_v28, %v3445_v14  ;;  %4939 = vtanh.f32 %v3408_v31  ;;  %v3391_v3 = vadd.f32 %v3375_v48, %v5925_v56  ;;  %v3405_v17 = vmul.f32 0.7978846, %v3389_v32 }
 0x895   : > { %v4248_v23 = vpack.c.bf16 %v3451_v41, %v3447_v59  ;;  %4941 = vtanh.f32 %v3412_v52  ;;  %v3409_v42 = vmul.f32 0.7978846, %v3393_v33  ;;  %v3395_v15 = vadd.f32 %v3379_v6, %v5944_v47 }
 0x896   : > { %v4928_v45 = vpop.eup %4927  ;;  %v3318_v34 = vmul.f32 0.5, %v5893_v30  ;;  %v3407_v35 = vmul.f32 0.7978846, %v3391_v3  ;;  %v3322_v50 = vmul.f32 0.5, %v5900_v62  ;;  %4943 = vtanh.f32 %v3405_v17 }
 0x897   : > { %v4930_v0 = vpop.eup %4929  ;;  %v3430_v27 = vadd.f32 1.0, %v4928_v45  ;;  %v3411_v11 = vmul.f32 0.7978846, %v3395_v15  ;;  %4945 = vtanh.f32 %v3409_v42  ;;  %v3320_v46 = vmul.f32 0.5, %v5903_v20 }
 0x898   : > { %v3434_v18 = vadd.f32 1.0, %v4930_v0  ;;  %4947 = vtanh.f32 %v3407_v35  ;;  %v3324_v43 = vmul.f32 0.5, %v5906_v24  ;;  %v3326_v48 = vmul.f32 0.5, %v5930_v61 }
 0x899   : > { %v4932_v37 = vpop.eup %4931  ;;  %v3446_v44 = vmul.f32 %v3430_v27, %v3318_v34  ;;  %4949 = vtanh.f32 %v3411_v11  ;;  %v3330_v5 = vmul.f32 0.5, %v5951_v22  ;;  %v3328_v1 = vmul.f32 0.5, %v5936_v54 }
 0x89a   : > { %v4934_v36 = vpop.eup %4933  ;;  %v3450_v7 = vmul.f32 %v3434_v18, %v3322_v50  ;;  %v3432_v2 = vadd.f32 1.0, %v4932_v37  ;;  %v3332_v6 = vmul.f32 0.5, %v5954_v57  ;;  %v3325_v59 = vmul.f32 0.5, %v5919_v16 }
 0x89b   : > { %v3436_v12 = vadd.f32 1.0, %v4934_v36  ;;  %v3329_v41 = vmul.f32 0.5, %v5939_v8  ;;  %v3327_v54 = vmul.f32 0.5, %v5925_v56  ;;  %v4195_v8 = vld [vmem:[%s6055_s20] ss:$0 sm:$0xff] }
 0x89c   : > { %v4936_v30 = vpop.eup %4935  ;;  %v4247_v49 = vpack.c.bf16 %v3450_v7, %v3446_v44  ;;  %v3448_v62 = vmul.f32 %v3432_v2, %v3320_v46 }
 0x89d   : > { %v4938_v9 = vpop.eup %4937  ;;  %v3452_v60 = vmul.f32 %v3436_v12, %v3324_v43  ;;  %v3438_v39 = vadd.f32 1.0, %v4936_v30 }
 0x89e   : > { %3820 = vmatprep.mubr.bf16.mxu0 %v4247_v49  ;;  %v3442_v25 = vadd.f32 1.0, %v4938_v9  ;;  %v4940_v38 = vpop.eup %4939 }
 0x89f   : > { %v4249_v51 = vpack.c.bf16 %v3452_v60, %v3448_v62  ;;  %3821 = vmatmul.mubr.bf16.vlgmr.msra.gmra.mrb[84].mxu0 %v4246_v26  ;;  %v4942_v20 = vpop.eup %4941  ;;  %v3454_v63 = vmul.f32 %v3438_v39, %v3326_v48  ;;  %v3440_v55 = vadd.f32 1.0, %v4940_v38 }
 0x8a0   : > { %v3458_v24 = vmul.f32 %v3442_v25, %v3330_v5  ;;  %v3444_v10 = vadd.f32 1.0, %v4942_v20  ;;  %v4944_v13 = vpop.eup %4943 }
 0x8a1   : > { %3869 = vmatprep.mubr.bf16.mxu1 %v4249_v51  ;;  %v4946_v61 = vpop.eup %4945  ;;  %v3456_v28 = vmul.f32 %v3440_v55, %v3328_v1  ;;  %v3437_v29 = vadd.f32 1.0, %v4944_v13 }
 0x8a2   : > { %3870 = vmatmul.mubr.bf16.vlgmr.msra.gmra.mrb[76].mxu1 %v4248_v23  ;;  %v4251_v14 = vpack.c.bf16 %v3458_v24, %v3454_v63  ;;  %v3460_v22 = vmul.f32 %v3444_v10, %v3332_v6  ;;  %v4948_v58 = vpop.eup %4947  ;;  %v3441_v4 = vadd.f32 1.0, %v4946_v61  ;;  %v3331_v23 = vmul.f32 0.5, %v5944_v47 }
 0x8a3   : > { %v4950_v26 = vpop.eup %4949  ;;  %v3439_v57 = vadd.f32 1.0, %v4948_v58  ;;  %v3453_v52 = vmul.f32 %v3437_v29, %v3325_v59 }
 0x8a4   : > { %3828 = vmatprep.mubr.bf16.mxu0 %v4251_v14  ;;  %v4253_v31 = vpack.c.bf16 %v3460_v22, %v3456_v28  ;;  %v3457_v32 = vmul.f32 %v3441_v4, %v3329_v41  ;;  %v3443_v33 = vadd.f32 1.0, %v4950_v26 }
 0x8a5   : > { %v3455_v45 = vmul.f32 %v3439_v57, %v3327_v54 }
 0x8a6   : > { %3877 = vmatprep.mubr.bf16.mxu1 %v4253_v31  ;;  %v4250_v3 = vpack.c.bf16 %v3457_v32, %v3453_v52  ;;  %v3459_v17 = vmul.f32 %v3443_v33, %v3331_v23 }
 0x8a8   : > { %3829 = vmatmul.mubr.bf16.gmra.mrb[88].mxu0 %v4250_v3  ;;  %v4252_v42 = vpack.c.bf16 %v3459_v17, %v3455_v45 }
 0x8aa   : > { %3878 = vmatmul.mubr.bf16.gmra.mrb[80].mxu1 %v4252_v42 }
 0x972   : > { %v4374_v16 = vpop.f32.mrb[84].mxu0 }
 0x973   : > { %v4375_v15 = vpop.f32.mrb[85].mxu0 }
 0x974   : > { %v4376_v56 = vadd.f32 %v4375_v15, %v4374_v16  ;;  %v4377_v0 = vpop.f32.mrb[86].mxu0 }
 0x975   : > { %v4402_v34 = vpop.f32.mrb[76].mxu1  ;;  %v4378_v27 = vpop.f32.mrb[87].mxu0 }
 0x976   : > { %v3823_v35 = vadd.f32 %v4376_v56, %v4195_v8  ;;  %v4403_v47 = vpop.f32.mrb[77].mxu1  ;;  %v4379_v50 = vadd.f32 %v4378_v27, %v4377_v0 }
 0x977   : > { %v4404_v18 = vadd.f32 %v4403_v47, %v4402_v34  ;;  %v4405_v11 = vpop.f32.mrb[78].mxu1 }
 0x978   : > { %v3826_v37 = vadd.f32 %v4379_v50, %v4195_v8  ;;  %v4406_v36 = vpop.f32.mrb[79].mxu1 }
 0x979   : > { %v3872_v44 = vadd.f32 %v4404_v18, %v3823_v35  ;;  %v4407_v7 = vadd.f32 %v4406_v36, %v4405_v11  ;;  %v4237_v35 = vld [vmem:[%s6057_s27] ss:$0 sm:$0xff] }
 0x97b   : > { %v3875_v2 = vadd.f32 %v4407_v7, %v3826_v37  ;;  %v3886_v46 = vadd.f32 %v3872_v44, %v5857_v53  ;;  %v4380_v43 = vpop.f32.mrb[88].mxu0 }
 0x97c   : > { %v4381_v30 = vpop.f32.mrb[89].mxu0 }
 0x97d   : > { %3892 = vadd.xlane.f32.xlu1 %v3886_v46  ;;  %v3887_v12 = vadd.f32 %v3875_v2, %v5859_v40  ;;  %v4408_v49 = vpop.f32.mrb[80].mxu1  ;;  %v4382_v9 = vadd.f32 %v4381_v30, %v4380_v43  ;;  %v4383_v62 = vpop.f32.mrb[90].mxu0 }
 0x97e   : > { %v4409_v60 = vpop.f32.mrb[81].mxu1  ;;  %v4384_v39 = vpop.f32.mrb[91].mxu0 }
 0x97f   : > { %3894 = vadd.xlane.f32.xlu0 %v3887_v12  ;;  %v3831_v48 = vadd.f32 %v4382_v9, %v4195_v8  ;;  %v4410_v5 = vadd.f32 %v4409_v60, %v4408_v49  ;;  %v4411_v25 = vpop.f32.mrb[82].mxu1  ;;  %v4385_v38 = vadd.f32 %v4384_v39, %v4383_v62 }
 0x980   : > { %v4412_v51 = vpop.f32.mrb[83].mxu1 }
 0x981   : > { %v3880_v20 = vadd.f32 %v4410_v5, %v3831_v48  ;;  %v3834_v63 = vadd.f32 %v4385_v38, %v4195_v8  ;;  %v4413_v24 = vadd.f32 %v4412_v51, %v4411_v25  ;;  %v4236_v8 = vld [vmem:[%s6056_s12] ss:$0 sm:$0xff] }
 0x983   : > { %v3883_v53 = vadd.f32 %v4413_v24, %v3834_v63  ;;  %v3888_v55 = vadd.f32 %v3880_v20, %v5869_v21 }
 0x985   : > { %3896 = vadd.xlane.f32.xlu1 %v3888_v55  ;;  %v3889_v40 = vadd.f32 %v3883_v53, %v5867_v19 }
 0x987   : > { %3898 = vadd.xlane.f32.xlu0 %v3889_v40 }
 0xa0a   : > { %v3893_v1 = vpop.xlane.xlu1 %3892 }
 0xa0b   : > { %v3900_v6 = vmul.f32 0.0078125, %v3893_v1 }
 0xa0c   : > { %v3895_v10 = vpop.xlane.xlu0 %3894 }
 0xa0d   : > { %v3904_v13 = vsub.f32 %v3886_v46, %v3900_v6  ;;  %v3901_v14 = vmul.f32 0.0078125, %v3895_v10 }
 0xa0f   : > { %v3905_v61 = vsub.f32 %v3887_v12, %v3901_v14  ;;  %v3908_v28 = vmul.f32 %v3904_v13, %v3904_v13 }
 0xa11   : > { %3912 = vadd.xlane.f32.xlu1 %v3908_v28  ;;  %v3909_v22 = vmul.f32 %v3905_v61, %v3905_v61 }
 0xa12   : > { %v3897_v29 = vpop.xlane.xlu1 %3896 }
 0xa13   : > { %3914 = vadd.xlane.f32.xlu0 %v3909_v22  ;;  %v3902_v58 = vmul.f32 0.0078125, %v3897_v29 }
 0xa14   : > { %v3899_v59 = vpop.xlane.xlu0 %3898 }
 0xa15   : > { %v3906_v41 = vsub.f32 %v3888_v55, %v3902_v58  ;;  %v3903_v4 = vmul.f32 0.0078125, %v3899_v59 }
 0xa17   : > { %v3907_v21 = vsub.f32 %v3889_v40, %v3903_v4  ;;  %v3910_v26 = vmul.f32 %v3906_v41, %v3906_v41 }
 0xa19   : > { %3916 = vadd.xlane.f32.xlu1 %v3910_v26  ;;  %v3911_v19 = vmul.f32 %v3907_v21, %v3907_v21 }
 0xa1b   : > { %3918 = vadd.xlane.f32.xlu0 %v3911_v19 }
 0xa9e   : > { %v3913_v31 = vpop.xlane.xlu1 %3912 }
 0xa9f   : > { %v3920_v54 = vmul.f32 0.0078125, %v3913_v31 }
 0xaa0   : > { %v3915_v57 = vpop.xlane.xlu0 %3914 }
 0xaa1   : > { %v3924_v52 = vadd.f32 1e-12, %v3920_v54  ;;  %v3921_v32 = vmul.f32 0.0078125, %v3915_v57 }
 0xaa3   : > { %4951 = vrsqrt.f32 %v3924_v52  ;;  %v3925_v23 = vadd.f32 1e-12, %v3921_v32 }
 0xaa5   : > { %4953 = vrsqrt.f32 %v3925_v23 }
 0xaa6   : > { %v3917_v33 = vpop.xlane.xlu1 %3916 }
 0xaa7   : > { %v3922_v3 = vmul.f32 0.0078125, %v3917_v33 }
 0xaa8   : > { %v3919_v45 = vpop.xlane.xlu0 %3918 }
 0xaa9   : > { %v3926_v17 = vadd.f32 1e-12, %v3922_v3  ;;  %v3923_v42 = vmul.f32 0.0078125, %v3919_v45 }
 0xaab   : > { %4955 = vrsqrt.f32 %v3926_v17  ;;  %v3927_v15 = vadd.f32 1e-12, %v3923_v42 }
 0xaad   : > { %v4952_v16 = vpop.eup %4951  ;;  %4957 = vrsqrt.f32 %v3927_v15 }
 0xaae   : > { %v3932_v56 = vmul.f32 %v4952_v16, %v3904_v13 }
 0xaaf   : > { %v4954_v0 = vpop.eup %4953 }
 0xab0   : > { %v3942_v34 = vmul.f32 %v4236_v8, %v3932_v56  ;;  %v3933_v27 = vmul.f32 %v4954_v0, %v3905_v61 }
 0xab2   : > { %v3943_v47 = vmul.f32 %v4236_v8, %v3933_v27  ;;  %v3952_v50 = vadd.f32 %v4237_v35, %v3942_v34 }
 0xab4   : > { %v3953_v18 = vadd.f32 %v4237_v35, %v3943_v47 }
 0xab5   : > { %v4956_v37 = vpop.eup %4955 }
 0xab6   : > { %v4265_v11 = vpack.c.bf16 %v3953_v18, %v3952_v50  ;;  %v3934_v36 = vmul.f32 %v4956_v37, %v3906_v41 }
 0xab7   : > { %v4958_v44 = vpop.eup %4957 }
 0xab8   : > { %4266 = vst [vmem:[%s578_s15] sm:$0xff] %v4265_v11   ;;  %v3944_v7 = vmul.f32 %v4236_v8, %v3934_v36  ;;  %v3935_v2 = vmul.f32 %v4958_v44, %v3907_v21 }
 0xaba   : > { %v3945_v46 = vmul.f32 %v4236_v8, %v3935_v2  ;;  %v3954_v43 = vadd.f32 %v4237_v35, %v3944_v7 }
 0xabc   : > { %v3955_v12 = vadd.f32 %v4237_v35, %v3945_v46 }
 0xabe   : > { %v4270_v30 = vpack.c.bf16 %v3955_v12, %v3954_v43 }
 0xac0   : > { %4273 = vst [vmem:[%s578_s15 + $0x8] sm:$0xff] %v4270_v30  }
 0xac1 PF: > { %s27_s18 = sadd.s32 1, %s5057_s18  }
 0xac2   : > { %p24_p3 = scmp.ge.s32.totalorder %s27_s18, 4  }
 0xac4   :  { %26 = sbr.rel (!%p24_p3) target bundleno = 7 (0x7), region = 129 }
 0xacb   :  { %3986 = vsyncpa [#allocation3], 1 }
 0xacc   :  { %3988 = vsyncpa [#allocation3 + $0x1], 1 }
 0xacd   :  { %3989 = vsyncpa [#allocation5], 1 }

// kernel: graph_bert_encoder_forward.5
= control target key start
LH: loop header
LB: loop body
LE: loop exit
PB: predicated region body
PF: predicated region fallthrough
CT: control target
= control target key end

     0   :  { %s6298_s0 = inlined_call_operand.hbm [shape: bf16[8,8,128], index: 0, kind: input, shape index: {}, may-alias: {0,15}]   ;;  %s6299_s1 = inlined_call_operand.vmem [shape: f32[8,1,8], index: 1, kind: input, shape index: {}]   ;;  %s6300_s2 = inlined_call_operand.vmem [shape: bf16[8,1,128], index: 2, kind: input, shape index: {}]   ;;  %s6301_s3 = inlined_call_operand.vmem [shape: bf16[128,384], index: 3, kind: input, shape index: {}]   ;;  %s6302_s4 = inlined_call_operand.vmem [shape: f32[1,384], index: 4, kind: input, shape index: {}]   ;;  %s6303_s5 = inlined_call_operand.vmem [shape: bf16[128,128], index: 5, kind: input, shape index: {}]   ;;  %s6304_s6 = inlined_call_operand.vmem [shape: f32[1,128], index: 6, kind: input, shape index: {}]   ;;  %s6305_s7 = inlined_call_operand.vmem [shape: f32[1,128], index: 7, kind: input, shape index: {}]   ;;  %s6306_s8 = inlined_call_operand.vmem [shape: f32[1,128], index: 8, kind: input, shape index: {}]   ;;  %s6307_s9 = inlined_call_operand.vmem [shape: bf16[128,512], index: 9, kind: input, shape index: {}]   ;;  %s6308_s10 = inlined_call_operand.vmem [shape: f32[1,512], index: 10, kind: input, shape index: {}]   ;;  %s6309_s11 = inlined_call_operand.vmem [shape: bf16[512,128], index: 11, kind: input, shape index: {}]   ;;  %s6310_s12 = inlined_call_operand.vmem [shape: f32[1,128], index: 12, kind: input, shape index: {}]   ;;  %s6311_s13 = inlined_call_operand.vmem [shape: f32[1,128], index: 13, kind: input, shape index: {}]   ;;  %s6312_s14 = inlined_call_operand.vmem [shape: f32[1,128], index: 14, kind: input, shape index: {}]   ;;  %s6313_s15 = inlined_call_operand.hbm [shape: bf16[8,8,128], index: 15, kind: output, shape index: {}, may-alias: {0,15}]  }
   0x1   :  { %6324 = sst [smem:[#allocation13_spill]] %s6298_s0 }
   0x2   :  { %6325 = sst [smem:[#allocation14_spill]] %s6313_s15 }
   0x3   :  { %20 = vsyncpa [#allocation3], 0 }
   0x4   :  { %22 = vsyncpa [#allocation3 + $0x1], 0 }
   0x5   :  { %23 = vsyncpa [#allocation4], 0 }
   0x6   :  { %25 = vsyncpa [#allocation4 + $0x1], 0  ;;  %s5124_s18 = smov 0   ;;  %s5126_s19 = smov 0  }
   0x7   :  { %s5128_s20 = smov 0   ;;  %s5130_s21 = smov 0  }
   0x8 LB: > { %6326 = sst [smem:[#allocation8_spill]] %s5019_s18  ;;  %s5145_s22 = sadd.s32 4294967295, %s5031_s21   ;;  %s5031_s21 = sphi %s5130_s21, %s6345_s21   ;;  %s5027_s20 = sphi %s5128_s20, %s6347_s20   ;;  %s5023_s19 = sphi %s5126_s19, %s6349_s19   ;;  %s5019_s18 = sphi %s5124_s18, %s6348_s18  }
   0x9   : > { %6327 = sst [smem:[#allocation9_spill]] %s5027_s20  ;;  %s4042_s23 = sadd.s32 4294967294, %s5031_s21  }
   0xa   : > { %s5149_s24 = sadd.s32 1, %s5031_s21   ;;  %s38_s25 = sadd.s32 1, %s5027_s20 }
   0xb   : > { %6328 = sst [smem:[#allocation10_spill]] %s5149_s24  ;;  %s35_s26 = ssub.s32 %s5031_s21, %s5149_s24 }
   0xc   : > { %p45_p0 = scmp.ne.s32.totalorder %s5027_s20, %s5023_s19  ;;  %p36_p1 = scmp.eq.s32.totalorder %s35_s26, 0 }
   0xd   : > { %p46_p2 = scmp.eq.s32.totalorder %s5031_s21, 0  ;;  %p51_p3 = scmp.ne.s32.totalorder %s5023_s19, %s5019_s18 }
   0xe   : > { %p52_p4 = scmp.eq.s32.totalorder %s5145_s22, 0  ;;  %p379_p7 = scmp.eq.s32.totalorder %s5145_s22, 1 }
   0xf   : > { %s5161_s27 = scalar_select %p36_p1, %s5027_s20, %s38_s25  }
  0x10   : > { %p5163_p5 = por %p46_p2, %p45_p0  ;;  %p5167_p6 = por %p52_p4, %p51_p3 }
  0x11   : > { %6329 = sst [smem:[#allocation11_spill]] %s5161_s27  ;;  %p385_p8 = scmp.eq.s32.totalorder %s4042_s23, 1 }
  0x12   : > { %p4630_p10 = scmp.lt.s32.totalorder %s5031_s21, 2  ;;  %p5174_p11 = por %p379_p7, %p45_p0 }
  0x13   : > { %p5178_p12 = por %p385_p8, %p51_p3  ;;  %s441_s17 = sand.u32 1, %s5027_s20  }
  0x14   : > { %s6332_s30 = scalar_select %p5174_p11, 1, 0 }
  0x15   : > { %s6334_s16 = scalar_select %p5178_p12, 1, 0 }
  0x16   : > { %6333 = sst [smem:[#allocation12_spill]] %s6332_s30  ;;  %s4210_s25 = sshll.u32 %s5031_s21, 8 }
  0x17   : > { %s4045_s26 = sshll.u32 %s441_s17, 4  ;;  %s6335_s0 = sld [smem:[#allocation13_spill]] }
  0x18   : > { %s445_s23 = scalar_lea.vmem [#allocation2], %s4045_s26  ;;  %p5191_p13 = pnand %p4630_p10, %p5163_p5 }
  0x19   : > { %s452_s15 = sshll.u32 %s445_s23, 4  ;;  %s5197_s20 = scalar_lea.sflag [#allocation3], %s441_s17  ;;  %s5195_s15 = int_to_ptr.vmem [resolvable:$true] %s452_s15 }
  0x1a   : > { %p4937_p1 = pneg %p5191_p13 }
  0x1d   : > { %s5187_s18 = scalar_lea.hbm %s6335_s0, %s4210_s25  ;;  %s4940_s25 = scalar_lea.hbm %s6335_s0, 512 }
  0x1e   : > { %s4935_s24 = scalar_lea.hbm %s5187_s18, 256  ;;  %p4941_p4 = scmp.lt.u32.totalorder %s5187_s18, %s6335_s0 }
  0x1f   : > { %p4936_p0 = scmp.ne.s32.totalorder %s5187_s18, %s4935_s24  ;;  %p4942_p5 = scmp.lt.u32.totalorder %s4940_s25, %s4935_s24 }
  0x20   : > { %p4944_p8 = scmp.lt.u32.totalorder %s4935_s24, %s5187_s18 }
  0x21   : > { %p4938_p2 = pnand %p4937_p1, %p4936_p0  ;;  %p4943_p7 = por %p4942_p5, %p4941_p4 }
  0x23   : > { %p4939_p3 = pneg %p4938_p2  ;;  %p4945_p10 = por %p4944_p8, %p4943_p7 }
  0x25   : > { %p4946_p9 = pnand %p4945_p10, %p4939_p3 }
  0x27   : > { %4949 = shalt.err (!%p4946_p9)
}
  0x28   : > { %s4950_s17 = scalar_lea.vmem %s5195_s15, 256  ;;  %s5033_s27 = smov [#allocation2]  }
  0x29   : > { %p4951_p0 = scmp.ne.s32.totalorder %s5195_s15, %s4950_s17  ;;  %s4955_s28 = sshll.u32 %s5033_s27, 4  ;;  %s4956_s28 = int_to_ptr.vmem [resolvable:$false] %s4955_s28 }
  0x2a   : > { %s4957_s26 = scalar_lea.vmem %s4956_s28, 512  ;;  %p4958_p11 = scmp.lt.s32.totalorder %s5195_s15, %s4956_s28 }
  0x2b   : > { %p4953_p2 = pnand %p4951_p0, %p4937_p1  ;;  %p4959_p4 = scmp.lt.s32.totalorder %s4957_s26, %s4950_s17 }
  0x2d   : > { %p4954_p12 = pneg %p4953_p2  ;;  %p4960_p5 = por %p4959_p4, %p4958_p11 }
  0x2f   : > { %p4961_p7 = pnand %p4960_p5, %p4954_p12 }
  0x31   : > { %4964 = shalt.err (!%p4961_p7)
}
  0x32   : > { %s5034_s24 = smov 64   ;;  %s5035_s25 = smov 4  }
  0x33   : > { %4625 = dma.hbm_to_vmem [thread:$0]  (!%p5191_p13), %s5187_s18, 256, %s5195_s15, %s5197_s20, %s5034_s24, %s5034_s24, %s5035_s25  }
  0x34   : > { %p4048_p9 = scmp.ge.s32.totalorder %s5031_s21, 1  ;;  %p476_p1 = scmp.lt.s32.totalorder %s5031_s21, 3 }
  0x36   : > { %p477_p3 = pnand %p4048_p9, %p476_p1 }
  0x37   : > { %s5228_s23 = sand.u32 (!%p477_p3), 1, %s5023_s19  }
  0x38   : > { %480 = sbr.rel (%p477_p3) target bundleno = 2735 (0xaaf), region = 80  ;;  %s6323_s17 = sshll.u32 (!%p477_p3), %s5228_s23, 4 }
  0x39   : > { %s483_s27 = scalar_lea.sflag (!%p477_p3), [#allocation3], %s5228_s23  ;;  %s5234_s28 = scalar_lea.vmem (!%p477_p3), [#allocation2], %s6323_s17 }
  0x3f   : > { %5010 = dma.done.wait (%p5167_p6), %s483_s27, 256  }
  0x40   : > { %5012 = vsyncadd (%p5167_p6), %s483_s27, 4294967040  ;;  %v5036_v0 = vmov 0   ;;  %s4051_s15 = sshll.u32 %s5145_s22, 2  ;;  %v4703_v1 = vld [vmem:[%s6301_s3 + $0x4] ss:$12 sps:$4 sm:$0xff]   ;;  %v562_v4 = vlaneseq  ;;  %v4244_v43 = vld [vmem:[%s5234_s28 + $0x8] sm:$0xff]  }
  0x41   : > { %828 = vmatprep.mubr.bf16.mxu0 %v5036_v0  ;;  %p543_p11 = scmp.lt.s32.totalorder %s4051_s15, 7  ;;  %v4705_v2 = vld [vmem:[%s6301_s3] ss:$12 sps:$4 sm:$0xff]   ;;  %796 = vmatprep.subr.bf16.mxu0 %v4703_v1  ;;  %v4706_v3 = vld [vmem:[%s6301_s3 + $0x1c] ss:$12 sps:$4 sm:$0xff]   ;;  %v4232_v47 = vunpack.c.l.bf16 %v4244_v43  ;;  %v4233_v48 = vunpack.c.h.bf16 %v4244_v43  ;;  %v5037_v56 = vmov 0.0  }
  0x42   : > { %797 = vmatpush1.bf16.msra.mxu0 %v4705_v2  ;;  %v4708_v5 = vld [vmem:[%s6301_s3 + $0x18] ss:$12 sps:$4 sm:$0xff]   ;;  %v4709_v6 = vld [vmem:[%s6301_s3 + $0x34] ss:$12 sps:$4 sm:$0xff]   ;;  %v5259_v7 = vshrl.u32 %v562_v4, 7  ;;  %vm5038_vm1 = vmmov 0  }
  0x43   : > { %798 = vmatprep.subr.bf16.mxu0 %v4706_v3  ;;  %s6351_s15 = smov (!%p543_p11, %s4051_s15), 7  ;;  %v4711_v8 = vld [vmem:[%s6301_s3 + $0x30] ss:$12 sps:$4 sm:$0xff]   ;;  %v4712_v9 = vld [vmem:[%s6301_s3 + $0x4c] ss:$12 sps:$4 sm:$0xff]   ;;  %vm1018_vm2 = vcmask 261120  }
  0x44   : > { %s5271_s18 = scalar_lea.vmem %s6300_s2, %s6351_s15  ;;  %v4227_v10 = vld [vmem:[%s5234_s28] sm:$0xff]   ;;  %v5275_v11 = vsub.s32 0, %v5259_v7  ;;  %vm564_vm0 = vcmp.eq.s32.totalorder %v5259_v7, 0  ;;  %v4718_v25 = vld [vmem:[%s6301_s3 + $0x7c] ss:$12 sps:$4 sm:$0xff]   ;;  %v647_v58 = vsub.s32 1, %v5259_v7  ;;  %s545_s26 = scalar_lea.vmem %s6299_s1, %s6351_s15 }
  0x45   : > { %v4714_v12 = vld [vmem:[%s6301_s3 + $0x48] ss:$12 sps:$4 sm:$0xff]   ;;  %v565_v13 = vld [vmem:[%s5271_s18] sm:$0x1]  ;;  %v566_v14 = vld [vmem:[%s5271_s18 + $0x1] sm:$0x1]  ;;  %v4228_v18 = vunpack.c.l.bf16 %v4227_v10  ;;  %v4229_v19 = vunpack.c.h.bf16 %v4227_v10 }
  0x46   : > { %799 = vmatpush1.bf16.msra.mxu0 %v4708_v5  ;;  %v4715_v15 = vld [vmem:[%s6301_s3 + $0x64] ss:$12 sps:$4 sm:$0xff]   ;;  %v569_v16 = vunpack.c.l.bf16 %v565_v13  ;;  %v570_v17 = vunpack.c.l.bf16 %v566_v14  ;;  %v4727_v20 = vld [vmem:[%s6301_s3 + $0x8] ss:$12 sps:$4 sm:$0xff]   ;;  %v4728_v23 = vld [vmem:[%s6301_s3 + $0x20] ss:$12 sps:$4 sm:$0xff]  }
  0x47   : > { %800 = vmatprep.subr.bf16.mxu0 %v4709_v6  ;;  %v4717_v24 = vld [vmem:[%s6301_s3 + $0x60] ss:$12 sps:$4 sm:$0xff]   ;;  %4386 = vmatprep.subr.bf16.mxu1 %v4727_v20  ;;  %v4720_v28 = vld [vmem:[%s6301_s3 + $0x78] ss:$12 sps:$4 sm:$0xff]   ;;  %v4723_v36 = vld [vmem:[%s6301_s3 + $0x90] ss:$12 sps:$4 sm:$0xff]  }
  0x48   : > { %v578_v21 = vrot.slane %v569_v16, %v5275_v11  ;;  %v582_v22 = vrot.slane %v570_v17, %v5275_v11  ;;  %4387 = vmatpush3.bf16.msra.mxu1 %v4727_v20  ;;  %v4729_v31 = vld [vmem:[%s6301_s3 + $0x38] ss:$12 sps:$4 sm:$0xff]   ;;  %v4721_v32 = vld [vmem:[%s6301_s3 + $0x94] ss:$12 sps:$4 sm:$0xff]   ;;  %v4730_v37 = vld [vmem:[%s6301_s3 + $0x50] ss:$12 sps:$4 sm:$0xff]  }
  0x49   : > { %4388 = vmatprep.subr.bf16.mxu1 %v4728_v23  ;;  %v567_v34 = vld [vmem:[%s5271_s18 + $0x2] sm:$0x1]  ;;  %v568_v35 = vld [vmem:[%s5271_s18 + $0x3] sm:$0x1]  ;;  %v4724_v38 = vld [vmem:[%s6301_s3 + $0xac] ss:$12 sps:$4 sm:$0xff]  }
  0x4a   : > { %801 = vmatpush1.bf16.msra.mxu0 %v4711_v8  ;;  %v591_v26 = vsel %vm564_vm0, %v578_v21, 0.0  ;;  %v592_v27 = vsel %vm564_vm0, %v582_v22, 0.0  ;;  %v571_v39 = vunpack.c.l.bf16 %v567_v34  ;;  %v572_v40 = vunpack.c.l.bf16 %v568_v35  ;;  %v4731_v41 = vld [vmem:[%s6301_s3 + $0x68] ss:$12 sps:$4 sm:$0xff]   ;;  %v4732_v46 = vld [vmem:[%s6301_s3 + $0x80] ss:$12 sps:$4 sm:$0xff]  }
  0x4b   : > { %802 = vmatprep.subr.bf16.mxu0 %v4712_v9  ;;  %v5307_v29 = vadd.f32 %v4228_v18, %v591_v26  ;;  %v5309_v30 = vadd.f32 %v4229_v19, %v592_v27  ;;  %v4726_v42 = vld [vmem:[%s6301_s3 + $0xa8] ss:$12 sps:$4 sm:$0xff]   ;;  %v4733_v51 = vld [vmem:[%s6301_s3 + $0x98] ss:$12 sps:$4 sm:$0xff]   ;;  %v4734_v54 = vld [vmem:[%s6301_s3 + $0xb0] ss:$12 sps:$4 sm:$0xff]  }
  0x4c   : > { %4389 = vmatpush3.bf16.msra.mxu1 %v4728_v23  ;;  %v586_v44 = vrot.slane %v571_v39, %v5275_v11  ;;  %v590_v45 = vrot.slane %v572_v40, %v5275_v11  ;;  %v5368_v57 = vld [vmem:[%s6302_s4] sm:$0x7]  ;;  %s5039_s29 = smov 96   ;;  %s6322_s27 = smov 64   ;;  %vm1951_vm3 = vcmask 1043456   ;;  %vm1755_vm4 = vcmask 64512  }
  0x4d   : > { %v4211_v33 = vpack.c.bf16 %v5309_v30, %v5307_v29  ;;  %4390 = vmatprep.subr.bf16.mxu1 %v4729_v31  ;;  %v644_v59 = vrot.slane %v5368_v57, %v5275_v11  ;;  %v648_v60 = vrot.slane %v5368_v57, %v647_v58  ;;  %s5041_s20 = smov 32   ;;  %vm2737_vm5 = vcmask 523264   ;;  %s6338_s15 = sld [smem:[#allocation12_spill]] }
  0x4e   : > { %803 = vmatpush1.bf16.msra.mxu0 %v4714_v12  ;;  %v593_v49 = vsel %vm564_vm0, %v586_v44, 0.0  ;;  %v594_v50 = vsel %vm564_vm0, %v590_v45, 0.0  ;;  %vm2742_vm6 = vcmask 785408   ;;  %s4225_s24 = sshll.u32 %s5145_s22, 8  ;;  %s6339_s28 = sld [smem:[#allocation14_spill]] }
  0x4f   : > { %804 = vmatprep.subr.bf16.mxu0 %v4715_v15  ;;  %4402 = vmatprep.mubr.bf16.mxu1 %v4211_v33  ;;  %v5349_v52 = vadd.f32 %v4232_v47, %v593_v49  ;;  %v5351_v53 = vadd.f32 %v4233_v48, %v594_v50  ;;  %s5042_s22 = smov [#allocation5]  }
  0x50   : > { %4391 = vmatpush3.bf16.msra.mxu1 %v4729_v31 }
  0x51   : > { %4392 = vmatprep.subr.bf16.mxu1 %v4730_v37  ;;  %v4212_v55 = vpack.c.bf16 %v5351_v53, %v5349_v52 }
  0x52   : > { %805 = vmatpush1.bf16.msra.mxu0 %v4717_v24 }
  0x53   : > { %806 = vmatprep.subr.bf16.mxu0 %v4718_v25  ;;  %p6340_p12 = scmp.ne.s32.totalorder %s6338_s15, 0 }
  0x54   : > { %4393 = vmatpush3.bf16.msra.mxu1 %v4730_v37  ;;  %s6250_s17 = scalar_lea.hbm %s6339_s28, %s4225_s24 }
  0x55   : > { %4394 = vmatprep.subr.bf16.mxu1 %v4731_v41 }
  0x56   : > { %807 = vmatpush1.bf16.msra.mxu0 %v4720_v28  ;;  %v651_v28 = vsub.s32 2, %v5259_v7 }
  0x57   : > { %808 = vmatprep.subr.bf16.mxu0 %v4721_v32 }
  0x58   : > { %4395 = vmatpush3.bf16.msra.mxu1 %v4731_v41 }
  0x59   : > { %4396 = vmatprep.subr.bf16.mxu1 %v4732_v46 }
  0x5a   : > { %809 = vmatpush1.bf16.msra.mxu0 %v4723_v36 }
  0x5b   : > { %810 = vmatprep.subr.bf16.mxu0 %v4724_v38 }
  0x5c   : > { %4397 = vmatpush3.bf16.msra.mxu1 %v4732_v46 }
  0x5d   : > { %4398 = vmatprep.subr.bf16.mxu1 %v4733_v51 }
  0x5e   : > { %811 = vmatpush1.bf16.msra.mxu0 %v4726_v42 }
  0x5f   : > { %4406 = vmatprep.subr.bf16.mxu0 %v5037_v56 }
  0x60   : > { %4399 = vmatpush3.bf16.msra.mxu1 %v4733_v51 }
  0x61   : > { %829 = vmatmul.mubr.bf16.vlgmr.msra.gmra.mrb[0].mxu0 %v4211_v33  ;;  %4400 = vmatprep.subr.bf16.mxu1 %v4734_v54  ;;  %v652_v33 = vrot.slane %v5368_v57, %v651_v28 }
  0x62   : > { %838 = vmatprep.mubr.bf16.mxu0 %v5036_v0 }
  0x64   : > { %4401 = vmatpush3.bf16.msra.mxu1 %v4734_v54 }
  0x65   : > { %4418 = vmatprep.subr.bf16.mxu1 %v5037_v56 }
  0x67   : > { %4403 = vmatmul.mubr.bf16.vlgmr.msra.gmra.mrb[0].mxu1 %v4212_v55 }
  0x68   : > { %4420 = vmatprep.mubr.msk.bf16.mxu1 %vm5038_vm1, %v5037_v56 }
  0x69   : > { %839 = vmatmul.mubr.bf16.gmra.mrb[4].mxu0 %v4212_v55 }
  0x6a   : > { %4408 = vmatprep.mubr.msk.bf16.mxu0 %vm5038_vm1, %v5037_v56 }
 0x134   : > { %v830_v61 = vpop.f32.mrb[0].mxu0 }
 0x135   : > { %v831_v62 = vadd.f32 %v830_v61, %v644_v59  ;;  %v832_v63 = vpop.f32.mrb[1].mxu0 }
 0x136   : > { %v833_v1 = vadd.f32 %v832_v63, %v648_v60  ;;  %v834_v2 = vpop.f32.mrb[2].mxu0 }
 0x137   : > { %v898_v3 = vpack.c.bf16 %v831_v62, %v831_v62  ;;  %v835_v4 = vadd.f32 %v834_v2, %v644_v59  ;;  %v836_v5 = vpop.f32.mrb[3].mxu0 }
 0x138   : > { %v899_v6 = vpack.c.bf16 %v833_v1, %v833_v1  ;;  %v837_v8 = vadd.f32 %v836_v5, %v648_v60 }
 0x139   : > { %914 = vrot.lane.b32.xlu1 %v898_v3, %s5039_s29  ;;  %v901_v10 = vpack.c.bf16 %v835_v4, %v835_v4 }
 0x13a   : > { %942 = vrot.lane.b32.xlu0 %v899_v6, %s5039_s29  ;;  %v1023_v9 = vsel %vm1018_vm2, %v899_v6, 0  ;;  %v902_v12 = vpack.c.bf16 %v837_v8, %v837_v8  ;;  %v4404_v31 = vpop.f32.mrb[0].mxu1 }
 0x13b   : > { %4407 = vmatpush3.bf16.xpose.msra.mxu0 %v1023_v9  ;;  %v883_v32 = vpop.f32.mrb[1].mxu1  ;;  %v892_v40 = vadd.f32 %v4404_v31, %v652_v33 }
 0x13c   : > { %v840_v13 = vpop.f32.mrb[4].mxu0  ;;  %4412 = vmatprep.subr.bf16.mxu0 %v5037_v56  ;;  %v1069_v23 = vsel %vm1018_vm2, %v902_v12, 0  ;;  %v4405_v34 = vpop.f32.mrb[2].mxu1  ;;  %v884_v36 = vadd.f32 %v883_v32, %v652_v33 }
 0x13d   : > { %v842_v14 = vpop.f32.mrb[5].mxu0  ;;  %916 = vrot.lane.b32.xlu1 %v901_v10, %s5039_s29  ;;  %v841_v18 = vadd.f32 %v840_v13, %v644_v59  ;;  %v886_v35 = vpop.f32.mrb[3].mxu1  ;;  %v895_v38 = vadd.f32 %v4405_v34, %v652_v33  ;;  %v5432_v43 = vpack.c.bf16 %v892_v40, %v892_v40 }
 0x13e   : > { %v843_v15 = vadd.f32 %v842_v14, %v648_v60  ;;  %v844_v16 = vpop.f32.mrb[6].mxu0  ;;  %944 = vrot.lane.b32.xlu0 %v902_v12, %s5039_s29  ;;  %v887_v37 = vadd.f32 %v886_v35, %v652_v33  ;;  %v5426_v41 = vpack.c.bf16 %v884_v36, %v884_v36  ;;  %v5519_v35 = vld [vmem:[%s545_s26 + $0x2] ss:$0 sm:$0xff]  ;;  %v5521_v36 = vld [vmem:[%s545_s26 + $0x1] ss:$0 sm:$0xff] }
 0x13f   : > { %v846_v17 = vpop.f32.mrb[7].mxu0  ;;  %v845_v21 = vadd.f32 %v844_v16, %v644_v59  ;;  %v904_v25 = vpack.c.bf16 %v841_v18, %v841_v18  ;;  %v5428_v42 = vpack.c.bf16 %v895_v38, %v895_v38 }
 0x140   : > { %v905_v19 = vpack.c.bf16 %v843_v15, %v843_v15  ;;  %v847_v20 = vadd.f32 %v846_v17, %v648_v60  ;;  %v5423_v39 = vpack.c.bf16 %v887_v37, %v887_v37 }
 0x141   : > { %v907_v26 = vpack.c.bf16 %v845_v21, %v845_v21  ;;  %v1953_v21 = vsel %vm1951_vm3, %v5426_v41, 0 }
 0x142   : > { %v908_v22 = vpack.c.bf16 %v847_v20, %v847_v20  ;;  %946 = vrot.lane.b32.xlu0 %v905_v19, %s5039_s29  ;;  %4409 = vmatmul.mubr.msk.bf16.vlgmr.msra.gmra.mrb[8].mxu0 %vm1018_vm2, %v898_v3  ;;  %v1115_v24 = vsel %vm1018_vm2, %v905_v19, 0 }
 0x143   : > { %4413 = vmatpush3.bf16.xpose.msra.mxu0 %v1069_v23  ;;  %4419 = vmatpush3.bf16.xpose.msra.mxu1 %v1115_v24  ;;  %v1999_v23 = vsel %vm1951_vm3, %v5423_v39, 0 }
 0x144   : > { %948 = vrot.lane.b32.xlu1 %v908_v22, %s5039_s29  ;;  %4414 = vmatprep.mubr.msk.bf16.mxu0 %vm5038_vm1, %v5037_v56  ;;  %v1161_v27 = vsel %vm1018_vm2, %v908_v22, 0 }
 0x145   : > { %4424 = vmatprep.subr.bf16.mxu0 %v5037_v56  ;;  %4430 = vmatprep.subr.bf16.mxu1 %v5037_v56 }
 0x146   : > { %918 = vrot.lane.b32.xlu0 %v904_v25, %s5039_s29 }
 0x148   : > { %920 = vrot.lane.b32.xlu1 %v907_v26, %s5039_s29 }
 0x14a   : > { %4421 = vmatmul.mubr.msk.bf16.vlgmr.msra.gmra.mrb[4].mxu1 %vm1018_vm2, %v904_v25  ;;  %950 = vrot.lane.b32.xlu0 %v899_v6, %s6322_s27 }
 0x14b   : > { %4415 = vmatmul.mubr.msk.bf16.vlgmr.msra.gmra.mrb[12].mxu0 %vm1018_vm2, %v901_v10  ;;  %4432 = vmatprep.mubr.msk.bf16.mxu1 %vm5038_vm1, %v5037_v56 }
 0x14c   : > { %4425 = vmatpush3.bf16.xpose.msra.mxu0 %v1161_v27  ;;  %952 = vrot.lane.b32.xlu1 %v902_v12, %s6322_s27 }
 0x14d   : > { %4426 = vmatprep.mubr.msk.bf16.mxu0 %vm5038_vm1, %v5037_v56  ;;  %4436 = vmatprep.subr.bf16.mxu0 %v5037_v56 }
 0x14e   : > { %922 = vrot.lane.b32.xlu0 %v898_v3, %s6322_s27 }
 0x150   : > { %924 = vrot.lane.b32.xlu1 %v901_v10, %s6322_s27 }
 0x152   : > { %954 = vrot.lane.b32.xlu0 %v905_v19, %s6322_s27 }
 0x153   : > { %4427 = vmatmul.mubr.msk.bf16.vlgmr.msra.gmra.mrb[16].mxu0 %vm1018_vm2, %v907_v26 }
 0x154   : > { %956 = vrot.lane.b32.xlu1 %v908_v22, %s6322_s27  ;;  %4438 = vmatprep.mubr.msk.bf16.mxu0 %vm5038_vm1, %v5037_v56 }
 0x156   : > { %926 = vrot.lane.b32.xlu0 %v904_v25, %s6322_s27 }
 0x158   : > { %928 = vrot.lane.b32.xlu1 %v907_v26, %s6322_s27 }
 0x15a   : > { %958 = vrot.lane.b32.xlu0 %v899_v6, %s5041_s20 }
 0x15c   : > { %960 = vrot.lane.b32.xlu1 %v902_v12, %s5041_s20 }
 0x15e   : > { %930 = vrot.lane.b32.xlu0 %v898_v3, %s5041_s20 }
 0x160   : > { %932 = vrot.lane.b32.xlu1 %v901_v10, %s5041_s20 }
 0x162   : > { %962 = vrot.lane.b32.xlu0 %v905_v19, %s5041_s20 }
 0x164   : > { %964 = vrot.lane.b32.xlu1 %v908_v22, %s5041_s20 }
 0x166   : > { %934 = vrot.lane.b32.xlu0 %v904_v25, %s5041_s20  ;;  %v5512_v25 = vld [vmem:[%s545_s26] ss:$0 sm:$0xff] }
 0x168   : > { %936 = vrot.lane.b32.xlu1 %v907_v26, %s5041_s20 }
 0x16a   : > { %972 = vrot.lane.b32.xlu0 %v5423_v39, %s5039_s29 }
 0x16c   : > { %970 = vrot.lane.b32.xlu1 %v5426_v41, %s5039_s29 }
 0x16e   : > { %976 = vrot.lane.b32.xlu0 %v5428_v42, %s5039_s29 }
 0x170   : > { %974 = vrot.lane.b32.xlu1 %v5432_v43, %s5039_s29 }
 0x174   : > { %978 = vrot.lane.b32.xlu1 %v5426_v41, %s6322_s27 }
 0x1ab   : > { %v915_v44 = vpop.permute.xlu1 %914 }
 0x1ac   : > { %v943_v45 = vpop.permute.xlu0 %942 }
 0x1ad   : > { %v1207_v46 = vsel %vm1018_vm2, %v943_v45, 0 }
 0x1ae   : > { %4431 = vmatpush3.bf16.xpose.msra.mxu1 %v1207_v46 }
 0x1af   : > { %4442 = vmatprep.subr.bf16.mxu1 %v5037_v56  ;;  %v917_v49 = vpop.permute.xlu1 %916 }
 0x1b0   : > { %v945_v47 = vpop.permute.xlu0 %944 }
 0x1b1   : > { %v1253_v48 = vsel %vm1018_vm2, %v945_v47, 0 }
 0x1b2   : > { %4437 = vmatpush3.bf16.xpose.msra.mxu0 %v1253_v48 }
 0x1b3   : > { %4448 = vmatprep.subr.bf16.mxu0 %v5037_v56 }
 0x1b4   : > { %v947_v50 = vpop.permute.xlu0 %946 }
 0x1b5   : > { %v1299_v51 = vsel %vm1018_vm2, %v947_v50, 0  ;;  %4433 = vmatmul.mubr.msk.bf16.vlgmr.msra.gmra.mrb[8].mxu1 %vm1018_vm2, %v915_v44 }
 0x1b6   : > { %4443 = vmatpush3.bf16.xpose.msra.mxu1 %v1299_v51  ;;  %v949_v54 = vpop.permute.xlu1 %948  ;;  %4444 = vmatprep.mubr.msk.bf16.mxu1 %vm5038_vm1, %v5037_v56 }
 0x1b7   : > { %4454 = vmatprep.subr.bf16.mxu1 %v5037_v56  ;;  %v1345_v57 = vsel %vm1018_vm2, %v949_v54, 0 }
 0x1b8   : > { %v919_v55 = vpop.permute.xlu0 %918 }
 0x1b9   : > { %4439 = vmatmul.mubr.msk.bf16.vlgmr.msra.gmra.mrb[20].mxu0 %vm1018_vm2, %v917_v49 }
 0x1ba   : > { %v921_v59 = vpop.permute.xlu1 %920  ;;  %4449 = vmatpush3.bf16.xpose.msra.mxu0 %v1345_v57  ;;  %4450 = vmatprep.mubr.msk.bf16.mxu0 %vm5038_vm1, %v5037_v56 }
 0x1bb   : > { %4460 = vmatprep.subr.bf16.mxu0 %v5037_v56 }
 0x1bc   : > { %v951_v60 = vpop.permute.xlu0 %950 }
 0x1bd   : > { %v1391_v61 = vsel %vm1018_vm2, %v951_v60, 0  ;;  %4445 = vmatmul.mubr.msk.bf16.vlgmr.msra.gmra.mrb[12].mxu1 %vm1018_vm2, %v919_v55  ;;  %v5533_v55 = vld [vmem:[%s545_s26 + $0x3] ss:$0 sm:$0xff]  ;;  %s6337_s26 = sshll.u32 %s5228_s23, 4 }
 0x1be   : > { %4455 = vmatpush3.bf16.xpose.msra.mxu1 %v1391_v61  ;;  %v953_v62 = vpop.permute.xlu1 %952  ;;  %4456 = vmatprep.mubr.msk.bf16.mxu1 %vm5038_vm1, %v5037_v56 }
 0x1bf   : > { %4466 = vmatprep.subr.bf16.mxu1 %v5037_v56  ;;  %v1437_v1 = vsel %vm1018_vm2, %v953_v62, 0 }
 0x1c0   : > { %v923_v63 = vpop.permute.xlu0 %922 }
 0x1c1   : > { %4451 = vmatmul.mubr.msk.bf16.vlgmr.msra.gmra.mrb[24].mxu0 %vm1018_vm2, %v921_v59 }
 0x1c2   : > { %v925_v2 = vpop.permute.xlu1 %924  ;;  %4461 = vmatpush3.bf16.xpose.msra.mxu0 %v1437_v1  ;;  %4462 = vmatprep.mubr.msk.bf16.mxu0 %vm5038_vm1, %v5037_v56 }
 0x1c3   : > { %4472 = vmatprep.subr.bf16.mxu0 %v5037_v56 }
 0x1c4   : > { %v955_v3 = vpop.permute.xlu0 %954 }
 0x1c5   : > { %v1483_v4 = vsel %vm1018_vm2, %v955_v3, 0  ;;  %4457 = vmatmul.mubr.msk.bf16.vlgmr.msra.gmra.mrb[16].mxu1 %vm1018_vm2, %v923_v63 }
 0x1c6   : > { %4467 = vmatpush3.bf16.xpose.msra.mxu1 %v1483_v4  ;;  %v957_v5 = vpop.permute.xlu1 %956  ;;  %4468 = vmatprep.mubr.msk.bf16.mxu1 %vm5038_vm1, %v5037_v56 }
 0x1c7   : > { %4478 = vmatprep.subr.bf16.mxu1 %v5037_v56  ;;  %v1529_v8 = vsel %vm1018_vm2, %v957_v5, 0 }
 0x1c8   : > { %v927_v6 = vpop.permute.xlu0 %926 }
 0x1c9   : > { %4463 = vmatmul.mubr.msk.bf16.vlgmr.msra.gmra.mrb[28].mxu0 %vm1018_vm2, %v925_v2 }
 0x1ca   : > { %v929_v9 = vpop.permute.xlu1 %928  ;;  %4473 = vmatpush3.bf16.xpose.msra.mxu0 %v1529_v8  ;;  %4474 = vmatprep.mubr.msk.bf16.mxu0 %vm5038_vm1, %v5037_v56 }
 0x1cb   : > { %4484 = vmatprep.subr.bf16.mxu0 %v5037_v56 }
 0x1cc   : > { %v959_v10 = vpop.permute.xlu0 %958 }
 0x1cd   : > { %v1575_v12 = vsel %vm1018_vm2, %v959_v10, 0  ;;  %4469 = vmatmul.mubr.msk.bf16.vlgmr.msra.gmra.mrb[20].mxu1 %vm1018_vm2, %v927_v6 }
 0x1ce   : > { %4479 = vmatpush3.bf16.xpose.msra.mxu1 %v1575_v12  ;;  %v961_v13 = vpop.permute.xlu1 %960  ;;  %4480 = vmatprep.mubr.msk.bf16.mxu1 %vm5038_vm1, %v5037_v56 }
 0x1cf   : > { %4490 = vmatprep.subr.bf16.mxu1 %v5037_v56  ;;  %v1621_v15 = vsel %vm1018_vm2, %v961_v13, 0 }
 0x1d0   : > { %v931_v14 = vpop.permute.xlu0 %930 }
 0x1d1   : > { %4475 = vmatmul.mubr.msk.bf16.vlgmr.msra.gmra.mrb[32].mxu0 %vm1018_vm2, %v929_v9 }
 0x1d2   : > { %v933_v16 = vpop.permute.xlu1 %932  ;;  %4485 = vmatpush3.bf16.xpose.msra.mxu0 %v1621_v15  ;;  %4486 = vmatprep.mubr.msk.bf16.mxu0 %vm5038_vm1, %v5037_v56 }
 0x1d3   : > { %4496 = vmatprep.subr.bf16.mxu0 %v5037_v56 }
 0x1d4   : > { %v963_v17 = vpop.permute.xlu0 %962 }
 0x1d5   : > { %v1667_v18 = vsel %vm1018_vm2, %v963_v17, 0  ;;  %4481 = vmatmul.mubr.msk.bf16.vlgmr.msra.gmra.mrb[24].mxu1 %vm1018_vm2, %v931_v14 }
 0x1d6   : > { %4491 = vmatpush3.bf16.xpose.msra.mxu1 %v1667_v18  ;;  %v965_v19 = vpop.permute.xlu1 %964  ;;  %4492 = vmatprep.mubr.msk.bf16.mxu1 %vm5038_vm1, %v5037_v56 }
 0x1d7   : > { %4502 = vmatprep.subr.bf16.mxu1 %v5037_v56  ;;  %v1713_v20 = vsel %vm1018_vm2, %v965_v19, 0 }
 0x1d8   : > { %v935_v22 = vpop.permute.xlu0 %934 }
 0x1d9   : > { %4487 = vmatmul.mubr.msk.bf16.vlgmr.msra.gmra.mrb[36].mxu0 %vm1018_vm2, %v933_v16 }
 0x1da   : > { %4497 = vmatpush3.bf16.xpose.msra.mxu0 %v1713_v20  ;;  %4498 = vmatprep.mubr.msk.bf16.mxu0 %vm5038_vm1, %v5037_v56  ;;  %v937_v24 = vpop.permute.xlu1 %936 }
 0x1db   : > { %4508 = vmatprep.subr.bf16.mxu0 %v5037_v56 }
 0x1dd   : > { %4493 = vmatmul.mubr.msk.bf16.vlgmr.msra.gmra.mrb[28].mxu1 %vm1018_vm2, %v935_v22 }
 0x1de   : > { %4503 = vmatpush3.bf16.msra.mxu1 %v1953_v21  ;;  %4504 = vmatprep.mubr.msk.bf16.mxu1 %vm5038_vm1, %v5037_v56 }
 0x1df   : > { %4514 = vmatprep.subr.bf16.mxu1 %v5037_v56 }
 0x1e1   : > { %4499 = vmatmul.mubr.msk.bf16.vlgmr.msra.gmra.mrb[40].mxu0 %vm1018_vm2, %v937_v24 }
 0x1e2   : > { %4509 = vmatpush3.bf16.msra.mxu0 %v1999_v23  ;;  %4510 = vmatprep.mubr.msk.bf16.mxu0 %vm5038_vm1, %v5037_v56 }
 0x1e3   : > { %4520 = vmatprep.subr.bf16.mxu0 %v5037_v56 }
 0x215   : > { %v1059_v26 = vpop.f32.mrb[8].mxu0 }
 0x216   : > { %v5515_v27 = vadd.f32 %v5512_v25, %v1059_v26  ;;  %v4410_v31 = vpop.f32.mrb[9].mxu0 }
 0x217   : > { %v1062_v32 = vpop.f32.mrb[10].mxu0 }
 0x218   : > { %v4411_v33 = vpop.f32.mrb[11].mxu0  ;;  %v1756_v34 = vsel %vm1755_vm4, %v5515_v27, -inf }
 0x219   : > { %1757 = vmax.xlane.f32.xlu0 %v1756_v34 }
 0x21d   : > { %v1151_v37 = vpop.f32.mrb[4].mxu1 }
 0x21e   : > { %v1105_v38 = vpop.f32.mrb[12].mxu0  ;;  %v5524_v40 = vadd.f32 %v5519_v35, %v1151_v37  ;;  %v4422_v44 = vpop.f32.mrb[5].mxu1 }
 0x21f   : > { %v5527_v45 = vadd.f32 %v5521_v36, %v1105_v38  ;;  %v4416_v46 = vpop.f32.mrb[13].mxu0  ;;  %v1154_v47 = vpop.f32.mrb[6].mxu1 }
 0x220   : > { %v1108_v48 = vpop.f32.mrb[14].mxu0  ;;  %v4423_v49 = vpop.f32.mrb[7].mxu1  ;;  %v1762_v50 = vsel %vm1755_vm4, %v5524_v40, -inf }
 0x221   : > { %v4417_v51 = vpop.f32.mrb[15].mxu0  ;;  %1763 = vmax.xlane.f32.xlu0 %v1762_v50  ;;  %v1759_v54 = vsel %vm1755_vm4, %v5527_v45, -inf }
 0x222   : > { %1760 = vmax.xlane.f32.xlu1 %v1759_v54 }
 0x226   : > { %v1197_v57 = vpop.f32.mrb[16].mxu0 }
 0x227   : > { %v5536_v59 = vadd.f32 %v5533_v55, %v1197_v57  ;;  %v4428_v60 = vpop.f32.mrb[17].mxu0 }
 0x228   : > { %v1200_v61 = vpop.f32.mrb[18].mxu0 }
 0x229   : > { %v4429_v62 = vpop.f32.mrb[19].mxu0  ;;  %v1765_v63 = vsel %vm1755_vm4, %v5536_v59, -inf }
 0x22a   : > { %1766 = vmax.xlane.f32.xlu0 %v1765_v63 }
 0x288   : > { %v1243_v1 = vpop.f32.mrb[8].mxu1 }
 0x289   : > { %v5541_v2 = vadd.f32 %v5512_v25, %v1243_v1  ;;  %v4434_v3 = vpop.f32.mrb[9].mxu1 }
 0x28a   : > { %v1246_v4 = vpop.f32.mrb[10].mxu1 }
 0x28b   : > { %v4435_v5 = vpop.f32.mrb[11].mxu1  ;;  %v1768_v6 = vsel %vm1755_vm4, %v5541_v2, -inf }
 0x28c   : > { %1769 = vmax.xlane.f32.xlu1 %v1768_v6  ;;  %v1289_v8 = vpop.f32.mrb[20].mxu0 }
 0x28d   : > { %v5546_v9 = vadd.f32 %v5521_v36, %v1289_v8  ;;  %v4440_v10 = vpop.f32.mrb[21].mxu0 }
 0x28e   : > { %v1292_v12 = vpop.f32.mrb[22].mxu0 }
 0x28f   : > { %v4441_v13 = vpop.f32.mrb[23].mxu0  ;;  %v1771_v14 = vsel %vm1755_vm4, %v5546_v9, -inf }
 0x290   : > { %v1335_v15 = vpop.f32.mrb[12].mxu1  ;;  %1772 = vmax.xlane.f32.xlu0 %v1771_v14 }
 0x291   : > { %v5551_v16 = vadd.f32 %v5519_v35, %v1335_v15  ;;  %v4446_v17 = vpop.f32.mrb[13].mxu1 }
 0x292   : > { %v1338_v18 = vpop.f32.mrb[14].mxu1 }
 0x293   : > { %v4447_v19 = vpop.f32.mrb[15].mxu1  ;;  %v1774_v20 = vsel %vm1755_vm4, %v5551_v16, -inf }
 0x294   : > { %1775 = vmax.xlane.f32.xlu1 %v1774_v20  ;;  %v1381_v21 = vpop.f32.mrb[24].mxu0 }
 0x295   : > { %v5556_v22 = vadd.f32 %v5533_v55, %v1381_v21  ;;  %v4452_v23 = vpop.f32.mrb[25].mxu0 }
 0x296   : > { %v1384_v24 = vpop.f32.mrb[26].mxu0 }
 0x297   : > { %v4453_v26 = vpop.f32.mrb[27].mxu0  ;;  %v1777_v31 = vsel %vm1755_vm4, %v5556_v22, -inf }
 0x298   : > { %v1427_v32 = vpop.f32.mrb[16].mxu1  ;;  %1778 = vmax.xlane.f32.xlu0 %v1777_v31 }
 0x299   : > { %v5561_v33 = vadd.f32 %v5512_v25, %v1427_v32  ;;  %v4458_v34 = vpop.f32.mrb[17].mxu1 }
 0x29a   : > { %v1430_v37 = vpop.f32.mrb[18].mxu1 }
 0x29b   : > { %v4459_v38 = vpop.f32.mrb[19].mxu1  ;;  %v1780_v44 = vsel %vm1755_vm4, %v5561_v33, -inf }
 0x29c   : > { %1781 = vmax.xlane.f32.xlu1 %v1780_v44  ;;  %v1473_v46 = vpop.f32.mrb[28].mxu0 }
 0x29d   : > { %v5566_v47 = vadd.f32 %v5521_v36, %v1473_v46  ;;  %v4464_v48 = vpop.f32.mrb[29].mxu0 }
 0x29e   : > { %v1476_v49 = vpop.f32.mrb[30].mxu0 }
 0x29f   : > { %v4465_v50 = vpop.f32.mrb[31].mxu0  ;;  %v1783_v51 = vsel %vm1755_vm4, %v5566_v47, -inf }
 0x2a0   : > { %v1519_v54 = vpop.f32.mrb[20].mxu1  ;;  %1784 = vmax.xlane.f32.xlu0 %v1783_v51  ;;  %v5602_v50 = vpop.permute.xlu0 %972 }
 0x2a1   : > { %v5571_v57 = vadd.f32 %v5519_v35, %v1519_v54  ;;  %v4470_v60 = vpop.f32.mrb[21].mxu1 }
 0x2a2   : > { %v1522_v61 = vpop.f32.mrb[22].mxu1 }
 0x2a3   : > { %v4471_v62 = vpop.f32.mrb[23].mxu1  ;;  %v1786_v63 = vsel %vm1755_vm4, %v5571_v57, -inf }
 0x2a4   : > { %1787 = vmax.xlane.f32.xlu1 %v1786_v63  ;;  %v1565_v1 = vpop.f32.mrb[32].mxu0 }
 0x2a5   : > { %v5576_v3 = vadd.f32 %v5533_v55, %v1565_v1  ;;  %v4476_v4 = vpop.f32.mrb[33].mxu0 }
 0x2a6   : > { %v1568_v5 = vpop.f32.mrb[34].mxu0 }
 0x2a7   : > { %v4477_v6 = vpop.f32.mrb[35].mxu0  ;;  %v1789_v8 = vsel %vm1755_vm4, %v5576_v3, -inf }
 0x2a8   : > { %v1611_v10 = vpop.f32.mrb[24].mxu1  ;;  %1790 = vmax.xlane.f32.xlu0 %v1789_v8 }
 0x2a9   : > { %v5581_v12 = vadd.f32 %v5512_v25, %v1611_v10  ;;  %v4482_v13 = vpop.f32.mrb[25].mxu1 }
 0x2aa   : > { %v1614_v14 = vpop.f32.mrb[26].mxu1 }
 0x2ab   : > { %v4483_v15 = vpop.f32.mrb[27].mxu1  ;;  %v1792_v17 = vsel %vm1755_vm4, %v5581_v12, -inf }
 0x2ac   : > { %1793 = vmax.xlane.f32.xlu1 %v1792_v17  ;;  %v1657_v18 = vpop.f32.mrb[36].mxu0 }
 0x2ad   : > { %v5586_v19 = vadd.f32 %v5521_v36, %v1657_v18  ;;  %v4488_v20 = vpop.f32.mrb[37].mxu0 }
 0x2ae   : > { %v1660_v21 = vpop.f32.mrb[38].mxu0 }
 0x2af   : > { %v4489_v23 = vpop.f32.mrb[39].mxu0  ;;  %v1795_v24 = vsel %vm1755_vm4, %v5586_v19, -inf }
 0x2b0   : > { %v1703_v26 = vpop.f32.mrb[28].mxu1  ;;  %1796 = vmax.xlane.f32.xlu0 %v1795_v24 }
 0x2b1   : > { %v5591_v25 = vadd.f32 %v5519_v35, %v1703_v26  ;;  %v4494_v31 = vpop.f32.mrb[29].mxu1  ;;  %v5600_v35 = vpop.permute.xlu1 %970 }
 0x2b2   : > { %v1706_v32 = vpop.f32.mrb[30].mxu1 }
 0x2b3   : > { %v4495_v34 = vpop.f32.mrb[31].mxu1  ;;  %v1798_v37 = vsel %vm1755_vm4, %v5591_v25, -inf }
 0x2b4   : > { %1799 = vmax.xlane.f32.xlu1 %v1798_v37  ;;  %v1749_v36 = vpop.f32.mrb[40].mxu0 }
 0x2b5   : > { %v5596_v38 = vadd.f32 %v5533_v55, %v1749_v36  ;;  %v4500_v44 = vpop.f32.mrb[41].mxu0  ;;  %v5606_v51 = vpop.permute.xlu1 %974 }
 0x2b6   : > { %v1752_v46 = vpop.f32.mrb[42].mxu0  ;;  %v5610_v55 = vpop.permute.xlu0 %976 }
 0x2b7   : > { %v4501_v48 = vpop.f32.mrb[43].mxu0  ;;  %v1801_v49 = vsel %vm1755_vm4, %v5596_v38, -inf }
 0x2b8   : > { %1802 = vmax.xlane.f32.xlu0 %v1801_v49 }
 0x2b9   : > { %v5612_v54 = vpop.permute.xlu1 %978 }
 0x2ba   : > { %v1758_v60 = vpop.xlane.xlu0 %1757 }
 0x2bb   : > { %v1804_v63 = vsub.f32 %v5515_v27, %v1758_v60 }
 0x2bd   : > { %v1761_v62 = vpop.xlane.xlu1 %1760  ;;  %v1820_v5 = vmul.f32 1.442695, %v1804_v63 }
 0x2be   : > { %v1764_v61 = vpop.xlane.xlu0 %1763  ;;  %v1805_v1 = vsub.f32 %v5527_v45, %v1761_v62 }
 0x2bf   : > { %v1806_v6 = vsub.f32 %v5524_v40, %v1764_v61  ;;  %4823 = vpow2.f32 %v1820_v5 }
 0x2c0   : > { %v1822_v8 = vmul.f32 1.442695, %v1805_v1 }
 0x2c1   : > { %v1824_v13 = vmul.f32 1.442695, %v1806_v6 }
 0x2c2   : > { %v1767_v4 = vpop.xlane.xlu0 %1766  ;;  %4825 = vpow2.f32 %v1822_v8 }
 0x2c3   : > { %v1807_v10 = vsub.f32 %v5536_v59, %v1767_v4  ;;  %4827 = vpow2.f32 %v1824_v13 }
 0x2c5   : > { %982 = vrot.lane.b32.xlu1 %v5432_v43, %s6322_s27  ;;  %v1826_v14 = vmul.f32 1.442695, %v1807_v10 }
 0x2c7   : > { %4829 = vpow2.f32 %v1826_v14 }
 0x2c9   : > { %984 = vrot.lane.b32.xlu1 %v5428_v42, %s6322_s27  ;;  %v5620_v15 = vpop.eup %4823 }
 0x2ca   : > { %v1852_v45 = vsel %vm1755_vm4, %v5620_v15, 0.0 }
 0x2cc   : > { %v5622_v17 = vpop.eup %4825 }
 0x2cd   : > { %v5624_v27 = vpop.eup %4827  ;;  %v1855_v40 = vsel %vm1755_vm4, %v5622_v17, 0.0 }
 0x2ce   : > { %980 = vrot.lane.b32.xlu0 %v5423_v39, %s6322_s27  ;;  %v1858_v59 = vsel %vm1755_vm4, %v5624_v27, 0.0 }
 0x2d1   : > { %v5630_v18 = vpop.eup %4829 }
 0x2d2   : > { %v1861_v20 = vsel %vm1755_vm4, %v5630_v18, 0.0 }
 0x2ed   : > { %1853 = vadd.xlane.f32.xlu1 %v1852_v45  ;;  %1856 = vadd.xlane.f32.xlu0 %v1855_v40 }
 0x2f1   : > { %1859 = vadd.xlane.f32.xlu1 %v1858_v59  ;;  %1862 = vadd.xlane.f32.xlu0 %v1861_v20 }
 0x319   : > { %v1770_v21 = vpop.xlane.xlu1 %1769 }
 0x31a   : > { %v1808_v23 = vsub.f32 %v5541_v2, %v1770_v21 }
 0x31c   : > { %v1828_v24 = vmul.f32 1.442695, %v1808_v23 }
 0x31d   : > { %v1773_v26 = vpop.xlane.xlu0 %1772 }
 0x31e   : > { %4831 = vpow2.f32 %v1828_v24  ;;  %v1809_v31 = vsub.f32 %v5546_v9, %v1773_v26 }
 0x320   : > { %v1830_v32 = vmul.f32 1.442695, %v1809_v31 }
 0x321   : > { %v1776_v34 = vpop.xlane.xlu1 %1775 }
 0x322   : > { %4833 = vpow2.f32 %v1830_v32  ;;  %v1810_v37 = vsub.f32 %v5551_v16, %v1776_v34 }
 0x324   : > { %v1832_v36 = vmul.f32 1.442695, %v1810_v37 }
 0x325   : > { %v1779_v44 = vpop.xlane.xlu0 %1778 }
 0x326   : > { %4835 = vpow2.f32 %v1832_v36  ;;  %v1811_v46 = vsub.f32 %v5556_v22, %v1779_v44 }
 0x328   : > { %v5640_v48 = vpop.eup %4831  ;;  %v1834_v49 = vmul.f32 1.442695, %v1811_v46 }
 0x329   : > { %v1782_v60 = vpop.xlane.xlu1 %1781  ;;  %v1864_v2 = vsel %vm1755_vm4, %v5640_v48, 0.0 }
 0x32a   : > { %4837 = vpow2.f32 %v1834_v49  ;;  %v1812_v9 = vsub.f32 %v5561_v33, %v1782_v60  ;;  %1865 = vadd.xlane.f32.xlu1 %v1864_v2 }
 0x32c   : > { %v5645_v61 = vpop.eup %4833  ;;  %v1836_v62 = vmul.f32 1.442695, %v1812_v9 }
 0x32d   : > { %v1785_v16 = vpop.xlane.xlu0 %1784  ;;  %v1867_v63 = vsel %vm1755_vm4, %v5645_v61, 0.0 }
 0x32e   : > { %4839 = vpow2.f32 %v1836_v62  ;;  %v1813_v22 = vsub.f32 %v5566_v47, %v1785_v16  ;;  %1868 = vadd.xlane.f32.xlu0 %v1867_v63 }
 0x330   : > { %v5650_v1 = vpop.eup %4835  ;;  %v1838_v4 = vmul.f32 1.442695, %v1813_v22 }
 0x331   : > { %v1788_v5 = vpop.xlane.xlu1 %1787  ;;  %v1870_v6 = vsel %vm1755_vm4, %v5650_v1, 0.0 }
 0x332   : > { %4841 = vpow2.f32 %v1838_v4  ;;  %v1814_v33 = vsub.f32 %v5571_v57, %v1788_v5  ;;  %1871 = vadd.xlane.f32.xlu1 %v1870_v6 }
 0x334   : > { %v5655_v8 = vpop.eup %4837  ;;  %v1840_v10 = vmul.f32 1.442695, %v1814_v33 }
 0x335   : > { %v1791_v13 = vpop.xlane.xlu0 %1790  ;;  %v1873_v14 = vsel %vm1755_vm4, %v5655_v8, 0.0 }
 0x336   : > { %4843 = vpow2.f32 %v1840_v10  ;;  %v1815_v47 = vsub.f32 %v5576_v3, %v1791_v13  ;;  %1874 = vadd.xlane.f32.xlu0 %v1873_v14 }
 0x338   : > { %v5660_v45 = vpop.eup %4839  ;;  %v1842_v40 = vmul.f32 1.442695, %v1815_v47 }
 0x339   : > { %v1876_v59 = vsel %vm1755_vm4, %v5660_v45, 0.0  ;;  %v1794_v26 = vpop.xlane.xlu1 %1793 }
 0x33a   : > { %4845 = vpow2.f32 %v1842_v40  ;;  %1877 = vadd.xlane.f32.xlu1 %v1876_v59  ;;  %v1816_v31 = vsub.f32 %v5581_v12, %v1794_v26  ;;  %v2045_v26 = vsel %vm1951_vm3, %v5432_v43, 0 }
 0x33c   : > { %v5664_v57 = vpop.eup %4841  ;;  %v1844_v36 = vmul.f32 1.442695, %v1816_v31  ;;  %v2091_v31 = vsel %vm1951_vm3, %v5428_v42, 0 }
 0x33d   : > { %v1879_v20 = vsel %vm1755_vm4, %v5664_v57, 0.0  ;;  %v1797_v32 = vpop.xlane.xlu0 %1796 }
 0x33e   : > { %1880 = vadd.xlane.f32.xlu0 %v1879_v20  ;;  %v1817_v37 = vsub.f32 %v5586_v19, %v1797_v32  ;;  %4847 = vpow2.f32 %v1844_v36 }
 0x340   : > { %v5668_v21 = vpop.eup %4843  ;;  %v1846_v49 = vmul.f32 1.442695, %v1817_v37 }
 0x341   : > { %v1882_v3 = vsel %vm1755_vm4, %v5668_v21, 0.0  ;;  %v1800_v34 = vpop.xlane.xlu1 %1799 }
 0x342   : > { %1883 = vadd.xlane.f32.xlu1 %v1882_v3  ;;  %v1818_v44 = vsub.f32 %v5591_v25, %v1800_v34  ;;  %4849 = vpow2.f32 %v1846_v49  ;;  %v2229_v49 = vsel %vm1951_vm3, %v5606_v51, 0 }
 0x344   : > { %v5672_v23 = vpop.eup %4845  ;;  %v1848_v60 = vmul.f32 1.442695, %v1818_v44 }
 0x345   : > { %v1885_v24 = vsel %vm1755_vm4, %v5672_v23, 0.0  ;;  %v1803_v46 = vpop.xlane.xlu0 %1802 }
 0x346   : > { %1886 = vadd.xlane.f32.xlu0 %v1885_v24  ;;  %v1819_v2 = vsub.f32 %v5596_v38, %v1803_v46  ;;  %4851 = vpow2.f32 %v1848_v60 }
 0x348   : > { %v5686_v12 = vpop.eup %4847 }
 0x349   : > { %v5692_v62 = vpop.permute.xlu0 %980  ;;  %v1888_v25 = vsel %vm1755_vm4, %v5686_v12, 0.0 }
 0x34c   : > { %v5688_v9 = vpop.eup %4849 }
 0x34d   : > { %v1891_v4 = vsel %vm1755_vm4, %v5688_v9, 0.0 }
 0x350   : > { %v5696_v16 = vpop.eup %4851 }
 0x351   : > { %v1894_v22 = vsel %vm1755_vm4, %v5696_v16, 0.0 }
 0x353   : > { %988 = vrot.lane.b32.xlu1 %v5423_v39, %s5041_s20  ;;  %v1850_v39 = vmul.f32 1.442695, %v1819_v2 }
 0x355   : > { %4853 = vpow2.f32 %v1850_v39 }
 0x35c   : > { %986 = vrot.lane.b32.xlu0 %v5426_v41, %s5041_s20  ;;  %v5684_v41 = vpop.permute.xlu1 %982 }
 0x35f   : > { %v5702_v5 = vpop.eup %4853 }
 0x360   : > { %v5690_v19 = vpop.permute.xlu1 %984  ;;  %v1897_v10 = vsel %vm1755_vm4, %v5702_v5, 0.0 }
 0x377   : > { %1889 = vadd.xlane.f32.xlu1 %v1888_v25  ;;  %v2275_v25 = vsel %vm1951_vm3, %v5610_v55, 0 }
 0x37a   : > { %v1854_v38 = vpop.xlane.xlu1 %1853  ;;  %v1857_v63 = vpop.xlane.xlu0 %1856 }
 0x37b   : > { %4855 = vrcp.f32 %v1854_v38  ;;  %1895 = vadd.xlane.f32.xlu1 %v1894_v22  ;;  %1892 = vadd.xlane.f32.xlu0 %v1891_v4  ;;  %v2321_v22 = vsel %vm1951_vm3, %v5612_v54, 0 }
 0x37c   : > { %4857 = vrcp.f32 %v1857_v63 }
 0x37e   : > { %v1860_v6 = vpop.xlane.xlu1 %1859  ;;  %v1863_v33 = vpop.xlane.xlu0 %1862 }
 0x37f   : > { %4859 = vrcp.f32 %v1860_v6  ;;  %1898 = vadd.xlane.f32.xlu0 %v1897_v10 }
 0x380   : > { %4861 = vrcp.f32 %v1863_v33  ;;  %v2367_v33 = vsel %vm1951_vm3, %v5692_v62, 0 }
 0x385   : > { %v4856_v13 = vpop.eup %4855 }
 0x386   : > { %v4858_v14 = vpop.eup %4857  ;;  %v1916_v47 = vmul.f32 %v4856_v13, %v5620_v15 }
 0x387   : > { %v1917_v40 = vmul.f32 %v4858_v14, %v5622_v17  ;;  %v2413_v14 = vsel %vm1951_vm3, %v5684_v41, 0 }
 0x388   : > { %v1932_v59 = vpack.c.bf16 %v1916_v47, %v1916_v47 }
 0x389   : > { %v4860_v20 = vpop.eup %4859  ;;  %v1933_v3 = vpack.c.bf16 %v1917_v40, %v1917_v40  ;;  %v2459_v40 = vsel %vm1951_vm3, %v5690_v19, 0 }
 0x38a   : > { %v4862_v24 = vpop.eup %4861  ;;  %4505 = vmatmul.mubr.msk.bf16.vlgmr.msra.gmra.mrb[32].mxu1 %vm1755_vm4, %v1932_v59  ;;  %v1918_v32 = vmul.f32 %v4860_v20, %v5624_v27  ;;  %v2137_v27 = vsel %vm1951_vm3, %v5600_v35, 0 }
 0x38b   : > { %4511 = vmatmul.mubr.msk.bf16.vlgmr.msra.gmra.mrb[44].mxu0 %vm1755_vm4, %v1933_v3  ;;  %4515 = vmatpush3.bf16.msra.mxu1 %v2045_v26  ;;  %v1919_v15 = vmul.f32 %v4862_v24, %v5630_v18 }
 0x38c   : > { %4521 = vmatpush3.bf16.msra.mxu0 %v2091_v31  ;;  %992 = vrot.lane.b32.xlu1 %v5428_v42, %s5041_s20  ;;  %v1934_v17 = vpack.c.bf16 %v1918_v32, %v1918_v32  ;;  %v2183_v42 = vsel %vm1951_vm3, %v5602_v50, 0 }
 0x38d   : > { %4516 = vmatprep.mubr.msk.bf16.mxu1 %vm5038_vm1, %v5037_v56  ;;  %4522 = vmatprep.mubr.msk.bf16.mxu0 %vm5038_vm1, %v5037_v56  ;;  %v1935_v34 = vpack.c.bf16 %v1919_v15, %v1919_v15 }
 0x38e   : > { %4526 = vmatprep.subr.bf16.mxu1 %v5037_v56  ;;  %4532 = vmatprep.subr.bf16.mxu0 %v5037_v56 }
 0x392   : > { %4517 = vmatmul.mubr.msk.bf16.vlgmr.msra.gmra.mrb[36].mxu1 %vm1755_vm4, %v1934_v17 }
 0x393   : > { %4523 = vmatmul.mubr.msk.bf16.vlgmr.msra.gmra.mrb[48].mxu0 %vm1755_vm4, %v1935_v34  ;;  %4527 = vmatpush3.bf16.msra.mxu1 %v2137_v27 }
 0x394   : > { %4533 = vmatpush3.bf16.msra.mxu0 %v2183_v42  ;;  %4528 = vmatprep.mubr.msk.bf16.mxu1 %vm5038_vm1, %v5037_v56 }
 0x395   : > { %990 = vrot.lane.b32.xlu0 %v5432_v43, %s5041_s20  ;;  %4538 = vmatprep.subr.bf16.mxu1 %v5037_v56 }
 0x396   : > { %4534 = vmatprep.mubr.msk.bf16.mxu0 %vm5038_vm1, %v5037_v56  ;;  %4544 = vmatprep.subr.bf16.mxu0 %v5037_v56 }
 0x3b7   : > { %v1866_v35 = vpop.xlane.xlu1 %1865 }
 0x3b8   : > { %4863 = vrcp.f32 %v1866_v35 }
 0x3bb   : > { %v1869_v50 = vpop.xlane.xlu0 %1868 }
 0x3bc   : > { %4865 = vrcp.f32 %v1869_v50 }
 0x3bf   : > { %v1872_v18 = vpop.xlane.xlu1 %1871 }
 0x3c0   : > { %4867 = vrcp.f32 %v1872_v18 }
 0x3c2   : > { %v4864_v37 = vpop.eup %4863 }
 0x3c3   : > { %v1920_v36 = vmul.f32 %v4864_v37, %v5640_v48  ;;  %v1875_v44 = vpop.xlane.xlu0 %1874 }
 0x3c4   : > { %4869 = vrcp.f32 %v1875_v44 }
 0x3c5   : > { %v1936_v46 = vpack.c.bf16 %v1920_v36, %v1920_v36 }
 0x3c6   : > { %v4866_v43 = vpop.eup %4865 }
 0x3c7   : > { %v1921_v60 = vmul.f32 %v4866_v43, %v5645_v61  ;;  %4529 = vmatmul.mubr.msk.bf16.vlgmr.msra.gmra.mrb[40].mxu1 %vm1755_vm4, %v1936_v46  ;;  %v1878_v2 = vpop.xlane.xlu1 %1877 }
 0x3c8   : > { %4539 = vmatpush3.bf16.msra.mxu1 %v2229_v49  ;;  %4871 = vrcp.f32 %v1878_v2  ;;  %4540 = vmatprep.mubr.msk.bf16.mxu1 %vm5038_vm1, %v5037_v56 }
 0x3c9   : > { %v1937_v39 = vpack.c.bf16 %v1921_v60, %v1921_v60  ;;  %4550 = vmatprep.subr.bf16.mxu1 %v5037_v56 }
 0x3ca   : > { %v4868_v48 = vpop.eup %4867 }
 0x3cb   : > { %v1922_v38 = vmul.f32 %v4868_v48, %v5650_v1  ;;  %4535 = vmatmul.mubr.msk.bf16.vlgmr.msra.gmra.mrb[52].mxu0 %vm1755_vm4, %v1937_v39  ;;  %v1881_v51 = vpop.xlane.xlu0 %1880 }
 0x3cc   : > { %4545 = vmatpush3.bf16.msra.mxu0 %v2275_v25  ;;  %4873 = vrcp.f32 %v1881_v51  ;;  %4546 = vmatprep.mubr.msk.bf16.mxu0 %vm5038_vm1, %v5037_v56 }
 0x3cd   : > { %v1938_v61 = vpack.c.bf16 %v1922_v38, %v1922_v38  ;;  %4556 = vmatprep.subr.bf16.mxu0 %v5037_v56 }
 0x3ce   : > { %v4870_v63 = vpop.eup %4869 }
 0x3cf   : > { %v1923_v4 = vmul.f32 %v4870_v63, %v5655_v8  ;;  %4541 = vmatmul.mubr.msk.bf16.vlgmr.msra.gmra.mrb[44].mxu1 %vm1755_vm4, %v1938_v61  ;;  %v1884_v55 = vpop.xlane.xlu1 %1883 }
 0x3d0   : > { %4551 = vmatpush3.bf16.msra.mxu1 %v2321_v22  ;;  %4875 = vrcp.f32 %v1884_v55  ;;  %4552 = vmatprep.mubr.msk.bf16.mxu1 %vm5038_vm1, %v5037_v56 }
 0x3d1   : > { %v1939_v1 = vpack.c.bf16 %v1923_v4, %v1923_v4  ;;  %4562 = vmatprep.subr.bf16.mxu1 %v5037_v56 }
 0x3d2   : > { %v4872_v6 = vpop.eup %4871 }
 0x3d3   : > { %v1924_v10 = vmul.f32 %v4872_v6, %v5660_v45  ;;  %4547 = vmatmul.mubr.msk.bf16.vlgmr.msra.gmra.mrb[56].mxu0 %vm1755_vm4, %v1939_v1  ;;  %v1887_v54 = vpop.xlane.xlu0 %1886  ;;  %v989_v19 = vpop.permute.xlu1 %988 }
 0x3d4   : > { %4557 = vmatpush3.bf16.msra.mxu0 %v2367_v33  ;;  %4877 = vrcp.f32 %v1887_v54  ;;  %4558 = vmatprep.mubr.msk.bf16.mxu0 %vm5038_vm1, %v5037_v56  ;;  %v2551_v26 = vsel %vm1951_vm3, %v989_v19, 0 }
 0x3d5   : > { %v1940_v8 = vpack.c.bf16 %v1924_v10, %v1924_v10  ;;  %4568 = vmatprep.subr.bf16.mxu0 %v5037_v56 }
 0x3d6   : > { %v4874_v13 = vpop.eup %4873 }
 0x3d7   : > { %v1925_v47 = vmul.f32 %v4874_v13, %v5664_v57  ;;  %4553 = vmatmul.mubr.msk.bf16.vlgmr.msra.gmra.mrb[48].mxu1 %vm1755_vm4, %v1940_v8  ;;  %v987_v41 = vpop.permute.xlu0 %986 }
 0x3d8   : > { %4563 = vmatpush3.bf16.msra.mxu1 %v2413_v14  ;;  %4564 = vmatprep.mubr.msk.bf16.mxu1 %vm5038_vm1, %v5037_v56  ;;  %v2505_v24 = vsel %vm1951_vm3, %v987_v41, 0 }
 0x3d9   : > { %v1941_v45 = vpack.c.bf16 %v1925_v47, %v1925_v47  ;;  %4574 = vmatprep.subr.bf16.mxu1 %v5037_v56 }
 0x3da   : > { %v4876_v62 = vpop.eup %4875 }
 0x3db   : > { %v1926_v59 = vmul.f32 %v4876_v62, %v5668_v21  ;;  %4559 = vmatmul.mubr.msk.bf16.vlgmr.msra.gmra.mrb[60].mxu0 %vm1755_vm4, %v1941_v45 }
 0x3dc   : > { %4569 = vmatpush3.bf16.msra.mxu0 %v2459_v40  ;;  %4570 = vmatprep.mubr.msk.bf16.mxu0 %vm5038_vm1, %v5037_v56 }
 0x3dd   : > { %v1942_v57 = vpack.c.bf16 %v1926_v59, %v1926_v59  ;;  %4580 = vmatprep.subr.bf16.mxu0 %v5037_v56 }
 0x3de   : > { %v4878_v20 = vpop.eup %4877 }
 0x3df   : > { %v1927_v3 = vmul.f32 %v4878_v20, %v5672_v23  ;;  %4565 = vmatmul.mubr.msk.bf16.vlgmr.msra.gmra.mrb[52].mxu1 %vm1755_vm4, %v1942_v57 }
 0x3e0   : > { %4575 = vmatpush3.bf16.msra.mxu1 %v2505_v24  ;;  %4576 = vmatprep.mubr.msk.bf16.mxu1 %vm5038_vm1, %v5037_v56 }
 0x3e1   : > { %v1943_v21 = vpack.c.bf16 %v1927_v3, %v1927_v3  ;;  %4586 = vmatprep.subr.bf16.mxu1 %v5037_v56 }
 0x3e3   : > { %4571 = vmatmul.mubr.msk.bf16.vlgmr.msra.gmra.mrb[64].mxu0 %vm1755_vm4, %v1943_v21 }
 0x3e4   : > { %4581 = vmatpush3.bf16.msra.mxu0 %v2551_v26  ;;  %4582 = vmatprep.mubr.msk.bf16.mxu0 %vm5038_vm1, %v5037_v56 }
 0x3e5   : > { %4592 = vmatprep.subr.bf16.mxu0 %v5037_v56 }
 0x404   : > { %v1890_v23 = vpop.xlane.xlu1 %1889 }
 0x405   : > { %4879 = vrcp.f32 %v1890_v23 }
 0x408   : > { %v1896_v31 = vpop.xlane.xlu1 %1895  ;;  %v1893_v32 = vpop.xlane.xlu0 %1892 }
 0x409   : > { %4881 = vrcp.f32 %v1896_v31 }
 0x40a   : > { %4883 = vrcp.f32 %v1893_v32 }
 0x40c   : > { %v1899_v15 = vpop.xlane.xlu0 %1898  ;;  %v993_v44 = vpop.permute.xlu1 %992 }
 0x40d   : > { %4885 = vrcp.f32 %v1899_v15 }
 0x40f   : > { %v4880_v17 = vpop.eup %4879 }
 0x410   : > { %v1928_v34 = vmul.f32 %v4880_v17, %v5686_v12  ;;  %v991_v27 = vpop.permute.xlu0 %990  ;;  %v2643_v12 = vsel %vm1951_vm3, %v993_v44, 0  ;;  %v4735_v17 = vld [vmem:[%s6303_s5] sm:$0xff]  }
 0x411   : > { %v2597_v18 = vsel %vm1951_vm3, %v991_v27, 0 }
 0x412   : > { %v1944_v42 = vpack.c.bf16 %v1928_v34, %v1928_v34  ;;  %v4736_v34 = vld [vmem:[%s6303_s5 + $0x8] sm:$0xff]  }
 0x413   : > { %v4882_v35 = vpop.eup %4881 }
 0x414   : > { %v4884_v50 = vpop.eup %4883  ;;  %4577 = vmatmul.mubr.msk.bf16.vlgmr.msra.gmra.mrb[56].mxu1 %vm1755_vm4, %v1944_v42  ;;  %v1930_v36 = vmul.f32 %v4882_v35, %v5696_v16 }
 0x415   : > { %v1929_v37 = vmul.f32 %v4884_v50, %v5688_v9  ;;  %4587 = vmatpush3.bf16.msra.mxu1 %v2597_v18  ;;  %4588 = vmatprep.mubr.msk.bf16.mxu1 %vm5038_vm1, %v5037_v56 }
 0x416   : > { %v1946_v49 = vpack.c.bf16 %v1930_v36, %v1930_v36  ;;  %4598 = vmatprep.subr.bf16.mxu1 %v4735_v17 }
 0x417   : > { %v1945_v46 = vpack.c.bf16 %v1929_v37, %v1929_v37  ;;  %v4886_v43 = vpop.eup %4885  ;;  %v4737_v37 = vld [vmem:[%s6303_s5 + $0x10] sm:$0xff]  }
 0x418   : > { %v1931_v9 = vmul.f32 %v4886_v43, %v5702_v5 }
 0x419   : > { %4583 = vmatmul.mubr.msk.bf16.vlgmr.msra.gmra.mrb[68].mxu0 %vm1755_vm4, %v1945_v46 }
 0x41a   : > { %4593 = vmatpush3.bf16.msra.mxu0 %v2643_v12  ;;  %4594 = vmatprep.mubr.msk.bf16.mxu0 %vm5038_vm1, %v5037_v56  ;;  %v1947_v60 = vpack.c.bf16 %v1931_v9, %v1931_v9  ;;  %v4738_v12 = vld [vmem:[%s6303_s5 + $0x18] sm:$0xff]  }
 0x41c   : > { %4589 = vmatmul.mubr.msk.bf16.vlgmr.msra.gmra.mrb[60].mxu1 %vm1755_vm4, %v1946_v49 }
 0x41d   : > { %4599 = vmatpush3.bf16.msra.mxu1 %v4735_v17 }
 0x41e   : > { %4600 = vmatprep.subr.bf16.mxu1 %v4736_v34 }
 0x421   : > { %4595 = vmatmul.mubr.msk.bf16.vlgmr.msra.gmra.mrb[72].mxu0 %vm1755_vm4, %v1947_v60  ;;  %4601 = vmatpush3.bf16.msra.mxu1 %v4736_v34 }
 0x422   : > { %3216 = vmatprep.mubr.bf16.mxu0 %v5036_v0  ;;  %4602 = vmatprep.subr.bf16.mxu1 %v4737_v37 }
 0x425   : > { %4603 = vmatpush3.bf16.msra.mxu1 %v4737_v37 }
 0x426   : > { %4604 = vmatprep.subr.bf16.mxu1 %v4738_v12 }
 0x429   : > { %4605 = vmatpush3.bf16.msra.mxu1 %v4738_v12 }
 0x45d   : > { %v5807_v16 = vpop.f32.mrb[32].mxu1 }
 0x45e   : > { %v5809_v2 = vpop.f32.mrb[44].mxu0  ;;  %v4506_v39 = vpop.f32.mrb[33].mxu1 }
 0x45f   : > { %v4512_v48 = vpop.f32.mrb[45].mxu0  ;;  %v1992_v25 = vpop.f32.mrb[34].mxu1 }
 0x460   : > { %v2038_v38 = vpop.f32.mrb[46].mxu0  ;;  %v4507_v51 = vpop.f32.mrb[35].mxu1  ;;  %v4739_v48 = vld [vmem:[%s6303_s5 + $0x20] sm:$0xff]   ;;  %v4740_v25 = vld [vmem:[%s6303_s5 + $0x28] sm:$0xff]  }
 0x461   : > { %v4513_v61 = vpop.f32.mrb[47].mxu0  ;;  %4606 = vmatprep.subr.bf16.mxu1 %v4739_v48  ;;  %v4741_v38 = vld [vmem:[%s6303_s5 + $0x30] sm:$0xff]  }
 0x462   : > { %4607 = vmatpush3.bf16.msra.mxu1 %v4739_v48 }
 0x463   : > { %4608 = vmatprep.subr.bf16.mxu1 %v4740_v25 }
 0x465   : > { %v5811_v56 = vpop.f32.mrb[36].mxu1 }
 0x466   : > { %v5813_v5 = vpop.f32.mrb[48].mxu0  ;;  %v4518_v63 = vpop.f32.mrb[37].mxu1  ;;  %4609 = vmatpush3.bf16.msra.mxu1 %v4740_v25 }
 0x467   : > { %v4524_v22 = vpop.f32.mrb[49].mxu0  ;;  %v2084_v4 = vpop.f32.mrb[38].mxu1  ;;  %4610 = vmatprep.subr.bf16.mxu1 %v4741_v38 }
 0x468   : > { %v2130_v55 = vpop.f32.mrb[50].mxu0  ;;  %v4519_v1 = vpop.f32.mrb[39].mxu1  ;;  %v4742_v4 = vld [vmem:[%s6303_s5 + $0x38] sm:$0xff]  }
 0x469   : > { %v4525_v6 = vpop.f32.mrb[51].mxu0 }
 0x46a   : > { %4611 = vmatpush3.bf16.msra.mxu1 %v4741_v38 }
 0x46b   : > { %4612 = vmatprep.subr.bf16.mxu1 %v4742_v4 }
 0x46e   : > { %4613 = vmatpush3.bf16.msra.mxu1 %v4742_v4 }
 0x49a   : > { %v2173_v33 = vpop.f32.mrb[40].mxu1 }
 0x49b   : > { %v4530_v10 = vpop.f32.mrb[41].mxu1 }
 0x49c   : > { %v2176_v54 = vpop.f32.mrb[42].mxu1 }
 0x49d   : > { %v4531_v8 = vpop.f32.mrb[43].mxu1 }
 0x49e   : > { %v2219_v13 = vpop.f32.mrb[52].mxu0 }
 0x49f   : > { %v4673_v14 = vpack.i.bf16 %v2219_v13, %v2173_v33  ;;  %v4536_v47 = vpop.f32.mrb[53].mxu0 }
 0x4a0   : > { %v2222_v45 = vpop.f32.mrb[54].mxu0 }
 0x4a1   : > { %4674 = vrot.lane.b32.xlu0 %v4673_v14, %s5041_s20  ;;  %v4537_v62 = vpop.f32.mrb[55].mxu0 }
 0x4a2   : > { %v2265_v40 = vpop.f32.mrb[44].mxu1 }
 0x4a3   : > { %v4542_v59 = vpop.f32.mrb[45].mxu1 }
 0x4a4   : > { %v2268_v41 = vpop.f32.mrb[46].mxu1 }
 0x4a5   : > { %v4543_v57 = vpop.f32.mrb[47].mxu1 }
 0x4a6   : > { %v2311_v20 = vpop.f32.mrb[56].mxu0 }
 0x4a7   : > { %v4678_v3 = vpack.i.bf16 %v2311_v20, %v2265_v40  ;;  %v4548_v24 = vpop.f32.mrb[57].mxu0 }
 0x4a8   : > { %v2314_v19 = vpop.f32.mrb[58].mxu0 }
 0x4a9   : > { %4679 = vrot.lane.b32.xlu1 %v4678_v3, %s5041_s20  ;;  %v4549_v21 = vpop.f32.mrb[59].mxu0 }
 0x4aa   : > { %v2357_v26 = vpop.f32.mrb[48].mxu1 }
 0x4ab   : > { %v4554_v23 = vpop.f32.mrb[49].mxu1 }
 0x4ac   : > { %v2360_v31 = vpop.f32.mrb[50].mxu1 }
 0x4ad   : > { %v4555_v32 = vpop.f32.mrb[51].mxu1 }
 0x4ae   : > { %v2403_v15 = vpop.f32.mrb[60].mxu0 }
 0x4af   : > { %v4683_v27 = vpack.i.bf16 %v2403_v15, %v2357_v26  ;;  %v4560_v42 = vpop.f32.mrb[61].mxu0 }
 0x4b0   : > { %v2406_v35 = vpop.f32.mrb[62].mxu0 }
 0x4b1   : > { %4684 = vrot.lane.b32.xlu0 %v4683_v27, %s6322_s27  ;;  %v4561_v50 = vpop.f32.mrb[63].mxu0 }
 0x4b2   : > { %v2449_v18 = vpop.f32.mrb[52].mxu1 }
 0x4b3   : > { %v4566_v36 = vpop.f32.mrb[53].mxu1 }
 0x4b4   : > { %v2452_v44 = vpop.f32.mrb[54].mxu1 }
 0x4b5   : > { %v4567_v46 = vpop.f32.mrb[55].mxu1 }
 0x4b6   : > { %v2495_v43 = vpop.f32.mrb[64].mxu0 }
 0x4b7   : > { %v4688_v49 = vpack.i.bf16 %v2495_v43, %v2449_v18  ;;  %v4572_v9 = vpop.f32.mrb[65].mxu0 }
 0x4b8   : > { %v2498_v60 = vpop.f32.mrb[66].mxu0 }
 0x4b9   : > { %4689 = vrot.lane.b32.xlu1 %v4688_v49, %s6322_s27  ;;  %v4573_v39 = vpop.f32.mrb[67].mxu0  ;;  %s3938_s27 = scalar_lea.sflag [#allocation4], %s5228_s23 }
 0x4e7   : > { %v2541_v51 = vpop.f32.mrb[56].mxu1 }
 0x4e8   : > { %v4578_v61 = vpop.f32.mrb[57].mxu1 }
 0x4e9   : > { %v2544_v63 = vpop.f32.mrb[58].mxu1 }
 0x4ea   : > { %v4579_v22 = vpop.f32.mrb[59].mxu1 }
 0x4ec   : > { %v2587_v55 = vpop.f32.mrb[68].mxu0 }
 0x4ed   : > { %v4693_v1 = vpack.i.bf16 %v2587_v55, %v2541_v51  ;;  %v4584_v6 = vpop.f32.mrb[69].mxu0 }
 0x4ee   : > { %v2590_v33 = vpop.f32.mrb[70].mxu0 }
 0x4ef   : > { %4694 = vrot.lane.b32.xlu0 %v4693_v1, %s5039_s29  ;;  %v4585_v10 = vpop.f32.mrb[71].mxu0  ;;  %v2633_v54 = vpop.f32.mrb[60].mxu1 }
 0x4f0   : > { %v4590_v8 = vpop.f32.mrb[61].mxu1  ;;  %v4743_v10 = vld [vmem:[%s6307_s9] ss:$16 sps:$4 sm:$0xff]  }
 0x4f1   : > { %v2636_v13 = vpop.f32.mrb[62].mxu1  ;;  %v4749_v8 = vld [vmem:[%s6307_s9 + $0x20] ss:$16 sps:$4 sm:$0xff]  }
 0x4f2   : > { %v4591_v14 = vpop.f32.mrb[63].mxu1  ;;  %v4752_v13 = vld [vmem:[%s6307_s9 + $0x28] ss:$16 sps:$4 sm:$0xff]  }
 0x4f4   : > { %v2679_v47 = vpop.f32.mrb[72].mxu0 }
 0x4f5   : > { %v4698_v45 = vpack.i.bf16 %v2679_v47, %v2633_v54  ;;  %v4596_v62 = vpop.f32.mrb[73].mxu0  ;;  %v4745_v54 = vld [vmem:[%s6307_s9 + $0x4] ss:$16 sps:$4 sm:$0xff]  }
 0x4f6   : > { %v2682_v40 = vpop.f32.mrb[74].mxu0  ;;  %3184 = vmatprep.subr.bf16.mxu0 %v4745_v54 }
 0x4f7   : > { %4699 = vrot.lane.b32.xlu1 %v4698_v45, %s5039_s29  ;;  %v4597_v59 = vpop.f32.mrb[75].mxu0  ;;  %3185 = vmatpush1.bf16.msra.mxu0 %v4743_v10  ;;  %s540_s29 = scalar_lea.vmem [#allocation5], %s6337_s26  ;;  %s4969_s26 = sshll.u32 %s5042_s22, 4  ;;  %s4970_s26 = int_to_ptr.vmem [resolvable:$false] %s4969_s26 }
 0x4f8   : > { %s3951_s18 = sshll.u32 %s540_s29, 4  ;;  %s4971_s0 = scalar_lea.vmem %s4970_s26, 512  ;;  %s6252_s18 = int_to_ptr.vmem [resolvable:$true] %s3951_s18 }
 0x4f9   : > { %s4965_s30 = scalar_lea.vmem %s6252_s18, 256  ;;  %p4972_p10 = scmp.lt.s32.totalorder %s6252_s18, %s4970_s26 }
 0x4fa   : > { %p4966_p6 = scmp.ne.s32.totalorder %s6252_s18, %s4965_s30  ;;  %p4973_p0 = scmp.lt.s32.totalorder %s4971_s0, %s4965_s30 }
 0x4fc   : > { %p4967_p13 = pnand %p4966_p6, %p6340_p12  ;;  %p4974_p2 = por %p4973_p0, %p4972_p10 }
 0x4fe   : > { %p4968_p8 = pneg %p4967_p13 }
 0x500   : > { %p4975_p4 = pnand %p4974_p2, %p4968_p8 }
 0x513   : > { %v4675_v41 = vpop.permute.xlu0 %4674 }
 0x514   : > { %v4677_v20 = vunpack.i.h.bf16 %v4675_v41  ;;  %v4676_v3 = vunpack.i.l.bf16 %v4675_v41 }
 0x516   : > { %v2734_v23 = vsel %vm1018_vm2, %v5809_v2, %v4677_v20  ;;  %v2733_v31 = vsel %vm1018_vm2, %v5807_v16, %v4676_v3 }
 0x51b   : > { %v4680_v21 = vpop.permute.xlu1 %4679 }
 0x51c   : > { %v4682_v18 = vunpack.i.h.bf16 %v4680_v21  ;;  %v4681_v37 = vunpack.i.l.bf16 %v4680_v21 }
 0x51e   : > { %v2736_v16 = vsel %vm1018_vm2, %v5813_v5, %v4682_v18  ;;  %v2735_v46 = vsel %vm1018_vm2, %v5811_v56, %v4681_v37  ;;  %v4115_v5 = vld [vmem:[%s6304_s6] ss:$0 sm:$0xff]  ;;  %v4769_v18 = vld [vmem:[%s6307_s9 + $0x84] ss:$16 sps:$4 sm:$0xff]   ;;  %v4772_v37 = vld [vmem:[%s6307_s9 + $0x8c] ss:$16 sps:$4 sm:$0xff]  }
 0x523   : > { %v4685_v57 = vpop.permute.xlu0 %4684 }
 0x524   : > { %v4687_v24 = vunpack.i.h.bf16 %v4685_v57  ;;  %v4686_v19 = vunpack.i.l.bf16 %v4685_v57 }
 0x526   : > { %v2739_v17 = vsel %vm2737_vm5, %v2734_v23, %v4687_v24  ;;  %v2738_v34 = vsel %vm2737_vm5, %v2733_v31, %v4686_v19 }
 0x52b   : > { %v4690_v27 = vpop.permute.xlu1 %4689 }
 0x52c   : > { %v4692_v36 = vunpack.i.h.bf16 %v4690_v27  ;;  %v4691_v44 = vunpack.i.l.bf16 %v4690_v27  ;;  %v4763_v27 = vld [vmem:[%s6307_s9 + $0x64] ss:$16 sps:$4 sm:$0xff]  }
 0x52e   : > { %v2741_v49 = vsel %vm2737_vm5, %v2736_v16, %v4692_v36  ;;  %v2740_v9 = vsel %vm2737_vm5, %v2735_v46, %v4691_v44  ;;  %v4767_v36 = vld [vmem:[%s6307_s9 + $0x80] ss:$16 sps:$4 sm:$0xff]   ;;  %v4770_v44 = vld [vmem:[%s6307_s9 + $0x88] ss:$16 sps:$4 sm:$0xff]   ;;  %v4778_v16 = vld [vmem:[%s6307_s9 + $0xac] ss:$16 sps:$4 sm:$0xff]  }
 0x52f   : > { %v4773_v46 = vld [vmem:[%s6307_s9 + $0xa0] ss:$16 sps:$4 sm:$0xff]  }
 0x561   : > { %v4695_v26 = vpop.permute.xlu0 %4694 }
 0x562   : > { %v4697_v32 = vunpack.i.h.bf16 %v4695_v26  ;;  %v4696_v15 = vunpack.i.l.bf16 %v4695_v26 }
 0x564   : > { %v2743_v42 = vsel %vm2742_vm6, %v2738_v34, %v4696_v15  ;;  %v2744_v35 = vsel %vm2742_vm6, %v2739_v17, %v4697_v32  ;;  %v4757_v32 = vld [vmem:[%s6307_s9 + $0x44] ss:$16 sps:$4 sm:$0xff]   ;;  %v4760_v15 = vld [vmem:[%s6307_s9 + $0x4c] ss:$16 sps:$4 sm:$0xff]   ;;  %v4755_v17 = vld [vmem:[%s6307_s9 + $0x40] ss:$16 sps:$4 sm:$0xff]  }
 0x565   : > { %v4213_v50 = vpack.c.bf16 %v2744_v35, %v2743_v42  ;;  %v4758_v34 = vld [vmem:[%s6307_s9 + $0x48] ss:$16 sps:$4 sm:$0xff]   ;;  %v4766_v42 = vld [vmem:[%s6307_s9 + $0x6c] ss:$16 sps:$4 sm:$0xff]   ;;  %v4761_v35 = vld [vmem:[%s6307_s9 + $0x60] ss:$16 sps:$4 sm:$0xff]  }
 0x567   : > { %4614 = vmatprep.mubr.bf16.mxu1 %v4213_v50  ;;  %v4764_v50 = vld [vmem:[%s6307_s9 + $0x68] ss:$16 sps:$4 sm:$0xff]  }
 0x569   : > { %v4700_v2 = vpop.permute.xlu1 %4699 }
 0x56a   : > { %v4702_v43 = vunpack.i.h.bf16 %v4700_v2  ;;  %v4701_v12 = vunpack.i.l.bf16 %v4700_v2  ;;  %v4775_v2 = vld [vmem:[%s6307_s9 + $0xa4] ss:$16 sps:$4 sm:$0xff]  }
 0x56c   : > { %v2746_v60 = vsel %vm2742_vm6, %v2741_v49, %v4702_v43  ;;  %v2745_v39 = vsel %vm2742_vm6, %v2740_v9, %v4701_v12  ;;  %v4776_v43 = vld [vmem:[%s6307_s9 + $0xa8] ss:$16 sps:$4 sm:$0xff]   ;;  %v4781_v12 = vld [vmem:[%s6307_s9 + $0xc4] ss:$16 sps:$4 sm:$0xff]   ;;  %v4784_v49 = vld [vmem:[%s6307_s9 + $0xcc] ss:$16 sps:$4 sm:$0xff]  }
 0x56d   : > { %v4214_v48 = vpack.c.bf16 %v2746_v60, %v2745_v39  ;;  %v4779_v9 = vld [vmem:[%s6307_s9 + $0xc0] ss:$16 sps:$4 sm:$0xff]   ;;  %v4782_v60 = vld [vmem:[%s6307_s9 + $0xc8] ss:$16 sps:$4 sm:$0xff]   ;;  %v4787_v39 = vld [vmem:[%s6307_s9 + $0xe4] ss:$16 sps:$4 sm:$0xff]  }
 0x56f   : > { %4615 = vmatmul.mubr.bf16.vlgmr.msra.gmra.mrb[64].mxu1 %v4214_v48  ;;  %v4790_v48 = vld [vmem:[%s6307_s9 + $0xec] ss:$16 sps:$4 sm:$0xff]  }
 0x570   : > { %3269 = vmatprep.mubr.bf16.mxu1 %v5036_v0 }
 0x642   : > { %v4616_v25 = vpop.f32.mrb[64].mxu1 }
 0x643   : > { %v2868_v56 = vpop.f32.mrb[65].mxu1  ;;  %v2877_v63 = vadd.f32 %v4616_v25, %v4115_v5  ;;  %v4788_v25 = vld [vmem:[%s6307_s9 + $0xe8] ss:$16 sps:$4 sm:$0xff]  }
 0x644   : > { %v2869_v38 = vadd.f32 %v4115_v5, %v2868_v56  ;;  %v4617_v51 = vpop.f32.mrb[66].mxu1 }
 0x645   : > { %v2871_v61 = vpop.f32.mrb[67].mxu1  ;;  %v2880_v1 = vadd.f32 %v4617_v51, %v4115_v5  ;;  %v2885_v6 = vadd.f32 %v2877_v63, %v5349_v52  ;;  %v4751_v52 = vld [vmem:[%s6307_s9 + $0x24] ss:$16 sps:$4 sm:$0xff]  }
 0x646   : > { %v2872_v22 = vadd.f32 %v4115_v5, %v2871_v61  ;;  %v2883_v4 = vadd.f32 %v2869_v38, %v5307_v29  ;;  %v4746_v29 = vld [vmem:[%s6307_s9 + $0x8] ss:$16 sps:$4 sm:$0xff]   ;;  %3186 = vmatprep.subr.bf16.mxu0 %v4751_v52  ;;  %v4785_v5 = vld [vmem:[%s6307_s9 + $0xe0] ss:$16 sps:$4 sm:$0xff]  }
 0x647   : > { %v2886_v33 = vadd.f32 %v2880_v1, %v5351_v53  ;;  %v4754_v53 = vld [vmem:[%s6307_s9 + $0x2c] ss:$16 sps:$4 sm:$0xff]   ;;  %3187 = vmatpush1.bf16.msra.mxu0 %v4749_v8 }
 0x648   : > { %2889 = vadd.xlane.f32.xlu0 %v2883_v4  ;;  %v2884_v55 = vadd.f32 %v2872_v22, %v5309_v30  ;;  %v4748_v30 = vld [vmem:[%s6307_s9 + $0xc] ss:$16 sps:$4 sm:$0xff]   ;;  %3188 = vmatprep.subr.bf16.mxu0 %v4757_v32 }
 0x649   : > { %3237 = vmatprep.subr.bf16.mxu1 %v4748_v30  ;;  %v4795_v32 = vld [vmem:[%s6309_s11 + $0x48] sm:$0xff]  }
 0x64a   : > { %2891 = vadd.xlane.f32.xlu1 %v2884_v55  ;;  %3238 = vmatpush1.bf16.msra.mxu1 %v4746_v29  ;;  %v4126_v29 = vld [vmem:[%s6305_s7] ss:$0 sm:$0xff] }
 0x64b   : > { %3239 = vmatprep.subr.bf16.mxu1 %v4754_v53  ;;  %3189 = vmatpush1.bf16.msra.mxu0 %v4755_v17  ;;  %v4797_v17 = vld [vmem:[%s6309_s11 + $0x8] sm:$0xff]  }
 0x64c   : > { %2893 = vadd.xlane.f32.xlu0 %v2885_v6  ;;  %3190 = vmatprep.subr.bf16.mxu0 %v4763_v27  ;;  %v4799_v27 = vld [vmem:[%s6309_s11 + $0x50] sm:$0xff]  }
 0x64e   : > { %3240 = vmatpush1.bf16.msra.mxu1 %v4752_v13 }
 0x64f   : > { %3241 = vmatprep.subr.bf16.mxu1 %v4760_v15  ;;  %3191 = vmatpush1.bf16.msra.mxu0 %v4761_v35  ;;  %v4796_v15 = vld [vmem:[%s6309_s11 + $0xc8] sm:$0xff]   ;;  %v4801_v35 = vld [vmem:[%s6309_s11 + $0x10] sm:$0xff]  }
 0x650   : > { %2895 = vadd.xlane.f32.xlu0 %v2886_v33  ;;  %3192 = vmatprep.subr.bf16.mxu0 %v4769_v18  ;;  %v4803_v18 = vld [vmem:[%s6309_s11 + $0x58] sm:$0xff]  }
 0x652   : > { %3242 = vmatpush1.bf16.msra.mxu1 %v4758_v34  ;;  %v4798_v34 = vld [vmem:[%s6309_s11 + $0x88] sm:$0xff]  }
 0x653   : > { %3243 = vmatprep.subr.bf16.mxu1 %v4766_v42  ;;  %3193 = vmatpush1.bf16.msra.mxu0 %v4767_v36  ;;  %v4800_v42 = vld [vmem:[%s6309_s11 + $0xd0] sm:$0xff]   ;;  %v4805_v36 = vld [vmem:[%s6309_s11 + $0x18] sm:$0xff]  }
 0x654   : > { %3194 = vmatprep.subr.bf16.mxu0 %v4775_v2  ;;  %v4807_v2 = vld [vmem:[%s6309_s11 + $0x60] sm:$0xff]  }
 0x656   : > { %3244 = vmatpush1.bf16.msra.mxu1 %v4764_v50  ;;  %v4802_v50 = vld [vmem:[%s6309_s11 + $0x90] sm:$0xff]  }
 0x657   : > { %3245 = vmatprep.subr.bf16.mxu1 %v4772_v37  ;;  %3195 = vmatpush1.bf16.msra.mxu0 %v4773_v46  ;;  %v4804_v37 = vld [vmem:[%s6309_s11 + $0xd8] sm:$0xff]   ;;  %v4809_v46 = vld [vmem:[%s6309_s11 + $0x20] sm:$0xff]  }
 0x658   : > { %3196 = vmatprep.subr.bf16.mxu0 %v4781_v12  ;;  %v4811_v12 = vld [vmem:[%s6309_s11 + $0x68] sm:$0xff]  }
 0x65a   : > { %3246 = vmatpush1.bf16.msra.mxu1 %v4770_v44  ;;  %v4806_v44 = vld [vmem:[%s6309_s11 + $0x98] sm:$0xff]  }
 0x65b   : > { %3247 = vmatprep.subr.bf16.mxu1 %v4778_v16  ;;  %3197 = vmatpush1.bf16.msra.mxu0 %v4779_v9  ;;  %v4808_v16 = vld [vmem:[%s6309_s11 + $0xe0] sm:$0xff]   ;;  %v4813_v9 = vld [vmem:[%s6309_s11 + $0x28] sm:$0xff]  }
 0x65c   : > { %3198 = vmatprep.subr.bf16.mxu0 %v4787_v39  ;;  %v4815_v39 = vld [vmem:[%s6309_s11 + $0x70] sm:$0xff]  }
 0x65e   : > { %3248 = vmatpush1.bf16.msra.mxu1 %v4776_v43  ;;  %v4810_v43 = vld [vmem:[%s6309_s11 + $0xa0] sm:$0xff]  }
 0x65f   : > { %3249 = vmatprep.subr.bf16.mxu1 %v4784_v49  ;;  %3199 = vmatpush1.bf16.msra.mxu0 %v4785_v5  ;;  %v4812_v49 = vld [vmem:[%s6309_s11 + $0xe8] sm:$0xff]   ;;  %v4817_v5 = vld [vmem:[%s6309_s11 + $0x30] sm:$0xff]  }
 0x662   : > { %3250 = vmatpush1.bf16.msra.mxu1 %v4782_v60  ;;  %v4814_v60 = vld [vmem:[%s6309_s11 + $0xa8] sm:$0xff]  }
 0x663   : > { %3251 = vmatprep.subr.bf16.mxu1 %v4790_v48  ;;  %v4816_v48 = vld [vmem:[%s6309_s11 + $0xf0] sm:$0xff]  }
 0x666   : > { %3252 = vmatpush1.bf16.msra.mxu1 %v4788_v25  ;;  %v4818_v25 = vld [vmem:[%s6309_s11 + $0xb0] sm:$0xff]  }
 0x6d5   : > { %v2890_v14 = vpop.xlane.xlu0 %2889 }
 0x6d6   : > { %v2898_v47 = vmul.f32 0.0078125, %v2890_v14  ;;  %v4127_v14 = vld [vmem:[%s6306_s8] ss:$0 sm:$0xff] }
 0x6d7   : > { %v2892_v45 = vpop.xlane.xlu1 %2891 }
 0x6d8   : > { %v5893_v62 = vsub.f32 %v2883_v4, %v2898_v47  ;;  %v2899_v40 = vmul.f32 0.0078125, %v2892_v45 }
 0x6d9   : > { %v2894_v59 = vpop.xlane.xlu0 %2893 }
 0x6da   : > { %v5895_v41 = vsub.f32 %v2884_v55, %v2899_v40  ;;  %v2900_v57 = vmul.f32 0.0078125, %v2894_v59  ;;  %v2906_v20 = vmul.f32 %v5893_v62, %v5893_v62 }
 0x6dc   : > { %v5899_v3 = vsub.f32 %v2885_v6, %v2900_v57  ;;  %2910 = vadd.xlane.f32.xlu1 %v2906_v20  ;;  %v2907_v24 = vmul.f32 %v5895_v41, %v5895_v41 }
 0x6dd   : > { %v2896_v19 = vpop.xlane.xlu0 %2895 }
 0x6de   : > { %v2901_v21 = vmul.f32 0.0078125, %v2896_v19  ;;  %2912 = vadd.xlane.f32.xlu0 %v2907_v24  ;;  %v2908_v26 = vmul.f32 %v5899_v3, %v5899_v3 }
 0x6e0   : > { %v5905_v23 = vsub.f32 %v2886_v33, %v2901_v21  ;;  %2914 = vadd.xlane.f32.xlu1 %v2908_v26  ;;  %v4791_v26 = vld [vmem:[%s6309_s11 + $0x40] sm:$0xff]  }
 0x6e1   : > { %4330 = vmatprep.subr.bf16.mxu0 %v4791_v26 }
 0x6e2   : > { %v2909_v31 = vmul.f32 %v5905_v23, %v5905_v23 }
 0x6e4   : > { %2916 = vadd.xlane.f32.xlu0 %v2909_v31  ;;  %v4794_v31 = vld [vmem:[%s6309_s11 + $0x80] sm:$0xff]  }
 0x769   : > { %v2911_v56 = vpop.xlane.xlu1 %2910 }
 0x76a   : > { %v2918_v38 = vmul.f32 0.0078125, %v2911_v56  ;;  %v4819_v56 = vld [vmem:[%s6309_s11 + $0x78] sm:$0xff]  }
 0x76b   : > { %v2913_v51 = vpop.xlane.xlu0 %2912 }
 0x76c   : > { %v2922_v61 = vadd.f32 1e-12, %v2918_v38  ;;  %v2919_v63 = vmul.f32 0.0078125, %v2913_v51  ;;  %v4820_v38 = vld [vmem:[%s6309_s11 + $0xf8] sm:$0xff]  }
 0x76d   : > { %v2915_v22 = vpop.xlane.xlu1 %2914  ;;  %v4821_v51 = vld [vmem:[%s6309_s11 + $0x38] sm:$0xff]  }
 0x76e   : > { %4887 = vrsqrt.f32 %v2922_v61  ;;  %v2923_v4 = vadd.f32 1e-12, %v2919_v63  ;;  %v2920_v55 = vmul.f32 0.0078125, %v2915_v22  ;;  %v4822_v61 = vld [vmem:[%s6309_s11 + $0xb8] sm:$0xff]   ;;  %v2990_v63 = vld [vmem:[%s6308_s10] sm:$0xf] }
 0x76f   : > { %v6105_v22 = vrot.slane %v2990_v63, %v5275_v11 }
 0x770   : > { %4889 = vrsqrt.f32 %v2923_v4  ;;  %v2924_v1 = vadd.f32 1e-12, %v2920_v55  ;;  %v6109_v4 = vrot.slane %v2990_v63, %v651_v28  ;;  %v3006_v55 = vsub.s32 3, %v5259_v7 }
 0x771   : > { %v2917_v6 = vpop.xlane.xlu0 %2916 }
 0x772   : > { %4891 = vrsqrt.f32 %v2924_v1  ;;  %v2921_v33 = vmul.f32 0.0078125, %v2917_v6  ;;  %v6118_v11 = vrot.slane %v2990_v63, %v3006_v55 }
 0x774   : > { %v2925_v10 = vadd.f32 1e-12, %v2921_v33  ;;  %v6114_v33 = vrot.slane %v2990_v63, %v647_v58 }
 0x776   : > { %4893 = vrsqrt.f32 %v2925_v10 }
 0x778   : > { %v4888_v54 = vpop.eup %4887 }
 0x779   : > { %v2930_v30 = vmul.f32 %v4888_v54, %v5893_v62 }
 0x77a   : > { %v4890_v52 = vpop.eup %4889 }
 0x77b   : > { %v2931_v53 = vmul.f32 %v4890_v52, %v5895_v41  ;;  %v2940_v8 = vmul.f32 %v4126_v29, %v2930_v30 }
 0x77c   : > { %v4892_v13 = vpop.eup %4891 }
 0x77d   : > { %v2941_v47 = vmul.f32 %v4126_v29, %v2931_v53  ;;  %v5989_v45 = vadd.f32 %v4127_v14, %v2940_v8  ;;  %v2932_v59 = vmul.f32 %v4892_v13, %v5899_v3 }
 0x77f   : > { %v5991_v40 = vadd.f32 %v4127_v14, %v2941_v47  ;;  %v2942_v41 = vmul.f32 %v4126_v29, %v2932_v59 }
 0x780   : > { %v4894_v57 = vpop.eup %4893 }
 0x781   : > { %v4215_v62 = vpack.c.bf16 %v5991_v40, %v5989_v45  ;;  %v2933_v20 = vmul.f32 %v4894_v57, %v5905_v23  ;;  %v6001_v21 = vadd.f32 %v4127_v14, %v2942_v41  ;;  %v4792_v23 = vld [vmem:[%s6309_s11 + $0xc0] sm:$0xff]  }
 0x782   : > { %4358 = vmatprep.subr.bf16.mxu1 %v4792_v23 }
 0x783   : > { %3217 = vmatmul.mubr.bf16.vlgmr.msra.gmra.mrb[76].mxu0 %v4215_v62  ;;  %3270 = vmatmul.mubr.bf16.vlgmr.msra.gmra.mrb[68].mxu1 %v4215_v62  ;;  %v2943_v24 = vmul.f32 %v4126_v29, %v2933_v20 }
 0x784   : > { %3226 = vmatprep.mubr.bf16.mxu0 %v5036_v0  ;;  %3279 = vmatprep.mubr.bf16.mxu1 %v5036_v0  ;;  %v4793_v0 = vld [vmem:[%s6309_s11] sm:$0xff]  }
 0x785   : > { %v5999_v19 = vadd.f32 %v4127_v14, %v2943_v24  ;;  %4331 = vmatpush3.bf16.msra.mxu0 %v4793_v0  ;;  %4359 = vmatpush3.bf16.msra.mxu1 %v4794_v31 }
 0x786   : > { %4332 = vmatprep.subr.bf16.mxu0 %v4795_v32  ;;  %4360 = vmatprep.subr.bf16.mxu1 %v4796_v15 }
 0x787   : > { %v4216_v3 = vpack.c.bf16 %v5999_v19, %v6001_v21 }
 0x789   : > { %4333 = vmatpush3.bf16.msra.mxu0 %v4797_v17  ;;  %4361 = vmatpush3.bf16.msra.mxu1 %v4798_v34 }
 0x78a   : > { %4334 = vmatprep.subr.bf16.mxu0 %v4799_v27  ;;  %4362 = vmatprep.subr.bf16.mxu1 %v4800_v42 }
 0x78b   : > { %3227 = vmatmul.mubr.bf16.gmra.mrb[80].mxu0 %v4216_v3  ;;  %3280 = vmatmul.mubr.bf16.gmra.mrb[72].mxu1 %v4216_v3 }
 0x78d   : > { %4335 = vmatpush3.bf16.msra.mxu0 %v4801_v35  ;;  %4363 = vmatpush3.bf16.msra.mxu1 %v4802_v50 }
 0x78e   : > { %4336 = vmatprep.subr.bf16.mxu0 %v4803_v18  ;;  %4364 = vmatprep.subr.bf16.mxu1 %v4804_v37 }
 0x791   : > { %4337 = vmatpush3.bf16.msra.mxu0 %v4805_v36  ;;  %4365 = vmatpush3.bf16.msra.mxu1 %v4806_v44 }
 0x792   : > { %4338 = vmatprep.subr.bf16.mxu0 %v4807_v2  ;;  %4366 = vmatprep.subr.bf16.mxu1 %v4808_v16 }
 0x795   : > { %4339 = vmatpush3.bf16.msra.mxu0 %v4809_v46  ;;  %4367 = vmatpush3.bf16.msra.mxu1 %v4810_v43 }
 0x796   : > { %4340 = vmatprep.subr.bf16.mxu0 %v4811_v12  ;;  %4368 = vmatprep.subr.bf16.mxu1 %v4812_v49 }
 0x799   : > { %4341 = vmatpush3.bf16.msra.mxu0 %v4813_v9  ;;  %4369 = vmatpush3.bf16.msra.mxu1 %v4814_v60 }
 0x79a   : > { %4342 = vmatprep.subr.bf16.mxu0 %v4815_v39  ;;  %4370 = vmatprep.subr.bf16.mxu1 %v4816_v48 }
 0x79d   : > { %4343 = vmatpush3.bf16.msra.mxu0 %v4817_v5  ;;  %4371 = vmatpush3.bf16.msra.mxu1 %v4818_v25 }
 0x79e   : > { %4344 = vmatprep.subr.bf16.mxu0 %v4819_v56  ;;  %4372 = vmatprep.subr.bf16.mxu1 %v4820_v38 }
 0x7a1   : > { %4345 = vmatpush3.bf16.msra.mxu0 %v4821_v51  ;;  %4373 = vmatpush3.bf16.msra.mxu1 %v4822_v61 }
 0x856   : > { %v3218_v1 = vpop.f32.mrb[76].mxu0  ;;  %v3271_v6 = vpop.f32.mrb[68].mxu1 }
 0x857   : > { %v3219_v10 = vadd.f32 %v3218_v1, %v6105_v22  ;;  %v3272_v54 = vadd.f32 %v3271_v6, %v6109_v4  ;;  %v3220_v29 = vpop.f32.mrb[77].mxu0  ;;  %v3273_v30 = vpop.f32.mrb[69].mxu1 }
 0x858   : > { %v3222_v52 = vpop.f32.mrb[78].mxu0  ;;  %v3275_v53 = vpop.f32.mrb[70].mxu1  ;;  %v6121_v13 = vadd.f32 %v3220_v29, %v6114_v33  ;;  %v6131_v20 = vadd.f32 %v3273_v30, %v6118_v11 }
 0x859   : > { %v3306_v28 = vmul.f32 0.044715, %v3219_v10  ;;  %v3308_v8 = vmul.f32 0.044715, %v3272_v54  ;;  %v3223_v14 = vadd.f32 %v3222_v52, %v6105_v22  ;;  %v6125_v7 = vadd.f32 %v3275_v53, %v6109_v4  ;;  %v3224_v58 = vpop.f32.mrb[79].mxu0  ;;  %v3277_v47 = vpop.f32.mrb[71].mxu1 }
 0x85a   : > { %v6128_v62 = vadd.f32 %v3224_v58, %v6114_v33  ;;  %v6134_v24 = vadd.f32 %v3277_v47, %v6118_v11  ;;  %v6136_v3 = vmul.f32 0.5, %v3219_v10  ;;  %v3307_v31 = vmul.f32 0.044715, %v6121_v13 }
 0x85b   : > { %v3322_v59 = vmul.f32 %v3306_v28, %v3219_v10  ;;  %v3324_v57 = vmul.f32 %v3308_v8, %v3272_v54  ;;  %v3310_v41 = vmul.f32 0.044715, %v3223_v14  ;;  %v3312_v0 = vmul.f32 0.044715, %v6125_v7 }
 0x85c   : > { %v3311_v15 = vmul.f32 0.044715, %v6128_v62  ;;  %v6141_v42 = vmul.f32 0.5, %v3272_v54  ;;  %v3309_v36 = vmul.f32 0.044715, %v6131_v20  ;;  %v3323_v48 = vmul.f32 %v3307_v31, %v6121_v13 }
 0x85d   : > { %v3338_v26 = vmul.f32 %v3322_v59, %v3219_v10  ;;  %v3340_v23 = vmul.f32 %v3324_v57, %v3272_v54  ;;  %v3326_v32 = vmul.f32 %v3310_v41, %v3223_v14  ;;  %v3328_v50 = vmul.f32 %v3312_v0, %v6125_v7 }
 0x85e   : > { %v3228_v17 = vpop.f32.mrb[80].mxu0  ;;  %v3281_v34 = vpop.f32.mrb[72].mxu1  ;;  %v3313_v2 = vmul.f32 0.044715, %v6134_v24  ;;  %v3327_v25 = vmul.f32 %v3311_v15, %v6128_v62  ;;  %v3325_v63 = vmul.f32 %v3309_v36, %v6131_v20  ;;  %v3339_v30 = vmul.f32 %v3323_v48, %v6121_v13 }
 0x85f   : > { %v3354_v27 = vadd.f32 %v3338_v26, %v3219_v10  ;;  %v3356_v35 = vadd.f32 %v3340_v23, %v3272_v54  ;;  %v3230_v18 = vpop.f32.mrb[81].mxu0  ;;  %v3283_v37 = vpop.f32.mrb[73].mxu1  ;;  %v3342_v44 = vmul.f32 %v3326_v32, %v3223_v14  ;;  %v6147_v16 = vadd.f32 %v3228_v17, %v6105_v22 }
 0x860   : > { %v3232_v46 = vpop.f32.mrb[82].mxu0  ;;  %v3285_v43 = vpop.f32.mrb[74].mxu1  ;;  %v3344_v9 = vmul.f32 %v3328_v50, %v6125_v7  ;;  %v6153_v56 = vadd.f32 %v3281_v34, %v6109_v4  ;;  %v6158_v61 = vadd.f32 %v3230_v18, %v6114_v33  ;;  %v3329_v1 = vmul.f32 %v3313_v2, %v6134_v24 }
 0x861   : > { %v3370_v12 = vmul.f32 0.7978846, %v3354_v27  ;;  %v3372_v49 = vmul.f32 0.7978846, %v3356_v35  ;;  %v3234_v60 = vpop.f32.mrb[83].mxu0  ;;  %v3287_v39 = vpop.f32.mrb[75].mxu1  ;;  %v3358_v5 = vadd.f32 %v3342_v44, %v3223_v14  ;;  %v6164_v54 = vadd.f32 %v3283_v37, %v6118_v11 }
 0x862   : > { %v3360_v38 = vadd.f32 %v3344_v9, %v6125_v7  ;;  %v3314_v51 = vmul.f32 0.044715, %v6147_v16  ;;  %v3315_v10 = vmul.f32 0.044715, %v6158_v61  ;;  %v6167_v29 = vadd.f32 %v3232_v46, %v6105_v22 }
 0x863   : > { %4895 = vtanh.f32 %v3370_v12  ;;  %v3374_v55 = vmul.f32 0.7978846, %v3358_v5  ;;  %v3343_v52 = vmul.f32 %v3327_v25, %v6128_v62  ;;  %v6172_v53 = vadd.f32 %v3285_v43, %v6109_v4 }
 0x864   : > { %4897 = vtanh.f32 %v3372_v49  ;;  %v3376_v6 = vmul.f32 0.7978846, %v3360_v38  ;;  %v3330_v28 = vmul.f32 %v3314_v51, %v6147_v16  ;;  %v3316_v8 = vmul.f32 0.044715, %v6153_v56 }
 0x865   : > { %4899 = vtanh.f32 %v3374_v55  ;;  %v3317_v58 = vmul.f32 0.044715, %v6164_v54  ;;  %v3294_v47 = vmul.f32 0.5, %v3223_v14  ;;  %v3331_v59 = vmul.f32 %v3315_v10, %v6158_v61 }
 0x866   : > { %4901 = vtanh.f32 %v3376_v6  ;;  %v6179_v22 = vadd.f32 %v3234_v60, %v6114_v33  ;;  %v6182_v57 = vadd.f32 %v3287_v39, %v6118_v11  ;;  %v3341_v41 = vmul.f32 %v3325_v63, %v6131_v20 }
 0x867   : > { %v3345_v4 = vmul.f32 %v3329_v1, %v6134_v24  ;;  %v3318_v26 = vmul.f32 0.044715, %v6167_v29  ;;  %v3320_v23 = vmul.f32 0.044715, %v6172_v53  ;;  %v3333_v0 = vmul.f32 %v3317_v58, %v6164_v54 }
 0x868   : > { %v3319_v14 = vmul.f32 0.044715, %v6179_v22  ;;  %v3321_v31 = vmul.f32 0.044715, %v6182_v57  ;;  %v3355_v33 = vadd.f32 %v3339_v30, %v6121_v13  ;;  %v3296_v32 = vmul.f32 0.5, %v6125_v7 }
 0x869   : > { %v3346_v11 = vmul.f32 %v3330_v28, %v6147_v16  ;;  %v3332_v15 = vmul.f32 %v3316_v8, %v6153_v56  ;;  %v3359_v17 = vadd.f32 %v3343_v52, %v6128_v62  ;;  %v3347_v34 = vmul.f32 %v3331_v59, %v6158_v61 }
 0x86a   : > { %v3335_v27 = vmul.f32 %v3319_v14, %v6179_v22  ;;  %v3337_v35 = vmul.f32 %v3321_v31, %v6182_v57  ;;  %v3371_v50 = vmul.f32 0.7978846, %v3355_v33  ;;  %v3334_v37 = vmul.f32 %v3318_v26, %v6167_v29 }
 0x86b   : > { %v3375_v36 = vmul.f32 0.7978846, %v3359_v17  ;;  %v3357_v44 = vadd.f32 %v3341_v41, %v6131_v20  ;;  %v3361_v7 = vadd.f32 %v3345_v4, %v6134_v24  ;;  %v3349_v46 = vmul.f32 %v3333_v0, %v6164_v54 }
 0x86c   : > { %v3336_v43 = vmul.f32 %v3320_v23, %v6172_v53  ;;  %v3351_v12 = vmul.f32 %v3335_v27, %v6179_v22  ;;  %4903 = vtanh.f32 %v3371_v50  ;;  %v3348_v48 = vmul.f32 %v3332_v15, %v6153_v56 }
 0x86d   : > { %v4896_v18 = vpop.eup %4895  ;;  %4905 = vtanh.f32 %v3375_v36  ;;  %v3373_v49 = vmul.f32 0.7978846, %v3357_v44  ;;  %v3377_v9 = vmul.f32 0.7978846, %v3361_v7  ;;  %v3353_v5 = vmul.f32 %v3337_v35, %v6182_v57 }
 0x86e   : > { %v4898_v2 = vpop.eup %4897  ;;  %v3402_v60 = vadd.f32 1.0, %v4896_v18  ;;  %v3363_v38 = vadd.f32 %v3347_v34, %v6158_v61  ;;  %v3350_v63 = vmul.f32 %v3334_v37, %v6167_v29  ;;  %v3367_v1 = vadd.f32 %v3351_v12, %v6179_v22 }
 0x86f   : > { %v4900_v39 = vpop.eup %4899  ;;  %v3404_v25 = vadd.f32 1.0, %v4898_v2  ;;  %4907 = vtanh.f32 %v3373_v49  ;;  %v3352_v6 = vmul.f32 %v3336_v43, %v6172_v53  ;;  %v3365_v58 = vadd.f32 %v3349_v46, %v6164_v54 }
 0x870   : > { %v4902_v51 = vpop.eup %4901  ;;  %v3406_v55 = vadd.f32 1.0, %v4900_v39  ;;  %4909 = vtanh.f32 %v3377_v9  ;;  %v3379_v30 = vmul.f32 0.7978846, %v3363_v38  ;;  %v3418_v52 = vmul.f32 %v3402_v60, %v6136_v3 }
 0x871   : > { %v3408_v10 = vadd.f32 1.0, %v4902_v51  ;;  %v3383_v8 = vmul.f32 0.7978846, %v3367_v1  ;;  %v3420_v59 = vmul.f32 %v3404_v25, %v6141_v42  ;;  %v3369_v4 = vadd.f32 %v3353_v5, %v6182_v57 }
 0x872   : > { %v3422_v28 = vmul.f32 %v3406_v55, %v3294_v47  ;;  %4911 = vtanh.f32 %v3379_v30  ;;  %v3381_v23 = vmul.f32 0.7978846, %v3365_v58  ;;  %v3362_v31 = vadd.f32 %v3346_v11, %v6147_v16 }
 0x873   : > { %v3424_v41 = vmul.f32 %v3408_v10, %v3296_v32  ;;  %4913 = vtanh.f32 %v3383_v8  ;;  %v3385_v14 = vmul.f32 0.7978846, %v3369_v4  ;;  %v3366_v33 = vadd.f32 %v3350_v63, %v6167_v29 }
 0x874   : > { %v4217_v26 = vpack.c.bf16 %v3422_v28, %v3418_v52  ;;  %4915 = vtanh.f32 %v3381_v23  ;;  %v3364_v3 = vadd.f32 %v3348_v48, %v6153_v56  ;;  %v3378_v15 = vmul.f32 0.7978846, %v3362_v31 }
 0x875   : > { %v4219_v0 = vpack.c.bf16 %v3424_v41, %v3420_v59  ;;  %4917 = vtanh.f32 %v3385_v14  ;;  %v3382_v42 = vmul.f32 0.7978846, %v3366_v33  ;;  %v3368_v32 = vadd.f32 %v3352_v6, %v6172_v53 }
 0x876   : > { %v4904_v47 = vpop.eup %4903  ;;  %v3291_v34 = vmul.f32 0.5, %v6121_v13  ;;  %v3380_v35 = vmul.f32 0.7978846, %v3364_v3  ;;  %v3295_v50 = vmul.f32 0.5, %v6128_v62  ;;  %4919 = vtanh.f32 %v3378_v15 }
 0x877   : > { %v4906_v17 = vpop.eup %4905  ;;  %v3403_v27 = vadd.f32 1.0, %v4904_v47  ;;  %v3384_v11 = vmul.f32 0.7978846, %v3368_v32  ;;  %4921 = vtanh.f32 %v3382_v42  ;;  %v3293_v46 = vmul.f32 0.5, %v6131_v20 }
 0x878   : > { %v3407_v18 = vadd.f32 1.0, %v4906_v17  ;;  %4923 = vtanh.f32 %v3380_v35  ;;  %v3297_v43 = vmul.f32 0.5, %v6134_v24  ;;  %v3299_v48 = vmul.f32 0.5, %v6158_v61 }
 0x879   : > { %v4908_v37 = vpop.eup %4907  ;;  %v3419_v44 = vmul.f32 %v3403_v27, %v3291_v34  ;;  %4925 = vtanh.f32 %v3384_v11  ;;  %v3303_v5 = vmul.f32 0.5, %v6179_v22  ;;  %v3301_v1 = vmul.f32 0.5, %v6164_v54 }
 0x87a   : > { %v4910_v36 = vpop.eup %4909  ;;  %v3423_v7 = vmul.f32 %v3407_v18, %v3295_v50  ;;  %v3405_v2 = vadd.f32 1.0, %v4908_v37  ;;  %v3305_v6 = vmul.f32 0.5, %v6182_v57  ;;  %v3298_v59 = vmul.f32 0.5, %v6147_v16 }
 0x87b   : > { %v3409_v12 = vadd.f32 1.0, %v4910_v36  ;;  %v3302_v41 = vmul.f32 0.5, %v6167_v29  ;;  %v3300_v54 = vmul.f32 0.5, %v6153_v56  ;;  %v4162_v29 = vld [vmem:[%s6310_s12] ss:$0 sm:$0xff] }
 0x87c   : > { %v4912_v13 = vpop.eup %4911  ;;  %v4218_v49 = vpack.c.bf16 %v3423_v7, %v3419_v44  ;;  %v3421_v62 = vmul.f32 %v3405_v2, %v3293_v46 }
 0x87d   : > { %v4914_v9 = vpop.eup %4913  ;;  %v3425_v60 = vmul.f32 %v3409_v12, %v3297_v43  ;;  %v3411_v39 = vadd.f32 1.0, %v4912_v13 }
 0x87e   : > { %3793 = vmatprep.mubr.bf16.mxu0 %v4218_v49  ;;  %v3415_v25 = vadd.f32 1.0, %v4914_v9  ;;  %v4916_v38 = vpop.eup %4915 }
 0x87f   : > { %v4220_v51 = vpack.c.bf16 %v3425_v60, %v3421_v62  ;;  %3794 = vmatmul.mubr.bf16.vlgmr.msra.gmra.mrb[84].mxu0 %v4217_v26  ;;  %v4918_v20 = vpop.eup %4917  ;;  %v3427_v63 = vmul.f32 %v3411_v39, %v3299_v48  ;;  %v3413_v55 = vadd.f32 1.0, %v4916_v38 }
 0x880   : > { %v3431_v24 = vmul.f32 %v3415_v25, %v3303_v5  ;;  %v3417_v10 = vadd.f32 1.0, %v4918_v20  ;;  %v4920_v30 = vpop.eup %4919 }
 0x881   : > { %3842 = vmatprep.mubr.bf16.mxu1 %v4220_v51  ;;  %v4922_v61 = vpop.eup %4921  ;;  %v3429_v28 = vmul.f32 %v3413_v55, %v3301_v1  ;;  %v3410_v8 = vadd.f32 1.0, %v4920_v30 }
 0x882   : > { %3843 = vmatmul.mubr.bf16.vlgmr.msra.gmra.mrb[76].mxu1 %v4219_v0  ;;  %v4222_v52 = vpack.c.bf16 %v3431_v24, %v3427_v63  ;;  %v3433_v22 = vmul.f32 %v3417_v10, %v3305_v6  ;;  %v4924_v58 = vpop.eup %4923  ;;  %v3414_v4 = vadd.f32 1.0, %v4922_v61  ;;  %v3304_v0 = vmul.f32 0.5, %v6172_v53 }
 0x883   : > { %v4926_v26 = vpop.eup %4925  ;;  %v3412_v57 = vadd.f32 1.0, %v4924_v58  ;;  %v3426_v14 = vmul.f32 %v3410_v8, %v3298_v59 }
 0x884   : > { %3801 = vmatprep.mubr.bf16.mxu0 %v4222_v52  ;;  %v4224_v23 = vpack.c.bf16 %v3433_v22, %v3429_v28  ;;  %v3430_v31 = vmul.f32 %v3414_v4, %v3302_v41  ;;  %v3416_v33 = vadd.f32 1.0, %v4926_v26 }
 0x885   : > { %v3428_v47 = vmul.f32 %v3412_v57, %v3300_v54 }
 0x886   : > { %3850 = vmatprep.mubr.bf16.mxu1 %v4224_v23  ;;  %v4221_v3 = vpack.c.bf16 %v3430_v31, %v3426_v14  ;;  %v3432_v15 = vmul.f32 %v3416_v33, %v3304_v0 }
 0x888   : > { %3802 = vmatmul.mubr.bf16.gmra.mrb[88].mxu0 %v4221_v3  ;;  %v4223_v42 = vpack.c.bf16 %v3432_v15, %v3428_v47 }
 0x88a   : > { %3851 = vmatmul.mubr.bf16.gmra.mrb[80].mxu1 %v4223_v42 }
 0x952   : > { %v4346_v16 = vpop.f32.mrb[84].mxu0 }
 0x953   : > { %v4347_v32 = vpop.f32.mrb[85].mxu0 }
 0x954   : > { %v4348_v56 = vadd.f32 %v4347_v32, %v4346_v16  ;;  %v4349_v17 = vpop.f32.mrb[86].mxu0 }
 0x955   : > { %v4374_v34 = vpop.f32.mrb[76].mxu1  ;;  %v4350_v27 = vpop.f32.mrb[87].mxu0 }
 0x956   : > { %v3796_v35 = vadd.f32 %v4348_v56, %v4162_v29  ;;  %v4375_v53 = vpop.f32.mrb[77].mxu1  ;;  %v4351_v50 = vadd.f32 %v4350_v27, %v4349_v17 }
 0x957   : > { %v4376_v18 = vadd.f32 %v4375_v53, %v4374_v34  ;;  %v4377_v11 = vpop.f32.mrb[78].mxu1 }
 0x958   : > { %v3799_v37 = vadd.f32 %v4351_v50, %v4162_v29  ;;  %v4378_v36 = vpop.f32.mrb[79].mxu1 }
 0x959   : > { %v3845_v44 = vadd.f32 %v4376_v18, %v3796_v35  ;;  %v4379_v7 = vadd.f32 %v4378_v36, %v4377_v11  ;;  %v4204_v35 = vld [vmem:[%s6312_s14] ss:$0 sm:$0xff] }
 0x95b   : > { %v3848_v2 = vadd.f32 %v4379_v7, %v3799_v37  ;;  %v3859_v46 = vadd.f32 %v3845_v44, %v5989_v45  ;;  %v4352_v43 = vpop.f32.mrb[88].mxu0 }
 0x95c   : > { %v4353_v13 = vpop.f32.mrb[89].mxu0 }
 0x95d   : > { %3865 = vadd.xlane.f32.xlu1 %v3859_v46  ;;  %v3860_v12 = vadd.f32 %v3848_v2, %v5991_v40  ;;  %v4380_v49 = vpop.f32.mrb[80].mxu1  ;;  %v4354_v9 = vadd.f32 %v4353_v13, %v4352_v43  ;;  %v4355_v62 = vpop.f32.mrb[90].mxu0 }
 0x95e   : > { %v4381_v60 = vpop.f32.mrb[81].mxu1  ;;  %v4356_v39 = vpop.f32.mrb[91].mxu0 }
 0x95f   : > { %3867 = vadd.xlane.f32.xlu0 %v3860_v12  ;;  %v3804_v48 = vadd.f32 %v4354_v9, %v4162_v29  ;;  %v4382_v5 = vadd.f32 %v4381_v60, %v4380_v49  ;;  %v4383_v25 = vpop.f32.mrb[82].mxu1  ;;  %v4357_v38 = vadd.f32 %v4356_v39, %v4355_v62 }
 0x960   : > { %v4384_v51 = vpop.f32.mrb[83].mxu1 }
 0x961   : > { %v3853_v20 = vadd.f32 %v4382_v5, %v3804_v48  ;;  %v3807_v63 = vadd.f32 %v4357_v38, %v4162_v29  ;;  %v4385_v24 = vadd.f32 %v4384_v51, %v4383_v25  ;;  %v4203_v29 = vld [vmem:[%s6311_s13] ss:$0 sm:$0xff] }
 0x963   : > { %v3856_v45 = vadd.f32 %v4385_v24, %v3807_v63  ;;  %v3861_v55 = vadd.f32 %v3853_v20, %v6001_v21 }
 0x965   : > { %3869 = vadd.xlane.f32.xlu1 %v3861_v55  ;;  %v3862_v40 = vadd.f32 %v3856_v45, %v5999_v19 }
 0x967   : > { %3871 = vadd.xlane.f32.xlu0 %v3862_v40 }
 0x9ea   : > { %v3866_v1 = vpop.xlane.xlu1 %3865 }
 0x9eb   : > { %v3873_v6 = vmul.f32 0.0078125, %v3866_v1 }
 0x9ec   : > { %v3868_v10 = vpop.xlane.xlu0 %3867 }
 0x9ed   : > { %v3877_v30 = vsub.f32 %v3859_v46, %v3873_v6  ;;  %v3874_v52 = vmul.f32 0.0078125, %v3868_v10 }
 0x9ef   : > { %v3878_v61 = vsub.f32 %v3860_v12, %v3874_v52  ;;  %v3881_v28 = vmul.f32 %v3877_v30, %v3877_v30 }
 0x9f1   : > { %3885 = vadd.xlane.f32.xlu1 %v3881_v28  ;;  %v3882_v22 = vmul.f32 %v3878_v61, %v3878_v61 }
 0x9f2   : > { %v3870_v8 = vpop.xlane.xlu1 %3869 }
 0x9f3   : > { %3887 = vadd.xlane.f32.xlu0 %v3882_v22  ;;  %v3875_v58 = vmul.f32 0.0078125, %v3870_v8 }
 0x9f4   : > { %v3872_v59 = vpop.xlane.xlu0 %3871 }
 0x9f5   : > { %v3879_v41 = vsub.f32 %v3861_v55, %v3875_v58  ;;  %v3876_v4 = vmul.f32 0.0078125, %v3872_v59 }
 0x9f7   : > { %v3880_v21 = vsub.f32 %v3862_v40, %v3876_v4  ;;  %v3883_v26 = vmul.f32 %v3879_v41, %v3879_v41 }
 0x9f9   : > { %3889 = vadd.xlane.f32.xlu1 %v3883_v26  ;;  %v3884_v19 = vmul.f32 %v3880_v21, %v3880_v21 }
 0x9fb   : > { %3891 = vadd.xlane.f32.xlu0 %v3884_v19 }
 0xa7e   : > { %v3886_v23 = vpop.xlane.xlu1 %3885 }
 0xa7f   : > { %v3893_v54 = vmul.f32 0.0078125, %v3886_v23 }
 0xa80   : > { %v3888_v57 = vpop.xlane.xlu0 %3887 }
 0xa81   : > { %v3897_v14 = vadd.f32 1e-12, %v3893_v54  ;;  %v3894_v31 = vmul.f32 0.0078125, %v3888_v57 }
 0xa83   : > { %4927 = vrsqrt.f32 %v3897_v14  ;;  %v3898_v0 = vadd.f32 1e-12, %v3894_v31 }
 0xa85   : > { %4929 = vrsqrt.f32 %v3898_v0 }
 0xa86   : > { %v3890_v33 = vpop.xlane.xlu1 %3889 }
 0xa87   : > { %v3895_v3 = vmul.f32 0.0078125, %v3890_v33 }
 0xa88   : > { %v3892_v47 = vpop.xlane.xlu0 %3891 }
 0xa89   : > { %v3899_v15 = vadd.f32 1e-12, %v3895_v3  ;;  %v3896_v42 = vmul.f32 0.0078125, %v3892_v47 }
 0xa8b   : > { %4931 = vrsqrt.f32 %v3899_v15  ;;  %v3900_v32 = vadd.f32 1e-12, %v3896_v42 }
 0xa8d   : > { %v4928_v16 = vpop.eup %4927  ;;  %4933 = vrsqrt.f32 %v3900_v32 }
 0xa8e   : > { %v3905_v56 = vmul.f32 %v4928_v16, %v3877_v30 }
 0xa8f   : > { %v4930_v17 = vpop.eup %4929 }
 0xa90   : > { %v3915_v34 = vmul.f32 %v4203_v29, %v3905_v56  ;;  %v3906_v27 = vmul.f32 %v4930_v17, %v3878_v61 }
 0xa92   : > { %v3916_v53 = vmul.f32 %v4203_v29, %v3906_v27  ;;  %v3925_v50 = vadd.f32 %v4204_v35, %v3915_v34 }
 0xa94   : > { %v3926_v18 = vadd.f32 %v4204_v35, %v3916_v53 }
 0xa95   : > { %v4932_v37 = vpop.eup %4931 }
 0xa96   : > { %v4237_v11 = vpack.c.bf16 %v3926_v18, %v3925_v50  ;;  %v3907_v36 = vmul.f32 %v4932_v37, %v3879_v41 }
 0xa97   : > { %v4934_v44 = vpop.eup %4933 }
 0xa98   : > { %4238 = vst [vmem:[%s540_s29] sm:$0xff] %v4237_v11   ;;  %v3917_v7 = vmul.f32 %v4203_v29, %v3907_v36  ;;  %v3908_v2 = vmul.f32 %v4934_v44, %v3880_v21 }
 0xa9a   : > { %v3918_v46 = vmul.f32 %v4203_v29, %v3908_v2  ;;  %v3927_v43 = vadd.f32 %v4204_v35, %v3917_v7 }
 0xa9c   : > { %v3928_v12 = vadd.f32 %v4204_v35, %v3918_v46 }
 0xa9e   : > { %v4242_v13 = vpack.c.bf16 %v3928_v12, %v3927_v43 }
 0xaa0   : > { %4245 = vst [vmem:[%s540_s29 + $0x8] sm:$0xff] %v4242_v13  }
 0xaa1   : > { %4978 = shalt.err (!%p4975_p4)
}
 0xaa2   : > { %s4979_s29 = scalar_lea.hbm %s6250_s17, 256  ;;  %s4983_s20 = scalar_lea.hbm %s6339_s28, 512 }
 0xaa3   : > { %p4980_p5 = scmp.ne.s32.totalorder %s6250_s17, %s4979_s29  ;;  %p4984_p1 = scmp.lt.u32.totalorder %s6250_s17, %s6339_s28 }
 0xaa4   : > { %p4985_p3 = scmp.lt.u32.totalorder %s4983_s20, %s4979_s29  ;;  %p4987_p6 = scmp.lt.u32.totalorder %s4979_s29, %s6250_s17 }
 0xaa5   : > { %p4981_p7 = pnand %p4980_p5, %p6340_p12 }
 0xaa6   : > { %p4986_p11 = por %p4985_p3, %p4984_p1 }
 0xaa7   : > { %p4982_p9 = pneg %p4981_p7 }
 0xaa8   : > { %p4988_p13 = por %p4987_p6, %p4986_p11 }
 0xaaa   : > { %p4989_p8 = pnand %p4988_p13, %p4982_p9 }
 0xaac   : > { %4992 = shalt.err (!%p4989_p8)
}
 0xaad   : > { %s5043_s0 = smov 4   ;;  %s6341_s30 = smov 64  }
 0xaae   : > { %4620 = dma.vmem_to_hbm [thread:$0]  (%p6340_p12), %s6252_s18, 256, %s6250_s17, %s3938_s27, %s6341_s30, %s6341_s30, %s5043_s0  }
 0xaaf PF: > { %s6342_s24 = sld [smem:[#allocation8_spill]]  ;;  %p6343_p10 = scmp.ne.s32.totalorder %s6334_s16, 0 }
 0xab0   : > { %p6344_p0 = scmp.ge.s32.totalorder %s5031_s21, 2 }
 0xab2   : > { %p4627_p2 = pnand %p6344_p0, %p6343_p10 }
 0xab5   : > { %s3966_s25 = sand.u32 1, %s6342_s24  }
 0xab6   : > { %s3967_s29 = scalar_lea.sflag [#allocation4], %s3966_s25 }
 0xab7   : > { %5014 = dma.done.wait (!%p4627_p2), %s3967_s29, 256  }
 0xab8   : > { %5016 = vsyncadd (!%p4627_p2), %s3967_s29, 4294967040  ;;  %s6345_s21 = sld [smem:[#allocation10_spill]]  ;;  %s6346_s15 = sld [smem:[#allocation9_spill]] }
 0xab9   : > { %s6347_s20 = sld [smem:[#allocation11_spill]]  ;;  %s6348_s18 = smov %s5023_s19 }
 0xabe   : > { %p28_p4 = scmp.ge.s32.totalorder %s6345_s21, 4   ;;  %s6349_s19 = smov %s6346_s15 }
 0xac0   :  { %30 = sbr.rel (!%p28_p4) target bundleno = 8 (0x8), region = 131 }
 0xac7   :  { %3972 = vsyncpa [#allocation3], 1 }
 0xac8   :  { %3974 = vsyncpa [#allocation3 + $0x1], 1 }
 0xac9   :  { %3975 = vsyncpa [#allocation4], 1 }
 0xaca   :  { %3977 = vsyncpa [#allocation4 + $0x1], 1 }

</bundles_post_ra>
